<compile_context>
chip_gen: v7x
topology: tpu7x:2x2x1
jax: 0.10.0
libtpu: 0.0.40
codegen_flags: <defaults>
</compile_context>

<pallas_src>
import functools

import jax
import jax.numpy as jnp
from jax.experimental import pallas as pl
from jax.experimental.pallas import tpu as pltpu

DISCR_FILTERS = 64
BN_EPS = 1e-5
_TM_MAX = 512  # rows per M tile


def _round_up(x, m):
    return (x + m - 1) // m * m


def _choose_m_tiling(m):
    """Return (mp, tm): padded row count and tile size, tm | mp, mp % 8 == 0."""
    if m <= _TM_MAX:
        tm = _round_up(max(m, 1), 8)
        return tm, tm
    return _round_up(m, _TM_MAX), _TM_MAX


# ---------------------------------------------------------------------------
# Pallas kernels
# ---------------------------------------------------------------------------
def _conv_bias_act_kernel(x_ref, w_ref, b_ref, o_ref, *, act):
    """One M-tile of the conv matmul (full K in one block) + bias + act.

    x_ref: (tm, K) bf16 patches, w_ref: (K, Cout) bf16, b_ref: (1, Cout) f32.
    """
    acc = jnp.dot(x_ref[...], w_ref[...], preferred_element_type=jnp.float32)
    acc = acc + b_ref[...]
    if act == "relu":
        acc = jnp.maximum(acc, 0.0)
    o_ref[...] = acc.astype(o_ref.dtype)


def _conv_stats_kernel(x_ref, w_ref, o_ref, stats_ref):
    """Conv matmul tile (no bias / no act) + per-channel sum & sum-of-squares.

    Used for convs that feed BatchNorm: bias is cancelled by BN's mean
    subtraction, and the stats let BN skip a full re-read of the activation.
    stats_ref is an (8, Cout) f32 block: row 0 = sum, row 1 = sum of squares.
    """
    acc = jnp.dot(x_ref[...], w_ref[...], preferred_element_type=jnp.float32)
    o_ref[...] = acc.astype(o_ref.dtype)
    stats_ref[...] = jnp.zeros_like(stats_ref)
    stats_ref[0:1, :] = jnp.sum(acc, axis=0, keepdims=True)
    stats_ref[1:2, :] = jnp.sum(acc * acc, axis=0, keepdims=True)


def _bn_relu_kernel(x_ref, scale_ref, shift_ref, o_ref):
    """Elementwise folded BatchNorm (per-channel affine) + ReLU, f32 math."""
    x = x_ref[...].astype(jnp.float32)
    y = jnp.maximum(x * scale_ref[...] + shift_ref[...], 0.0)
    o_ref[...] = y.astype(o_ref.dtype)


def _head_kernel(x_ref, w_ref, b_ref, o_ref):
    """Final 4x4 valid conv with Cout=1: per-sample dot + bias + sigmoid."""
    x = x_ref[...].astype(jnp.float32)       # (tn, K)
    w = w_ref[...].astype(jnp.float32)       # (1, K)
    s = jnp.sum(x * w, axis=-1, keepdims=True)  # (tn, 1)
    o_ref[...] = jax.nn.sigmoid(s + b_ref[0])


# ---------------------------------------------------------------------------
# JAX glue: im2col + wrappers around pallas_call
# ---------------------------------------------------------------------------
def _im2col(x_nhwc, kh, kw, stride, pad):
    """Extract conv patches. Returns ([N, Ho, Wo, kh*kw*Cin], Ho, Wo)."""
    x = jnp.pad(x_nhwc, ((0, 0), (pad, pad), (pad, pad), (0, 0)))
    _, H, W, _ = x.shape
    ho = (H - kh) // stride + 1
    wo = (W - kw) // stride + 1
    blocks = []
    for i in range(kh):
        for j in range(kw):
            blocks.append(
                x[:, i:i + ho * stride:stride, j:j + wo * stride:stride, :])
    patches = jnp.concatenate(blocks, axis=-1)  # ordering: (i, j, cin)
    return patches, ho, wo


def _conv_matmul(x_nhwc, w_mat, bias, *, stride, pad, act="none",
                 emit_stats=False):
    """im2col conv as an M-tiled Pallas matmul with a single full-K block.

    w_mat: (K, Cout) bf16, K = kh*kw*Cin in (kh, kw, cin) row order (already
    prepared at init time). Returns (out2d_padded (mp, Cout) bf16,
    stats_or_None, (m, ho, wo)).
    """
    k, cout = w_mat.shape
    kh = kw = 4
    n = x_nhwc.shape[0]
    patches, ho, wo = _im2col(x_nhwc, kh, kw, stride, pad)

    m = n * ho * wo
    xm = patches.reshape(m, k).astype(jnp.bfloat16)

    mp, tm = _choose_m_tiling(m)
    if mp != m:
        xm = jnp.pad(xm, ((0, mp - m), (0, 0)))
    n_tiles = mp // tm
    grid = (n_tiles,)

    x_spec = pl.BlockSpec((tm, k), lambda i: (i, 0))
    w_spec = pl.BlockSpec((k, cout), lambda i: (0, 0))
    o_spec = pl.BlockSpec((tm, cout), lambda i: (i, 0))
    cparams = pltpu.CompilerParams(dimension_semantics=("parallel",))

    if emit_stats:
        out2d, stats = pl.pallas_call(
            _conv_stats_kernel,
            out_shape=(
                jax.ShapeDtypeStruct((mp, cout), jnp.bfloat16),
                jax.ShapeDtypeStruct((n_tiles * 8, cout), jnp.float32),
            ),
            grid=grid,
            in_specs=[x_spec, w_spec],
            out_specs=(o_spec, pl.BlockSpec((8, cout), lambda i: (i, 0))),
            compiler_params=cparams,
        )(xm, w_mat)
        stats = stats.reshape(n_tiles, 8, cout)
        ch_sum = jnp.sum(stats[:, 0, :], axis=0)
        ch_sumsq = jnp.sum(stats[:, 1, :], axis=0)
        return out2d, (ch_sum, ch_sumsq), (m, ho, wo)

    b2d = bias.reshape(1, cout).astype(jnp.float32)
    out2d = pl.pallas_call(
        functools.partial(_conv_bias_act_kernel, act=act),
        out_shape=jax.ShapeDtypeStruct((mp, cout), jnp.bfloat16),
        grid=grid,
        in_specs=[x_spec, w_spec, pl.BlockSpec((1, cout), lambda i: (0, 0))],
        out_specs=o_spec,
        compiler_params=cparams,
    )(xm, w_mat, b2d)
    return out2d, None, (m, ho, wo)


def _batchnorm_relu(x2d, ch_sum, ch_sumsq, m, gamma, beta, eps=BN_EPS):
    """BatchNorm2d in training mode (batch statistics over N,H,W) + ReLU.

    x2d: (mp, C) bf16 padded conv output (padded tail rows are exact zeros and
    contribute nothing to the sums). ch_sum/ch_sumsq are per-channel sums over
    the m real rows (produced inside the conv kernel).
    """
    mp, c = x2d.shape
    mean = ch_sum / m
    var = ch_sumsq / m - mean * mean          # biased var, as BN uses in-batch
    scale = gamma * jax.lax.rsqrt(var + eps)
    shift = beta - mean * scale

    tm = _choose_m_tiling(mp)[1]              # tm divides mp by construction
    grid = (mp // tm,)

    return pl.pallas_call(
        _bn_relu_kernel,
        out_shape=jax.ShapeDtypeStruct((mp, c), jnp.bfloat16),
        grid=grid,
        in_specs=[
            pl.BlockSpec((tm, c), lambda i: (i, 0)),
            pl.BlockSpec((1, c), lambda i: (0, 0)),
            pl.BlockSpec((1, c), lambda i: (0, 0)),
        ],
        out_specs=pl.BlockSpec((tm, c), lambda i: (i, 0)),
        compiler_params=pltpu.CompilerParams(
            dimension_semantics=("parallel",)),
    )(x2d,
      scale.reshape(1, c).astype(jnp.float32),
      shift.reshape(1, c).astype(jnp.float32))


def _head_sigmoid(x_nhwc, w_mat, bias):
    """Final conv (kernel 4, stride 1, pad 0 over a 4x4 map, Cout=1) + sigmoid.

    Computed as a per-sample dot product of length kh*kw*Cin — avoids padding
    Cout 1 -> 128 and the associated wasted MXU/HBM work.
    """
    n, h, w, c = x_nhwc.shape
    k = h * w * c
    # NHWC flatten order (h, w, c) matches the (kh, kw, cin) weight row order.
    xm = x_nhwc.reshape(n, k).astype(jnp.bfloat16)
    np_, tn = _choose_m_tiling(n)
    if np_ != n:
        xm = jnp.pad(xm, ((0, np_ - n), (0, 0)))

    out = pl.pallas_call(
        _head_kernel,
        out_shape=jax.ShapeDtypeStruct((np_, 1), jnp.float32),
        grid=(np_ // tn,),
        in_specs=[
            pl.BlockSpec((tn, k), lambda i: (i, 0)),
            pl.BlockSpec((1, k), lambda i: (0, 0)),
            pl.BlockSpec(memory_space=pltpu.MemorySpace.SMEM),
        ],
        out_specs=pl.BlockSpec((tn, 1), lambda i: (i, 0)),
        compiler_params=pltpu.CompilerParams(
            dimension_semantics=("parallel",)),
    )(xm, w_mat.reshape(1, k), bias.astype(jnp.float32))
    return out[:n, 0]


# ---------------------------------------------------------------------------
# Parameters
# ---------------------------------------------------------------------------
def init_params(key, in_channels):
    """Parameters in PyTorch layout (Conv2d weight: [Cout, Cin, KH, KW])."""
    nf = DISCR_FILTERS
    ks = jax.random.split(key, 5)
    p = {}
    chans = [(nf, in_channels), (nf * 2, nf), (nf * 4, nf * 2),
             (nf * 8, nf * 4), (1, nf * 8)]
    for idx, (co, ci) in enumerate(chans, start=1):
        p[f"w{idx}"] = 0.02 * jax.random.normal(ks[idx - 1], (co, ci, 4, 4),
                                                jnp.float32)
        p[f"b{idx}"] = jnp.zeros((co,), jnp.float32)
    # BatchNorm affine params (layers 2, 3, 4): default init gamma=1, beta=0
    for idx, co in [(2, nf * 2), (3, nf * 4), (4, nf * 8)]:
        p[f"gamma{idx}"] = jnp.ones((co,), jnp.float32)
        p[f"beta{idx}"] = jnp.zeros((co,), jnp.float32)
    return p


def prepare_params(params):
    """One-time conversion of PyTorch-layout weights to matmul layout:
    (Cout, Cin, KH, KW) -> (KH*KW*Cin, Cout) rows in (kh, kw, cin) order,
    cast to bf16. Done once, outside the per-forward work."""
    prepared = {}
    for i in range(1, 6):
        w = params[f"w{i}"]
        co, ci, kh, kw = w.shape
        prepared[f"w{i}"] = (jnp.transpose(w, (2, 3, 1, 0))
                             .reshape(kh * kw * ci, co)
                             .astype(jnp.bfloat16))
        prepared[f"b{i}"] = params[f"b{i}"]  # b2..b4 unused (cancelled by BN)
    for i in (2, 3, 4):
        prepared[f"gamma{i}"] = params[f"gamma{i}"]
        prepared[f"beta{i}"] = params[f"beta{i}"]
    return prepared


# ---------------------------------------------------------------------------
# Discriminator forward
# ---------------------------------------------------------------------------
def discriminator_forward(params, x_nchw):
    # layout: input NCHW (PyTorch convention) -> internal NHWC
    x = jnp.transpose(x_nchw, (0, 2, 3, 1)).astype(jnp.float32)
    n = x.shape[0]

    # Conv1 + bias + ReLU
    out2d, _, (m, ho, wo) = _conv_matmul(
        x, params["w1"], params["b1"], stride=2, pad=1, act="relu")
    x = out2d[:m].reshape(n, ho, wo, -1)

    # Conv2..4 (bias skipped: cancelled by BatchNorm) + BatchNorm + ReLU
    for i in (2, 3, 4):
        out2d, (s1, s2), (m, ho, wo) = _conv_matmul(
            x, params[f"w{i}"], None, stride=2, pad=1, emit_stats=True)
        out2d = _batchnorm_relu(out2d, s1, s2, m,
                                params[f"gamma{i}"], params[f"beta{i}"])
        x = out2d[:m].reshape(n, ho, wo, -1)

    # Conv5 (4x4 valid, stride 1 -> 1x1 spatial, Cout=1) + Sigmoid
    out = _head_sigmoid(x, params["w5"], params["b5"])
    # [N, 1, 1, 1] -> view(-1, 1).squeeze(1) -> (N,)
    return out


if __name__ == "__main__":
    # The architecture (4x stride-2 convs then a valid 4x4 conv) requires a
    # 64x64 spatial input for the final 1x1 output, as in standard DCGAN.
    N, C, H, W = 2, 3, 64, 64

    key = jax.random.PRNGKey(0)
    k_params, k_x = jax.random.split(key)
    params = prepare_params(init_params(k_params, in_channels=C))
    x = jax.random.normal(k_x, (N, C, H, W), jnp.float32)

    fwd = jax.jit(discriminator_forward)
    out = jax.block_until_ready(fwd(params, x))

    assert out.shape == (N,), out.shape
    assert bool(jnp.all(jnp.isfinite(out)))
    assert bool(jnp.all((out >= 0.0) & (out <= 1.0)))
    print("KERNEL_OK")
</pallas_src>

<mosaic_0001>
module attributes {stable_mosaic.version = 11 : i64} {
  func.func @_conv_bias_act_kernel(%arg0: i32, %arg1: memref<512x48xbf16, #tpu.memory_space<vmem>>, %arg2: memref<48x64xbf16, #tpu.memory_space<vmem>>, %arg3: memref<1x64xf32, #tpu.memory_space<vmem>>, %arg4: memref<512x64xbf16, #tpu.memory_space<vmem>>) attributes {dimension_semantics = [#tpu.dimension_semantics<parallel>], iteration_bounds = array<i64: 4>, scalar_prefetch = 0 : i64, scratch_operands = 0 : i64, tpu.core_type = #tpu.core_type<tc>, window_params = [{transform_indices = @transform_0, window_bounds = array<i64: 512, 48>}, {pipeline_mode = #tpu.pipeline_mode<synchronous>, transform_indices = @transform_1, window_bounds = array<i64: 48, 64>}, {pipeline_mode = #tpu.pipeline_mode<synchronous>, transform_indices = @transform_2, window_bounds = array<i64: 1, 64>}, {transform_indices = @transform_3, window_bounds = array<i64: 512, 64>}]} {
    %c0 = arith.constant 0 : index
    %c0_0 = arith.constant 0 : index
    %0 = vector.load %arg1[%c0, %c0_0] : memref<512x48xbf16, #tpu.memory_space<vmem>>, vector<512x48xbf16>
    %c0_1 = arith.constant 0 : index
    %c0_2 = arith.constant 0 : index
    %1 = vector.load %arg2[%c0_1, %c0_2] : memref<48x64xbf16, #tpu.memory_space<vmem>>, vector<48x64xbf16>
    %cst = arith.constant dense<0.000000e+00> : vector<512x64xf32>
    %2 = tpu.matmul %0, %1, %cst {dimension_numbers = #tpu.dot_dimension_numbers<[1], [0], [0], [1], [0, 0, 1, 1], [], []>} : vector<512x48xbf16>, vector<48x64xbf16>, vector<512x64xf32> -> vector<512x64xf32>
    %c0_3 = arith.constant 0 : index
    %c0_4 = arith.constant 0 : index
    %3 = vector.load %arg3[%c0_3, %c0_4] : memref<1x64xf32, #tpu.memory_space<vmem>>, vector<1x64xf32>
    %4 = vector.broadcast %3 : vector<1x64xf32> to vector<512x64xf32>
    %5 = arith.addf %2, %4 : vector<512x64xf32>
    %cst_5 = arith.constant 0.000000e+00 : f32
    %6 = vector.broadcast %cst_5 : f32 to vector<512x64xf32>
    %7 = arith.maximumf %5, %6 : vector<512x64xf32>
    %8 = arith.truncf %7 : vector<512x64xf32> to vector<512x64xbf16>
    %c0_6 = arith.constant 0 : index
    %c0_7 = arith.constant 0 : index
    %9 = vector.load %arg4[%c0_6, %c0_7] : memref<512x64xbf16, #tpu.memory_space<vmem>>, vector<512x64xbf16>
    tpu.vector_store %arg4[%c0_6, %c0_7], %8 {strides = array<i32>} : memref<512x64xbf16, #tpu.memory_space<vmem>>, vector<512x64xbf16>,
    return
  }
  func.func @transform_0(%arg0: i32) -> (i32, i32) {
    %c0_i32 = arith.constant 0 : i32
    %c0_i32_0 = arith.constant 0 : i32
    return %arg0, %c0_i32 : i32, i32
  }
  func.func @transform_1(%arg0: i32) -> (i32, i32) {
    %c0_i32 = arith.constant 0 : i32
    %c0_i32_0 = arith.constant 0 : i32
    %c0_i32_1 = arith.constant 0 : i32
    return %c0_i32, %c0_i32_0 : i32, i32
  }
  func.func @transform_2(%arg0: i32) -> (i32, i32) {
    %c0_i32 = arith.constant 0 : i32
    %c0_i32_0 = arith.constant 0 : i32
    %c0_i32_1 = arith.constant 0 : i32
    return %c0_i32, %c0_i32_0 : i32, i32
  }
  func.func @transform_3(%arg0: i32) -> (i32, i32) {
    %c0_i32 = arith.constant 0 : i32
    %c0_i32_0 = arith.constant 0 : i32
    return %arg0, %c0_i32 : i32, i32
  }
}

module attributes {stable_mosaic.version = 11 : i64} {
  func.func @_bn_relu_kernel(%arg0: i32, %arg1: memref<512x128xbf16, #tpu.memory_space<vmem>>, %arg2: memref<1x128xf32, #tpu.memory_space<vmem>>, %arg3: memref<1x128xf32, #tpu.memory_space<vmem>>, %arg4: memref<512x128xbf16, #tpu.memory_space<vmem>>) attributes {dimension_semantics = [#tpu.dimension_semantics<parallel>], iteration_bounds = array<i64: 1>, scalar_prefetch = 0 : i64, scratch_operands = 0 : i64, tpu.core_type = #tpu.core_type<tc>, window_params = [{transform_indices = @transform_0, window_bounds = array<i64: 512, 128>}, {pipeline_mode = #tpu.pipeline_mode<synchronous>, transform_indices = @transform_1, window_bounds = array<i64: 1, 128>}, {pipeline_mode = #tpu.pipeline_mode<synchronous>, transform_indices = @transform_2, window_bounds = array<i64: 1, 128>}, {transform_indices = @transform_3, window_bounds = array<i64: 512, 128>}]} {
    %c0 = arith.constant 0 : index
    %c0_0 = arith.constant 0 : index
    %0 = vector.load %arg1[%c0, %c0_0] : memref<512x128xbf16, #tpu.memory_space<vmem>>, vector<512x128xbf16>
    %1 = arith.extf %0 : vector<512x128xbf16> to vector<512x128xf32>
    %c0_1 = arith.constant 0 : index
    %c0_2 = arith.constant 0 : index
    %2 = vector.load %arg2[%c0_1, %c0_2] : memref<1x128xf32, #tpu.memory_space<vmem>>, vector<1x128xf32>
    %3 = vector.broadcast %2 : vector<1x128xf32> to vector<512x128xf32>
    %4 = arith.mulf %1, %3 : vector<512x128xf32>
    %c0_3 = arith.constant 0 : index
    %c0_4 = arith.constant 0 : index
    %5 = vector.load %arg3[%c0_3, %c0_4] : memref<1x128xf32, #tpu.memory_space<vmem>>, vector<1x128xf32>
    %6 = vector.broadcast %5 : vector<1x128xf32> to vector<512x128xf32>
    %7 = arith.addf %4, %6 : vector<512x128xf32>
    %cst = arith.constant 0.000000e+00 : f32
    %8 = vector.broadcast %cst : f32 to vector<512x128xf32>
    %9 = arith.maximumf %7, %8 : vector<512x128xf32>
    %10 = arith.truncf %9 : vector<512x128xf32> to vector<512x128xbf16>
    %c0_5 = arith.constant 0 : index
    %c0_6 = arith.constant 0 : index
    %11 = vector.load %arg4[%c0_5, %c0_6] : memref<512x128xbf16, #tpu.memory_space<vmem>>, vector<512x128xbf16>
    tpu.vector_store %arg4[%c0_5, %c0_6], %10 {strides = array<i32>} : memref<512x128xbf16, #tpu.memory_space<vmem>>, vector<512x128xbf16>,
    return
  }
  func.func @transform_0(%arg0: i32) -> (i32, i32) {
    %c0_i32 = arith.constant 0 : i32
    %c0_i32_0 = arith.constant 0 : i32
    return %arg0, %c0_i32 : i32, i32
  }
  func.func @transform_1(%arg0: i32) -> (i32, i32) {
    %c0_i32 = arith.constant 0 : i32
    %c0_i32_0 = arith.constant 0 : i32
    %c0_i32_1 = arith.constant 0 : i32
    return %c0_i32, %c0_i32_0 : i32, i32
  }
  func.func @transform_2(%arg0: i32) -> (i32, i32) {
    %c0_i32 = arith.constant 0 : i32
    %c0_i32_0 = arith.constant 0 : i32
    %c0_i32_1 = arith.constant 0 : i32
    return %c0_i32, %c0_i32_0 : i32, i32
  }
  func.func @transform_3(%arg0: i32) -> (i32, i32) {
    %c0_i32 = arith.constant 0 : i32
    %c0_i32_0 = arith.constant 0 : i32
    return %arg0, %c0_i32 : i32, i32
  }
}

module attributes {stable_mosaic.version = 11 : i64} {
  func.func @_conv_stats_kernel(%arg0: i32, %arg1: memref<512x1024xbf16, #tpu.memory_space<vmem>>, %arg2: memref<1024x128xbf16, #tpu.memory_space<vmem>>, %arg3: memref<512x128xbf16, #tpu.memory_space<vmem>>, %arg4: memref<8x128xf32, #tpu.memory_space<vmem>>) attributes {dimension_semantics = [#tpu.dimension_semantics<parallel>], iteration_bounds = array<i64: 1>, scalar_prefetch = 0 : i64, scratch_operands = 0 : i64, tpu.core_type = #tpu.core_type<tc>, window_params = [{transform_indices = @transform_0, window_bounds = array<i64: 512, 1024>}, {pipeline_mode = #tpu.pipeline_mode<synchronous>, transform_indices = @transform_1, window_bounds = array<i64: 1024, 128>}, {transform_indices = @transform_2, window_bounds = array<i64: 512, 128>}, {transform_indices = @transform_3, window_bounds = array<i64: 8, 128>}]} {
    %c0 = arith.constant 0 : index
    %c0_0 = arith.constant 0 : index
    %0 = vector.load %arg1[%c0, %c0_0] : memref<512x1024xbf16, #tpu.memory_space<vmem>>, vector<512x1024xbf16>
    %c0_1 = arith.constant 0 : index
    %c0_2 = arith.constant 0 : index
    %1 = vector.load %arg2[%c0_1, %c0_2] : memref<1024x128xbf16, #tpu.memory_space<vmem>>, vector<1024x128xbf16>
    %cst = arith.constant dense<0.000000e+00> : vector<512x128xf32>
    %2 = tpu.matmul %0, %1, %cst {dimension_numbers = #tpu.dot_dimension_numbers<[1], [0], [0], [1], [0, 0, 1, 1], [], []>} : vector<512x1024xbf16>, vector<1024x128xbf16>, vector<512x128xf32> -> vector<512x128xf32>
    %3 = arith.truncf %2 : vector<512x128xf32> to vector<512x128xbf16>
    %c0_3 = arith.constant 0 : index
    %c0_4 = arith.constant 0 : index
    %4 = vector.load %arg3[%c0_3, %c0_4] : memref<512x128xbf16, #tpu.memory_space<vmem>>, vector<512x128xbf16>
    tpu.vector_store %arg3[%c0_3, %c0_4], %3 {strides = array<i32>} : memref<512x128xbf16, #tpu.memory_space<vmem>>, vector<512x128xbf16>,
    %cst_5 = arith.constant 0.000000e+00 : f32
    %5 = vector.broadcast %cst_5 : f32 to vector<8x128xf32>
    %c0_6 = arith.constant 0 : index
    %c0_7 = arith.constant 0 : index
    %6 = vector.load %arg4[%c0_6, %c0_7] : memref<8x128xf32, #tpu.memory_space<vmem>>, vector<8x128xf32>
    tpu.vector_store %arg4[%c0_6, %c0_7], %5 {strides = array<i32>} : memref<8x128xf32, #tpu.memory_space<vmem>>, vector<8x128xf32>,
    %cst_8 = arith.constant dense<0.000000e+00> : vector<128xf32>
    %7 = vector.multi_reduction <add>, %2, %cst_8 [0] : vector<512x128xf32> to vector<128xf32>
    %8 = vector.shape_cast %7 : vector<128xf32> to vector<1x128xf32>
    %c0_9 = arith.constant 0 : index
    %c0_10 = arith.constant 0 : index
    %9 = vector.load %arg4[%c0_9, %c0_10] : memref<8x128xf32, #tpu.memory_space<vmem>>, vector<1x128xf32>
    tpu.vector_store %arg4[%c0_9, %c0_10], %8 {strides = array<i32>} : memref<8x128xf32, #tpu.memory_space<vmem>>, vector<1x128xf32>,
    %10 = arith.mulf %2, %2 : vector<512x128xf32>
    %cst_11 = arith.constant dense<0.000000e+00> : vector<128xf32>
    %11 = vector.multi_reduction <add>, %10, %cst_11 [0] : vector<512x128xf32> to vector<128xf32>
    %12 = vector.shape_cast %11 : vector<128xf32> to vector<1x128xf32>
    %c1 = arith.constant 1 : index
    %c0_12 = arith.constant 0 : index
    %13 = vector.load %arg4[%c1, %c0_12] : memref<8x128xf32, #tpu.memory_space<vmem>>, vector<1x128xf32>
    tpu.vector_store %arg4[%c1, %c0_12], %12 {strides = array<i32>} : memref<8x128xf32, #tpu.memory_space<vmem>>, vector<1x128xf32>,
    return
  }
  func.func @transform_0(%arg0: i32) -> (i32, i32) {
    %c0_i32 = arith.constant 0 : i32
    %c0_i32_0 = arith.constant 0 : i32
    return %arg0, %c0_i32 : i32, i32
  }
  func.func @transform_1(%arg0: i32) -> (i32, i32) {
    %c0_i32 = arith.constant 0 : i32
    %c0_i32_0 = arith.constant 0 : i32
    %c0_i32_1 = arith.constant 0 : i32
    return %c0_i32, %c0_i32_0 : i32, i32
  }
  func.func @transform_2(%arg0: i32) -> (i32, i32) {
    %c0_i32 = arith.constant 0 : i32
    %c0_i32_0 = arith.constant 0 : i32
    return %arg0, %c0_i32 : i32, i32
  }
  func.func @transform_3(%arg0: i32) -> (i32, i32) {
    %c0_i32 = arith.constant 0 : i32
    %c0_i32_0 = arith.constant 0 : i32
    return %arg0, %c0_i32 : i32, i32
  }
}

module attributes {stable_mosaic.version = 11 : i64} {
  func.func @_conv_stats_kernel(%arg0: i32, %arg1: memref<128x2048xbf16, #tpu.memory_space<vmem>>, %arg2: memref<2048x256xbf16, #tpu.memory_space<vmem>>, %arg3: memref<128x256xbf16, #tpu.memory_space<vmem>>, %arg4: memref<8x256xf32, #tpu.memory_space<vmem>>) attributes {dimension_semantics = [#tpu.dimension_semantics<parallel>], iteration_bounds = array<i64: 1>, scalar_prefetch = 0 : i64, scratch_operands = 0 : i64, tpu.core_type = #tpu.core_type<tc>, window_params = [{transform_indices = @transform_0, window_bounds = array<i64: 128, 2048>}, {pipeline_mode = #tpu.pipeline_mode<synchronous>, transform_indices = @transform_1, window_bounds = array<i64: 2048, 256>}, {transform_indices = @transform_2, window_bounds = array<i64: 128, 256>}, {transform_indices = @transform_3, window_bounds = array<i64: 8, 256>}]} {
    %c0 = arith.constant 0 : index
    %c0_0 = arith.constant 0 : index
    %0 = vector.load %arg1[%c0, %c0_0] : memref<128x2048xbf16, #tpu.memory_space<vmem>>, vector<128x2048xbf16>
    %c0_1 = arith.constant 0 : index
    %c0_2 = arith.constant 0 : index
    %1 = vector.load %arg2[%c0_1, %c0_2] : memref<2048x256xbf16, #tpu.memory_space<vmem>>, vector<2048x256xbf16>
    %cst = arith.constant dense<0.000000e+00> : vector<128x256xf32>
    %2 = tpu.matmul %0, %1, %cst {dimension_numbers = #tpu.dot_dimension_numbers<[1], [0], [0], [1], [0, 0, 1, 1], [], []>} : vector<128x2048xbf16>, vector<2048x256xbf16>, vector<128x256xf32> -> vector<128x256xf32>
    %3 = arith.truncf %2 : vector<128x256xf32> to vector<128x256xbf16>
    %c0_3 = arith.constant 0 : index
    %c0_4 = arith.constant 0 : index
    %4 = vector.load %arg3[%c0_3, %c0_4] : memref<128x256xbf16, #tpu.memory_space<vmem>>, vector<128x256xbf16>
    tpu.vector_store %arg3[%c0_3, %c0_4], %3 {strides = array<i32>} : memref<128x256xbf16, #tpu.memory_space<vmem>>, vector<128x256xbf16>,
    %cst_5 = arith.constant 0.000000e+00 : f32
    %5 = vector.broadcast %cst_5 : f32 to vector<8x256xf32>
    %c0_6 = arith.constant 0 : index
    %c0_7 = arith.constant 0 : index
    %6 = vector.load %arg4[%c0_6, %c0_7] : memref<8x256xf32, #tpu.memory_space<vmem>>, vector<8x256xf32>
    tpu.vector_store %arg4[%c0_6, %c0_7], %5 {strides = array<i32>} : memref<8x256xf32, #tpu.memory_space<vmem>>, vector<8x256xf32>,
    %cst_8 = arith.constant dense<0.000000e+00> : vector<256xf32>
    %7 = vector.multi_reduction <add>, %2, %cst_8 [0] : vector<128x256xf32> to vector<256xf32>
    %8 = vector.shape_cast %7 : vector<256xf32> to vector<1x256xf32>
    %c0_9 = arith.constant 0 : index
    %c0_10 = arith.constant 0 : index
    %9 = vector.load %arg4[%c0_9, %c0_10] : memref<8x256xf32, #tpu.memory_space<vmem>>, vector<1x256xf32>
    tpu.vector_store %arg4[%c0_9, %c0_10], %8 {strides = array<i32>} : memref<8x256xf32, #tpu.memory_space<vmem>>, vector<1x256xf32>,
    %10 = arith.mulf %2, %2 : vector<128x256xf32>
    %cst_11 = arith.constant dense<0.000000e+00> : vector<256xf32>
    %11 = vector.multi_reduction <add>, %10, %cst_11 [0] : vector<128x256xf32> to vector<256xf32>
    %12 = vector.shape_cast %11 : vector<256xf32> to vector<1x256xf32>
    %c1 = arith.constant 1 : index
    %c0_12 = arith.constant 0 : index
    %13 = vector.load %arg4[%c1, %c0_12] : memref<8x256xf32, #tpu.memory_space<vmem>>, vector<1x256xf32>
    tpu.vector_store %arg4[%c1, %c0_12], %12 {strides = array<i32>} : memref<8x256xf32, #tpu.memory_space<vmem>>, vector<1x256xf32>,
    return
  }
  func.func @transform_0(%arg0: i32) -> (i32, i32) {
    %c0_i32 = arith.constant 0 : i32
    %c0_i32_0 = arith.constant 0 : i32
    return %arg0, %c0_i32 : i32, i32
  }
  func.func @transform_1(%arg0: i32) -> (i32, i32) {
    %c0_i32 = arith.constant 0 : i32
    %c0_i32_0 = arith.constant 0 : i32
    %c0_i32_1 = arith.constant 0 : i32
    return %c0_i32, %c0_i32_0 : i32, i32
  }
  func.func @transform_2(%arg0: i32) -> (i32, i32) {
    %c0_i32 = arith.constant 0 : i32
    %c0_i32_0 = arith.constant 0 : i32
    return %arg0, %c0_i32 : i32, i32
  }
  func.func @transform_3(%arg0: i32) -> (i32, i32) {
    %c0_i32 = arith.constant 0 : i32
    %c0_i32_0 = arith.constant 0 : i32
    return %arg0, %c0_i32 : i32, i32
  }
}

module attributes {stable_mosaic.version = 11 : i64} {
  func.func @_bn_relu_kernel(%arg0: i32, %arg1: memref<128x256xbf16, #tpu.memory_space<vmem>>, %arg2: memref<1x256xf32, #tpu.memory_space<vmem>>, %arg3: memref<1x256xf32, #tpu.memory_space<vmem>>, %arg4: memref<128x256xbf16, #tpu.memory_space<vmem>>) attributes {dimension_semantics = [#tpu.dimension_semantics<parallel>], iteration_bounds = array<i64: 1>, scalar_prefetch = 0 : i64, scratch_operands = 0 : i64, tpu.core_type = #tpu.core_type<tc>, window_params = [{transform_indices = @transform_0, window_bounds = array<i64: 128, 256>}, {pipeline_mode = #tpu.pipeline_mode<synchronous>, transform_indices = @transform_1, window_bounds = array<i64: 1, 256>}, {pipeline_mode = #tpu.pipeline_mode<synchronous>, transform_indices = @transform_2, window_bounds = array<i64: 1, 256>}, {transform_indices = @transform_3, window_bounds = array<i64: 128, 256>}]} {
    %c0 = arith.constant 0 : index
    %c0_0 = arith.constant 0 : index
    %0 = vector.load %arg1[%c0, %c0_0] : memref<128x256xbf16, #tpu.memory_space<vmem>>, vector<128x256xbf16>
    %1 = arith.extf %0 : vector<128x256xbf16> to vector<128x256xf32>
    %c0_1 = arith.constant 0 : index
    %c0_2 = arith.constant 0 : index
    %2 = vector.load %arg2[%c0_1, %c0_2] : memref<1x256xf32, #tpu.memory_space<vmem>>, vector<1x256xf32>
    %3 = vector.broadcast %2 : vector<1x256xf32> to vector<128x256xf32>
    %4 = arith.mulf %1, %3 : vector<128x256xf32>
    %c0_3 = arith.constant 0 : index
    %c0_4 = arith.constant 0 : index
    %5 = vector.load %arg3[%c0_3, %c0_4] : memref<1x256xf32, #tpu.memory_space<vmem>>, vector<1x256xf32>
    %6 = vector.broadcast %5 : vector<1x256xf32> to vector<128x256xf32>
    %7 = arith.addf %4, %6 : vector<128x256xf32>
    %cst = arith.constant 0.000000e+00 : f32
    %8 = vector.broadcast %cst : f32 to vector<128x256xf32>
    %9 = arith.maximumf %7, %8 : vector<128x256xf32>
    %10 = arith.truncf %9 : vector<128x256xf32> to vector<128x256xbf16>
    %c0_5 = arith.constant 0 : index
    %c0_6 = arith.constant 0 : index
    %11 = vector.load %arg4[%c0_5, %c0_6] : memref<128x256xbf16, #tpu.memory_space<vmem>>, vector<128x256xbf16>
    tpu.vector_store %arg4[%c0_5, %c0_6], %10 {strides = array<i32>} : memref<128x256xbf16, #tpu.memory_space<vmem>>, vector<128x256xbf16>,
    return
  }
  func.func @transform_0(%arg0: i32) -> (i32, i32) {
    %c0_i32 = arith.constant 0 : i32
    %c0_i32_0 = arith.constant 0 : i32
    return %arg0, %c0_i32 : i32, i32
  }
  func.func @transform_1(%arg0: i32) -> (i32, i32) {
    %c0_i32 = arith.constant 0 : i32
    %c0_i32_0 = arith.constant 0 : i32
    %c0_i32_1 = arith.constant 0 : i32
    return %c0_i32, %c0_i32_0 : i32, i32
  }
  func.func @transform_2(%arg0: i32) -> (i32, i32) {
    %c0_i32 = arith.constant 0 : i32
    %c0_i32_0 = arith.constant 0 : i32
    %c0_i32_1 = arith.constant 0 : i32
    return %c0_i32, %c0_i32_0 : i32, i32
  }
  func.func @transform_3(%arg0: i32) -> (i32, i32) {
    %c0_i32 = arith.constant 0 : i32
    %c0_i32_0 = arith.constant 0 : i32
    return %arg0, %c0_i32 : i32, i32
  }
}

module attributes {stable_mosaic.version = 11 : i64} {
  func.func @_conv_stats_kernel(%arg0: i32, %arg1: memref<32x4096xbf16, #tpu.memory_space<vmem>>, %arg2: memref<4096x512xbf16, #tpu.memory_space<vmem>>, %arg3: memref<32x512xbf16, #tpu.memory_space<vmem>>, %arg4: memref<8x512xf32, #tpu.memory_space<vmem>>) attributes {dimension_semantics = [#tpu.dimension_semantics<parallel>], iteration_bounds = array<i64: 1>, scalar_prefetch = 0 : i64, scratch_operands = 0 : i64, tpu.core_type = #tpu.core_type<tc>, window_params = [{transform_indices = @transform_0, window_bounds = array<i64: 32, 4096>}, {pipeline_mode = #tpu.pipeline_mode<synchronous>, transform_indices = @transform_1, window_bounds = array<i64: 4096, 512>}, {transform_indices = @transform_2, window_bounds = array<i64: 32, 512>}, {transform_indices = @transform_3, window_bounds = array<i64: 8, 512>}]} {
    %c0 = arith.constant 0 : index
    %c0_0 = arith.constant 0 : index
    %0 = vector.load %arg1[%c0, %c0_0] : memref<32x4096xbf16, #tpu.memory_space<vmem>>, vector<32x4096xbf16>
    %c0_1 = arith.constant 0 : index
    %c0_2 = arith.constant 0 : index
    %1 = vector.load %arg2[%c0_1, %c0_2] : memref<4096x512xbf16, #tpu.memory_space<vmem>>, vector<4096x512xbf16>
    %cst = arith.constant dense<0.000000e+00> : vector<32x512xf32>
    %2 = tpu.matmul %0, %1, %cst {dimension_numbers = #tpu.dot_dimension_numbers<[1], [0], [0], [1], [0, 0, 1, 1], [], []>} : vector<32x4096xbf16>, vector<4096x512xbf16>, vector<32x512xf32> -> vector<32x512xf32>
    %3 = arith.truncf %2 : vector<32x512xf32> to vector<32x512xbf16>
    %c0_3 = arith.constant 0 : index
    %c0_4 = arith.constant 0 : index
    %4 = vector.load %arg3[%c0_3, %c0_4] : memref<32x512xbf16, #tpu.memory_space<vmem>>, vector<32x512xbf16>
    tpu.vector_store %arg3[%c0_3, %c0_4], %3 {strides = array<i32>} : memref<32x512xbf16, #tpu.memory_space<vmem>>, vector<32x512xbf16>,
    %cst_5 = arith.constant 0.000000e+00 : f32
    %5 = vector.broadcast %cst_5 : f32 to vector<8x512xf32>
    %c0_6 = arith.constant 0 : index
    %c0_7 = arith.constant 0 : index
    %6 = vector.load %arg4[%c0_6, %c0_7] : memref<8x512xf32, #tpu.memory_space<vmem>>, vector<8x512xf32>
    tpu.vector_store %arg4[%c0_6, %c0_7], %5 {strides = array<i32>} : memref<8x512xf32, #tpu.memory_space<vmem>>, vector<8x512xf32>,
    %cst_8 = arith.constant dense<0.000000e+00> : vector<512xf32>
    %7 = vector.multi_reduction <add>, %2, %cst_8 [0] : vector<32x512xf32> to vector<512xf32>
    %8 = vector.shape_cast %7 : vector<512xf32> to vector<1x512xf32>
    %c0_9 = arith.constant 0 : index
    %c0_10 = arith.constant 0 : index
    %9 = vector.load %arg4[%c0_9, %c0_10] : memref<8x512xf32, #tpu.memory_space<vmem>>, vector<1x512xf32>
    tpu.vector_store %arg4[%c0_9, %c0_10], %8 {strides = array<i32>} : memref<8x512xf32, #tpu.memory_space<vmem>>, vector<1x512xf32>,
    %10 = arith.mulf %2, %2 : vector<32x512xf32>
    %cst_11 = arith.constant dense<0.000000e+00> : vector<512xf32>
    %11 = vector.multi_reduction <add>, %10, %cst_11 [0] : vector<32x512xf32> to vector<512xf32>
    %12 = vector.shape_cast %11 : vector<512xf32> to vector<1x512xf32>
    %c1 = arith.constant 1 : index
    %c0_12 = arith.constant 0 : index
    %13 = vector.load %arg4[%c1, %c0_12] : memref<8x512xf32, #tpu.memory_space<vmem>>, vector<1x512xf32>
    tpu.vector_store %arg4[%c1, %c0_12], %12 {strides = array<i32>} : memref<8x512xf32, #tpu.memory_space<vmem>>, vector<1x512xf32>,
    return
  }
  func.func @transform_0(%arg0: i32) -> (i32, i32) {
    %c0_i32 = arith.constant 0 : i32
    %c0_i32_0 = arith.constant 0 : i32
    return %arg0, %c0_i32 : i32, i32
  }
  func.func @transform_1(%arg0: i32) -> (i32, i32) {
    %c0_i32 = arith.constant 0 : i32
    %c0_i32_0 = arith.constant 0 : i32
    %c0_i32_1 = arith.constant 0 : i32
    return %c0_i32, %c0_i32_0 : i32, i32
  }
  func.func @transform_2(%arg0: i32) -> (i32, i32) {
    %c0_i32 = arith.constant 0 : i32
    %c0_i32_0 = arith.constant 0 : i32
    return %arg0, %c0_i32 : i32, i32
  }
  func.func @transform_3(%arg0: i32) -> (i32, i32) {
    %c0_i32 = arith.constant 0 : i32
    %c0_i32_0 = arith.constant 0 : i32
    return %arg0, %c0_i32 : i32, i32
  }
}

module attributes {stable_mosaic.version = 11 : i64} {
  func.func @_bn_relu_kernel(%arg0: i32, %arg1: memref<32x512xbf16, #tpu.memory_space<vmem>>, %arg2: memref<1x512xf32, #tpu.memory_space<vmem>>, %arg3: memref<1x512xf32, #tpu.memory_space<vmem>>, %arg4: memref<32x512xbf16, #tpu.memory_space<vmem>>) attributes {dimension_semantics = [#tpu.dimension_semantics<parallel>], iteration_bounds = array<i64: 1>, scalar_prefetch = 0 : i64, scratch_operands = 0 : i64, tpu.core_type = #tpu.core_type<tc>, window_params = [{transform_indices = @transform_0, window_bounds = array<i64: 32, 512>}, {pipeline_mode = #tpu.pipeline_mode<synchronous>, transform_indices = @transform_1, window_bounds = array<i64: 1, 512>}, {pipeline_mode = #tpu.pipeline_mode<synchronous>, transform_indices = @transform_2, window_bounds = array<i64: 1, 512>}, {transform_indices = @transform_3, window_bounds = array<i64: 32, 512>}]} {
    %c0 = arith.constant 0 : index
    %c0_0 = arith.constant 0 : index
    %0 = vector.load %arg1[%c0, %c0_0] : memref<32x512xbf16, #tpu.memory_space<vmem>>, vector<32x512xbf16>
    %1 = arith.extf %0 : vector<32x512xbf16> to vector<32x512xf32>
    %c0_1 = arith.constant 0 : index
    %c0_2 = arith.constant 0 : index
    %2 = vector.load %arg2[%c0_1, %c0_2] : memref<1x512xf32, #tpu.memory_space<vmem>>, vector<1x512xf32>
    %3 = vector.broadcast %2 : vector<1x512xf32> to vector<32x512xf32>
    %4 = arith.mulf %1, %3 : vector<32x512xf32>
    %c0_3 = arith.constant 0 : index
    %c0_4 = arith.constant 0 : index
    %5 = vector.load %arg3[%c0_3, %c0_4] : memref<1x512xf32, #tpu.memory_space<vmem>>, vector<1x512xf32>
    %6 = vector.broadcast %5 : vector<1x512xf32> to vector<32x512xf32>
    %7 = arith.addf %4, %6 : vector<32x512xf32>
    %cst = arith.constant 0.000000e+00 : f32
    %8 = vector.broadcast %cst : f32 to vector<32x512xf32>
    %9 = arith.maximumf %7, %8 : vector<32x512xf32>
    %10 = arith.truncf %9 : vector<32x512xf32> to vector<32x512xbf16>
    %c0_5 = arith.constant 0 : index
    %c0_6 = arith.constant 0 : index
    %11 = vector.load %arg4[%c0_5, %c0_6] : memref<32x512xbf16, #tpu.memory_space<vmem>>, vector<32x512xbf16>
    tpu.vector_store %arg4[%c0_5, %c0_6], %10 {strides = array<i32>} : memref<32x512xbf16, #tpu.memory_space<vmem>>, vector<32x512xbf16>,
    return
  }
  func.func @transform_0(%arg0: i32) -> (i32, i32) {
    %c0_i32 = arith.constant 0 : i32
    %c0_i32_0 = arith.constant 0 : i32
    return %arg0, %c0_i32 : i32, i32
  }
  func.func @transform_1(%arg0: i32) -> (i32, i32) {
    %c0_i32 = arith.constant 0 : i32
    %c0_i32_0 = arith.constant 0 : i32
    %c0_i32_1 = arith.constant 0 : i32
    return %c0_i32, %c0_i32_0 : i32, i32
  }
  func.func @transform_2(%arg0: i32) -> (i32, i32) {
    %c0_i32 = arith.constant 0 : i32
    %c0_i32_0 = arith.constant 0 : i32
    %c0_i32_1 = arith.constant 0 : i32
    return %c0_i32, %c0_i32_0 : i32, i32
  }
  func.func @transform_3(%arg0: i32) -> (i32, i32) {
    %c0_i32 = arith.constant 0 : i32
    %c0_i32_0 = arith.constant 0 : i32
    return %arg0, %c0_i32 : i32, i32
  }
}

module attributes {stable_mosaic.version = 11 : i64} {
  func.func @_head_kernel(%arg0: i32, %arg1: memref<8x8192xbf16, #tpu.memory_space<vmem>>, %arg2: memref<1x8192xbf16, #tpu.memory_space<vmem>>, %arg3: memref<1xf32, #tpu.memory_space<smem>>, %arg4: memref<8x1xf32, #tpu.memory_space<vmem>>) attributes {dimension_semantics = [#tpu.dimension_semantics<parallel>], iteration_bounds = array<i64: 1>, scalar_prefetch = 0 : i64, scratch_operands = 0 : i64, tpu.core_type = #tpu.core_type<tc>, window_params = [{transform_indices = @transform_0, window_bounds = array<i64: 8, 8192>}, {pipeline_mode = #tpu.pipeline_mode<synchronous>, transform_indices = @transform_1, window_bounds = array<i64: 1, 8192>}, {transform_indices = @transform_2, window_bounds = array<i64: 1>}, {transform_indices = @transform_3, window_bounds = array<i64: 8, 1>}]} {
    %c0 = arith.constant 0 : index
    %c0_0 = arith.constant 0 : index
    %0 = vector.load %arg1[%c0, %c0_0] : memref<8x8192xbf16, #tpu.memory_space<vmem>>, vector<8x8192xbf16>
    %1 = arith.extf %0 : vector<8x8192xbf16> to vector<8x8192xf32>
    %c0_1 = arith.constant 0 : index
    %c0_2 = arith.constant 0 : index
    %2 = vector.load %arg2[%c0_1, %c0_2] : memref<1x8192xbf16, #tpu.memory_space<vmem>>, vector<1x8192xbf16>
    %3 = arith.extf %2 : vector<1x8192xbf16> to vector<1x8192xf32>
    %4 = vector.broadcast %3 : vector<1x8192xf32> to vector<8x8192xf32>
    %5 = arith.mulf %1, %4 : vector<8x8192xf32>
    %cst = arith.constant dense<0.000000e+00> : vector<8xf32>
    %6 = vector.multi_reduction <add>, %5, %cst [1] : vector<8x8192xf32> to vector<8xf32>
    %7 = vector.shape_cast %6 : vector<8xf32> to vector<8x1xf32>
    %c0_3 = arith.constant 0 : index
    %8 = memref.load %arg3[%c0_3] : memref<1xf32, #tpu.memory_space<smem>>
    %9 = vector.broadcast %8 : f32 to vector<8x1xf32>
    %10 = arith.addf %7, %9 : vector<8x1xf32>
    %11 = arith.negf %10 : vector<8x1xf32>
    %12 = math.exp %11 : vector<8x1xf32>
    %cst_4 = arith.constant 1.000000e+00 : f32
    %13 = vector.broadcast %cst_4 : f32 to vector<8x1xf32>
    %14 = arith.addf %13, %12 : vector<8x1xf32>
    %15 = arith.divf %13, %14 : vector<8x1xf32>
    %c0_5 = arith.constant 0 : index
    %c0_6 = arith.constant 0 : index
    %16 = vector.load %arg4[%c0_5, %c0_6] : memref<8x1xf32, #tpu.memory_space<vmem>>, vector<8x1xf32>
    tpu.vector_store %arg4[%c0_5, %c0_6], %15 {strides = array<i32>} : memref<8x1xf32, #tpu.memory_space<vmem>>, vector<8x1xf32>,
    return
  }
  func.func @transform_0(%arg0: i32) -> (i32, i32) {
    %c0_i32 = arith.constant 0 : i32
    %c0_i32_0 = arith.constant 0 : i32
    return %arg0, %c0_i32 : i32, i32
  }
  func.func @transform_1(%arg0: i32) -> (i32, i32) {
    %c0_i32 = arith.constant 0 : i32
    %c0_i32_0 = arith.constant 0 : i32
    %c0_i32_1 = arith.constant 0 : i32
    return %c0_i32, %c0_i32_0 : i32, i32
  }
  func.func @transform_2(%arg0: i32) -> i32 {
    %c0_i32 = arith.constant 0 : i32
    %c0_i32_0 = arith.constant 0 : i32
    return %c0_i32 : i32
  }
  func.func @transform_3(%arg0: i32) -> (i32, i32) {
    %c0_i32 = arith.constant 0 : i32
    %c0_i32_0 = arith.constant 0 : i32
    return %arg0, %c0_i32 : i32, i32
  }
}

</mosaic_0001>

<bundles_post_ra>
// kernel: discriminator_forward.8
= control target key start
LH: loop header
LB: loop body
LE: loop exit
PB: predicated region body
PF: predicated region fallthrough
CT: control target
= control target key end

     0   :  { %s1646_s12 = smov 0   ;;  %s1944_s0 = inlined_call_operand.vmem [shape: bf16[2048,48], index: 0, kind: input, shape index: {}]   ;;  %s1945_s1 = inlined_call_operand.vmem [shape: bf16[48,64], index: 1, kind: input, shape index: {}]   ;;  %s1946_s2 = inlined_call_operand.vmem [shape: f32[1,64], index: 2, kind: input, shape index: {}]   ;;  %s1947_s3 = inlined_call_operand.vmem [shape: bf16[2048,64], index: 3, kind: output, shape index: {}]  }
   0x1 LB: > { %s1257_s13 = sadd.s32 4294967295, %s1624_s12   ;;  %p1261_p0 = scmp.ge.s32.totalorder %s1624_s12, 1  ;;  %s1624_s12 = sphi %s1646_s12, %s13_s12  }
   0x2   : > { %p138_p1 = scmp.lt.s32.totalorder %s1624_s12, 5 }
   0x4   : > { %p139_p2 = pnand %p1261_p0, %p138_p1 }
   0x5   : > { %v1583_v0 = vld [vmem:[%s1945_s1] sm:$0xff] (!%p139_p2)   ;;  %s1262_s16 = sshll.u32 (!%p139_p2), %s1257_s13, 6  ;;  %v1584_v1 = vld [vmem:[%s1945_s1 + $0x8] sm:$0xff] (!%p139_p2)   ;;  %v1585_v2 = vld [vmem:[%s1945_s1 + $0x10] sm:$0xff] (!%p139_p2)   ;;  %vm430_vm0 = vcmask (!%p139_p2), 392192   ;;  %vm1136_vm1 = vcmask (!%p139_p2), 519168  }
   0x6   : > { %142 = sbr.rel (%p139_p2) target bundleno = 297 (0x129), region = 32  ;;  %p163_p3 = scmp.lt.s32.totalorder (!%p139_p2), %s1262_s16, 255  ;;  %1499 = vmatprep.subr.bf16.mxu0 (!%p139_p2), %v1583_v0  ;;  %1569 = vmatprep.subr.bf16.mxu1 (!%p139_p2), %v1583_v0  ;;  %v1740_v35 = vld [vmem:[%s1946_s2] ss:$0 sm:$0xff] (!%p139_p2) }
   0x7   : > { %1500 = vmatpush3.bf16.msra.mxu0 (!%p139_p2), %v1583_v0  ;;  %1572 = vmatpush3.bf16.msra.mxu1 (!%p139_p2), %v1583_v0 }
   0x8   : > { %1501 = vmatprep.subr.bf16.mxu0 (!%p139_p2), %v1584_v1  ;;  %1570 = vmatprep.subr.bf16.mxu1 (!%p139_p2), %v1584_v1 }
   0xb   : > { %1502 = vmatpush3.bf16.msra.mxu0 (!%p139_p2), %v1584_v1  ;;  %1573 = vmatpush3.bf16.msra.mxu1 (!%p139_p2), %v1584_v1 }
   0xc   : > { %1503 = vmatprep.subr.bf16.mxu0 (!%p139_p2), %v1585_v2  ;;  %1571 = vmatprep.subr.bf16.mxu1 (!%p139_p2), %v1585_v2 }
   0xd   : > { %s1949_s16 = smov (!%p163_p3, %s1262_s16), 255 }
   0xe   : > { %s1263_s21 = sshll.u32 %s1949_s16, 2 }
   0xf   : > { %s1671_s24 = scalar_lea.vmem %s1944_s0, %s1263_s21  ;;  %1504 = vmatpush3.bf16.msra.mxu0 %v1585_v2  ;;  %1574 = vmatpush3.bf16.msra.mxu1 %v1585_v2  ;;  %s1753_s29 = scalar_lea.vmem %s1947_s3, %s1263_s21 }
  0x10   : > { %v1586_v3 = vld [vmem:[%s1671_s24] sm:$0xff]   ;;  %v1588_v5 = vld [vmem:[%s1671_s24 + $0x8] sm:$0xff]   ;;  %v1590_v7 = vld [vmem:[%s1671_s24 + $0x10] sm:$0xff]  }
  0x11   : > { %v1587_v4 = vld [vmem:[%s1671_s24 + $0x80] sm:$0xff]   ;;  %1505 = vmatprep.mubr.msk.bf16.mxu0 %vm430_vm0, %v1586_v3  ;;  %v1589_v6 = vld [vmem:[%s1671_s24 + $0x88] sm:$0xff]   ;;  %v1591_v8 = vld [vmem:[%s1671_s24 + $0x90] sm:$0xff]  }
  0x12   : > { %1537 = vmatprep.mubr.msk.bf16.mxu1 %vm430_vm0, %v1587_v4  ;;  %1506 = vmatmul.mubr.msk.bf16.vlgmr.msra.gmra.mrb[0].mxu0 %vm430_vm0, %v1588_v5  ;;  %v1592_v9 = vld [vmem:[%s1671_s24 + $0x18] sm:$0xff]   ;;  %v1594_v11 = vld [vmem:[%s1671_s24 + $0x20] sm:$0xff]   ;;  %v1596_v13 = vld [vmem:[%s1671_s24 + $0x28] sm:$0xff]  }
  0x13   : > { %1538 = vmatmul.mubr.msk.bf16.vlgmr.msra.gmra.mrb[0].mxu1 %vm430_vm0, %v1589_v6  ;;  %1509 = vmatprep.mubr.msk.bf16.mxu0 %vm430_vm0, %v1590_v7  ;;  %v1593_v10 = vld [vmem:[%s1671_s24 + $0x98] sm:$0xff]   ;;  %v1595_v12 = vld [vmem:[%s1671_s24 + $0xa0] sm:$0xff]   ;;  %v1597_v14 = vld [vmem:[%s1671_s24 + $0xa8] sm:$0xff]  }
  0x14   : > { %1541 = vmatprep.mubr.msk.bf16.mxu1 %vm430_vm0, %v1591_v8  ;;  %v1598_v15 = vld [vmem:[%s1671_s24 + $0x30] sm:$0xff]   ;;  %v1600_v17 = vld [vmem:[%s1671_s24 + $0x38] sm:$0xff]   ;;  %v1602_v19 = vld [vmem:[%s1671_s24 + $0x40] sm:$0xff]  }
  0x15   : > { %v1599_v16 = vld [vmem:[%s1671_s24 + $0xb0] sm:$0xff]   ;;  %v1601_v18 = vld [vmem:[%s1671_s24 + $0xb8] sm:$0xff]   ;;  %v1603_v20 = vld [vmem:[%s1671_s24 + $0xc0] sm:$0xff]  }
  0x16   : > { %v1604_v21 = vld [vmem:[%s1671_s24 + $0x48] sm:$0xff]   ;;  %v1606_v23 = vld [vmem:[%s1671_s24 + $0x50] sm:$0xff]   ;;  %v1608_v25 = vld [vmem:[%s1671_s24 + $0x58] sm:$0xff]  }
  0x17   : > { %v1605_v22 = vld [vmem:[%s1671_s24 + $0xc8] sm:$0xff]   ;;  %v1607_v24 = vld [vmem:[%s1671_s24 + $0xd0] sm:$0xff]   ;;  %v1609_v26 = vld [vmem:[%s1671_s24 + $0xd8] sm:$0xff]  }
  0x18   : > { %v1610_v27 = vld [vmem:[%s1671_s24 + $0x60] sm:$0xff]   ;;  %v1612_v29 = vld [vmem:[%s1671_s24 + $0x68] sm:$0xff]   ;;  %v1614_v31 = vld [vmem:[%s1671_s24 + $0x70] sm:$0xff]  }
  0x19   : > { %v1611_v28 = vld [vmem:[%s1671_s24 + $0xe0] sm:$0xff]   ;;  %v1613_v30 = vld [vmem:[%s1671_s24 + $0xe8] sm:$0xff]   ;;  %v1615_v32 = vld [vmem:[%s1671_s24 + $0xf0] sm:$0xff]  }
  0x1a   : > { %1510 = vmatmul.mubr.msk.bf16.gmra.mrb[4].mxu0 %vm430_vm0, %v1592_v9  ;;  %v1616_v33 = vld [vmem:[%s1671_s24 + $0x78] sm:$0xff]  }
  0x1b   : > { %1542 = vmatmul.mubr.msk.bf16.gmra.mrb[4].mxu1 %vm430_vm0, %v1593_v10  ;;  %1513 = vmatprep.mubr.msk.bf16.mxu0 %vm430_vm0, %v1594_v11  ;;  %v1617_v34 = vld [vmem:[%s1671_s24 + $0xf8] sm:$0xff]  }
  0x1c   : > { %1545 = vmatprep.mubr.msk.bf16.mxu1 %vm430_vm0, %v1595_v12 }
  0x22   : > { %1514 = vmatmul.mubr.msk.bf16.gmra.mrb[8].mxu0 %vm430_vm0, %v1596_v13 }
  0x23   : > { %1546 = vmatmul.mubr.msk.bf16.gmra.mrb[8].mxu1 %vm430_vm0, %v1597_v14  ;;  %1517 = vmatprep.mubr.msk.bf16.mxu0 %vm430_vm0, %v1598_v15 }
  0x24   : > { %1549 = vmatprep.mubr.msk.bf16.mxu1 %vm430_vm0, %v1599_v16 }
  0x2a   : > { %1518 = vmatmul.mubr.msk.bf16.gmra.mrb[12].mxu0 %vm430_vm0, %v1600_v17 }
  0x2b   : > { %1550 = vmatmul.mubr.msk.bf16.gmra.mrb[12].mxu1 %vm430_vm0, %v1601_v18  ;;  %1521 = vmatprep.mubr.msk.bf16.mxu0 %vm430_vm0, %v1602_v19 }
  0x2c   : > { %1553 = vmatprep.mubr.msk.bf16.mxu1 %vm430_vm0, %v1603_v20 }
  0x32   : > { %1522 = vmatmul.mubr.msk.bf16.gmra.mrb[16].mxu0 %vm430_vm0, %v1604_v21 }
  0x33   : > { %1554 = vmatmul.mubr.msk.bf16.gmra.mrb[16].mxu1 %vm430_vm0, %v1605_v22  ;;  %1525 = vmatprep.mubr.msk.bf16.mxu0 %vm430_vm0, %v1606_v23 }
  0x34   : > { %1557 = vmatprep.mubr.msk.bf16.mxu1 %vm430_vm0, %v1607_v24 }
  0x3a   : > { %1526 = vmatmul.mubr.msk.bf16.gmra.mrb[20].mxu0 %vm430_vm0, %v1608_v25 }
  0x3b   : > { %1558 = vmatmul.mubr.msk.bf16.gmra.mrb[20].mxu1 %vm430_vm0, %v1609_v26  ;;  %1529 = vmatprep.mubr.msk.bf16.mxu0 %vm430_vm0, %v1610_v27 }
  0x3c   : > { %1561 = vmatprep.mubr.msk.bf16.mxu1 %vm430_vm0, %v1611_v28 }
  0x42   : > { %1530 = vmatmul.mubr.msk.bf16.gmra.mrb[24].mxu0 %vm430_vm0, %v1612_v29 }
  0x43   : > { %1562 = vmatmul.mubr.msk.bf16.gmra.mrb[24].mxu1 %vm430_vm0, %v1613_v30  ;;  %1533 = vmatprep.mubr.msk.bf16.mxu0 %vm430_vm0, %v1614_v31 }
  0x44   : > { %1565 = vmatprep.mubr.msk.bf16.mxu1 %vm430_vm0, %v1615_v32 }
  0x4a   : > { %1534 = vmatmul.mubr.msk.bf16.gmra.mrb[28].mxu0 %vm430_vm0, %v1616_v33 }
  0x4b   : > { %1566 = vmatmul.mubr.msk.bf16.gmra.mrb[28].mxu1 %vm430_vm0, %v1617_v34 }
  0xe5   : > { %v1507_v36 = vpop.f32.mrb[0].mxu0 }
  0xe6   : > { %v1539_v37 = vpop.f32.mrb[0].mxu1  ;;  %v570_v38 = vadd.f32 %v1507_v36, %v1740_v35  ;;  %v561_v40 = vpop.f32.mrb[1].mxu0 }
  0xe7   : > { %v698_v39 = vadd.f32 %v1539_v37, %v1740_v35  ;;  %v689_v41 = vpop.f32.mrb[1].mxu1  ;;  %v562_v42 = vadd.f32 %v1740_v35, %v561_v40  ;;  %v1508_v44 = vpop.f32.mrb[2].mxu0 }
  0xe8   : > { %v690_v43 = vadd.f32 %v1740_v35, %v689_v41  ;;  %v1540_v45 = vpop.f32.mrb[2].mxu1  ;;  %v818_v46 = vmax.f32 %v570_v38, 0.0  ;;  %v573_v48 = vadd.f32 %v1508_v44, %v1740_v35  ;;  %v564_v50 = vpop.f32.mrb[3].mxu0 }
  0xe9   : > { %v850_v47 = vmax.f32 %v698_v39, 0.0  ;;  %v701_v49 = vadd.f32 %v1540_v45, %v1740_v35  ;;  %v692_v51 = vpop.f32.mrb[3].mxu1  ;;  %v816_v52 = vmax.f32 %v562_v42, 0.0  ;;  %v565_v54 = vadd.f32 %v1740_v35, %v564_v50 }
  0xea   : > { %v848_v53 = vmax.f32 %v690_v43, 0.0  ;;  %v693_v55 = vadd.f32 %v1740_v35, %v692_v51  ;;  %v1402_v56 = vpack.c.bf16 %v818_v46, %v818_v46  ;;  %v819_v58 = vmax.f32 %v573_v48, 0.0 }
  0xeb   : > { %v1434_v57 = vpack.c.bf16 %v850_v47, %v850_v47  ;;  %v851_v59 = vmax.f32 %v701_v49, 0.0  ;;  %v1400_v60 = vpack.c.bf16 %v816_v52, %v816_v52  ;;  %v817_v62 = vmax.f32 %v565_v54, 0.0 }
  0xec   : > { %v1432_v61 = vpack.c.bf16 %v848_v53, %v848_v53  ;;  %v849_v63 = vmax.f32 %v693_v55, 0.0  ;;  %1139 = vst.msk [vmem:[%s1753_s29 + $0x8] sm:$0xf] %vm1136_vm1, %v1402_v56  ;;  %v1403_v0 = vpack.c.bf16 %v819_v58, %v819_v58 }
  0xed   : > { %1171 = vst.msk [vmem:[%s1753_s29 + $0x88] sm:$0xf] %vm1136_vm1, %v1434_v57  ;;  %v1435_v1 = vpack.c.bf16 %v851_v59, %v851_v59  ;;  %1137 = vst.msk [vmem:[%s1753_s29] sm:$0xf] %vm1136_vm1, %v1400_v60  ;;  %v1401_v2 = vpack.c.bf16 %v817_v62, %v817_v62  ;;  %v1511_v4 = vpop.f32.mrb[4].mxu0 }
  0xee   : > { %1169 = vst.msk [vmem:[%s1753_s29 + $0x80] sm:$0xf] %vm1136_vm1, %v1432_v61  ;;  %v1433_v3 = vpack.c.bf16 %v849_v63, %v849_v63  ;;  %v1543_v5 = vpop.f32.mrb[4].mxu1  ;;  %1140 = vst.msk [vmem:[%s1753_s29 + $0xc] sm:$0xf] %vm1136_vm1, %v1403_v0  ;;  %v586_v6 = vadd.f32 %v1511_v4, %v1740_v35  ;;  %v577_v8 = vpop.f32.mrb[5].mxu0 }
  0xef   : > { %1172 = vst.msk [vmem:[%s1753_s29 + $0x8c] sm:$0xf] %vm1136_vm1, %v1435_v1  ;;  %v714_v7 = vadd.f32 %v1543_v5, %v1740_v35  ;;  %v705_v9 = vpop.f32.mrb[5].mxu1  ;;  %1138 = vst.msk [vmem:[%s1753_s29 + $0x4] sm:$0xf] %vm1136_vm1, %v1401_v2  ;;  %v578_v10 = vadd.f32 %v1740_v35, %v577_v8  ;;  %v1512_v12 = vpop.f32.mrb[6].mxu0 }
  0xf0   : > { %1170 = vst.msk [vmem:[%s1753_s29 + $0x84] sm:$0xf] %vm1136_vm1, %v1433_v3  ;;  %v706_v11 = vadd.f32 %v1740_v35, %v705_v9  ;;  %v1544_v13 = vpop.f32.mrb[6].mxu1  ;;  %v822_v14 = vmax.f32 %v586_v6, 0.0  ;;  %v589_v16 = vadd.f32 %v1512_v12, %v1740_v35  ;;  %v580_v18 = vpop.f32.mrb[7].mxu0 }
  0xf1   : > { %v854_v15 = vmax.f32 %v714_v7, 0.0  ;;  %v717_v17 = vadd.f32 %v1544_v13, %v1740_v35  ;;  %v708_v19 = vpop.f32.mrb[7].mxu1  ;;  %v820_v20 = vmax.f32 %v578_v10, 0.0  ;;  %v581_v22 = vadd.f32 %v1740_v35, %v580_v18 }
  0xf2   : > { %v852_v21 = vmax.f32 %v706_v11, 0.0  ;;  %v709_v23 = vadd.f32 %v1740_v35, %v708_v19  ;;  %v1406_v24 = vpack.c.bf16 %v822_v14, %v822_v14  ;;  %v823_v26 = vmax.f32 %v589_v16, 0.0 }
  0xf3   : > { %v1438_v25 = vpack.c.bf16 %v854_v15, %v854_v15  ;;  %v855_v27 = vmax.f32 %v717_v17, 0.0  ;;  %v1404_v28 = vpack.c.bf16 %v820_v20, %v820_v20  ;;  %v821_v30 = vmax.f32 %v581_v22, 0.0 }
  0xf4   : > { %v1436_v29 = vpack.c.bf16 %v852_v21, %v852_v21  ;;  %v853_v31 = vmax.f32 %v709_v23, 0.0  ;;  %1143 = vst.msk [vmem:[%s1753_s29 + $0x18] sm:$0xf] %vm1136_vm1, %v1406_v24  ;;  %v1407_v32 = vpack.c.bf16 %v823_v26, %v823_v26 }
  0xf5   : > { %1175 = vst.msk [vmem:[%s1753_s29 + $0x98] sm:$0xf] %vm1136_vm1, %v1438_v25  ;;  %v1439_v33 = vpack.c.bf16 %v855_v27, %v855_v27  ;;  %1141 = vst.msk [vmem:[%s1753_s29 + $0x10] sm:$0xf] %vm1136_vm1, %v1404_v28  ;;  %v1405_v34 = vpack.c.bf16 %v821_v30, %v821_v30  ;;  %v1515_v37 = vpop.f32.mrb[8].mxu0 }
  0xf6   : > { %1173 = vst.msk [vmem:[%s1753_s29 + $0x90] sm:$0xf] %vm1136_vm1, %v1436_v29  ;;  %v1437_v36 = vpack.c.bf16 %v853_v31, %v853_v31  ;;  %v1547_v38 = vpop.f32.mrb[8].mxu1  ;;  %1144 = vst.msk [vmem:[%s1753_s29 + $0x1c] sm:$0xf] %vm1136_vm1, %v1407_v32  ;;  %v602_v39 = vadd.f32 %v1515_v37, %v1740_v35  ;;  %v593_v41 = vpop.f32.mrb[9].mxu0 }
  0xf7   : > { %1176 = vst.msk [vmem:[%s1753_s29 + $0x9c] sm:$0xf] %vm1136_vm1, %v1439_v33  ;;  %v730_v40 = vadd.f32 %v1547_v38, %v1740_v35  ;;  %v721_v42 = vpop.f32.mrb[9].mxu1  ;;  %1142 = vst.msk [vmem:[%s1753_s29 + $0x14] sm:$0xf] %vm1136_vm1, %v1405_v34  ;;  %v594_v43 = vadd.f32 %v1740_v35, %v593_v41  ;;  %v1516_v45 = vpop.f32.mrb[10].mxu0 }
  0xf8   : > { %1174 = vst.msk [vmem:[%s1753_s29 + $0x94] sm:$0xf] %vm1136_vm1, %v1437_v36  ;;  %v722_v44 = vadd.f32 %v1740_v35, %v721_v42  ;;  %v1548_v46 = vpop.f32.mrb[10].mxu1  ;;  %v826_v47 = vmax.f32 %v602_v39, 0.0  ;;  %v605_v49 = vadd.f32 %v1516_v45, %v1740_v35  ;;  %v596_v51 = vpop.f32.mrb[11].mxu0 }
  0xf9   : > { %v858_v48 = vmax.f32 %v730_v40, 0.0  ;;  %v733_v50 = vadd.f32 %v1548_v46, %v1740_v35  ;;  %v724_v52 = vpop.f32.mrb[11].mxu1  ;;  %v824_v53 = vmax.f32 %v594_v43, 0.0  ;;  %v597_v55 = vadd.f32 %v1740_v35, %v596_v51 }
  0xfa   : > { %v856_v54 = vmax.f32 %v722_v44, 0.0  ;;  %v725_v56 = vadd.f32 %v1740_v35, %v724_v52  ;;  %v1410_v57 = vpack.c.bf16 %v826_v47, %v826_v47  ;;  %v827_v59 = vmax.f32 %v605_v49, 0.0 }
  0xfb   : > { %v1442_v58 = vpack.c.bf16 %v858_v48, %v858_v48  ;;  %v859_v60 = vmax.f32 %v733_v50, 0.0  ;;  %v1408_v61 = vpack.c.bf16 %v824_v53, %v824_v53  ;;  %v825_v63 = vmax.f32 %v597_v55, 0.0 }
  0xfc   : > { %v1440_v62 = vpack.c.bf16 %v856_v54, %v856_v54  ;;  %v857_v0 = vmax.f32 %v725_v56, 0.0  ;;  %1147 = vst.msk [vmem:[%s1753_s29 + $0x28] sm:$0xf] %vm1136_vm1, %v1410_v57  ;;  %v1411_v1 = vpack.c.bf16 %v827_v59, %v827_v59 }
  0xfd   : > { %1179 = vst.msk [vmem:[%s1753_s29 + $0xa8] sm:$0xf] %vm1136_vm1, %v1442_v58  ;;  %v1443_v2 = vpack.c.bf16 %v859_v60, %v859_v60  ;;  %1145 = vst.msk [vmem:[%s1753_s29 + $0x20] sm:$0xf] %vm1136_vm1, %v1408_v61  ;;  %v1409_v3 = vpack.c.bf16 %v825_v63, %v825_v63  ;;  %v1519_v5 = vpop.f32.mrb[12].mxu0 }
  0xfe   : > { %1177 = vst.msk [vmem:[%s1753_s29 + $0xa0] sm:$0xf] %vm1136_vm1, %v1440_v62  ;;  %v1441_v4 = vpack.c.bf16 %v857_v0, %v857_v0  ;;  %v1551_v6 = vpop.f32.mrb[12].mxu1  ;;  %1148 = vst.msk [vmem:[%s1753_s29 + $0x2c] sm:$0xf] %vm1136_vm1, %v1411_v1  ;;  %v618_v7 = vadd.f32 %v1519_v5, %v1740_v35  ;;  %v609_v9 = vpop.f32.mrb[13].mxu0 }
  0xff   : > { %1180 = vst.msk [vmem:[%s1753_s29 + $0xac] sm:$0xf] %vm1136_vm1, %v1443_v2  ;;  %v746_v8 = vadd.f32 %v1551_v6, %v1740_v35  ;;  %v737_v10 = vpop.f32.mrb[13].mxu1  ;;  %1146 = vst.msk [vmem:[%s1753_s29 + $0x24] sm:$0xf] %vm1136_vm1, %v1409_v3  ;;  %v610_v11 = vadd.f32 %v1740_v35, %v609_v9  ;;  %v1520_v13 = vpop.f32.mrb[14].mxu0 }
 0x100   : > { %1178 = vst.msk [vmem:[%s1753_s29 + $0xa4] sm:$0xf] %vm1136_vm1, %v1441_v4  ;;  %v738_v12 = vadd.f32 %v1740_v35, %v737_v10  ;;  %v1552_v14 = vpop.f32.mrb[14].mxu1  ;;  %v830_v15 = vmax.f32 %v618_v7, 0.0  ;;  %v621_v17 = vadd.f32 %v1520_v13, %v1740_v35  ;;  %v612_v19 = vpop.f32.mrb[15].mxu0 }
 0x101   : > { %v862_v16 = vmax.f32 %v746_v8, 0.0  ;;  %v749_v18 = vadd.f32 %v1552_v14, %v1740_v35  ;;  %v740_v20 = vpop.f32.mrb[15].mxu1  ;;  %v828_v21 = vmax.f32 %v610_v11, 0.0  ;;  %v613_v23 = vadd.f32 %v1740_v35, %v612_v19 }
 0x102   : > { %v860_v22 = vmax.f32 %v738_v12, 0.0  ;;  %v741_v24 = vadd.f32 %v1740_v35, %v740_v20  ;;  %v1414_v25 = vpack.c.bf16 %v830_v15, %v830_v15  ;;  %v831_v27 = vmax.f32 %v621_v17, 0.0 }
 0x103   : > { %v1446_v26 = vpack.c.bf16 %v862_v16, %v862_v16  ;;  %v863_v28 = vmax.f32 %v749_v18, 0.0  ;;  %v1412_v29 = vpack.c.bf16 %v828_v21, %v828_v21  ;;  %v829_v31 = vmax.f32 %v613_v23, 0.0 }
 0x104   : > { %v1444_v30 = vpack.c.bf16 %v860_v22, %v860_v22  ;;  %v861_v32 = vmax.f32 %v741_v24, 0.0  ;;  %1151 = vst.msk [vmem:[%s1753_s29 + $0x38] sm:$0xf] %vm1136_vm1, %v1414_v25  ;;  %v1415_v33 = vpack.c.bf16 %v831_v27, %v831_v27 }
 0x105   : > { %1183 = vst.msk [vmem:[%s1753_s29 + $0xb8] sm:$0xf] %vm1136_vm1, %v1446_v26  ;;  %v1447_v34 = vpack.c.bf16 %v863_v28, %v863_v28  ;;  %1149 = vst.msk [vmem:[%s1753_s29 + $0x30] sm:$0xf] %vm1136_vm1, %v1412_v29  ;;  %v1413_v36 = vpack.c.bf16 %v829_v31, %v829_v31  ;;  %v1523_v38 = vpop.f32.mrb[16].mxu0 }
 0x106   : > { %1181 = vst.msk [vmem:[%s1753_s29 + $0xb0] sm:$0xf] %vm1136_vm1, %v1444_v30  ;;  %v1445_v37 = vpack.c.bf16 %v861_v32, %v861_v32  ;;  %v1555_v39 = vpop.f32.mrb[16].mxu1  ;;  %1152 = vst.msk [vmem:[%s1753_s29 + $0x3c] sm:$0xf] %vm1136_vm1, %v1415_v33  ;;  %v634_v40 = vadd.f32 %v1523_v38, %v1740_v35  ;;  %v625_v42 = vpop.f32.mrb[17].mxu0 }
 0x107   : > { %1184 = vst.msk [vmem:[%s1753_s29 + $0xbc] sm:$0xf] %vm1136_vm1, %v1447_v34  ;;  %v762_v41 = vadd.f32 %v1555_v39, %v1740_v35  ;;  %v753_v43 = vpop.f32.mrb[17].mxu1  ;;  %1150 = vst.msk [vmem:[%s1753_s29 + $0x34] sm:$0xf] %vm1136_vm1, %v1413_v36  ;;  %v626_v44 = vadd.f32 %v1740_v35, %v625_v42  ;;  %v1524_v46 = vpop.f32.mrb[18].mxu0 }
 0x108   : > { %1182 = vst.msk [vmem:[%s1753_s29 + $0xb4] sm:$0xf] %vm1136_vm1, %v1445_v37  ;;  %v754_v45 = vadd.f32 %v1740_v35, %v753_v43  ;;  %v1556_v47 = vpop.f32.mrb[18].mxu1  ;;  %v834_v48 = vmax.f32 %v634_v40, 0.0  ;;  %v637_v50 = vadd.f32 %v1524_v46, %v1740_v35  ;;  %v628_v52 = vpop.f32.mrb[19].mxu0 }
 0x109   : > { %v866_v49 = vmax.f32 %v762_v41, 0.0  ;;  %v765_v51 = vadd.f32 %v1556_v47, %v1740_v35  ;;  %v756_v53 = vpop.f32.mrb[19].mxu1  ;;  %v832_v54 = vmax.f32 %v626_v44, 0.0  ;;  %v629_v56 = vadd.f32 %v1740_v35, %v628_v52 }
 0x10a   : > { %v864_v55 = vmax.f32 %v754_v45, 0.0  ;;  %v757_v57 = vadd.f32 %v1740_v35, %v756_v53  ;;  %v1418_v58 = vpack.c.bf16 %v834_v48, %v834_v48  ;;  %v835_v60 = vmax.f32 %v637_v50, 0.0 }
 0x10b   : > { %v1450_v59 = vpack.c.bf16 %v866_v49, %v866_v49  ;;  %v867_v61 = vmax.f32 %v765_v51, 0.0  ;;  %v1416_v62 = vpack.c.bf16 %v832_v54, %v832_v54  ;;  %v833_v0 = vmax.f32 %v629_v56, 0.0 }
 0x10c   : > { %v1448_v63 = vpack.c.bf16 %v864_v55, %v864_v55  ;;  %v865_v1 = vmax.f32 %v757_v57, 0.0  ;;  %1155 = vst.msk [vmem:[%s1753_s29 + $0x48] sm:$0xf] %vm1136_vm1, %v1418_v58  ;;  %v1419_v2 = vpack.c.bf16 %v835_v60, %v835_v60 }
 0x10d   : > { %1187 = vst.msk [vmem:[%s1753_s29 + $0xc8] sm:$0xf] %vm1136_vm1, %v1450_v59  ;;  %v1451_v3 = vpack.c.bf16 %v867_v61, %v867_v61  ;;  %1153 = vst.msk [vmem:[%s1753_s29 + $0x40] sm:$0xf] %vm1136_vm1, %v1416_v62  ;;  %v1417_v4 = vpack.c.bf16 %v833_v0, %v833_v0  ;;  %v1527_v6 = vpop.f32.mrb[20].mxu0 }
 0x10e   : > { %1185 = vst.msk [vmem:[%s1753_s29 + $0xc0] sm:$0xf] %vm1136_vm1, %v1448_v63  ;;  %v1449_v5 = vpack.c.bf16 %v865_v1, %v865_v1  ;;  %v1559_v7 = vpop.f32.mrb[20].mxu1  ;;  %1156 = vst.msk [vmem:[%s1753_s29 + $0x4c] sm:$0xf] %vm1136_vm1, %v1419_v2  ;;  %v650_v8 = vadd.f32 %v1527_v6, %v1740_v35  ;;  %v641_v10 = vpop.f32.mrb[21].mxu0 }
 0x10f   : > { %1188 = vst.msk [vmem:[%s1753_s29 + $0xcc] sm:$0xf] %vm1136_vm1, %v1451_v3  ;;  %v778_v9 = vadd.f32 %v1559_v7, %v1740_v35  ;;  %v769_v11 = vpop.f32.mrb[21].mxu1  ;;  %1154 = vst.msk [vmem:[%s1753_s29 + $0x44] sm:$0xf] %vm1136_vm1, %v1417_v4  ;;  %v642_v12 = vadd.f32 %v1740_v35, %v641_v10  ;;  %v1528_v14 = vpop.f32.mrb[22].mxu0 }
 0x110   : > { %1186 = vst.msk [vmem:[%s1753_s29 + $0xc4] sm:$0xf] %vm1136_vm1, %v1449_v5  ;;  %v770_v13 = vadd.f32 %v1740_v35, %v769_v11  ;;  %v1560_v15 = vpop.f32.mrb[22].mxu1  ;;  %v838_v16 = vmax.f32 %v650_v8, 0.0  ;;  %v653_v18 = vadd.f32 %v1528_v14, %v1740_v35  ;;  %v644_v20 = vpop.f32.mrb[23].mxu0 }
 0x111   : > { %v870_v17 = vmax.f32 %v778_v9, 0.0  ;;  %v781_v19 = vadd.f32 %v1560_v15, %v1740_v35  ;;  %v772_v21 = vpop.f32.mrb[23].mxu1  ;;  %v836_v22 = vmax.f32 %v642_v12, 0.0  ;;  %v645_v24 = vadd.f32 %v1740_v35, %v644_v20 }
 0x112   : > { %v868_v23 = vmax.f32 %v770_v13, 0.0  ;;  %v773_v25 = vadd.f32 %v1740_v35, %v772_v21  ;;  %v1422_v26 = vpack.c.bf16 %v838_v16, %v838_v16  ;;  %v839_v28 = vmax.f32 %v653_v18, 0.0 }
 0x113   : > { %v1454_v27 = vpack.c.bf16 %v870_v17, %v870_v17  ;;  %v871_v29 = vmax.f32 %v781_v19, 0.0  ;;  %v1420_v30 = vpack.c.bf16 %v836_v22, %v836_v22  ;;  %v837_v32 = vmax.f32 %v645_v24, 0.0 }
 0x114   : > { %v1452_v31 = vpack.c.bf16 %v868_v23, %v868_v23  ;;  %v869_v33 = vmax.f32 %v773_v25, 0.0  ;;  %1159 = vst.msk [vmem:[%s1753_s29 + $0x58] sm:$0xf] %vm1136_vm1, %v1422_v26  ;;  %v1423_v34 = vpack.c.bf16 %v839_v28, %v839_v28 }
 0x115   : > { %1191 = vst.msk [vmem:[%s1753_s29 + $0xd8] sm:$0xf] %vm1136_vm1, %v1454_v27  ;;  %v1455_v36 = vpack.c.bf16 %v871_v29, %v871_v29  ;;  %1157 = vst.msk [vmem:[%s1753_s29 + $0x50] sm:$0xf] %vm1136_vm1, %v1420_v30  ;;  %v1421_v37 = vpack.c.bf16 %v837_v32, %v837_v32  ;;  %v1531_v39 = vpop.f32.mrb[24].mxu0 }
 0x116   : > { %1189 = vst.msk [vmem:[%s1753_s29 + $0xd0] sm:$0xf] %vm1136_vm1, %v1452_v31  ;;  %v1453_v38 = vpack.c.bf16 %v869_v33, %v869_v33  ;;  %v1563_v40 = vpop.f32.mrb[24].mxu1  ;;  %1160 = vst.msk [vmem:[%s1753_s29 + $0x5c] sm:$0xf] %vm1136_vm1, %v1423_v34  ;;  %v666_v41 = vadd.f32 %v1531_v39, %v1740_v35  ;;  %v657_v43 = vpop.f32.mrb[25].mxu0 }
 0x117   : > { %1192 = vst.msk [vmem:[%s1753_s29 + $0xdc] sm:$0xf] %vm1136_vm1, %v1455_v36  ;;  %v794_v42 = vadd.f32 %v1563_v40, %v1740_v35  ;;  %v785_v44 = vpop.f32.mrb[25].mxu1  ;;  %1158 = vst.msk [vmem:[%s1753_s29 + $0x54] sm:$0xf] %vm1136_vm1, %v1421_v37  ;;  %v658_v45 = vadd.f32 %v1740_v35, %v657_v43  ;;  %v1532_v47 = vpop.f32.mrb[26].mxu0 }
 0x118   : > { %1190 = vst.msk [vmem:[%s1753_s29 + $0xd4] sm:$0xf] %vm1136_vm1, %v1453_v38  ;;  %v786_v46 = vadd.f32 %v1740_v35, %v785_v44  ;;  %v1564_v48 = vpop.f32.mrb[26].mxu1  ;;  %v842_v49 = vmax.f32 %v666_v41, 0.0  ;;  %v669_v51 = vadd.f32 %v1532_v47, %v1740_v35  ;;  %v660_v53 = vpop.f32.mrb[27].mxu0 }
 0x119   : > { %v874_v50 = vmax.f32 %v794_v42, 0.0  ;;  %v797_v52 = vadd.f32 %v1564_v48, %v1740_v35  ;;  %v788_v54 = vpop.f32.mrb[27].mxu1  ;;  %v840_v55 = vmax.f32 %v658_v45, 0.0  ;;  %v661_v57 = vadd.f32 %v1740_v35, %v660_v53 }
 0x11a   : > { %v872_v56 = vmax.f32 %v786_v46, 0.0  ;;  %v789_v58 = vadd.f32 %v1740_v35, %v788_v54  ;;  %v1426_v59 = vpack.c.bf16 %v842_v49, %v842_v49  ;;  %v843_v61 = vmax.f32 %v669_v51, 0.0 }
 0x11b   : > { %v1458_v60 = vpack.c.bf16 %v874_v50, %v874_v50  ;;  %v875_v62 = vmax.f32 %v797_v52, 0.0  ;;  %v1424_v63 = vpack.c.bf16 %v840_v55, %v840_v55  ;;  %v841_v1 = vmax.f32 %v661_v57, 0.0 }
 0x11c   : > { %v1456_v0 = vpack.c.bf16 %v872_v56, %v872_v56  ;;  %v873_v2 = vmax.f32 %v789_v58, 0.0  ;;  %1163 = vst.msk [vmem:[%s1753_s29 + $0x68] sm:$0xf] %vm1136_vm1, %v1426_v59  ;;  %v1427_v3 = vpack.c.bf16 %v843_v61, %v843_v61 }
 0x11d   : > { %1195 = vst.msk [vmem:[%s1753_s29 + $0xe8] sm:$0xf] %vm1136_vm1, %v1458_v60  ;;  %v1459_v4 = vpack.c.bf16 %v875_v62, %v875_v62  ;;  %1161 = vst.msk [vmem:[%s1753_s29 + $0x60] sm:$0xf] %vm1136_vm1, %v1424_v63  ;;  %v1425_v5 = vpack.c.bf16 %v841_v1, %v841_v1  ;;  %v1535_v7 = vpop.f32.mrb[28].mxu0 }
 0x11e   : > { %1193 = vst.msk [vmem:[%s1753_s29 + $0xe0] sm:$0xf] %vm1136_vm1, %v1456_v0  ;;  %v1457_v6 = vpack.c.bf16 %v873_v2, %v873_v2  ;;  %v1567_v8 = vpop.f32.mrb[28].mxu1  ;;  %1164 = vst.msk [vmem:[%s1753_s29 + $0x6c] sm:$0xf] %vm1136_vm1, %v1427_v3  ;;  %v682_v9 = vadd.f32 %v1535_v7, %v1740_v35  ;;  %v673_v11 = vpop.f32.mrb[29].mxu0 }
 0x11f   : > { %1196 = vst.msk [vmem:[%s1753_s29 + $0xec] sm:$0xf] %vm1136_vm1, %v1459_v4  ;;  %v810_v10 = vadd.f32 %v1567_v8, %v1740_v35  ;;  %v801_v12 = vpop.f32.mrb[29].mxu1  ;;  %1162 = vst.msk [vmem:[%s1753_s29 + $0x64] sm:$0xf] %vm1136_vm1, %v1425_v5  ;;  %v674_v13 = vadd.f32 %v1740_v35, %v673_v11  ;;  %v1536_v15 = vpop.f32.mrb[30].mxu0 }
 0x120   : > { %1194 = vst.msk [vmem:[%s1753_s29 + $0xe4] sm:$0xf] %vm1136_vm1, %v1457_v6  ;;  %v802_v14 = vadd.f32 %v1740_v35, %v801_v12  ;;  %v1568_v16 = vpop.f32.mrb[30].mxu1  ;;  %v846_v17 = vmax.f32 %v682_v9, 0.0  ;;  %v685_v19 = vadd.f32 %v1536_v15, %v1740_v35  ;;  %v676_v21 = vpop.f32.mrb[31].mxu0 }
 0x121   : > { %v878_v18 = vmax.f32 %v810_v10, 0.0  ;;  %v813_v20 = vadd.f32 %v1568_v16, %v1740_v35  ;;  %v804_v22 = vpop.f32.mrb[31].mxu1  ;;  %v844_v23 = vmax.f32 %v674_v13, 0.0  ;;  %v677_v25 = vadd.f32 %v1740_v35, %v676_v21 }
 0x122   : > { %v876_v24 = vmax.f32 %v802_v14, 0.0  ;;  %v805_v26 = vadd.f32 %v1740_v35, %v804_v22  ;;  %v1430_v27 = vpack.c.bf16 %v846_v17, %v846_v17  ;;  %v847_v29 = vmax.f32 %v685_v19, 0.0 }
 0x123   : > { %v1462_v28 = vpack.c.bf16 %v878_v18, %v878_v18  ;;  %v879_v30 = vmax.f32 %v813_v20, 0.0  ;;  %v1428_v31 = vpack.c.bf16 %v844_v23, %v844_v23  ;;  %v845_v33 = vmax.f32 %v677_v25, 0.0 }
 0x124   : > { %v1460_v32 = vpack.c.bf16 %v876_v24, %v876_v24  ;;  %v877_v34 = vmax.f32 %v805_v26, 0.0  ;;  %1167 = vst.msk [vmem:[%s1753_s29 + $0x78] sm:$0xf] %vm1136_vm1, %v1430_v27  ;;  %v1431_v36 = vpack.c.bf16 %v847_v29, %v847_v29 }
 0x125   : > { %1199 = vst.msk [vmem:[%s1753_s29 + $0xf8] sm:$0xf] %vm1136_vm1, %v1462_v28  ;;  %v1463_v37 = vpack.c.bf16 %v879_v30, %v879_v30  ;;  %1165 = vst.msk [vmem:[%s1753_s29 + $0x70] sm:$0xf] %vm1136_vm1, %v1428_v31  ;;  %v1429_v35 = vpack.c.bf16 %v845_v33, %v845_v33 }
 0x126   : > { %1197 = vst.msk [vmem:[%s1753_s29 + $0xf0] sm:$0xf] %vm1136_vm1, %v1460_v32  ;;  %v1461_v38 = vpack.c.bf16 %v877_v34, %v877_v34  ;;  %1168 = vst.msk [vmem:[%s1753_s29 + $0x7c] sm:$0xf] %vm1136_vm1, %v1431_v36 }
 0x127   : > { %1200 = vst.msk [vmem:[%s1753_s29 + $0xfc] sm:$0xf] %vm1136_vm1, %v1463_v37  ;;  %1166 = vst.msk [vmem:[%s1753_s29 + $0x74] sm:$0xf] %vm1136_vm1, %v1429_v35 }
 0x128   : > { %1198 = vst.msk [vmem:[%s1753_s29 + $0xf4] sm:$0xf] %vm1136_vm1, %v1461_v38 }
 0x129 PF: > { %s13_s12 = sadd.s32 1, %s1624_s12  }
 0x12a   : > { %p10_p4 = scmp.ge.s32.totalorder %s13_s12, 6  }
 0x12c   :  { %12 = sbr.rel (!%p10_p4) target bundleno = 1 (0x1), region = 62 }

// kernel: discriminator_forward.10
= control target key start
LH: loop header
LB: loop body
LE: loop exit
PB: predicated region body
PF: predicated region fallthrough
CT: control target
= control target key end

     0   :  { %s1502_s0 = inlined_call_operand.vmem [shape: bf16[512,128], index: 0, kind: input, shape index: {}]   ;;  %s1503_s1 = inlined_call_operand.vmem [shape: f32[1,128], index: 1, kind: input, shape index: {}]   ;;  %s1504_s2 = inlined_call_operand.vmem [shape: f32[1,128], index: 2, kind: input, shape index: {}]   ;;  %s1505_s3 = inlined_call_operand.vmem [shape: bf16[512,128], index: 3, kind: output, shape index: {}]  }
   0x1   :  { %v803_v0 = vld [vmem:[%s1502_s0] sm:$0xff]   ;;  %v1090_v4 = vld [vmem:[%s1502_s0 + $0x8] sm:$0xff]   ;;  %v1091_v5 = vld [vmem:[%s1502_s0 + $0x10] sm:$0xff]  }
   0x2   :  { %v1178_v1 = vld [vmem:[%s1503_s1] ss:$0 sm:$0xff]  ;;  %v804_v2 = vunpack.c.l.bf16 %v803_v0  ;;  %v805_v3 = vunpack.c.h.bf16 %v803_v0  ;;  %v1092_v6 = vld [vmem:[%s1502_s0 + $0x18] sm:$0xff]   ;;  %v808_v8 = vunpack.c.l.bf16 %v1090_v4  ;;  %v809_v9 = vunpack.c.h.bf16 %v1090_v4  ;;  %v1094_v33 = vld [vmem:[%s1502_s0 + $0x28] sm:$0xff]  }
   0x3   :  { %v1192_v7 = vld [vmem:[%s1504_s2] ss:$0 sm:$0xff]  ;;  %v812_v10 = vunpack.c.l.bf16 %v1091_v5  ;;  %v813_v11 = vunpack.c.h.bf16 %v1091_v5  ;;  %v816_v14 = vunpack.c.l.bf16 %v1092_v6  ;;  %v817_v15 = vunpack.c.h.bf16 %v1092_v6  ;;  %v1095_v38 = vld [vmem:[%s1502_s0 + $0x30] sm:$0xff]   ;;  %v1096_v43 = vld [vmem:[%s1502_s0 + $0x38] sm:$0xff]  }
   0x4   :  { %v149_v12 = vmul.f32 %v804_v2, %v1178_v1  ;;  %v150_v13 = vmul.f32 %v805_v3, %v1178_v1  ;;  %v151_v16 = vmul.f32 %v808_v8, %v1178_v1  ;;  %v152_v17 = vmul.f32 %v809_v9, %v1178_v1  ;;  %v1093_v28 = vld [vmem:[%s1502_s0 + $0x20] sm:$0xff]  }
   0x5   :  { %v153_v18 = vmul.f32 %v812_v10, %v1178_v1  ;;  %v154_v19 = vmul.f32 %v813_v11, %v1178_v1  ;;  %v155_v22 = vmul.f32 %v816_v14, %v1178_v1  ;;  %v156_v23 = vmul.f32 %v817_v15, %v1178_v1  ;;  %v1097_v0 = vld [vmem:[%s1502_s0 + $0x40] sm:$0xff]   ;;  %v1098_v11 = vld [vmem:[%s1502_s0 + $0x48] sm:$0xff]  }
   0x6   :  { %v220_v20 = vadd.f32 %v1192_v7, %v149_v12  ;;  %v221_v21 = vadd.f32 %v1192_v7, %v150_v13  ;;  %v222_v24 = vadd.f32 %v1192_v7, %v151_v16  ;;  %v223_v25 = vadd.f32 %v1192_v7, %v152_v17  ;;  %v1099_v16 = vld [vmem:[%s1502_s0 + $0x50] sm:$0xff]  }
   0x7   :  { %v224_v26 = vadd.f32 %v1192_v7, %v153_v18  ;;  %v225_v27 = vadd.f32 %v1192_v7, %v154_v19  ;;  %v226_v31 = vadd.f32 %v1192_v7, %v155_v22  ;;  %v227_v32 = vadd.f32 %v1192_v7, %v156_v23 }
   0x8   :  { %v284_v29 = vmax.f32 %v220_v20, 0.0  ;;  %v285_v30 = vmax.f32 %v221_v21, 0.0  ;;  %v286_v34 = vmax.f32 %v222_v24, 0.0  ;;  %v287_v35 = vmax.f32 %v223_v25, 0.0  ;;  %v1100_v25 = vld [vmem:[%s1502_s0 + $0x58] sm:$0xff]  }
   0x9   :  { %v288_v36 = vmax.f32 %v224_v26, 0.0  ;;  %v289_v37 = vmax.f32 %v225_v27, 0.0  ;;  %v290_v40 = vmax.f32 %v226_v31, 0.0  ;;  %v291_v41 = vmax.f32 %v227_v32, 0.0 }
   0xa   :  { %v933_v39 = vpack.c.bf16 %v285_v30, %v284_v29  ;;  %v820_v42 = vunpack.c.l.bf16 %v1093_v28  ;;  %v938_v44 = vpack.c.bf16 %v287_v35, %v286_v34  ;;  %v821_v46 = vunpack.c.h.bf16 %v1093_v28 }
   0xb   :  { %v943_v45 = vpack.c.bf16 %v289_v37, %v288_v36  ;;  %v824_v47 = vunpack.c.l.bf16 %v1094_v33  ;;  %v948_v48 = vpack.c.bf16 %v291_v41, %v290_v40  ;;  %v825_v50 = vunpack.c.h.bf16 %v1094_v33 }
   0xc   :  { %934 = vst [vmem:[%s1505_s3] sm:$0xff] %v933_v39   ;;  %v157_v49 = vmul.f32 %v820_v42, %v1178_v1  ;;  %v828_v51 = vunpack.c.l.bf16 %v1095_v38  ;;  %1121 = vst [vmem:[%s1505_s3 + $0x8] sm:$0xff] %v938_v44   ;;  %v158_v52 = vmul.f32 %v821_v46, %v1178_v1  ;;  %v829_v54 = vunpack.c.h.bf16 %v1095_v38  ;;  %v1101_v38 = vld [vmem:[%s1502_s0 + $0x60] sm:$0xff]  }
   0xd   :  { %1122 = vst [vmem:[%s1505_s3 + $0x10] sm:$0xff] %v943_v45   ;;  %v159_v53 = vmul.f32 %v824_v47, %v1178_v1  ;;  %v832_v55 = vunpack.c.l.bf16 %v1096_v43  ;;  %1123 = vst [vmem:[%s1505_s3 + $0x18] sm:$0xff] %v948_v48   ;;  %v160_v57 = vmul.f32 %v825_v50, %v1178_v1  ;;  %v833_v59 = vunpack.c.h.bf16 %v1096_v43 }
   0xe   :  { %v228_v56 = vadd.f32 %v1192_v7, %v157_v49  ;;  %v161_v58 = vmul.f32 %v828_v51, %v1178_v1  ;;  %v229_v60 = vadd.f32 %v1192_v7, %v158_v52  ;;  %v162_v62 = vmul.f32 %v829_v54, %v1178_v1  ;;  %v1102_v51 = vld [vmem:[%s1502_s0 + $0x68] sm:$0xff]  }
   0xf   :  { %v230_v61 = vadd.f32 %v1192_v7, %v159_v53  ;;  %v163_v63 = vmul.f32 %v832_v55, %v1178_v1  ;;  %v231_v3 = vadd.f32 %v1192_v7, %v160_v57  ;;  %v164_v5 = vmul.f32 %v833_v59, %v1178_v1 }
  0x10   :  { %v292_v2 = vmax.f32 %v228_v56, 0.0  ;;  %v232_v4 = vadd.f32 %v1192_v7, %v161_v58  ;;  %v293_v6 = vmax.f32 %v229_v60, 0.0  ;;  %v233_v9 = vadd.f32 %v1192_v7, %v162_v62  ;;  %v1103_v60 = vld [vmem:[%s1502_s0 + $0x70] sm:$0xff]  }
  0x11   :  { %v294_v8 = vmax.f32 %v230_v61, 0.0  ;;  %v234_v10 = vadd.f32 %v1192_v7, %v163_v63  ;;  %v295_v12 = vmax.f32 %v231_v3, 0.0  ;;  %v235_v14 = vadd.f32 %v1192_v7, %v164_v5 }
  0x12   :  { %v296_v13 = vmax.f32 %v232_v4, 0.0  ;;  %v836_v15 = vunpack.c.l.bf16 %v1097_v0  ;;  %v953_v17 = vpack.c.bf16 %v293_v6, %v292_v2  ;;  %v297_v18 = vmax.f32 %v233_v9, 0.0  ;;  %v1104_v2 = vld [vmem:[%s1502_s0 + $0x78] sm:$0xff]  }
  0x13   :  { %v298_v19 = vmax.f32 %v234_v10, 0.0  ;;  %v837_v20 = vunpack.c.h.bf16 %v1097_v0  ;;  %v958_v21 = vpack.c.bf16 %v295_v12, %v294_v8  ;;  %v299_v22 = vmax.f32 %v235_v14, 0.0  ;;  %v1105_v12 = vld [vmem:[%s1502_s0 + $0x80] sm:$0xff]  }
  0x14   :  { %v165_v23 = vmul.f32 %v836_v15, %v1178_v1  ;;  %v840_v24 = vunpack.c.l.bf16 %v1098_v11  ;;  %1124 = vst [vmem:[%s1505_s3 + $0x20] sm:$0xff] %v953_v17   ;;  %v963_v26 = vpack.c.bf16 %v297_v18, %v296_v13  ;;  %v841_v28 = vunpack.c.h.bf16 %v1098_v11 }
  0x15   :  { %v166_v27 = vmul.f32 %v837_v20, %v1178_v1  ;;  %v844_v29 = vunpack.c.l.bf16 %v1099_v16  ;;  %1125 = vst [vmem:[%s1505_s3 + $0x28] sm:$0xff] %v958_v21   ;;  %v968_v30 = vpack.c.bf16 %v299_v22, %v298_v19  ;;  %v845_v33 = vunpack.c.h.bf16 %v1099_v16 }
  0x16   :  { %v236_v31 = vadd.f32 %v1192_v7, %v165_v23  ;;  %v167_v32 = vmul.f32 %v840_v24, %v1178_v1  ;;  %1126 = vst [vmem:[%s1505_s3 + $0x30] sm:$0xff] %v963_v26   ;;  %v168_v35 = vmul.f32 %v841_v28, %v1178_v1  ;;  %v848_v37 = vunpack.c.l.bf16 %v1100_v25 }
  0x17   :  { %v237_v34 = vadd.f32 %v1192_v7, %v166_v27  ;;  %v169_v36 = vmul.f32 %v844_v29, %v1178_v1  ;;  %1127 = vst [vmem:[%s1505_s3 + $0x38] sm:$0xff] %v968_v30   ;;  %v170_v41 = vmul.f32 %v845_v33, %v1178_v1  ;;  %v849_v42 = vunpack.c.h.bf16 %v1100_v25  ;;  %v1106_v29 = vld [vmem:[%s1502_s0 + $0x88] sm:$0xff]  }
  0x18   :  { %v300_v39 = vmax.f32 %v236_v31, 0.0  ;;  %v238_v40 = vadd.f32 %v1192_v7, %v167_v32  ;;  %v239_v44 = vadd.f32 %v1192_v7, %v168_v35  ;;  %v171_v46 = vmul.f32 %v848_v37, %v1178_v1 }
  0x19   :  { %v301_v43 = vmax.f32 %v237_v34, 0.0  ;;  %v240_v45 = vadd.f32 %v1192_v7, %v169_v36  ;;  %v241_v48 = vadd.f32 %v1192_v7, %v170_v41  ;;  %v172_v49 = vmul.f32 %v849_v42, %v1178_v1  ;;  %v1107_v34 = vld [vmem:[%s1502_s0 + $0x90] sm:$0xff]  }
  0x1a   :  { %v302_v47 = vmax.f32 %v238_v40, 0.0  ;;  %v852_v50 = vunpack.c.l.bf16 %v1101_v38  ;;  %v303_v53 = vmax.f32 %v239_v44, 0.0  ;;  %v242_v55 = vadd.f32 %v1192_v7, %v171_v46 }
  0x1b   :  { %v973_v52 = vpack.c.bf16 %v301_v43, %v300_v39  ;;  %v304_v54 = vmax.f32 %v240_v45, 0.0  ;;  %v305_v56 = vmax.f32 %v241_v48, 0.0  ;;  %v243_v57 = vadd.f32 %v1192_v7, %v172_v49  ;;  %v1108_v43 = vld [vmem:[%s1502_s0 + $0x98] sm:$0xff]  }
  0x1c   :  { %v853_v58 = vunpack.c.h.bf16 %v1101_v38  ;;  %v173_v59 = vmul.f32 %v852_v50, %v1178_v1  ;;  %v978_v61 = vpack.c.bf16 %v303_v53, %v302_v47  ;;  %v306_v62 = vmax.f32 %v242_v55, 0.0 }
  0x1d   :  { %1128 = vst [vmem:[%s1505_s3 + $0x40] sm:$0xff] %v973_v52   ;;  %v856_v63 = vunpack.c.l.bf16 %v1102_v51  ;;  %v857_v0 = vunpack.c.h.bf16 %v1102_v51  ;;  %v983_v3 = vpack.c.bf16 %v305_v56, %v304_v54  ;;  %v307_v4 = vmax.f32 %v243_v57, 0.0  ;;  %v1109_v56 = vld [vmem:[%s1502_s0 + $0xa0] sm:$0xff]  }
  0x1e   :  { %v174_v5 = vmul.f32 %v853_v58, %v1178_v1  ;;  %v244_v6 = vadd.f32 %v1192_v7, %v173_v59  ;;  %1129 = vst [vmem:[%s1505_s3 + $0x48] sm:$0xff] %v978_v61   ;;  %v860_v10 = vunpack.c.l.bf16 %v1103_v60  ;;  %v861_v11 = vunpack.c.h.bf16 %v1103_v60 }
  0x1f   :  { %v175_v8 = vmul.f32 %v856_v63, %v1178_v1  ;;  %v176_v9 = vmul.f32 %v857_v0, %v1178_v1  ;;  %1130 = vst [vmem:[%s1505_s3 + $0x50] sm:$0xff] %v983_v3   ;;  %v988_v13 = vpack.c.bf16 %v307_v4, %v306_v62  ;;  %v864_v16 = vunpack.c.l.bf16 %v1104_v2 }
  0x20   :  { %v245_v14 = vadd.f32 %v1192_v7, %v174_v5  ;;  %v308_v15 = vmax.f32 %v244_v6, 0.0  ;;  %v177_v19 = vmul.f32 %v860_v10, %v1178_v1  ;;  %v178_v20 = vmul.f32 %v861_v11, %v1178_v1 }
  0x21   :  { %v246_v17 = vadd.f32 %v1192_v7, %v175_v8  ;;  %v247_v18 = vadd.f32 %v1192_v7, %v176_v9  ;;  %1131 = vst [vmem:[%s1505_s3 + $0x58] sm:$0xff] %v988_v13   ;;  %v865_v22 = vunpack.c.h.bf16 %v1104_v2  ;;  %v179_v23 = vmul.f32 %v864_v16, %v1178_v1  ;;  %v1110_v2 = vld [vmem:[%s1502_s0 + $0xa8] sm:$0xff]   ;;  %v1111_v16 = vld [vmem:[%s1502_s0 + $0xb0] sm:$0xff]  }
  0x22   :  { %v309_v21 = vmax.f32 %v245_v14, 0.0  ;;  %v868_v24 = vunpack.c.l.bf16 %v1105_v12  ;;  %v248_v27 = vadd.f32 %v1192_v7, %v177_v19  ;;  %v249_v28 = vadd.f32 %v1192_v7, %v178_v20 }
  0x23   :  { %v310_v25 = vmax.f32 %v246_v17, 0.0  ;;  %v311_v26 = vmax.f32 %v247_v18, 0.0  ;;  %v180_v31 = vmul.f32 %v865_v22, %v1178_v1  ;;  %v250_v32 = vadd.f32 %v1192_v7, %v179_v23 }
  0x24   :  { %v993_v30 = vpack.c.bf16 %v309_v21, %v308_v15  ;;  %v869_v33 = vunpack.c.h.bf16 %v1105_v12  ;;  %v312_v36 = vmax.f32 %v248_v27, 0.0  ;;  %v313_v37 = vmax.f32 %v249_v28, 0.0  ;;  %v1112_v21 = vld [vmem:[%s1502_s0 + $0xb8] sm:$0xff]  }
  0x25   :  { %v998_v35 = vpack.c.bf16 %v311_v26, %v310_v25  ;;  %v181_v38 = vmul.f32 %v868_v24, %v1178_v1  ;;  %v251_v39 = vadd.f32 %v1192_v7, %v180_v31  ;;  %v314_v40 = vmax.f32 %v250_v32, 0.0 }
  0x26   :  { %1132 = vst [vmem:[%s1505_s3 + $0x60] sm:$0xff] %v993_v30   ;;  %v182_v41 = vmul.f32 %v869_v33, %v1178_v1  ;;  %v872_v42 = vunpack.c.l.bf16 %v1106_v29  ;;  %v1003_v44 = vpack.c.bf16 %v313_v37, %v312_v36  ;;  %v873_v46 = vunpack.c.h.bf16 %v1106_v29 }
  0x27   :  { %1133 = vst [vmem:[%s1505_s3 + $0x68] sm:$0xff] %v998_v35   ;;  %v252_v45 = vadd.f32 %v1192_v7, %v181_v38  ;;  %v876_v47 = vunpack.c.l.bf16 %v1107_v34  ;;  %v315_v48 = vmax.f32 %v251_v39, 0.0  ;;  %v877_v51 = vunpack.c.h.bf16 %v1107_v34  ;;  %v1113_v34 = vld [vmem:[%s1502_s0 + $0xc0] sm:$0xff]  }
  0x28   :  { %v253_v49 = vadd.f32 %v1192_v7, %v182_v41  ;;  %v183_v50 = vmul.f32 %v872_v42, %v1178_v1  ;;  %1134 = vst [vmem:[%s1505_s3 + $0x70] sm:$0xff] %v1003_v44   ;;  %v184_v53 = vmul.f32 %v873_v46, %v1178_v1  ;;  %v880_v55 = vunpack.c.l.bf16 %v1108_v43 }
  0x29   :  { %v316_v52 = vmax.f32 %v252_v45, 0.0  ;;  %v185_v54 = vmul.f32 %v876_v47, %v1178_v1  ;;  %v1008_v57 = vpack.c.bf16 %v315_v48, %v314_v40  ;;  %v186_v60 = vmul.f32 %v877_v51, %v1178_v1  ;;  %v1114_v47 = vld [vmem:[%s1502_s0 + $0xc8] sm:$0xff]  }
  0x2a   :  { %v317_v58 = vmax.f32 %v253_v49, 0.0  ;;  %v254_v59 = vadd.f32 %v1192_v7, %v183_v50  ;;  %v255_v61 = vadd.f32 %v1192_v7, %v184_v53  ;;  %v881_v63 = vunpack.c.h.bf16 %v1108_v43 }
  0x2b   :  { %v256_v62 = vadd.f32 %v1192_v7, %v185_v54  ;;  %v187_v0 = vmul.f32 %v880_v55, %v1178_v1  ;;  %1135 = vst [vmem:[%s1505_s3 + $0x78] sm:$0xff] %v1008_v57   ;;  %v257_v5 = vadd.f32 %v1192_v7, %v186_v60  ;;  %v884_v6 = vunpack.c.l.bf16 %v1109_v56 }
  0x2c   :  { %v1013_v3 = vpack.c.bf16 %v317_v58, %v316_v52  ;;  %v318_v4 = vmax.f32 %v254_v59, 0.0  ;;  %v319_v8 = vmax.f32 %v255_v61, 0.0  ;;  %v188_v10 = vmul.f32 %v881_v63, %v1178_v1  ;;  %v1115_v52 = vld [vmem:[%s1502_s0 + $0xd0] sm:$0xff]   ;;  %v1116_v61 = vld [vmem:[%s1502_s0 + $0xd8] sm:$0xff]  }
  0x2d   :  { %v320_v9 = vmax.f32 %v256_v62, 0.0  ;;  %v258_v11 = vadd.f32 %v1192_v7, %v187_v0  ;;  %v321_v12 = vmax.f32 %v257_v5, 0.0  ;;  %v885_v13 = vunpack.c.h.bf16 %v1109_v56 }
  0x2e   :  { %1136 = vst [vmem:[%s1505_s3 + $0x80] sm:$0xff] %v1013_v3   ;;  %v189_v14 = vmul.f32 %v884_v6, %v1178_v1  ;;  %v888_v15 = vunpack.c.l.bf16 %v1110_v2  ;;  %v1018_v17 = vpack.c.bf16 %v319_v8, %v318_v4  ;;  %v259_v18 = vadd.f32 %v1192_v7, %v188_v10 }
  0x2f   :  { %v322_v19 = vmax.f32 %v258_v11, 0.0  ;;  %v889_v20 = vunpack.c.h.bf16 %v1110_v2  ;;  %v1023_v22 = vpack.c.bf16 %v321_v12, %v320_v9  ;;  %v190_v23 = vmul.f32 %v885_v13, %v1178_v1  ;;  %v1117_v12 = vld [vmem:[%s1502_s0 + $0xe0] sm:$0xff]  }
  0x30   :  { %v260_v24 = vadd.f32 %v1192_v7, %v189_v14  ;;  %v191_v25 = vmul.f32 %v888_v15, %v1178_v1  ;;  %1137 = vst [vmem:[%s1505_s3 + $0x88] sm:$0xff] %v1018_v17   ;;  %v323_v26 = vmax.f32 %v259_v18, 0.0  ;;  %v892_v28 = vunpack.c.l.bf16 %v1111_v16 }
  0x31   :  { %v192_v27 = vmul.f32 %v889_v20, %v1178_v1  ;;  %v893_v29 = vunpack.c.h.bf16 %v1111_v16  ;;  %1138 = vst [vmem:[%s1505_s3 + $0x90] sm:$0xff] %v1023_v22   ;;  %v261_v30 = vadd.f32 %v1192_v7, %v190_v23  ;;  %v896_v33 = vunpack.c.l.bf16 %v1112_v21 }
  0x32   :  { %v324_v31 = vmax.f32 %v260_v24, 0.0  ;;  %v262_v32 = vadd.f32 %v1192_v7, %v191_v25  ;;  %v1028_v35 = vpack.c.bf16 %v323_v26, %v322_v19  ;;  %v193_v37 = vmul.f32 %v892_v28, %v1178_v1 }
  0x33   :  { %v263_v36 = vadd.f32 %v1192_v7, %v192_v27  ;;  %v194_v38 = vmul.f32 %v893_v29, %v1178_v1  ;;  %v325_v39 = vmax.f32 %v261_v30, 0.0  ;;  %v897_v41 = vunpack.c.h.bf16 %v1112_v21  ;;  %v1118_v21 = vld [vmem:[%s1502_s0 + $0xe8] sm:$0xff]  }
  0x34   :  { %v326_v40 = vmax.f32 %v262_v32, 0.0  ;;  %v195_v42 = vmul.f32 %v896_v33, %v1178_v1  ;;  %1139 = vst [vmem:[%s1505_s3 + $0x98] sm:$0xff] %v1028_v35   ;;  %v264_v44 = vadd.f32 %v1192_v7, %v193_v37  ;;  %v900_v46 = vunpack.c.l.bf16 %v1113_v34 }
  0x35   :  { %v327_v43 = vmax.f32 %v263_v36, 0.0  ;;  %v265_v45 = vadd.f32 %v1192_v7, %v194_v38  ;;  %v1033_v48 = vpack.c.bf16 %v325_v39, %v324_v31  ;;  %v196_v49 = vmul.f32 %v897_v41, %v1178_v1  ;;  %v1120_v39 = vld [vmem:[%s1502_s0 + $0xf8] sm:$0xff]  }
  0x36   :  { %v266_v50 = vadd.f32 %v1192_v7, %v195_v42  ;;  %v901_v51 = vunpack.c.h.bf16 %v1113_v34  ;;  %v328_v54 = vmax.f32 %v264_v44, 0.0  ;;  %v197_v56 = vmul.f32 %v900_v46, %v1178_v1  ;;  %v1119_v34 = vld [vmem:[%s1502_s0 + $0xf0] sm:$0xff]  }
  0x37   :  { %v1038_v53 = vpack.c.bf16 %v327_v43, %v326_v40  ;;  %v329_v55 = vmax.f32 %v265_v45, 0.0  ;;  %1140 = vst [vmem:[%s1505_s3 + $0xa0] sm:$0xff] %v1033_v48   ;;  %v267_v57 = vadd.f32 %v1192_v7, %v196_v49  ;;  %v904_v60 = vunpack.c.l.bf16 %v1114_v47 }
  0x38   :  { %v330_v58 = vmax.f32 %v266_v50, 0.0  ;;  %v198_v59 = vmul.f32 %v901_v51, %v1178_v1  ;;  %v268_v63 = vadd.f32 %v1192_v7, %v197_v56  ;;  %v905_v0 = vunpack.c.h.bf16 %v1114_v47 }
  0x39   :  { %1141 = vst [vmem:[%s1505_s3 + $0xa8] sm:$0xff] %v1038_v53   ;;  %v1043_v62 = vpack.c.bf16 %v329_v55, %v328_v54  ;;  %v908_v2 = vunpack.c.l.bf16 %v1115_v52  ;;  %v331_v3 = vmax.f32 %v267_v57, 0.0  ;;  %v199_v5 = vmul.f32 %v904_v60, %v1178_v1 }
  0x3a   :  { %v269_v4 = vadd.f32 %v1192_v7, %v198_v59  ;;  %v909_v6 = vunpack.c.h.bf16 %v1115_v52  ;;  %v332_v8 = vmax.f32 %v268_v63, 0.0  ;;  %v200_v9 = vmul.f32 %v905_v0, %v1178_v1 }
  0x3b   :  { %1142 = vst [vmem:[%s1505_s3 + $0xb0] sm:$0xff] %v1043_v62   ;;  %v201_v10 = vmul.f32 %v908_v2, %v1178_v1  ;;  %v912_v11 = vunpack.c.l.bf16 %v1116_v61  ;;  %v1048_v13 = vpack.c.bf16 %v331_v3, %v330_v58  ;;  %v270_v15 = vadd.f32 %v1192_v7, %v199_v5 }
  0x3c   :  { %v333_v14 = vmax.f32 %v269_v4, 0.0  ;;  %v202_v16 = vmul.f32 %v909_v6, %v1178_v1  ;;  %v271_v17 = vadd.f32 %v1192_v7, %v200_v9  ;;  %v913_v19 = vunpack.c.h.bf16 %v1116_v61 }
  0x3d   :  { %v272_v18 = vadd.f32 %v1192_v7, %v201_v10  ;;  %v203_v20 = vmul.f32 %v912_v11, %v1178_v1  ;;  %1143 = vst [vmem:[%s1505_s3 + $0xb8] sm:$0xff] %v1048_v13   ;;  %v334_v23 = vmax.f32 %v270_v15, 0.0  ;;  %v916_v25 = vunpack.c.l.bf16 %v1117_v12 }
  0x3e   :  { %v1053_v22 = vpack.c.bf16 %v333_v14, %v332_v8  ;;  %v273_v24 = vadd.f32 %v1192_v7, %v202_v16  ;;  %v335_v26 = vmax.f32 %v271_v17, 0.0  ;;  %v204_v28 = vmul.f32 %v913_v19, %v1178_v1 }
  0x3f   :  { %v336_v27 = vmax.f32 %v272_v18, 0.0  ;;  %v274_v29 = vadd.f32 %v1192_v7, %v203_v20  ;;  %v917_v31 = vunpack.c.h.bf16 %v1117_v12  ;;  %v205_v32 = vmul.f32 %v916_v25, %v1178_v1 }
  0x40   :  { %1144 = vst [vmem:[%s1505_s3 + $0xc0] sm:$0xff] %v1053_v22   ;;  %v337_v30 = vmax.f32 %v273_v24, 0.0  ;;  %v920_v33 = vunpack.c.l.bf16 %v1118_v21  ;;  %v1058_v35 = vpack.c.bf16 %v335_v26, %v334_v23  ;;  %v275_v36 = vadd.f32 %v1192_v7, %v204_v28 }
  0x41   :  { %v338_v37 = vmax.f32 %v274_v29, 0.0  ;;  %v921_v38 = vunpack.c.h.bf16 %v1118_v21  ;;  %v206_v41 = vmul.f32 %v917_v31, %v1178_v1  ;;  %v276_v42 = vadd.f32 %v1192_v7, %v205_v32 }
  0x42   :  { %v1063_v40 = vpack.c.bf16 %v337_v30, %v336_v27  ;;  %v207_v43 = vmul.f32 %v920_v33, %v1178_v1  ;;  %1145 = vst [vmem:[%s1505_s3 + $0xc8] sm:$0xff] %v1058_v35   ;;  %v339_v44 = vmax.f32 %v275_v36, 0.0  ;;  %v924_v46 = vunpack.c.l.bf16 %v1119_v34 }
  0x43   :  { %v208_v45 = vmul.f32 %v921_v38, %v1178_v1  ;;  %v925_v47 = vunpack.c.h.bf16 %v1119_v34  ;;  %v277_v48 = vadd.f32 %v1192_v7, %v206_v41  ;;  %v340_v49 = vmax.f32 %v276_v42, 0.0 }
  0x44   :  { %1146 = vst [vmem:[%s1505_s3 + $0xd0] sm:$0xff] %v1063_v40   ;;  %v278_v50 = vadd.f32 %v1192_v7, %v207_v43  ;;  %v928_v51 = vunpack.c.l.bf16 %v1120_v39  ;;  %v1068_v52 = vpack.c.bf16 %v339_v44, %v338_v37  ;;  %v209_v54 = vmul.f32 %v924_v46, %v1178_v1 }
  0x45   :  { %v279_v53 = vadd.f32 %v1192_v7, %v208_v45  ;;  %v210_v55 = vmul.f32 %v925_v47, %v1178_v1  ;;  %v341_v56 = vmax.f32 %v277_v48, 0.0  ;;  %v929_v58 = vunpack.c.h.bf16 %v1120_v39 }
  0x46   :  { %v342_v57 = vmax.f32 %v278_v50, 0.0  ;;  %v211_v59 = vmul.f32 %v928_v51, %v1178_v1  ;;  %1147 = vst [vmem:[%s1505_s3 + $0xd8] sm:$0xff] %v1068_v52   ;;  %v280_v61 = vadd.f32 %v1192_v7, %v209_v54 }
  0x47   :  { %v343_v60 = vmax.f32 %v279_v53, 0.0  ;;  %v281_v62 = vadd.f32 %v1192_v7, %v210_v55  ;;  %v1073_v63 = vpack.c.bf16 %v341_v56, %v340_v49  ;;  %v212_v0 = vmul.f32 %v929_v58, %v1178_v1 }
  0x48   :  { %v282_v2 = vadd.f32 %v1192_v7, %v211_v59  ;;  %v344_v4 = vmax.f32 %v280_v61, 0.0 }
  0x49   :  { %v1078_v3 = vpack.c.bf16 %v343_v60, %v342_v57  ;;  %v345_v5 = vmax.f32 %v281_v62, 0.0  ;;  %1148 = vst [vmem:[%s1505_s3 + $0xe0] sm:$0xff] %v1073_v63   ;;  %v283_v6 = vadd.f32 %v1192_v7, %v212_v0 }
  0x4a   :  { %v346_v8 = vmax.f32 %v282_v2, 0.0 }
  0x4b   :  { %1149 = vst [vmem:[%s1505_s3 + $0xe8] sm:$0xff] %v1078_v3   ;;  %v1083_v9 = vpack.c.bf16 %v345_v5, %v344_v4  ;;  %v347_v10 = vmax.f32 %v283_v6, 0.0 }
  0x4d   :  { %1150 = vst [vmem:[%s1505_s3 + $0xf0] sm:$0xff] %v1083_v9   ;;  %v1088_v1 = vpack.c.bf16 %v347_v10, %v346_v8 }
  0x4f   :  { %1151 = vst [vmem:[%s1505_s3 + $0xf8] sm:$0xff] %v1088_v1  }

// kernel: discriminator_forward.9
= control target key start
LH: loop header
LB: loop body
LE: loop exit
PB: predicated region body
PF: predicated region fallthrough
CT: control target
= control target key end

     0   :  { %v4776_v0 = vmov 0   ;;  %s5943_s1 = inlined_call_operand.vmem [shape: bf16[1024,128], index: 1, kind: input, shape index: {}]   ;;  %s5944_s0 = inlined_call_operand.vmem [shape: bf16[512,1024], index: 0, kind: input, shape index: {}]   ;;  %s5945_s2 = inlined_call_operand.vmem [shape: bf16[512,128], index: 2, kind: output, shape index: {0}]   ;;  %s5946_s3 = inlined_call_operand.vmem [shape: f32[8,128], index: 3, kind: output, shape index: {1}]  }
   0x1   :  { %2062 = vmatprep.subr.bf16.mxu1 %v4776_v0  ;;  %2640 = vmatprep.subr.bf16.mxu0 %v4776_v0  ;;  %v4712_v1 = vld [vmem:[%s5943_s1] sm:$0xff]   ;;  %v4714_v3 = vld [vmem:[%s5943_s1 + $0x8] sm:$0xff]   ;;  %v4716_v5 = vld [vmem:[%s5943_s1 + $0x10] sm:$0xff]  }
   0x2   :  { %v4713_v2 = vld [vmem:[%s5943_s1 + $0x100] sm:$0xff]   ;;  %2063 = vmatpush1.bf16.msra.mxu1 %v4712_v1  ;;  %v4715_v4 = vld [vmem:[%s5943_s1 + $0x108] sm:$0xff]   ;;  %v4717_v6 = vld [vmem:[%s5943_s1 + $0x110] sm:$0xff]  }
   0x3   :  { %2641 = vmatpush1.bf16.msra.mxu0 %v4713_v2  ;;  %2064 = vmatprep.subr.bf16.mxu1 %v4776_v0  ;;  %v4718_v7 = vld [vmem:[%s5943_s1 + $0x18] sm:$0xff]   ;;  %v4720_v9 = vld [vmem:[%s5943_s1 + $0x20] sm:$0xff]   ;;  %v4722_v11 = vld [vmem:[%s5943_s1 + $0x28] sm:$0xff]  }
   0x4   :  { %2642 = vmatprep.subr.bf16.mxu0 %v4776_v0  ;;  %v4719_v8 = vld [vmem:[%s5943_s1 + $0x118] sm:$0xff]   ;;  %v4721_v10 = vld [vmem:[%s5943_s1 + $0x120] sm:$0xff]   ;;  %v4723_v12 = vld [vmem:[%s5943_s1 + $0x128] sm:$0xff]  }
   0x5   :  { %v4724_v13 = vld [vmem:[%s5943_s1 + $0x30] sm:$0xff]   ;;  %v4726_v15 = vld [vmem:[%s5943_s1 + $0x38] sm:$0xff]   ;;  %v4728_v17 = vld [vmem:[%s5943_s1 + $0x40] sm:$0xff]  }
   0x6   :  { %2065 = vmatpush1.bf16.msra.mxu1 %v4714_v3  ;;  %v4725_v14 = vld [vmem:[%s5943_s1 + $0x130] sm:$0xff]   ;;  %v4727_v16 = vld [vmem:[%s5943_s1 + $0x138] sm:$0xff]   ;;  %v4729_v18 = vld [vmem:[%s5943_s1 + $0x140] sm:$0xff]  }
   0x7   :  { %2643 = vmatpush1.bf16.msra.mxu0 %v4715_v4  ;;  %2066 = vmatprep.subr.bf16.mxu1 %v4776_v0  ;;  %v4873_v19 = vld [vmem:[%s5944_s0] sm:$0xff]  ;;  %v4883_v21 = vld [vmem:[%s5944_s0 + $0x10] sm:$0xff]  ;;  %v4730_v24 = vld [vmem:[%s5943_s1 + $0x48] sm:$0xff]  }
   0x8   :  { %2644 = vmatprep.subr.bf16.mxu0 %v4776_v0  ;;  %v4878_v20 = vld [vmem:[%s5944_s0 + $0x20] sm:$0xff]  ;;  %v4890_v23 = vld [vmem:[%s5944_s0 + $0x30] sm:$0xff]  ;;  %v4731_v26 = vld [vmem:[%s5943_s1 + $0x148] sm:$0xff]  }
   0x9   :  { %v3752_v22 = vcombine.high %v4873_v19, %v4878_v20  ;;  %v3756_v25 = vcombine.high %v4883_v21, %v4890_v23  ;;  %v4732_v27 = vld [vmem:[%s5943_s1 + $0x50] sm:$0xff]   ;;  %v4734_v29 = vld [vmem:[%s5943_s1 + $0x58] sm:$0xff]   ;;  %v4736_v31 = vld [vmem:[%s5943_s1 + $0x60] sm:$0xff]   ;;  %v3751_v42 = vcombine.low %v4873_v19, %v4878_v20  ;;  %v3755_v44 = vcombine.low %v4883_v21, %v4890_v23 }
   0xa   :  { %2067 = vmatpush1.bf16.msra.mxu1 %v4716_v5  ;;  %v4733_v28 = vld [vmem:[%s5943_s1 + $0x150] sm:$0xff]   ;;  %v4735_v30 = vld [vmem:[%s5943_s1 + $0x158] sm:$0xff]   ;;  %v4737_v32 = vld [vmem:[%s5943_s1 + $0x160] sm:$0xff]  }
   0xb   :  { %2645 = vmatpush1.bf16.msra.mxu0 %v4717_v6  ;;  %2068 = vmatprep.subr.bf16.mxu1 %v4776_v0  ;;  %v4738_v33 = vld [vmem:[%s5943_s1 + $0x68] sm:$0xff]   ;;  %v4740_v35 = vld [vmem:[%s5943_s1 + $0x70] sm:$0xff]   ;;  %v4742_v37 = vld [vmem:[%s5943_s1 + $0x78] sm:$0xff]  }
   0xc   :  { %2646 = vmatprep.subr.bf16.mxu0 %v4776_v0  ;;  %2094 = vmatprep.mubr.bf16.mxu1 %v3752_v22  ;;  %v4739_v34 = vld [vmem:[%s5943_s1 + $0x168] sm:$0xff]   ;;  %v4741_v36 = vld [vmem:[%s5943_s1 + $0x170] sm:$0xff]   ;;  %v4743_v38 = vld [vmem:[%s5943_s1 + $0x178] sm:$0xff]  }
   0xd   :  { %2672 = vmatprep.mubr.bf16.mxu0 %v3756_v25  ;;  %v22_v39 = vld [vmem:[%s5944_s0 + $0x40] sm:$0xff]  ;;  %v24_v41 = vld [vmem:[%s5944_s0 + $0x50] sm:$0xff]  ;;  %v4746_v51 = vld [vmem:[%s5943_s1 + $0x88] sm:$0xff]  }
   0xe   :  { %2069 = vmatpush1.bf16.msra.mxu1 %v4718_v7  ;;  %v26_v40 = vld [vmem:[%s5944_s0 + $0x60] sm:$0xff]  ;;  %v28_v43 = vld [vmem:[%s5944_s0 + $0x70] sm:$0xff]  ;;  %v4747_v52 = vld [vmem:[%s5943_s1 + $0x188] sm:$0xff]  }
   0xf   :  { %2647 = vmatpush1.bf16.msra.mxu0 %v4719_v8  ;;  %2070 = vmatprep.subr.bf16.mxu1 %v4776_v0  ;;  %v4744_v45 = vld [vmem:[%s5943_s1 + $0x80] sm:$0xff]   ;;  %v3760_v47 = vcombine.high %v22_v39, %v26_v40  ;;  %v3764_v48 = vcombine.high %v24_v41, %v28_v43  ;;  %v32_v53 = vld [vmem:[%s5944_s0 + $0x90] sm:$0xff]  ;;  %v3759_v55 = vcombine.low %v22_v39, %v26_v40  ;;  %v4750_v2 = vld [vmem:[%s5943_s1 + $0x98] sm:$0xff]  }
  0x10   :  { %2648 = vmatprep.subr.bf16.mxu0 %v4776_v0  ;;  %v4745_v46 = vld [vmem:[%s5943_s1 + $0x180] sm:$0xff]   ;;  %v36_v54 = vld [vmem:[%s5944_s0 + $0xb0] sm:$0xff]  ;;  %v3763_v56 = vcombine.low %v24_v41, %v28_v43  ;;  %v4751_v3 = vld [vmem:[%s5943_s1 + $0x198] sm:$0xff]  }
  0x11   :  { %v30_v49 = vld [vmem:[%s5944_s0 + $0x80] sm:$0xff]  ;;  %v3772_v58 = vcombine.high %v32_v53, %v36_v54  ;;  %v4748_v59 = vld [vmem:[%s5943_s1 + $0x90] sm:$0xff]   ;;  %v3771_v6 = vcombine.low %v32_v53, %v36_v54  ;;  %v4763_v39 = vld [vmem:[%s5943_s1 + $0x1c8] sm:$0xff]  }
  0x12   :  { %2071 = vmatpush1.bf16.msra.mxu1 %v4720_v9  ;;  %v34_v50 = vld [vmem:[%s5944_s0 + $0xa0] sm:$0xff]  ;;  %v4749_v60 = vld [vmem:[%s5943_s1 + $0x190] sm:$0xff]   ;;  %v4766_v54 = vld [vmem:[%s5943_s1 + $0xd8] sm:$0xff]  }
  0x13   :  { %2649 = vmatpush1.bf16.msra.mxu0 %v4721_v10  ;;  %2072 = vmatprep.subr.bf16.mxu1 %v4776_v0  ;;  %v3768_v57 = vcombine.high %v30_v49, %v34_v50  ;;  %v38_v61 = vld [vmem:[%s5944_s0 + $0xc0] sm:$0xff]  ;;  %v40_v63 = vld [vmem:[%s5944_s0 + $0xd0] sm:$0xff]  ;;  %v3767_v4 = vcombine.low %v30_v49, %v34_v50 }
  0x14   :  { %2650 = vmatprep.subr.bf16.mxu0 %v4776_v0  ;;  %v42_v62 = vld [vmem:[%s5944_s0 + $0xe0] sm:$0xff]  ;;  %v44_v1 = vld [vmem:[%s5944_s0 + $0xf0] sm:$0xff] }
  0x15   :  { %v4752_v5 = vld [vmem:[%s5943_s1 + $0xa0] sm:$0xff]   ;;  %v3776_v7 = vcombine.high %v38_v61, %v42_v62  ;;  %v3780_v9 = vcombine.high %v40_v63, %v44_v1  ;;  %v4756_v20 = vld [vmem:[%s5943_s1 + $0xb0] sm:$0xff]  }
  0x16   :  { %2073 = vmatpush1.bf16.msra.mxu1 %v4722_v11  ;;  %v4753_v8 = vld [vmem:[%s5943_s1 + $0x1a0] sm:$0xff]   ;;  %v4757_v21 = vld [vmem:[%s5943_s1 + $0x1b0] sm:$0xff]  }
  0x17   :  { %2651 = vmatpush1.bf16.msra.mxu0 %v4723_v12  ;;  %2074 = vmatprep.subr.bf16.mxu1 %v4776_v0  ;;  %v46_v10 = vld [vmem:[%s5944_s0 + $0x100] sm:$0xff]  ;;  %v48_v12 = vld [vmem:[%s5944_s0 + $0x110] sm:$0xff] }
  0x18   :  { %2652 = vmatprep.subr.bf16.mxu0 %v4776_v0  ;;  %v50_v11 = vld [vmem:[%s5944_s0 + $0x120] sm:$0xff]  ;;  %v56_v25 = vld [vmem:[%s5944_s0 + $0x150] sm:$0xff] }
  0x19   :  { %v54_v22 = vld [vmem:[%s5944_s0 + $0x140] sm:$0xff]  ;;  %v76_v49 = vld [vmem:[%s5944_s0 + $0x1f0] sm:$0xff] }
  0x1a   :  { %2075 = vmatpush1.bf16.msra.mxu1 %v4724_v13  ;;  %v52_v13 = vld [vmem:[%s5944_s0 + $0x130] sm:$0xff]  ;;  %v58_v23 = vld [vmem:[%s5944_s0 + $0x160] sm:$0xff] }
  0x1b   :  { %2653 = vmatpush1.bf16.msra.mxu0 %v4725_v14  ;;  %2076 = vmatprep.subr.bf16.mxu1 %v4776_v0  ;;  %v4754_v14 = vld [vmem:[%s5943_s1 + $0xa8] sm:$0xff]   ;;  %v3788_v19 = vcombine.high %v48_v12, %v52_v13  ;;  %v3791_v40 = vcombine.low %v54_v22, %v58_v23 }
  0x1c   :  { %2654 = vmatprep.subr.bf16.mxu0 %v4776_v0 }
  0x1e   :  { %2077 = vmatpush1.bf16.msra.mxu1 %v4726_v15  ;;  %v4755_v15 = vld [vmem:[%s5943_s1 + $0x1a8] sm:$0xff]  }
  0x1f   :  { %2655 = vmatpush1.bf16.msra.mxu0 %v4727_v16  ;;  %2078 = vmatprep.subr.bf16.mxu1 %v4776_v0  ;;  %v3775_v16 = vcombine.low %v38_v61, %v42_v62 }
  0x20   :  { %2656 = vmatprep.subr.bf16.mxu0 %v4776_v0 }
  0x22   :  { %2079 = vmatpush1.bf16.msra.mxu1 %v4728_v17  ;;  %v3779_v17 = vcombine.low %v40_v63, %v44_v1  ;;  %v86_v1 = vld [vmem:[%s5944_s0 + $0x240] sm:$0xff] }
  0x23   :  { %2657 = vmatpush1.bf16.msra.mxu0 %v4729_v18  ;;  %2080 = vmatprep.subr.bf16.mxu1 %v4776_v0  ;;  %v3784_v18 = vcombine.high %v46_v10, %v50_v11 }
  0x24   :  { %2658 = vmatprep.subr.bf16.mxu0 %v4776_v0 }
  0x26   :  { %2081 = vmatpush1.bf16.msra.mxu1 %v4730_v24  ;;  %v4758_v24 = vld [vmem:[%s5943_s1 + $0xb8] sm:$0xff]  }
  0x27   :  { %2659 = vmatpush1.bf16.msra.mxu0 %v4731_v26  ;;  %2082 = vmatprep.subr.bf16.mxu1 %v4776_v0  ;;  %v60_v26 = vld [vmem:[%s5944_s0 + $0x170] sm:$0xff] }
  0x28   :  { %2660 = vmatprep.subr.bf16.mxu0 %v4776_v0  ;;  %v3795_v41 = vcombine.low %v56_v25, %v60_v26 }
  0x2a   :  { %2083 = vmatpush1.bf16.msra.mxu1 %v4732_v27  ;;  %v4759_v27 = vld [vmem:[%s5943_s1 + $0x1b8] sm:$0xff]  }
  0x2b   :  { %2661 = vmatpush1.bf16.msra.mxu0 %v4733_v28  ;;  %2084 = vmatprep.subr.bf16.mxu1 %v4776_v0  ;;  %v3783_v28 = vcombine.low %v46_v10, %v50_v11  ;;  %v4769_v10 = vld [vmem:[%s5943_s1 + $0x1e0] sm:$0xff]  }
  0x2c   :  { %2662 = vmatprep.subr.bf16.mxu0 %v4776_v0  ;;  %v94_v11 = vld [vmem:[%s5944_s0 + $0x280] sm:$0xff] }
  0x2e   :  { %2085 = vmatpush1.bf16.msra.mxu1 %v4734_v29  ;;  %v3787_v29 = vcombine.low %v48_v12, %v52_v13  ;;  %v98_v12 = vld [vmem:[%s5944_s0 + $0x2a0] sm:$0xff]  ;;  %v96_v13 = vld [vmem:[%s5944_s0 + $0x290] sm:$0xff] }
  0x2f   :  { %2663 = vmatpush1.bf16.msra.mxu0 %v4735_v30  ;;  %2086 = vmatprep.subr.bf16.mxu1 %v4776_v0  ;;  %v3792_v30 = vcombine.high %v54_v22, %v58_v23  ;;  %v108_v22 = vld [vmem:[%s5944_s0 + $0x2f0] sm:$0xff]  ;;  %v3831_v23 = vcombine.low %v94_v11, %v98_v12 }
  0x30   :  { %2664 = vmatprep.subr.bf16.mxu0 %v4776_v0 }
  0x32   :  { %2087 = vmatpush1.bf16.msra.mxu1 %v4736_v31  ;;  %v3796_v31 = vcombine.high %v56_v25, %v60_v26 }
  0x33   :  { %2665 = vmatpush1.bf16.msra.mxu0 %v4737_v32  ;;  %2088 = vmatprep.subr.bf16.mxu1 %v4776_v0  ;;  %v4760_v32 = vld [vmem:[%s5943_s1 + $0xc0] sm:$0xff]  }
  0x34   :  { %2666 = vmatprep.subr.bf16.mxu0 %v4776_v0 }
  0x36   :  { %2089 = vmatpush1.bf16.msra.mxu1 %v4738_v33  ;;  %v4761_v33 = vld [vmem:[%s5943_s1 + $0x1c0] sm:$0xff]  }
  0x37   :  { %2667 = vmatpush1.bf16.msra.mxu0 %v4739_v34  ;;  %2090 = vmatprep.subr.bf16.mxu1 %v4776_v0  ;;  %v62_v34 = vld [vmem:[%s5944_s0 + $0x180] sm:$0xff] }
  0x38   :  { %2668 = vmatprep.subr.bf16.mxu0 %v4776_v0 }
  0x3a   :  { %2091 = vmatpush1.bf16.msra.mxu1 %v4740_v35  ;;  %v66_v35 = vld [vmem:[%s5944_s0 + $0x1a0] sm:$0xff] }
  0x3b   :  { %2669 = vmatpush1.bf16.msra.mxu0 %v4741_v36  ;;  %2092 = vmatprep.subr.bf16.mxu1 %v4776_v0  ;;  %v4762_v36 = vld [vmem:[%s5943_s1 + $0xc8] sm:$0xff]   ;;  %v3799_v50 = vcombine.low %v62_v34, %v66_v35 }
  0x3c   :  { %2670 = vmatprep.subr.bf16.mxu0 %v4776_v0 }
  0x3e   :  { %2093 = vmatpush1.bf16.msra.mxu1 %v4742_v37  ;;  %v64_v37 = vld [vmem:[%s5944_s0 + $0x190] sm:$0xff] }
  0x3f   :  { %2671 = vmatpush1.bf16.msra.mxu0 %v4743_v38  ;;  %2351 = vmatprep.subr.bf16.mxu1 %v4776_v0  ;;  %v68_v38 = vld [vmem:[%s5944_s0 + $0x1b0] sm:$0xff] }
  0x40   :  { %2929 = vmatprep.subr.bf16.mxu0 %v4776_v0  ;;  %v3804_v43 = vcombine.high %v64_v37, %v68_v38 }
  0x41   :  { %2095 = vmatmul.mubr.bf16.vlgmr.msra.gmra.mrb[0].mxu1 %v3751_v42  ;;  %v3800_v42 = vcombine.high %v62_v34, %v66_v35 }
  0x42   :  { %2673 = vmatmul.mubr.bf16.vlgmr.msra.gmra.mrb[0].mxu0 %v3755_v44  ;;  %2352 = vmatpush1.bf16.msra.mxu1 %v4744_v45  ;;  %v4764_v44 = vld [vmem:[%s5943_s1 + $0xd0] sm:$0xff]  }
  0x43   :  { %2930 = vmatpush1.bf16.msra.mxu0 %v4745_v46  ;;  %2102 = vmatprep.mubr.bf16.mxu1 %v3760_v47  ;;  %v4765_v45 = vld [vmem:[%s5943_s1 + $0x1d0] sm:$0xff]   ;;  %v70_v46 = vld [vmem:[%s5944_s0 + $0x1c0] sm:$0xff] }
  0x44   :  { %2680 = vmatprep.mubr.bf16.mxu0 %v3764_v48  ;;  %2353 = vmatprep.subr.bf16.mxu1 %v4776_v0  ;;  %v74_v47 = vld [vmem:[%s5944_s0 + $0x1e0] sm:$0xff]  ;;  %v72_v48 = vld [vmem:[%s5944_s0 + $0x1d0] sm:$0xff] }
  0x45   :  { %2931 = vmatprep.subr.bf16.mxu0 %v4776_v0  ;;  %v3812_v53 = vcombine.high %v72_v48, %v76_v49  ;;  %v3811_v61 = vcombine.low %v72_v48, %v76_v49  ;;  %v130_v48 = vld [vmem:[%s5944_s0 + $0x3a0] sm:$0xff]  ;;  %v128_v49 = vld [vmem:[%s5944_s0 + $0x390] sm:$0xff] }
  0x46   :  { %2354 = vmatpush1.bf16.msra.mxu1 %v4746_v51  ;;  %v3803_v51 = vcombine.low %v64_v37, %v68_v38  ;;  %v118_v37 = vld [vmem:[%s5944_s0 + $0x340] sm:$0xff] }
  0x47   :  { %2932 = vmatpush1.bf16.msra.mxu0 %v4747_v52  ;;  %2355 = vmatprep.subr.bf16.mxu1 %v4776_v0  ;;  %v3808_v52 = vcombine.high %v70_v46, %v74_v47  ;;  %v122_v38 = vld [vmem:[%s5944_s0 + $0x360] sm:$0xff] }
  0x48   :  { %2933 = vmatprep.subr.bf16.mxu0 %v4776_v0 }
  0x49   :  { %2103 = vmatmul.mubr.bf16.gmra.mrb[4].mxu1 %v3759_v55  ;;  %v4767_v55 = vld [vmem:[%s5943_s1 + $0x1d8] sm:$0xff]  }
  0x4a   :  { %2681 = vmatmul.mubr.bf16.gmra.mrb[4].mxu0 %v3763_v56  ;;  %2110 = vmatprep.mubr.bf16.mxu1 %v3768_v57  ;;  %v78_v56 = vld [vmem:[%s5944_s0 + $0x200] sm:$0xff] }
  0x4b   :  { %2688 = vmatprep.mubr.bf16.mxu0 %v3772_v58  ;;  %2356 = vmatpush1.bf16.msra.mxu1 %v4748_v59  ;;  %v82_v57 = vld [vmem:[%s5944_s0 + $0x220] sm:$0xff]  ;;  %v80_v58 = vld [vmem:[%s5944_s0 + $0x210] sm:$0xff] }
  0x4c   :  { %2934 = vmatpush1.bf16.msra.mxu0 %v4749_v60  ;;  %2357 = vmatprep.subr.bf16.mxu1 %v4776_v0  ;;  %v84_v59 = vld [vmem:[%s5944_s0 + $0x230] sm:$0xff]  ;;  %v3807_v60 = vcombine.low %v70_v46, %v74_v47  ;;  %v3816_v62 = vcombine.high %v78_v56, %v82_v57  ;;  %v126_v47 = vld [vmem:[%s5944_s0 + $0x380] sm:$0xff] }
  0x4d   :  { %2935 = vmatprep.subr.bf16.mxu0 %v4776_v0  ;;  %v3820_v63 = vcombine.high %v80_v58, %v84_v59  ;;  %v4773_v46 = vld [vmem:[%s5943_s1 + $0x1f0] sm:$0xff]  }
  0x4f   :  { %2358 = vmatpush1.bf16.msra.mxu1 %v4750_v2  ;;  %v90_v2 = vld [vmem:[%s5944_s0 + $0x260] sm:$0xff] }
  0x50   :  { %2936 = vmatpush1.bf16.msra.mxu0 %v4751_v3  ;;  %2359 = vmatprep.subr.bf16.mxu1 %v4776_v0  ;;  %v88_v3 = vld [vmem:[%s5944_s0 + $0x250] sm:$0xff] }
  0x51   :  { %2111 = vmatmul.mubr.bf16.gmra.mrb[8].mxu1 %v3767_v4  ;;  %2937 = vmatprep.subr.bf16.mxu0 %v4776_v0  ;;  %v92_v4 = vld [vmem:[%s5944_s0 + $0x270] sm:$0xff] }
  0x52   :  { %2689 = vmatmul.mubr.bf16.gmra.mrb[8].mxu0 %v3771_v6  ;;  %2118 = vmatprep.mubr.bf16.mxu1 %v3776_v7  ;;  %v3819_v6 = vcombine.low %v80_v58, %v84_v59  ;;  %v3824_v7 = vcombine.high %v86_v1, %v90_v2  ;;  %v3863_v58 = vcombine.low %v126_v47, %v130_v48 }
  0x53   :  { %2696 = vmatprep.mubr.bf16.mxu0 %v3780_v9  ;;  %2360 = vmatpush1.bf16.msra.mxu1 %v4752_v5  ;;  %v3815_v5 = vcombine.low %v78_v56, %v82_v57  ;;  %v4768_v9 = vld [vmem:[%s5943_s1 + $0xe0] sm:$0xff]   ;;  %v136_v57 = vld [vmem:[%s5944_s0 + $0x3d0] sm:$0xff] }
  0x54   :  { %2938 = vmatpush1.bf16.msra.mxu0 %v4753_v8  ;;  %2361 = vmatprep.subr.bf16.mxu1 %v4776_v0  ;;  %v3828_v8 = vcombine.high %v88_v3, %v92_v4  ;;  %v138_v56 = vld [vmem:[%s5944_s0 + $0x3e0] sm:$0xff] }
  0x55   :  { %2939 = vmatprep.subr.bf16.mxu0 %v4776_v0 }
  0x57   :  { %2362 = vmatpush1.bf16.msra.mxu1 %v4754_v14  ;;  %v100_v14 = vld [vmem:[%s5944_s0 + $0x2b0] sm:$0xff] }
  0x58   :  { %2940 = vmatpush1.bf16.msra.mxu0 %v4755_v15  ;;  %2363 = vmatprep.subr.bf16.mxu1 %v4776_v0  ;;  %v3823_v15 = vcombine.low %v86_v1, %v90_v2  ;;  %v142_v1 = vld [vmem:[%s5944_s0 + $0x400] sm:$0xff] }
  0x59   :  { %2119 = vmatmul.mubr.bf16.gmra.mrb[12].mxu1 %v3775_v16  ;;  %2941 = vmatprep.subr.bf16.mxu0 %v4776_v0  ;;  %v3827_v16 = vcombine.low %v88_v3, %v92_v4  ;;  %v146_v2 = vld [vmem:[%s5944_s0 + $0x420] sm:$0xff]  ;;  %v144_v3 = vld [vmem:[%s5944_s0 + $0x410] sm:$0xff] }
  0x5a   :  { %2697 = vmatmul.mubr.bf16.gmra.mrb[12].mxu0 %v3779_v17  ;;  %2126 = vmatprep.mubr.bf16.mxu1 %v3784_v18  ;;  %v3832_v17 = vcombine.high %v94_v11, %v98_v12  ;;  %v3836_v18 = vcombine.high %v96_v13, %v100_v14  ;;  %v148_v4 = vld [vmem:[%s5944_s0 + $0x430] sm:$0xff] }
  0x5b   :  { %2704 = vmatprep.mubr.bf16.mxu0 %v3788_v19  ;;  %2364 = vmatpush1.bf16.msra.mxu1 %v4756_v20  ;;  %v102_v19 = vld [vmem:[%s5944_s0 + $0x2c0] sm:$0xff]  ;;  %v152_v11 = vld [vmem:[%s5944_s0 + $0x450] sm:$0xff] }
  0x5c   :  { %2942 = vmatpush1.bf16.msra.mxu0 %v4757_v21  ;;  %2365 = vmatprep.subr.bf16.mxu1 %v4776_v0  ;;  %v106_v20 = vld [vmem:[%s5944_s0 + $0x2e0] sm:$0xff]  ;;  %v104_v21 = vld [vmem:[%s5944_s0 + $0x2d0] sm:$0xff] }
  0x5d   :  { %2943 = vmatprep.subr.bf16.mxu0 %v4776_v0  ;;  %v3840_v25 = vcombine.high %v102_v19, %v106_v20  ;;  %v3844_v26 = vcombine.high %v104_v21, %v108_v22  ;;  %v3843_v34 = vcombine.low %v104_v21, %v108_v22  ;;  %v156_v12 = vld [vmem:[%s5944_s0 + $0x470] sm:$0xff] }
  0x5e   :  { %v3891_v22 = vcombine.low %v152_v11, %v156_v12 }
  0x5f   :  { %2366 = vmatpush1.bf16.msra.mxu1 %v4758_v24  ;;  %v3835_v24 = vcombine.low %v96_v13, %v100_v14  ;;  %v3879_v13 = vcombine.low %v142_v1, %v146_v2  ;;  %v3883_v14 = vcombine.low %v144_v3, %v148_v4 }
  0x60   :  { %2944 = vmatpush1.bf16.msra.mxu0 %v4759_v27  ;;  %2367 = vmatprep.subr.bf16.mxu1 %v4776_v0  ;;  %v4770_v27 = vld [vmem:[%s5943_s1 + $0xe8] sm:$0xff]  }
  0x61   :  { %2127 = vmatmul.mubr.bf16.gmra.mrb[16].mxu1 %v3783_v28  ;;  %2945 = vmatprep.subr.bf16.mxu0 %v4776_v0  ;;  %v4771_v28 = vld [vmem:[%s5943_s1 + $0x1e8] sm:$0xff]  }
  0x62   :  { %2705 = vmatmul.mubr.bf16.gmra.mrb[16].mxu0 %v3787_v29  ;;  %2134 = vmatprep.mubr.bf16.mxu1 %v3792_v30  ;;  %v110_v29 = vld [vmem:[%s5944_s0 + $0x300] sm:$0xff] }
  0x63   :  { %2712 = vmatprep.mubr.bf16.mxu0 %v3796_v31  ;;  %2368 = vmatpush1.bf16.msra.mxu1 %v4760_v32  ;;  %v114_v30 = vld [vmem:[%s5944_s0 + $0x320] sm:$0xff]  ;;  %v112_v31 = vld [vmem:[%s5944_s0 + $0x310] sm:$0xff] }
  0x64   :  { %2946 = vmatpush1.bf16.msra.mxu0 %v4761_v33  ;;  %2369 = vmatprep.subr.bf16.mxu1 %v4776_v0  ;;  %v116_v32 = vld [vmem:[%s5944_s0 + $0x330] sm:$0xff]  ;;  %v3839_v33 = vcombine.low %v102_v19, %v106_v20  ;;  %v3848_v35 = vcombine.high %v110_v29, %v114_v30 }
  0x65   :  { %2947 = vmatprep.subr.bf16.mxu0 %v4776_v0  ;;  %v160_v19 = vld [vmem:[%s5944_s0 + $0x490] sm:$0xff] }
  0x66   :  { %v164_v20 = vld [vmem:[%s5944_s0 + $0x4b0] sm:$0xff] }
  0x67   :  { %2370 = vmatpush1.bf16.msra.mxu1 %v4762_v36  ;;  %v3852_v36 = vcombine.high %v112_v31, %v116_v32 }
  0x68   :  { %2948 = vmatpush1.bf16.msra.mxu0 %v4763_v39  ;;  %2371 = vmatprep.subr.bf16.mxu1 %v4776_v0  ;;  %v120_v39 = vld [vmem:[%s5944_s0 + $0x350] sm:$0xff] }
  0x69   :  { %2135 = vmatmul.mubr.bf16.gmra.mrb[20].mxu1 %v3791_v40  ;;  %2949 = vmatprep.subr.bf16.mxu0 %v4776_v0  ;;  %v124_v40 = vld [vmem:[%s5944_s0 + $0x370] sm:$0xff] }
  0x6a   :  { %2713 = vmatmul.mubr.bf16.gmra.mrb[20].mxu0 %v3795_v41  ;;  %2142 = vmatprep.mubr.bf16.mxu1 %v3800_v42  ;;  %v3847_v41 = vcombine.low %v110_v29, %v114_v30  ;;  %v3851_v42 = vcombine.low %v112_v31, %v116_v32  ;;  %v3899_v30 = vcombine.low %v160_v19, %v164_v20 }
  0x6b   :  { %2720 = vmatprep.mubr.bf16.mxu0 %v3804_v43  ;;  %2372 = vmatpush1.bf16.msra.mxu1 %v4764_v44  ;;  %v3856_v43 = vcombine.high %v118_v37, %v122_v38  ;;  %v3860_v44 = vcombine.high %v120_v39, %v124_v40 }
  0x6c   :  { %2950 = vmatpush1.bf16.msra.mxu0 %v4765_v45  ;;  %2373 = vmatprep.subr.bf16.mxu1 %v4776_v0  ;;  %v4772_v45 = vld [vmem:[%s5943_s1 + $0xf0] sm:$0xff]  }
  0x6d   :  { %2951 = vmatprep.subr.bf16.mxu0 %v4776_v0 }
  0x6f   :  { %2374 = vmatpush1.bf16.msra.mxu1 %v4766_v54 }
  0x70   :  { %2952 = vmatpush1.bf16.msra.mxu0 %v4767_v55  ;;  %2375 = vmatprep.subr.bf16.mxu1 %v4776_v0  ;;  %v134_v55 = vld [vmem:[%s5944_s0 + $0x3c0] sm:$0xff] }
  0x71   :  { %2143 = vmatmul.mubr.bf16.gmra.mrb[24].mxu1 %v3799_v50  ;;  %2953 = vmatprep.subr.bf16.mxu0 %v4776_v0  ;;  %v132_v50 = vld [vmem:[%s5944_s0 + $0x3b0] sm:$0xff] }
  0x72   :  { %2721 = vmatmul.mubr.bf16.gmra.mrb[24].mxu0 %v3803_v51  ;;  %2150 = vmatprep.mubr.bf16.mxu1 %v3808_v52  ;;  %v3855_v51 = vcombine.low %v118_v37, %v122_v38  ;;  %v3859_v52 = vcombine.low %v120_v39, %v124_v40  ;;  %v3868_v54 = vcombine.high %v128_v49, %v132_v50 }
  0x73   :  { %2728 = vmatprep.mubr.bf16.mxu0 %v3812_v53  ;;  %2376 = vmatpush1.bf16.msra.mxu1 %v4768_v9  ;;  %v3864_v53 = vcombine.high %v126_v47, %v130_v48  ;;  %v3867_v59 = vcombine.low %v128_v49, %v132_v50  ;;  %v150_v9 = vld [vmem:[%s5944_s0 + $0x440] sm:$0xff] }
  0x74   :  { %2954 = vmatpush1.bf16.msra.mxu0 %v4769_v10  ;;  %2377 = vmatprep.subr.bf16.mxu1 %v4776_v0  ;;  %v154_v10 = vld [vmem:[%s5944_s0 + $0x460] sm:$0xff] }
  0x75   :  { %2955 = vmatprep.subr.bf16.mxu0 %v4776_v0  ;;  %v3887_v21 = vcombine.low %v150_v9, %v154_v10  ;;  %v190_v49 = vld [vmem:[%s5944_s0 + $0x580] sm:$0xff] }
  0x76   :  { %v194_v50 = vld [vmem:[%s5944_s0 + $0x5a0] sm:$0xff] }
  0x77   :  { %2378 = vmatpush1.bf16.msra.mxu1 %v4770_v27  ;;  %v168_v27 = vld [vmem:[%s5944_s0 + $0x4d0] sm:$0xff] }
  0x78   :  { %2956 = vmatpush1.bf16.msra.mxu0 %v4771_v28  ;;  %2379 = vmatprep.subr.bf16.mxu1 %v4776_v0  ;;  %v172_v28 = vld [vmem:[%s5944_s0 + $0x4f0] sm:$0xff] }
  0x79   :  { %2151 = vmatmul.mubr.bf16.gmra.mrb[28].mxu1 %v3807_v60  ;;  %2957 = vmatprep.subr.bf16.mxu0 %v4776_v0  ;;  %v3872_v60 = vcombine.high %v134_v55, %v138_v56  ;;  %v3908_v32 = vcombine.high %v168_v27, %v172_v28  ;;  %v3907_v38 = vcombine.low %v168_v27, %v172_v28  ;;  %v232_v27 = vld [vmem:[%s5944_s0 + $0x6d0] sm:$0xff] }
  0x7a   :  { %2729 = vmatmul.mubr.bf16.gmra.mrb[28].mxu0 %v3811_v61  ;;  %2158 = vmatprep.mubr.bf16.mxu1 %v3816_v62  ;;  %v4774_v62 = vld [vmem:[%s5943_s1 + $0xf8] sm:$0xff]   ;;  %v236_v28 = vld [vmem:[%s5944_s0 + $0x6f0] sm:$0xff] }
  0x7b   :  { %2736 = vmatprep.mubr.bf16.mxu0 %v3820_v63  ;;  %2380 = vmatpush1.bf16.msra.mxu1 %v4772_v45  ;;  %v4775_v63 = vld [vmem:[%s5943_s1 + $0x1f8] sm:$0xff]  }
  0x7c   :  { %2958 = vmatpush1.bf16.msra.mxu0 %v4773_v46  ;;  %2381 = vmatprep.subr.bf16.mxu1 %v4776_v0 }
  0x7d   :  { %2959 = vmatprep.subr.bf16.mxu0 %v4776_v0  ;;  %v140_v0 = vld [vmem:[%s5944_s0 + $0x3f0] sm:$0xff] }
  0x7e   :  { %v3876_v61 = vcombine.high %v136_v57, %v140_v0 }
  0x7f   :  { %2382 = vmatpush1.bf16.msra.mxu1 %v4774_v62 }
  0x80   :  { %2960 = vmatpush1.bf16.msra.mxu0 %v4775_v63 }
  0x81   :  { %2159 = vmatmul.mubr.bf16.gmra.mrb[32].mxu1 %v3815_v5  ;;  %v3871_v5 = vcombine.low %v134_v55, %v138_v56  ;;  %v3928_v55 = vcombine.high %v190_v49, %v194_v50 }
  0x82   :  { %2737 = vmatmul.mubr.bf16.gmra.mrb[32].mxu0 %v3819_v6  ;;  %2166 = vmatprep.mubr.bf16.mxu1 %v3824_v7  ;;  %v3875_v6 = vcombine.low %v136_v57, %v140_v0  ;;  %v3880_v7 = vcombine.high %v142_v1, %v146_v2  ;;  %v198_v57 = vld [vmem:[%s5944_s0 + $0x5c0] sm:$0xff] }
  0x83   :  { %2744 = vmatprep.mubr.bf16.mxu0 %v3828_v8  ;;  %v3884_v8 = vcombine.high %v144_v3, %v148_v4  ;;  %v202_v0 = vld [vmem:[%s5944_s0 + $0x5e0] sm:$0xff]  ;;  %v208_v3 = vld [vmem:[%s5944_s0 + $0x610] sm:$0xff] }
  0x84   :  { %v3936_v62 = vcombine.high %v198_v57, %v202_v0  ;;  %v206_v1 = vld [vmem:[%s5944_s0 + $0x600] sm:$0xff]  ;;  %v212_v4 = vld [vmem:[%s5944_s0 + $0x630] sm:$0xff] }
  0x85   :  { %v210_v2 = vld [vmem:[%s5944_s0 + $0x620] sm:$0xff] }
  0x89   :  { %2167 = vmatmul.mubr.bf16.gmra.mrb[36].mxu1 %v3823_v15  ;;  %v3888_v15 = vcombine.high %v150_v9, %v154_v10  ;;  %v214_v9 = vld [vmem:[%s5944_s0 + $0x640] sm:$0xff] }
  0x8a   :  { %2745 = vmatmul.mubr.bf16.gmra.mrb[36].mxu0 %v3827_v16  ;;  %2174 = vmatprep.mubr.bf16.mxu1 %v3832_v17  ;;  %v3892_v16 = vcombine.high %v152_v11, %v156_v12  ;;  %v158_v17 = vld [vmem:[%s5944_s0 + $0x480] sm:$0xff]  ;;  %v216_v11 = vld [vmem:[%s5944_s0 + $0x650] sm:$0xff] }
  0x8b   :  { %2752 = vmatprep.mubr.bf16.mxu0 %v3836_v18  ;;  %v162_v18 = vld [vmem:[%s5944_s0 + $0x4a0] sm:$0xff]  ;;  %v220_v12 = vld [vmem:[%s5944_s0 + $0x670] sm:$0xff] }
  0x8c   :  { %v3895_v29 = vcombine.low %v158_v17, %v162_v18  ;;  %v218_v10 = vld [vmem:[%s5944_s0 + $0x660] sm:$0xff] }
  0x91   :  { %2175 = vmatmul.mubr.bf16.gmra.mrb[40].mxu1 %v3831_v23  ;;  %v3896_v23 = vcombine.high %v158_v17, %v162_v18  ;;  %v222_v17 = vld [vmem:[%s5944_s0 + $0x680] sm:$0xff] }
  0x92   :  { %2753 = vmatmul.mubr.bf16.gmra.mrb[40].mxu0 %v3835_v24  ;;  %2182 = vmatprep.mubr.bf16.mxu1 %v3840_v25  ;;  %v3900_v24 = vcombine.high %v160_v19, %v164_v20  ;;  %v166_v25 = vld [vmem:[%s5944_s0 + $0x4c0] sm:$0xff]  ;;  %v224_v19 = vld [vmem:[%s5944_s0 + $0x690] sm:$0xff] }
  0x93   :  { %2760 = vmatprep.mubr.bf16.mxu0 %v3844_v26  ;;  %v170_v26 = vld [vmem:[%s5944_s0 + $0x4e0] sm:$0xff]  ;;  %v228_v20 = vld [vmem:[%s5944_s0 + $0x6b0] sm:$0xff] }
  0x94   :  { %v3904_v31 = vcombine.high %v166_v25, %v170_v26  ;;  %v3903_v37 = vcombine.low %v166_v25, %v170_v26  ;;  %v226_v18 = vld [vmem:[%s5944_s0 + $0x6a0] sm:$0xff] }
  0x95   :  { %v230_v25 = vld [vmem:[%s5944_s0 + $0x6c0] sm:$0xff] }
  0x96   :  { %v234_v26 = vld [vmem:[%s5944_s0 + $0x6e0] sm:$0xff] }
  0x99   :  { %2183 = vmatmul.mubr.bf16.gmra.mrb[44].mxu1 %v3839_v33  ;;  %v174_v33 = vld [vmem:[%s5944_s0 + $0x500] sm:$0xff] }
  0x9a   :  { %2761 = vmatmul.mubr.bf16.gmra.mrb[44].mxu0 %v3843_v34  ;;  %2190 = vmatprep.mubr.bf16.mxu1 %v3848_v35  ;;  %v178_v34 = vld [vmem:[%s5944_s0 + $0x520] sm:$0xff]  ;;  %v176_v35 = vld [vmem:[%s5944_s0 + $0x510] sm:$0xff] }
  0x9b   :  { %2768 = vmatprep.mubr.bf16.mxu0 %v3852_v36  ;;  %v180_v36 = vld [vmem:[%s5944_s0 + $0x530] sm:$0xff]  ;;  %v3912_v39 = vcombine.high %v174_v33, %v178_v34  ;;  %v3911_v45 = vcombine.low %v174_v33, %v178_v34  ;;  %v238_v33 = vld [vmem:[%s5944_s0 + $0x700] sm:$0xff] }
  0x9c   :  { %v3916_v40 = vcombine.high %v176_v35, %v180_v36  ;;  %v3915_v46 = vcombine.low %v176_v35, %v180_v36  ;;  %v242_v34 = vld [vmem:[%s5944_s0 + $0x720] sm:$0xff]  ;;  %v240_v35 = vld [vmem:[%s5944_s0 + $0x710] sm:$0xff] }
  0x9d   :  { %v244_v36 = vld [vmem:[%s5944_s0 + $0x730] sm:$0xff] }
  0xa1   :  { %2191 = vmatmul.mubr.bf16.gmra.mrb[48].mxu1 %v3847_v41  ;;  %v182_v41 = vld [vmem:[%s5944_s0 + $0x540] sm:$0xff] }
  0xa2   :  { %2769 = vmatmul.mubr.bf16.gmra.mrb[48].mxu0 %v3851_v42  ;;  %2198 = vmatprep.mubr.bf16.mxu1 %v3856_v43  ;;  %v186_v42 = vld [vmem:[%s5944_s0 + $0x560] sm:$0xff]  ;;  %v184_v43 = vld [vmem:[%s5944_s0 + $0x550] sm:$0xff] }
  0xa3   :  { %2776 = vmatprep.mubr.bf16.mxu0 %v3860_v44  ;;  %v188_v44 = vld [vmem:[%s5944_s0 + $0x570] sm:$0xff]  ;;  %v3920_v47 = vcombine.high %v182_v41, %v186_v42 }
  0xa4   :  { %v3924_v48 = vcombine.high %v184_v43, %v188_v44 }
  0xa9   :  { %2199 = vmatmul.mubr.bf16.gmra.mrb[52].mxu1 %v3855_v51  ;;  %v192_v51 = vld [vmem:[%s5944_s0 + $0x590] sm:$0xff] }
  0xaa   :  { %2777 = vmatmul.mubr.bf16.gmra.mrb[52].mxu0 %v3859_v52  ;;  %2206 = vmatprep.mubr.bf16.mxu1 %v3864_v53  ;;  %v196_v52 = vld [vmem:[%s5944_s0 + $0x5b0] sm:$0xff]  ;;  %v3919_v53 = vcombine.low %v182_v41, %v186_v42  ;;  %v246_v41 = vld [vmem:[%s5944_s0 + $0x740] sm:$0xff] }
  0xab   :  { %2784 = vmatprep.mubr.bf16.mxu0 %v3868_v54  ;;  %v3923_v54 = vcombine.low %v184_v43, %v188_v44  ;;  %v3932_v56 = vcombine.high %v192_v51, %v196_v52  ;;  %v250_v42 = vld [vmem:[%s5944_s0 + $0x760] sm:$0xff]  ;;  %v248_v43 = vld [vmem:[%s5944_s0 + $0x750] sm:$0xff] }
  0xac   :  { %v252_v44 = vld [vmem:[%s5944_s0 + $0x770] sm:$0xff] }
  0xb1   :  { %2207 = vmatmul.mubr.bf16.gmra.mrb[56].mxu1 %v3863_v58  ;;  %v200_v58 = vld [vmem:[%s5944_s0 + $0x5d0] sm:$0xff] }
  0xb2   :  { %2785 = vmatmul.mubr.bf16.gmra.mrb[56].mxu0 %v3867_v59  ;;  %2214 = vmatprep.mubr.bf16.mxu1 %v3872_v60  ;;  %v204_v59 = vld [vmem:[%s5944_s0 + $0x5f0] sm:$0xff]  ;;  %v3927_v60 = vcombine.low %v190_v49, %v194_v50  ;;  %v254_v49 = vld [vmem:[%s5944_s0 + $0x780] sm:$0xff] }
  0xb3   :  { %2792 = vmatprep.mubr.bf16.mxu0 %v3876_v61  ;;  %v3931_v61 = vcombine.low %v192_v51, %v196_v52  ;;  %v3940_v63 = vcombine.high %v200_v58, %v204_v59  ;;  %v258_v50 = vld [vmem:[%s5944_s0 + $0x7a0] sm:$0xff]  ;;  %v256_v51 = vld [vmem:[%s5944_s0 + $0x790] sm:$0xff] }
  0xb4   :  { %v260_v52 = vld [vmem:[%s5944_s0 + $0x7b0] sm:$0xff] }
  0xb9   :  { %2215 = vmatmul.mubr.bf16.gmra.mrb[60].mxu1 %v3871_v5  ;;  %v3935_v5 = vcombine.low %v198_v57, %v202_v0  ;;  %v262_v57 = vld [vmem:[%s5944_s0 + $0x7c0] sm:$0xff] }
  0xba   :  { %2793 = vmatmul.mubr.bf16.gmra.mrb[60].mxu0 %v3875_v6  ;;  %2222 = vmatprep.mubr.bf16.mxu1 %v3880_v7  ;;  %v3939_v6 = vcombine.low %v200_v58, %v204_v59  ;;  %v3944_v7 = vcombine.high %v206_v1, %v210_v2  ;;  %v266_v0 = vld [vmem:[%s5944_s0 + $0x7e0] sm:$0xff]  ;;  %v264_v58 = vld [vmem:[%s5944_s0 + $0x7d0] sm:$0xff] }
  0xbb   :  { %2800 = vmatprep.mubr.bf16.mxu0 %v3884_v8  ;;  %v3948_v8 = vcombine.high %v208_v3, %v212_v4  ;;  %v268_v59 = vld [vmem:[%s5944_s0 + $0x7f0] sm:$0xff] }
  0xc1   :  { %2223 = vmatmul.mubr.bf16.gmra.mrb[64].mxu1 %v3879_v13  ;;  %v3943_v13 = vcombine.low %v206_v1, %v210_v2  ;;  %v15_v1 = vld [vmem:[%s5944_s0 + $0x8] sm:$0xff] }
  0xc2   :  { %2801 = vmatmul.mubr.bf16.gmra.mrb[64].mxu0 %v3883_v14  ;;  %2230 = vmatprep.mubr.bf16.mxu1 %v3888_v15  ;;  %v3947_v14 = vcombine.low %v208_v3, %v212_v4  ;;  %v3952_v15 = vcombine.high %v214_v9, %v218_v10  ;;  %v19_v2 = vld [vmem:[%s5944_s0 + $0x28] sm:$0xff]  ;;  %v17_v3 = vld [vmem:[%s5944_s0 + $0x18] sm:$0xff] }
  0xc3   :  { %2808 = vmatprep.mubr.bf16.mxu0 %v3892_v16  ;;  %v3956_v16 = vcombine.high %v216_v11, %v220_v12  ;;  %v21_v4 = vld [vmem:[%s5944_s0 + $0x38] sm:$0xff] }
  0xc9   :  { %2231 = vmatmul.mubr.bf16.gmra.mrb[68].mxu1 %v3887_v21  ;;  %v3951_v21 = vcombine.low %v214_v9, %v218_v10  ;;  %v23_v9 = vld [vmem:[%s5944_s0 + $0x48] sm:$0xff] }
  0xca   :  { %2809 = vmatmul.mubr.bf16.gmra.mrb[68].mxu0 %v3891_v22  ;;  %2238 = vmatprep.mubr.bf16.mxu1 %v3896_v23  ;;  %v3955_v22 = vcombine.low %v216_v11, %v220_v12  ;;  %v3960_v23 = vcombine.high %v222_v17, %v226_v18  ;;  %v27_v10 = vld [vmem:[%s5944_s0 + $0x68] sm:$0xff]  ;;  %v25_v11 = vld [vmem:[%s5944_s0 + $0x58] sm:$0xff] }
  0xcb   :  { %2816 = vmatprep.mubr.bf16.mxu0 %v3900_v24  ;;  %v3964_v24 = vcombine.high %v224_v19, %v228_v20  ;;  %v29_v12 = vld [vmem:[%s5944_s0 + $0x78] sm:$0xff] }
  0xd1   :  { %2239 = vmatmul.mubr.bf16.gmra.mrb[72].mxu1 %v3895_v29  ;;  %v3959_v29 = vcombine.low %v222_v17, %v226_v18  ;;  %v31_v17 = vld [vmem:[%s5944_s0 + $0x88] sm:$0xff] }
  0xd2   :  { %2817 = vmatmul.mubr.bf16.gmra.mrb[72].mxu0 %v3899_v30  ;;  %2246 = vmatprep.mubr.bf16.mxu1 %v3904_v31  ;;  %v3963_v30 = vcombine.low %v224_v19, %v228_v20  ;;  %v3968_v31 = vcombine.high %v230_v25, %v234_v26  ;;  %v35_v18 = vld [vmem:[%s5944_s0 + $0xa8] sm:$0xff]  ;;  %v33_v19 = vld [vmem:[%s5944_s0 + $0x98] sm:$0xff] }
  0xd3   :  { %2824 = vmatprep.mubr.bf16.mxu0 %v3908_v32  ;;  %v3972_v32 = vcombine.high %v232_v27, %v236_v28  ;;  %v37_v20 = vld [vmem:[%s5944_s0 + $0xb8] sm:$0xff] }
  0xd9   :  { %2247 = vmatmul.mubr.bf16.gmra.mrb[76].mxu1 %v3903_v37  ;;  %v3967_v37 = vcombine.low %v230_v25, %v234_v26  ;;  %v39_v25 = vld [vmem:[%s5944_s0 + $0xc8] sm:$0xff] }
  0xda   :  { %2825 = vmatmul.mubr.bf16.gmra.mrb[76].mxu0 %v3907_v38  ;;  %2254 = vmatprep.mubr.bf16.mxu1 %v3912_v39  ;;  %v3971_v38 = vcombine.low %v232_v27, %v236_v28  ;;  %v3976_v39 = vcombine.high %v238_v33, %v242_v34  ;;  %v43_v26 = vld [vmem:[%s5944_s0 + $0xe8] sm:$0xff]  ;;  %v41_v27 = vld [vmem:[%s5944_s0 + $0xd8] sm:$0xff] }
  0xdb   :  { %2832 = vmatprep.mubr.bf16.mxu0 %v3916_v40  ;;  %v3980_v40 = vcombine.high %v240_v35, %v244_v36  ;;  %v45_v28 = vld [vmem:[%s5944_s0 + $0xf8] sm:$0xff] }
  0xe1   :  { %2255 = vmatmul.mubr.bf16.gmra.mrb[80].mxu1 %v3911_v45  ;;  %v3975_v45 = vcombine.low %v238_v33, %v242_v34  ;;  %v47_v33 = vld [vmem:[%s5944_s0 + $0x108] sm:$0xff] }
  0xe2   :  { %2833 = vmatmul.mubr.bf16.gmra.mrb[80].mxu0 %v3915_v46  ;;  %2262 = vmatprep.mubr.bf16.mxu1 %v3920_v47  ;;  %v3979_v46 = vcombine.low %v240_v35, %v244_v36  ;;  %v3984_v47 = vcombine.high %v246_v41, %v250_v42  ;;  %v51_v34 = vld [vmem:[%s5944_s0 + $0x128] sm:$0xff]  ;;  %v49_v35 = vld [vmem:[%s5944_s0 + $0x118] sm:$0xff] }
  0xe3   :  { %2840 = vmatprep.mubr.bf16.mxu0 %v3924_v48  ;;  %v3988_v48 = vcombine.high %v248_v43, %v252_v44  ;;  %v53_v36 = vld [vmem:[%s5944_s0 + $0x138] sm:$0xff] }
  0xe9   :  { %2263 = vmatmul.mubr.bf16.gmra.mrb[84].mxu1 %v3919_v53  ;;  %v3983_v53 = vcombine.low %v246_v41, %v250_v42  ;;  %v55_v41 = vld [vmem:[%s5944_s0 + $0x148] sm:$0xff] }
  0xea   :  { %2841 = vmatmul.mubr.bf16.gmra.mrb[84].mxu0 %v3923_v54  ;;  %2270 = vmatprep.mubr.bf16.mxu1 %v3928_v55  ;;  %v3987_v54 = vcombine.low %v248_v43, %v252_v44  ;;  %v3992_v55 = vcombine.high %v254_v49, %v258_v50  ;;  %v59_v42 = vld [vmem:[%s5944_s0 + $0x168] sm:$0xff]  ;;  %v57_v43 = vld [vmem:[%s5944_s0 + $0x158] sm:$0xff] }
  0xeb   :  { %2848 = vmatprep.mubr.bf16.mxu0 %v3932_v56  ;;  %v3996_v56 = vcombine.high %v256_v51, %v260_v52  ;;  %v61_v44 = vld [vmem:[%s5944_s0 + $0x178] sm:$0xff] }
  0xf1   :  { %2271 = vmatmul.mubr.bf16.gmra.mrb[88].mxu1 %v3927_v60  ;;  %v3991_v60 = vcombine.low %v254_v49, %v258_v50  ;;  %v63_v49 = vld [vmem:[%s5944_s0 + $0x188] sm:$0xff] }
  0xf2   :  { %2849 = vmatmul.mubr.bf16.gmra.mrb[88].mxu0 %v3931_v61  ;;  %2278 = vmatprep.mubr.bf16.mxu1 %v3936_v62  ;;  %v3995_v61 = vcombine.low %v256_v51, %v260_v52  ;;  %v4000_v62 = vcombine.high %v262_v57, %v266_v0  ;;  %v67_v50 = vld [vmem:[%s5944_s0 + $0x1a8] sm:$0xff]  ;;  %v65_v51 = vld [vmem:[%s5944_s0 + $0x198] sm:$0xff] }
  0xf3   :  { %2856 = vmatprep.mubr.bf16.mxu0 %v3940_v63  ;;  %v4004_v63 = vcombine.high %v264_v58, %v268_v59  ;;  %v69_v52 = vld [vmem:[%s5944_s0 + $0x1b8] sm:$0xff] }
  0xf9   :  { %2279 = vmatmul.mubr.bf16.gmra.mrb[92].mxu1 %v3935_v5  ;;  %v3999_v5 = vcombine.low %v262_v57, %v266_v0  ;;  %v71_v57 = vld [vmem:[%s5944_s0 + $0x1c8] sm:$0xff] }
  0xfa   :  { %2857 = vmatmul.mubr.bf16.gmra.mrb[92].mxu0 %v3939_v6  ;;  %2286 = vmatprep.mubr.bf16.mxu1 %v3944_v7  ;;  %v4003_v6 = vcombine.low %v264_v58, %v268_v59  ;;  %v3754_v7 = vcombine.high %v15_v1, %v19_v2  ;;  %v75_v0 = vld [vmem:[%s5944_s0 + $0x1e8] sm:$0xff]  ;;  %v73_v58 = vld [vmem:[%s5944_s0 + $0x1d8] sm:$0xff] }
  0xfb   :  { %2864 = vmatprep.mubr.bf16.mxu0 %v3948_v8  ;;  %v3758_v8 = vcombine.high %v17_v3, %v21_v4  ;;  %v77_v59 = vld [vmem:[%s5944_s0 + $0x1f8] sm:$0xff] }
 0x101   :  { %2287 = vmatmul.mubr.bf16.gmra.mrb[96].mxu1 %v3943_v13  ;;  %v3753_v13 = vcombine.low %v15_v1, %v19_v2  ;;  %v79_v1 = vld [vmem:[%s5944_s0 + $0x208] sm:$0xff] }
 0x102   :  { %2865 = vmatmul.mubr.bf16.gmra.mrb[96].mxu0 %v3947_v14  ;;  %2294 = vmatprep.mubr.bf16.mxu1 %v3952_v15  ;;  %v3757_v14 = vcombine.low %v17_v3, %v21_v4  ;;  %v3762_v15 = vcombine.high %v23_v9, %v27_v10  ;;  %v83_v2 = vld [vmem:[%s5944_s0 + $0x228] sm:$0xff]  ;;  %v81_v3 = vld [vmem:[%s5944_s0 + $0x218] sm:$0xff] }
 0x103   :  { %2872 = vmatprep.mubr.bf16.mxu0 %v3956_v16  ;;  %v3766_v16 = vcombine.high %v25_v11, %v29_v12  ;;  %v85_v4 = vld [vmem:[%s5944_s0 + $0x238] sm:$0xff] }
 0x109   :  { %2295 = vmatmul.mubr.bf16.gmra.mrb[100].mxu1 %v3951_v21  ;;  %v3761_v21 = vcombine.low %v23_v9, %v27_v10  ;;  %v87_v9 = vld [vmem:[%s5944_s0 + $0x248] sm:$0xff] }
 0x10a   :  { %2873 = vmatmul.mubr.bf16.gmra.mrb[100].mxu0 %v3955_v22  ;;  %2302 = vmatprep.mubr.bf16.mxu1 %v3960_v23  ;;  %v3765_v22 = vcombine.low %v25_v11, %v29_v12  ;;  %v3770_v23 = vcombine.high %v31_v17, %v35_v18  ;;  %v91_v10 = vld [vmem:[%s5944_s0 + $0x268] sm:$0xff]  ;;  %v89_v11 = vld [vmem:[%s5944_s0 + $0x258] sm:$0xff] }
 0x10b   :  { %2880 = vmatprep.mubr.bf16.mxu0 %v3964_v24  ;;  %v3774_v24 = vcombine.high %v33_v19, %v37_v20  ;;  %v93_v12 = vld [vmem:[%s5944_s0 + $0x278] sm:$0xff] }
 0x111   :  { %2303 = vmatmul.mubr.bf16.gmra.mrb[104].mxu1 %v3959_v29  ;;  %v3769_v29 = vcombine.low %v31_v17, %v35_v18  ;;  %v95_v17 = vld [vmem:[%s5944_s0 + $0x288] sm:$0xff] }
 0x112   :  { %2881 = vmatmul.mubr.bf16.gmra.mrb[104].mxu0 %v3963_v30  ;;  %2310 = vmatprep.mubr.bf16.mxu1 %v3968_v31  ;;  %v3773_v30 = vcombine.low %v33_v19, %v37_v20  ;;  %v3778_v31 = vcombine.high %v39_v25, %v43_v26  ;;  %v99_v18 = vld [vmem:[%s5944_s0 + $0x2a8] sm:$0xff]  ;;  %v97_v19 = vld [vmem:[%s5944_s0 + $0x298] sm:$0xff] }
 0x113   :  { %2888 = vmatprep.mubr.bf16.mxu0 %v3972_v32  ;;  %v3782_v32 = vcombine.high %v41_v27, %v45_v28  ;;  %v101_v20 = vld [vmem:[%s5944_s0 + $0x2b8] sm:$0xff] }
 0x119   :  { %2311 = vmatmul.mubr.bf16.gmra.mrb[108].mxu1 %v3967_v37  ;;  %v3777_v37 = vcombine.low %v39_v25, %v43_v26  ;;  %v103_v25 = vld [vmem:[%s5944_s0 + $0x2c8] sm:$0xff] }
 0x11a   :  { %2889 = vmatmul.mubr.bf16.gmra.mrb[108].mxu0 %v3971_v38  ;;  %2318 = vmatprep.mubr.bf16.mxu1 %v3976_v39  ;;  %v3781_v38 = vcombine.low %v41_v27, %v45_v28  ;;  %v3786_v39 = vcombine.high %v47_v33, %v51_v34  ;;  %v107_v26 = vld [vmem:[%s5944_s0 + $0x2e8] sm:$0xff]  ;;  %v105_v27 = vld [vmem:[%s5944_s0 + $0x2d8] sm:$0xff] }
 0x11b   :  { %2896 = vmatprep.mubr.bf16.mxu0 %v3980_v40  ;;  %v3790_v40 = vcombine.high %v49_v35, %v53_v36  ;;  %v109_v28 = vld [vmem:[%s5944_s0 + $0x2f8] sm:$0xff] }
 0x121   :  { %2319 = vmatmul.mubr.bf16.gmra.mrb[112].mxu1 %v3975_v45  ;;  %v3785_v45 = vcombine.low %v47_v33, %v51_v34  ;;  %v111_v33 = vld [vmem:[%s5944_s0 + $0x308] sm:$0xff] }
 0x122   :  { %2897 = vmatmul.mubr.bf16.gmra.mrb[112].mxu0 %v3979_v46  ;;  %2326 = vmatprep.mubr.bf16.mxu1 %v3984_v47  ;;  %v3789_v46 = vcombine.low %v49_v35, %v53_v36  ;;  %v3794_v47 = vcombine.high %v55_v41, %v59_v42  ;;  %v115_v34 = vld [vmem:[%s5944_s0 + $0x328] sm:$0xff]  ;;  %v113_v35 = vld [vmem:[%s5944_s0 + $0x318] sm:$0xff] }
 0x123   :  { %2904 = vmatprep.mubr.bf16.mxu0 %v3988_v48  ;;  %v3798_v48 = vcombine.high %v57_v43, %v61_v44  ;;  %v117_v36 = vld [vmem:[%s5944_s0 + $0x338] sm:$0xff] }
 0x129   :  { %2327 = vmatmul.mubr.bf16.gmra.mrb[116].mxu1 %v3983_v53  ;;  %v3793_v53 = vcombine.low %v55_v41, %v59_v42  ;;  %v119_v41 = vld [vmem:[%s5944_s0 + $0x348] sm:$0xff] }
 0x12a   :  { %2905 = vmatmul.mubr.bf16.gmra.mrb[116].mxu0 %v3987_v54  ;;  %2334 = vmatprep.mubr.bf16.mxu1 %v3992_v55  ;;  %v3797_v54 = vcombine.low %v57_v43, %v61_v44  ;;  %v3802_v55 = vcombine.high %v63_v49, %v67_v50  ;;  %v123_v42 = vld [vmem:[%s5944_s0 + $0x368] sm:$0xff]  ;;  %v121_v43 = vld [vmem:[%s5944_s0 + $0x358] sm:$0xff] }
 0x12b   :  { %2912 = vmatprep.mubr.bf16.mxu0 %v3996_v56  ;;  %v3806_v56 = vcombine.high %v65_v51, %v69_v52  ;;  %v125_v44 = vld [vmem:[%s5944_s0 + $0x378] sm:$0xff] }
 0x131   :  { %2335 = vmatmul.mubr.bf16.gmra.mrb[120].mxu1 %v3991_v60  ;;  %v3801_v60 = vcombine.low %v63_v49, %v67_v50  ;;  %v127_v49 = vld [vmem:[%s5944_s0 + $0x388] sm:$0xff] }
 0x132   :  { %2913 = vmatmul.mubr.bf16.gmra.mrb[120].mxu0 %v3995_v61  ;;  %2342 = vmatprep.mubr.bf16.mxu1 %v4000_v62  ;;  %v3805_v61 = vcombine.low %v65_v51, %v69_v52  ;;  %v3810_v62 = vcombine.high %v71_v57, %v75_v0  ;;  %v131_v50 = vld [vmem:[%s5944_s0 + $0x3a8] sm:$0xff]  ;;  %v129_v51 = vld [vmem:[%s5944_s0 + $0x398] sm:$0xff] }
 0x133   :  { %2920 = vmatprep.mubr.bf16.mxu0 %v4004_v63  ;;  %v3814_v63 = vcombine.high %v73_v58, %v77_v59  ;;  %v133_v52 = vld [vmem:[%s5944_s0 + $0x3b8] sm:$0xff] }
 0x139   :  { %2343 = vmatmul.mubr.bf16.gmra.mrb[124].mxu1 %v3999_v5  ;;  %v3809_v5 = vcombine.low %v71_v57, %v75_v0  ;;  %v135_v57 = vld [vmem:[%s5944_s0 + $0x3c8] sm:$0xff] }
 0x13a   :  { %2921 = vmatmul.mubr.bf16.gmra.mrb[124].mxu0 %v4003_v6  ;;  %2383 = vmatprep.mubr.bf16.mxu1 %v3754_v7  ;;  %v3813_v6 = vcombine.low %v73_v58, %v77_v59  ;;  %v3818_v7 = vcombine.high %v79_v1, %v83_v2  ;;  %v139_v0 = vld [vmem:[%s5944_s0 + $0x3e8] sm:$0xff]  ;;  %v137_v58 = vld [vmem:[%s5944_s0 + $0x3d8] sm:$0xff] }
 0x13b   :  { %2961 = vmatprep.mubr.bf16.mxu0 %v3758_v8  ;;  %v3822_v8 = vcombine.high %v81_v3, %v85_v4  ;;  %v141_v59 = vld [vmem:[%s5944_s0 + $0x3f8] sm:$0xff] }
 0x141   :  { %2384 = vmatmul.mubr.bf16.vlgmr.msra.gmra.mrb[0].mxu1 %v3753_v13  ;;  %v3817_v13 = vcombine.low %v79_v1, %v83_v2  ;;  %v143_v1 = vld [vmem:[%s5944_s0 + $0x408] sm:$0xff] }
 0x142   :  { %2962 = vmatmul.mubr.bf16.vlgmr.msra.gmra.mrb[0].mxu0 %v3757_v14  ;;  %2391 = vmatprep.mubr.bf16.mxu1 %v3762_v15  ;;  %v3821_v14 = vcombine.low %v81_v3, %v85_v4  ;;  %v3826_v15 = vcombine.high %v87_v9, %v91_v10  ;;  %v147_v2 = vld [vmem:[%s5944_s0 + $0x428] sm:$0xff]  ;;  %v145_v3 = vld [vmem:[%s5944_s0 + $0x418] sm:$0xff] }
 0x143   :  { %2969 = vmatprep.mubr.bf16.mxu0 %v3766_v16  ;;  %v3830_v16 = vcombine.high %v89_v11, %v93_v12  ;;  %v149_v4 = vld [vmem:[%s5944_s0 + $0x438] sm:$0xff] }
 0x149   :  { %2392 = vmatmul.mubr.bf16.gmra.mrb[4].mxu1 %v3761_v21  ;;  %v3825_v21 = vcombine.low %v87_v9, %v91_v10  ;;  %v151_v9 = vld [vmem:[%s5944_s0 + $0x448] sm:$0xff] }
 0x14a   :  { %2970 = vmatmul.mubr.bf16.gmra.mrb[4].mxu0 %v3765_v22  ;;  %2399 = vmatprep.mubr.bf16.mxu1 %v3770_v23  ;;  %v3829_v22 = vcombine.low %v89_v11, %v93_v12  ;;  %v3834_v23 = vcombine.high %v95_v17, %v99_v18  ;;  %v155_v10 = vld [vmem:[%s5944_s0 + $0x468] sm:$0xff]  ;;  %v153_v11 = vld [vmem:[%s5944_s0 + $0x458] sm:$0xff] }
 0x14b   :  { %2977 = vmatprep.mubr.bf16.mxu0 %v3774_v24  ;;  %v3838_v24 = vcombine.high %v97_v19, %v101_v20  ;;  %v157_v12 = vld [vmem:[%s5944_s0 + $0x478] sm:$0xff] }
 0x151   :  { %2400 = vmatmul.mubr.bf16.gmra.mrb[8].mxu1 %v3769_v29  ;;  %v3833_v29 = vcombine.low %v95_v17, %v99_v18  ;;  %v159_v17 = vld [vmem:[%s5944_s0 + $0x488] sm:$0xff] }
 0x152   :  { %2978 = vmatmul.mubr.bf16.gmra.mrb[8].mxu0 %v3773_v30  ;;  %2407 = vmatprep.mubr.bf16.mxu1 %v3778_v31  ;;  %v3837_v30 = vcombine.low %v97_v19, %v101_v20  ;;  %v3842_v31 = vcombine.high %v103_v25, %v107_v26  ;;  %v163_v18 = vld [vmem:[%s5944_s0 + $0x4a8] sm:$0xff]  ;;  %v161_v19 = vld [vmem:[%s5944_s0 + $0x498] sm:$0xff] }
 0x153   :  { %2985 = vmatprep.mubr.bf16.mxu0 %v3782_v32  ;;  %v3846_v32 = vcombine.high %v105_v27, %v109_v28  ;;  %v165_v20 = vld [vmem:[%s5944_s0 + $0x4b8] sm:$0xff] }
 0x159   :  { %2408 = vmatmul.mubr.bf16.gmra.mrb[12].mxu1 %v3777_v37  ;;  %v3841_v37 = vcombine.low %v103_v25, %v107_v26  ;;  %v167_v25 = vld [vmem:[%s5944_s0 + $0x4c8] sm:$0xff] }
 0x15a   :  { %2986 = vmatmul.mubr.bf16.gmra.mrb[12].mxu0 %v3781_v38  ;;  %2415 = vmatprep.mubr.bf16.mxu1 %v3786_v39  ;;  %v3845_v38 = vcombine.low %v105_v27, %v109_v28  ;;  %v3850_v39 = vcombine.high %v111_v33, %v115_v34  ;;  %v171_v26 = vld [vmem:[%s5944_s0 + $0x4e8] sm:$0xff]  ;;  %v169_v27 = vld [vmem:[%s5944_s0 + $0x4d8] sm:$0xff] }
 0x15b   :  { %2993 = vmatprep.mubr.bf16.mxu0 %v3790_v40  ;;  %v3854_v40 = vcombine.high %v113_v35, %v117_v36  ;;  %v173_v28 = vld [vmem:[%s5944_s0 + $0x4f8] sm:$0xff] }
 0x161   :  { %2416 = vmatmul.mubr.bf16.gmra.mrb[16].mxu1 %v3785_v45  ;;  %v3849_v45 = vcombine.low %v111_v33, %v115_v34  ;;  %v175_v33 = vld [vmem:[%s5944_s0 + $0x508] sm:$0xff] }
 0x162   :  { %2994 = vmatmul.mubr.bf16.gmra.mrb[16].mxu0 %v3789_v46  ;;  %2423 = vmatprep.mubr.bf16.mxu1 %v3794_v47  ;;  %v3853_v46 = vcombine.low %v113_v35, %v117_v36  ;;  %v3858_v47 = vcombine.high %v119_v41, %v123_v42  ;;  %v179_v34 = vld [vmem:[%s5944_s0 + $0x528] sm:$0xff]  ;;  %v177_v35 = vld [vmem:[%s5944_s0 + $0x518] sm:$0xff] }
 0x163   :  { %3001 = vmatprep.mubr.bf16.mxu0 %v3798_v48  ;;  %v3862_v48 = vcombine.high %v121_v43, %v125_v44  ;;  %v181_v36 = vld [vmem:[%s5944_s0 + $0x538] sm:$0xff] }
 0x169   :  { %2424 = vmatmul.mubr.bf16.gmra.mrb[20].mxu1 %v3793_v53  ;;  %v3857_v53 = vcombine.low %v119_v41, %v123_v42  ;;  %v183_v41 = vld [vmem:[%s5944_s0 + $0x548] sm:$0xff] }
 0x16a   :  { %3002 = vmatmul.mubr.bf16.gmra.mrb[20].mxu0 %v3797_v54  ;;  %2431 = vmatprep.mubr.bf16.mxu1 %v3802_v55  ;;  %v3861_v54 = vcombine.low %v121_v43, %v125_v44  ;;  %v3866_v55 = vcombine.high %v127_v49, %v131_v50  ;;  %v187_v42 = vld [vmem:[%s5944_s0 + $0x568] sm:$0xff]  ;;  %v185_v43 = vld [vmem:[%s5944_s0 + $0x558] sm:$0xff] }
 0x16b   :  { %3009 = vmatprep.mubr.bf16.mxu0 %v3806_v56  ;;  %v3870_v56 = vcombine.high %v129_v51, %v133_v52  ;;  %v189_v44 = vld [vmem:[%s5944_s0 + $0x578] sm:$0xff] }
 0x171   :  { %2432 = vmatmul.mubr.bf16.gmra.mrb[24].mxu1 %v3801_v60  ;;  %v3865_v60 = vcombine.low %v127_v49, %v131_v50  ;;  %v191_v49 = vld [vmem:[%s5944_s0 + $0x588] sm:$0xff] }
 0x172   :  { %3010 = vmatmul.mubr.bf16.gmra.mrb[24].mxu0 %v3805_v61  ;;  %2439 = vmatprep.mubr.bf16.mxu1 %v3810_v62  ;;  %v3869_v61 = vcombine.low %v129_v51, %v133_v52  ;;  %v3874_v62 = vcombine.high %v135_v57, %v139_v0  ;;  %v195_v50 = vld [vmem:[%s5944_s0 + $0x5a8] sm:$0xff]  ;;  %v193_v51 = vld [vmem:[%s5944_s0 + $0x598] sm:$0xff] }
 0x173   :  { %3017 = vmatprep.mubr.bf16.mxu0 %v3814_v63  ;;  %v3878_v63 = vcombine.high %v137_v58, %v141_v59  ;;  %v197_v52 = vld [vmem:[%s5944_s0 + $0x5b8] sm:$0xff] }
 0x179   :  { %2440 = vmatmul.mubr.bf16.gmra.mrb[28].mxu1 %v3809_v5  ;;  %v3873_v5 = vcombine.low %v135_v57, %v139_v0  ;;  %v199_v57 = vld [vmem:[%s5944_s0 + $0x5c8] sm:$0xff] }
 0x17a   :  { %3018 = vmatmul.mubr.bf16.gmra.mrb[28].mxu0 %v3813_v6  ;;  %2447 = vmatprep.mubr.bf16.mxu1 %v3818_v7  ;;  %v3877_v6 = vcombine.low %v137_v58, %v141_v59  ;;  %v3882_v7 = vcombine.high %v143_v1, %v147_v2  ;;  %v203_v0 = vld [vmem:[%s5944_s0 + $0x5e8] sm:$0xff]  ;;  %v201_v58 = vld [vmem:[%s5944_s0 + $0x5d8] sm:$0xff] }
 0x17b   :  { %3025 = vmatprep.mubr.bf16.mxu0 %v3822_v8  ;;  %v3886_v8 = vcombine.high %v145_v3, %v149_v4  ;;  %v205_v59 = vld [vmem:[%s5944_s0 + $0x5f8] sm:$0xff] }
 0x181   :  { %2448 = vmatmul.mubr.bf16.gmra.mrb[32].mxu1 %v3817_v13  ;;  %v3881_v13 = vcombine.low %v143_v1, %v147_v2  ;;  %v207_v1 = vld [vmem:[%s5944_s0 + $0x608] sm:$0xff] }
 0x182   :  { %3026 = vmatmul.mubr.bf16.gmra.mrb[32].mxu0 %v3821_v14  ;;  %2455 = vmatprep.mubr.bf16.mxu1 %v3826_v15  ;;  %v3885_v14 = vcombine.low %v145_v3, %v149_v4  ;;  %v3890_v15 = vcombine.high %v151_v9, %v155_v10  ;;  %v211_v2 = vld [vmem:[%s5944_s0 + $0x628] sm:$0xff]  ;;  %v209_v3 = vld [vmem:[%s5944_s0 + $0x618] sm:$0xff] }
 0x183   :  { %3033 = vmatprep.mubr.bf16.mxu0 %v3830_v16  ;;  %v3894_v16 = vcombine.high %v153_v11, %v157_v12  ;;  %v213_v4 = vld [vmem:[%s5944_s0 + $0x638] sm:$0xff] }
 0x189   :  { %2456 = vmatmul.mubr.bf16.gmra.mrb[36].mxu1 %v3825_v21  ;;  %v3889_v21 = vcombine.low %v151_v9, %v155_v10  ;;  %v215_v9 = vld [vmem:[%s5944_s0 + $0x648] sm:$0xff] }
 0x18a   :  { %3034 = vmatmul.mubr.bf16.gmra.mrb[36].mxu0 %v3829_v22  ;;  %2463 = vmatprep.mubr.bf16.mxu1 %v3834_v23  ;;  %v3893_v22 = vcombine.low %v153_v11, %v157_v12  ;;  %v3898_v23 = vcombine.high %v159_v17, %v163_v18  ;;  %v219_v10 = vld [vmem:[%s5944_s0 + $0x668] sm:$0xff]  ;;  %v217_v11 = vld [vmem:[%s5944_s0 + $0x658] sm:$0xff] }
 0x18b   :  { %3041 = vmatprep.mubr.bf16.mxu0 %v3838_v24  ;;  %v3902_v24 = vcombine.high %v161_v19, %v165_v20  ;;  %v221_v12 = vld [vmem:[%s5944_s0 + $0x678] sm:$0xff] }
 0x191   :  { %2464 = vmatmul.mubr.bf16.gmra.mrb[40].mxu1 %v3833_v29  ;;  %v3897_v29 = vcombine.low %v159_v17, %v163_v18  ;;  %v223_v17 = vld [vmem:[%s5944_s0 + $0x688] sm:$0xff] }
 0x192   :  { %3042 = vmatmul.mubr.bf16.gmra.mrb[40].mxu0 %v3837_v30  ;;  %2471 = vmatprep.mubr.bf16.mxu1 %v3842_v31  ;;  %v3901_v30 = vcombine.low %v161_v19, %v165_v20  ;;  %v3906_v31 = vcombine.high %v167_v25, %v171_v26  ;;  %v227_v18 = vld [vmem:[%s5944_s0 + $0x6a8] sm:$0xff]  ;;  %v225_v19 = vld [vmem:[%s5944_s0 + $0x698] sm:$0xff] }
 0x193   :  { %3049 = vmatprep.mubr.bf16.mxu0 %v3846_v32  ;;  %v3910_v32 = vcombine.high %v169_v27, %v173_v28  ;;  %v229_v20 = vld [vmem:[%s5944_s0 + $0x6b8] sm:$0xff] }
 0x199   :  { %2472 = vmatmul.mubr.bf16.gmra.mrb[44].mxu1 %v3841_v37  ;;  %v3905_v37 = vcombine.low %v167_v25, %v171_v26  ;;  %v231_v25 = vld [vmem:[%s5944_s0 + $0x6c8] sm:$0xff] }
 0x19a   :  { %3050 = vmatmul.mubr.bf16.gmra.mrb[44].mxu0 %v3845_v38  ;;  %2479 = vmatprep.mubr.bf16.mxu1 %v3850_v39  ;;  %v3909_v38 = vcombine.low %v169_v27, %v173_v28  ;;  %v3914_v39 = vcombine.high %v175_v33, %v179_v34  ;;  %v235_v26 = vld [vmem:[%s5944_s0 + $0x6e8] sm:$0xff]  ;;  %v233_v27 = vld [vmem:[%s5944_s0 + $0x6d8] sm:$0xff] }
 0x19b   :  { %3057 = vmatprep.mubr.bf16.mxu0 %v3854_v40  ;;  %v3918_v40 = vcombine.high %v177_v35, %v181_v36  ;;  %v237_v28 = vld [vmem:[%s5944_s0 + $0x6f8] sm:$0xff] }
 0x1a1   :  { %2480 = vmatmul.mubr.bf16.gmra.mrb[48].mxu1 %v3849_v45  ;;  %v3913_v45 = vcombine.low %v175_v33, %v179_v34  ;;  %v239_v33 = vld [vmem:[%s5944_s0 + $0x708] sm:$0xff] }
 0x1a2   :  { %3058 = vmatmul.mubr.bf16.gmra.mrb[48].mxu0 %v3853_v46  ;;  %2487 = vmatprep.mubr.bf16.mxu1 %v3858_v47  ;;  %v3917_v46 = vcombine.low %v177_v35, %v181_v36  ;;  %v3922_v47 = vcombine.high %v183_v41, %v187_v42  ;;  %v243_v34 = vld [vmem:[%s5944_s0 + $0x728] sm:$0xff]  ;;  %v241_v36 = vld [vmem:[%s5944_s0 + $0x718] sm:$0xff] }
 0x1a3   :  { %3065 = vmatprep.mubr.bf16.mxu0 %v3862_v48  ;;  %v3926_v48 = vcombine.high %v185_v43, %v189_v44 }
 0x1a9   :  { %2488 = vmatmul.mubr.bf16.gmra.mrb[52].mxu1 %v3857_v53  ;;  %v3921_v53 = vcombine.low %v183_v41, %v187_v42 }
 0x1aa   :  { %3066 = vmatmul.mubr.bf16.gmra.mrb[52].mxu0 %v3861_v54  ;;  %2495 = vmatprep.mubr.bf16.mxu1 %v3866_v55  ;;  %v3925_v54 = vcombine.low %v185_v43, %v189_v44  ;;  %v3930_v55 = vcombine.high %v191_v49, %v195_v50  ;;  %v3973_v44 = vcombine.low %v233_v27, %v237_v28 }
 0x1ab   :  { %3073 = vmatprep.mubr.bf16.mxu0 %v3870_v56  ;;  %v3934_v56 = vcombine.high %v193_v51, %v197_v52 }
 0x1b1   :  { %2496 = vmatmul.mubr.bf16.gmra.mrb[56].mxu1 %v3865_v60  ;;  %v3929_v60 = vcombine.low %v191_v49, %v195_v50 }
 0x1b2   :  { %3074 = vmatmul.mubr.bf16.gmra.mrb[56].mxu0 %v3869_v61  ;;  %2503 = vmatprep.mubr.bf16.mxu1 %v3874_v62  ;;  %v3933_v61 = vcombine.low %v193_v51, %v197_v52  ;;  %v3938_v62 = vcombine.high %v199_v57, %v203_v0 }
 0x1b3   :  { %3081 = vmatprep.mubr.bf16.mxu0 %v3878_v63  ;;  %v3942_v63 = vcombine.high %v201_v58, %v205_v59 }
 0x1b9   :  { %2504 = vmatmul.mubr.bf16.gmra.mrb[60].mxu1 %v3873_v5  ;;  %v3937_v5 = vcombine.low %v199_v57, %v203_v0  ;;  %v251_v0 = vld [vmem:[%s5944_s0 + $0x768] sm:$0xff] }
 0x1ba   :  { %3082 = vmatmul.mubr.bf16.gmra.mrb[60].mxu0 %v3877_v6  ;;  %2511 = vmatprep.mubr.bf16.mxu1 %v3882_v7  ;;  %v3941_v6 = vcombine.low %v201_v58, %v205_v59  ;;  %v3946_v7 = vcombine.high %v207_v1, %v211_v2  ;;  %v249_v58 = vld [vmem:[%s5944_s0 + $0x758] sm:$0xff] }
 0x1bb   :  { %3089 = vmatprep.mubr.bf16.mxu0 %v3886_v8  ;;  %v3950_v8 = vcombine.high %v209_v3, %v213_v4  ;;  %v253_v59 = vld [vmem:[%s5944_s0 + $0x778] sm:$0xff] }
 0x1c1   :  { %2512 = vmatmul.mubr.bf16.gmra.mrb[64].mxu1 %v3881_v13  ;;  %v3945_v13 = vcombine.low %v207_v1, %v211_v2 }
 0x1c2   :  { %3090 = vmatmul.mubr.bf16.gmra.mrb[64].mxu0 %v3885_v14  ;;  %2519 = vmatprep.mubr.bf16.mxu1 %v3890_v15  ;;  %v3949_v14 = vcombine.low %v209_v3, %v213_v4  ;;  %v3954_v15 = vcombine.high %v215_v9, %v219_v10 }
 0x1c3   :  { %3097 = vmatprep.mubr.bf16.mxu0 %v3894_v16  ;;  %v3958_v16 = vcombine.high %v217_v11, %v221_v12 }
 0x1c9   :  { %2520 = vmatmul.mubr.bf16.gmra.mrb[68].mxu1 %v3889_v21  ;;  %v3953_v21 = vcombine.low %v215_v9, %v219_v10 }
 0x1ca   :  { %3098 = vmatmul.mubr.bf16.gmra.mrb[68].mxu0 %v3893_v22  ;;  %2527 = vmatprep.mubr.bf16.mxu1 %v3898_v23  ;;  %v3957_v22 = vcombine.low %v217_v11, %v221_v12  ;;  %v3962_v23 = vcombine.high %v223_v17, %v227_v18 }
 0x1cb   :  { %3105 = vmatprep.mubr.bf16.mxu0 %v3902_v24  ;;  %v3966_v24 = vcombine.high %v225_v19, %v229_v20 }
 0x1d1   :  { %2528 = vmatmul.mubr.bf16.gmra.mrb[72].mxu1 %v3897_v29  ;;  %v3961_v29 = vcombine.low %v223_v17, %v227_v18 }
 0x1d2   :  { %3106 = vmatmul.mubr.bf16.gmra.mrb[72].mxu0 %v3901_v30  ;;  %2535 = vmatprep.mubr.bf16.mxu1 %v3906_v31  ;;  %v3965_v30 = vcombine.low %v225_v19, %v229_v20  ;;  %v3970_v31 = vcombine.high %v231_v25, %v235_v26  ;;  %v259_v19 = vld [vmem:[%s5944_s0 + $0x7a8] sm:$0xff]  ;;  %v257_v20 = vld [vmem:[%s5944_s0 + $0x798] sm:$0xff] }
 0x1d3   :  { %3113 = vmatprep.mubr.bf16.mxu0 %v3910_v32  ;;  %v3974_v32 = vcombine.high %v233_v27, %v237_v28  ;;  %v3989_v28 = vcombine.low %v249_v58, %v253_v59 }
 0x1d9   :  { %2536 = vmatmul.mubr.bf16.gmra.mrb[76].mxu1 %v3905_v37  ;;  %v245_v37 = vld [vmem:[%s5944_s0 + $0x738] sm:$0xff] }
 0x1da   :  { %3114 = vmatmul.mubr.bf16.gmra.mrb[76].mxu0 %v3909_v38  ;;  %2543 = vmatprep.mubr.bf16.mxu1 %v3914_v39  ;;  %v3981_v3 = vcombine.low %v241_v36, %v245_v37 }
 0x1db   :  { %3121 = vmatprep.mubr.bf16.mxu0 %v3918_v40  ;;  %v3969_v40 = vcombine.low %v231_v25, %v235_v26 }
 0x1e1   :  { %2544 = vmatmul.mubr.bf16.gmra.mrb[80].mxu1 %v3913_v45  ;;  %v3978_v45 = vcombine.high %v239_v33, %v243_v34 }
 0x1e2   :  { %3122 = vmatmul.mubr.bf16.gmra.mrb[80].mxu0 %v3917_v46  ;;  %2551 = vmatprep.mubr.bf16.mxu1 %v3922_v47 }
 0x1e3   :  { %3129 = vmatprep.mubr.bf16.mxu0 %v3926_v48  ;;  %v3982_v48 = vcombine.high %v241_v36, %v245_v37 }
 0x1e9   :  { %2552 = vmatmul.mubr.bf16.gmra.mrb[84].mxu1 %v3921_v53 }
 0x1ea   :  { %3130 = vmatmul.mubr.bf16.gmra.mrb[84].mxu0 %v3925_v54  ;;  %2559 = vmatprep.mubr.bf16.mxu1 %v3930_v55  ;;  %v247_v55 = vld [vmem:[%s5944_s0 + $0x748] sm:$0xff] }
 0x1eb   :  { %3137 = vmatprep.mubr.bf16.mxu0 %v3934_v56 }
 0x1f1   :  { %2560 = vmatmul.mubr.bf16.gmra.mrb[88].mxu1 %v3929_v60 }
 0x1f2   :  { %3138 = vmatmul.mubr.bf16.gmra.mrb[88].mxu0 %v3933_v61  ;;  %2567 = vmatprep.mubr.bf16.mxu1 %v3938_v62  ;;  %v3977_v62 = vcombine.low %v239_v33, %v243_v34 }
 0x1f3   :  { %3145 = vmatprep.mubr.bf16.mxu0 %v3942_v63 }
 0x1f9   :  { %2568 = vmatmul.mubr.bf16.gmra.mrb[92].mxu1 %v3937_v5 }
 0x1fa   :  { %3146 = vmatmul.mubr.bf16.gmra.mrb[92].mxu0 %v3941_v6  ;;  %2575 = vmatprep.mubr.bf16.mxu1 %v3946_v7  ;;  %v3986_v6 = vcombine.high %v247_v55, %v251_v0  ;;  %v3990_v7 = vcombine.high %v249_v58, %v253_v59 }
 0x1fb   :  { %3153 = vmatprep.mubr.bf16.mxu0 %v3950_v8 }
 0x201   :  { %2576 = vmatmul.mubr.bf16.gmra.mrb[96].mxu1 %v3945_v13 }
 0x202   :  { %3154 = vmatmul.mubr.bf16.gmra.mrb[96].mxu0 %v3949_v14  ;;  %2583 = vmatprep.mubr.bf16.mxu1 %v3954_v15 }
 0x203   :  { %3161 = vmatprep.mubr.bf16.mxu0 %v3958_v16  ;;  %v255_v16 = vld [vmem:[%s5944_s0 + $0x788] sm:$0xff] }
 0x209   :  { %2584 = vmatmul.mubr.bf16.gmra.mrb[100].mxu1 %v3953_v21  ;;  %v261_v21 = vld [vmem:[%s5944_s0 + $0x7b8] sm:$0xff] }
 0x20a   :  { %3162 = vmatmul.mubr.bf16.gmra.mrb[100].mxu0 %v3957_v22  ;;  %2591 = vmatprep.mubr.bf16.mxu1 %v3962_v23 }
 0x20b   :  { %3169 = vmatprep.mubr.bf16.mxu0 %v3966_v24  ;;  %v3985_v24 = vcombine.low %v247_v55, %v251_v0 }
 0x211   :  { %2592 = vmatmul.mubr.bf16.gmra.mrb[104].mxu1 %v3961_v29 }
 0x212   :  { %3170 = vmatmul.mubr.bf16.gmra.mrb[104].mxu0 %v3965_v30  ;;  %2599 = vmatprep.mubr.bf16.mxu1 %v3970_v31  ;;  %v3994_v31 = vcombine.high %v255_v16, %v259_v19 }
 0x213   :  { %3177 = vmatprep.mubr.bf16.mxu0 %v3974_v32  ;;  %v3998_v32 = vcombine.high %v257_v20, %v261_v21 }
 0x214   :  { %v2385_v35 = vpop.f32.mrb[0].mxu1 }
 0x215   :  { %v2963_v38 = vpop.f32.mrb[0].mxu0  ;;  %v2387_v39 = vpop.f32.mrb[1].mxu1 }
 0x216   :  { %v4390_v41 = vadd.f32 %v2963_v38, %v2385_v35  ;;  %v2965_v42 = vpop.f32.mrb[1].mxu0  ;;  %v2388_v43 = vpop.f32.mrb[2].mxu1 }
 0x217   :  { %v2966_v46 = vpop.f32.mrb[2].mxu0  ;;  %v2390_v47 = vpop.f32.mrb[3].mxu1 }
 0x218   :  { %v4391_v49 = vadd.f32 %v2966_v46, %v2388_v43  ;;  %v2968_v50 = vpop.f32.mrb[3].mxu0  ;;  %v3609_v51 = vmul.f32 %v4390_v41, %v4390_v41  ;;  %v269_v46 = vld [vmem:[%s5944_s0 + $0x7f8] sm:$0xff] }
 0x219   :  { %2600 = vmatmul.mubr.bf16.gmra.mrb[108].mxu1 %v3969_v40 }
 0x21a   :  { %v4202_v52 = vpack.c.bf16 %v4391_v49, %v4390_v41  ;;  %v3539_v53 = vadd.f32 %v4391_v49, %v4390_v41  ;;  %v3610_v54 = vmul.f32 %v4391_v49, %v4391_v49  ;;  %3178 = vmatmul.mubr.bf16.gmra.mrb[108].mxu0 %v3973_v44  ;;  %2607 = vmatprep.mubr.bf16.mxu1 %v3978_v45  ;;  %v263_v41 = vld [vmem:[%s5944_s0 + $0x7c8] sm:$0xff]  ;;  %v265_v45 = vld [vmem:[%s5944_s0 + $0x7d8] sm:$0xff] }
 0x21b   :  { %3185 = vmatprep.mubr.bf16.mxu0 %v3982_v48  ;;  %v267_v44 = vld [vmem:[%s5944_s0 + $0x7e8] sm:$0xff]  ;;  %v3993_v49 = vcombine.low %v255_v16, %v259_v19 }
 0x21c   :  { %4203 = vst [vmem:[%s5945_s2] sm:$0xff] %v4202_v52   ;;  %v3673_v56 = vadd.f32 %v3610_v54, %v3609_v51  ;;  %v2393_v57 = vpop.f32.mrb[4].mxu1 }
 0x21d   :  { %v2971_v60 = vpop.f32.mrb[4].mxu0  ;;  %v2395_v61 = vpop.f32.mrb[5].mxu1 }
 0x21e   :  { %v4392_v63 = vadd.f32 %v2971_v60, %v2393_v57  ;;  %v2973_v1 = vpop.f32.mrb[5].mxu0  ;;  %v2396_v2 = vpop.f32.mrb[6].mxu1  ;;  %v4006_v57 = vcombine.high %v265_v45, %v269_v46 }
 0x21f   :  { %v2974_v4 = vpop.f32.mrb[6].mxu0  ;;  %v2398_v5 = vpop.f32.mrb[7].mxu1 }
 0x220   :  { %v3540_v8 = vadd.f32 %v4392_v63, %v3539_v53  ;;  %v3611_v9 = vmul.f32 %v4392_v63, %v4392_v63  ;;  %v4393_v10 = vadd.f32 %v2974_v4, %v2396_v2  ;;  %v2976_v11 = vpop.f32.mrb[7].mxu0  ;;  %v3997_v53 = vcombine.low %v257_v20, %v261_v21 }
 0x221   :  { %2608 = vmatmul.mubr.bf16.gmra.mrb[112].mxu1 %v3977_v62 }
 0x222   :  { %v3674_v12 = vadd.f32 %v3673_v56, %v3611_v9  ;;  %v4207_v13 = vpack.c.bf16 %v4393_v10, %v4392_v63  ;;  %v3541_v14 = vadd.f32 %v4393_v10, %v3540_v8  ;;  %v3612_v15 = vmul.f32 %v4393_v10, %v4393_v10  ;;  %3186 = vmatmul.mubr.bf16.gmra.mrb[112].mxu0 %v3981_v3 }
 0x223   :  { %2615 = vmatprep.mubr.bf16.mxu1 %v3986_v6  ;;  %3193 = vmatprep.mubr.bf16.mxu0 %v3990_v7  ;;  %v4002_v56 = vcombine.high %v263_v41, %v267_v44  ;;  %v4001_v6 = vcombine.low %v263_v41, %v267_v44  ;;  %v4005_v10 = vcombine.low %v265_v45, %v269_v46 }
 0x224   :  { %4359 = vst [vmem:[%s5945_s2 + $0x8] sm:$0xff] %v4207_v13   ;;  %v3675_v17 = vadd.f32 %v3674_v12, %v3612_v15  ;;  %v2401_v18 = vpop.f32.mrb[8].mxu1 }
 0x225   :  { %v2979_v22 = vpop.f32.mrb[8].mxu0  ;;  %v2403_v23 = vpop.f32.mrb[9].mxu1 }
 0x226   :  { %v4394_v25 = vadd.f32 %v2979_v22, %v2401_v18  ;;  %v2981_v26 = vpop.f32.mrb[9].mxu0  ;;  %v2404_v27 = vpop.f32.mrb[10].mxu1 }
 0x227   :  { %v2982_v29 = vpop.f32.mrb[10].mxu0  ;;  %v2406_v30 = vpop.f32.mrb[11].mxu1 }
 0x228   :  { %v3542_v33 = vadd.f32 %v4394_v25, %v3541_v14  ;;  %v3613_v34 = vmul.f32 %v4394_v25, %v4394_v25  ;;  %v4395_v35 = vadd.f32 %v2982_v29, %v2404_v27  ;;  %v2984_v36 = vpop.f32.mrb[11].mxu0 }
 0x229   :  { %2616 = vmatmul.mubr.bf16.gmra.mrb[116].mxu1 %v3985_v24 }
 0x22a   :  { %v3676_v37 = vadd.f32 %v3675_v17, %v3613_v34  ;;  %v4212_v38 = vpack.c.bf16 %v4395_v35, %v4394_v25  ;;  %v3543_v39 = vadd.f32 %v4395_v35, %v3542_v33  ;;  %v3614_v40 = vmul.f32 %v4395_v35, %v4395_v35  ;;  %3194 = vmatmul.mubr.bf16.gmra.mrb[116].mxu0 %v3989_v28 }
 0x22b   :  { %2623 = vmatprep.mubr.bf16.mxu1 %v3994_v31  ;;  %3201 = vmatprep.mubr.bf16.mxu0 %v3998_v32 }
 0x22c   :  { %4360 = vst [vmem:[%s5945_s2 + $0x10] sm:$0xff] %v4212_v38   ;;  %v3677_v42 = vadd.f32 %v3676_v37, %v3614_v40  ;;  %v2409_v43 = vpop.f32.mrb[12].mxu1 }
 0x22d   :  { %v2987_v47 = vpop.f32.mrb[12].mxu0  ;;  %v2411_v48 = vpop.f32.mrb[13].mxu1 }
 0x22e   :  { %v4396_v50 = vadd.f32 %v2987_v47, %v2409_v43  ;;  %v2989_v51 = vpop.f32.mrb[13].mxu0  ;;  %v2412_v52 = vpop.f32.mrb[14].mxu1 }
 0x22f   :  { %v2990_v54 = vpop.f32.mrb[14].mxu0  ;;  %v2414_v55 = vpop.f32.mrb[15].mxu1 }
 0x230   :  { %v3544_v0 = vadd.f32 %v4396_v50, %v3543_v39  ;;  %v3615_v58 = vmul.f32 %v4396_v50, %v4396_v50  ;;  %v4397_v59 = vadd.f32 %v2990_v54, %v2412_v52  ;;  %v2992_v60 = vpop.f32.mrb[15].mxu0 }
 0x231   :  { %2624 = vmatmul.mubr.bf16.gmra.mrb[120].mxu1 %v3993_v49 }
 0x232   :  { %v3678_v61 = vadd.f32 %v3677_v42, %v3615_v58  ;;  %v4217_v62 = vpack.c.bf16 %v4397_v59, %v4396_v50  ;;  %v3545_v63 = vadd.f32 %v4397_v59, %v3544_v0  ;;  %v3616_v1 = vmul.f32 %v4397_v59, %v4397_v59  ;;  %3202 = vmatmul.mubr.bf16.gmra.mrb[120].mxu0 %v3997_v53 }
 0x233   :  { %2631 = vmatprep.mubr.bf16.mxu1 %v4002_v56  ;;  %3209 = vmatprep.mubr.bf16.mxu0 %v4006_v57 }
 0x234   :  { %4361 = vst [vmem:[%s5945_s2 + $0x18] sm:$0xff] %v4217_v62   ;;  %v3679_v2 = vadd.f32 %v3678_v61, %v3616_v1  ;;  %v2417_v3 = vpop.f32.mrb[16].mxu1 }
 0x235   :  { %v2995_v4 = vpop.f32.mrb[16].mxu0  ;;  %v2419_v5 = vpop.f32.mrb[17].mxu1 }
 0x236   :  { %v4398_v7 = vadd.f32 %v2995_v4, %v2417_v3  ;;  %v2997_v8 = vpop.f32.mrb[17].mxu0  ;;  %v2420_v9 = vpop.f32.mrb[18].mxu1 }
 0x237   :  { %v2998_v11 = vpop.f32.mrb[18].mxu0  ;;  %v2422_v12 = vpop.f32.mrb[19].mxu1 }
 0x238   :  { %v3546_v13 = vadd.f32 %v4398_v7, %v3545_v63  ;;  %v3617_v14 = vmul.f32 %v4398_v7, %v4398_v7  ;;  %v4399_v15 = vadd.f32 %v2998_v11, %v2420_v9  ;;  %v3000_v16 = vpop.f32.mrb[19].mxu0 }
 0x239   :  { %2632 = vmatmul.mubr.bf16.gmra.mrb[124].mxu1 %v4001_v6 }
 0x23a   :  { %v3680_v17 = vadd.f32 %v3679_v2, %v3617_v14  ;;  %v4222_v18 = vpack.c.bf16 %v4399_v15, %v4398_v7  ;;  %v3547_v19 = vadd.f32 %v4399_v15, %v3546_v13  ;;  %v3618_v20 = vmul.f32 %v4399_v15, %v4399_v15  ;;  %3210 = vmatmul.mubr.bf16.gmra.mrb[124].mxu0 %v4005_v10 }
 0x23c   :  { %4362 = vst [vmem:[%s5945_s2 + $0x20] sm:$0xff] %v4222_v18   ;;  %v3681_v21 = vadd.f32 %v3680_v17, %v3618_v20  ;;  %v2425_v22 = vpop.f32.mrb[20].mxu1 }
 0x23d   :  { %v3003_v23 = vpop.f32.mrb[20].mxu0  ;;  %v2427_v24 = vpop.f32.mrb[21].mxu1 }
 0x23e   :  { %v4400_v25 = vadd.f32 %v3003_v23, %v2425_v22  ;;  %v3005_v26 = vpop.f32.mrb[21].mxu0  ;;  %v2428_v27 = vpop.f32.mrb[22].mxu1 }
 0x23f   :  { %v3006_v28 = vpop.f32.mrb[22].mxu0  ;;  %v2430_v29 = vpop.f32.mrb[23].mxu1 }
 0x240   :  { %v3548_v30 = vadd.f32 %v4400_v25, %v3547_v19  ;;  %v3619_v31 = vmul.f32 %v4400_v25, %v4400_v25  ;;  %v4401_v32 = vadd.f32 %v3006_v28, %v2428_v27  ;;  %v3008_v33 = vpop.f32.mrb[23].mxu0 }
 0x242   :  { %v3682_v34 = vadd.f32 %v3681_v21, %v3619_v31  ;;  %v4227_v35 = vpack.c.bf16 %v4401_v32, %v4400_v25  ;;  %v3549_v36 = vadd.f32 %v4401_v32, %v3548_v30  ;;  %v3620_v37 = vmul.f32 %v4401_v32, %v4401_v32 }
 0x244   :  { %4363 = vst [vmem:[%s5945_s2 + $0x28] sm:$0xff] %v4227_v35   ;;  %v3683_v38 = vadd.f32 %v3682_v34, %v3620_v37  ;;  %v2433_v39 = vpop.f32.mrb[24].mxu1 }
 0x245   :  { %v3011_v40 = vpop.f32.mrb[24].mxu0  ;;  %v2435_v41 = vpop.f32.mrb[25].mxu1 }
 0x246   :  { %v4402_v42 = vadd.f32 %v3011_v40, %v2433_v39  ;;  %v3013_v43 = vpop.f32.mrb[25].mxu0  ;;  %v2436_v44 = vpop.f32.mrb[26].mxu1 }
 0x247   :  { %v3014_v45 = vpop.f32.mrb[26].mxu0  ;;  %v2438_v46 = vpop.f32.mrb[27].mxu1 }
 0x248   :  { %v3550_v47 = vadd.f32 %v4402_v42, %v3549_v36  ;;  %v3621_v48 = vmul.f32 %v4402_v42, %v4402_v42  ;;  %v4403_v49 = vadd.f32 %v3014_v45, %v2436_v44  ;;  %v3016_v50 = vpop.f32.mrb[27].mxu0 }
 0x24a   :  { %v3684_v51 = vadd.f32 %v3683_v38, %v3621_v48  ;;  %v4232_v52 = vpack.c.bf16 %v4403_v49, %v4402_v42  ;;  %v3551_v53 = vadd.f32 %v4403_v49, %v3550_v47  ;;  %v3622_v54 = vmul.f32 %v4403_v49, %v4403_v49 }
 0x24c   :  { %4364 = vst [vmem:[%s5945_s2 + $0x30] sm:$0xff] %v4232_v52   ;;  %v3685_v55 = vadd.f32 %v3684_v51, %v3622_v54  ;;  %v2441_v56 = vpop.f32.mrb[28].mxu1 }
 0x24d   :  { %v3019_v57 = vpop.f32.mrb[28].mxu0  ;;  %v2443_v0 = vpop.f32.mrb[29].mxu1 }
 0x24e   :  { %v4404_v58 = vadd.f32 %v3019_v57, %v2441_v56  ;;  %v3021_v59 = vpop.f32.mrb[29].mxu0  ;;  %v2444_v60 = vpop.f32.mrb[30].mxu1 }
 0x24f   :  { %v3022_v61 = vpop.f32.mrb[30].mxu0  ;;  %v2446_v62 = vpop.f32.mrb[31].mxu1 }
 0x250   :  { %v3552_v63 = vadd.f32 %v4404_v58, %v3551_v53  ;;  %v3623_v1 = vmul.f32 %v4404_v58, %v4404_v58  ;;  %v4405_v2 = vadd.f32 %v3022_v61, %v2444_v60  ;;  %v3024_v3 = vpop.f32.mrb[31].mxu0 }
 0x252   :  { %v3686_v4 = vadd.f32 %v3685_v55, %v3623_v1  ;;  %v4237_v5 = vpack.c.bf16 %v4405_v2, %v4404_v58  ;;  %v3553_v6 = vadd.f32 %v4405_v2, %v3552_v63  ;;  %v3624_v7 = vmul.f32 %v4405_v2, %v4405_v2 }
 0x254   :  { %4365 = vst [vmem:[%s5945_s2 + $0x38] sm:$0xff] %v4237_v5   ;;  %v3687_v8 = vadd.f32 %v3686_v4, %v3624_v7  ;;  %v2449_v9 = vpop.f32.mrb[32].mxu1 }
 0x255   :  { %v3027_v10 = vpop.f32.mrb[32].mxu0  ;;  %v2451_v11 = vpop.f32.mrb[33].mxu1 }
 0x256   :  { %v4406_v12 = vadd.f32 %v3027_v10, %v2449_v9  ;;  %v3029_v13 = vpop.f32.mrb[33].mxu0  ;;  %v2452_v14 = vpop.f32.mrb[34].mxu1 }
 0x257   :  { %v3030_v15 = vpop.f32.mrb[34].mxu0  ;;  %v2454_v16 = vpop.f32.mrb[35].mxu1 }
 0x258   :  { %v3554_v17 = vadd.f32 %v4406_v12, %v3553_v6  ;;  %v3625_v18 = vmul.f32 %v4406_v12, %v4406_v12  ;;  %v4407_v19 = vadd.f32 %v3030_v15, %v2452_v14  ;;  %v3032_v20 = vpop.f32.mrb[35].mxu0 }
 0x25a   :  { %v3688_v21 = vadd.f32 %v3687_v8, %v3625_v18  ;;  %v4242_v22 = vpack.c.bf16 %v4407_v19, %v4406_v12  ;;  %v3555_v23 = vadd.f32 %v4407_v19, %v3554_v17  ;;  %v3626_v24 = vmul.f32 %v4407_v19, %v4407_v19 }
 0x25c   :  { %4366 = vst [vmem:[%s5945_s2 + $0x40] sm:$0xff] %v4242_v22   ;;  %v3689_v25 = vadd.f32 %v3688_v21, %v3626_v24  ;;  %v2457_v26 = vpop.f32.mrb[36].mxu1 }
 0x25d   :  { %v3035_v27 = vpop.f32.mrb[36].mxu0  ;;  %v2459_v28 = vpop.f32.mrb[37].mxu1 }
 0x25e   :  { %v4408_v29 = vadd.f32 %v3035_v27, %v2457_v26  ;;  %v3037_v30 = vpop.f32.mrb[37].mxu0  ;;  %v2460_v31 = vpop.f32.mrb[38].mxu1 }
 0x25f   :  { %v3038_v32 = vpop.f32.mrb[38].mxu0  ;;  %v2462_v33 = vpop.f32.mrb[39].mxu1 }
 0x260   :  { %v3556_v34 = vadd.f32 %v4408_v29, %v3555_v23  ;;  %v3627_v35 = vmul.f32 %v4408_v29, %v4408_v29  ;;  %v4409_v36 = vadd.f32 %v3038_v32, %v2460_v31  ;;  %v3040_v37 = vpop.f32.mrb[39].mxu0 }
 0x262   :  { %v3690_v38 = vadd.f32 %v3689_v25, %v3627_v35  ;;  %v4247_v39 = vpack.c.bf16 %v4409_v36, %v4408_v29  ;;  %v3557_v40 = vadd.f32 %v4409_v36, %v3556_v34  ;;  %v3628_v41 = vmul.f32 %v4409_v36, %v4409_v36 }
 0x264   :  { %4367 = vst [vmem:[%s5945_s2 + $0x48] sm:$0xff] %v4247_v39   ;;  %v3691_v42 = vadd.f32 %v3690_v38, %v3628_v41  ;;  %v2465_v43 = vpop.f32.mrb[40].mxu1 }
 0x265   :  { %v3043_v44 = vpop.f32.mrb[40].mxu0  ;;  %v2467_v45 = vpop.f32.mrb[41].mxu1 }
 0x266   :  { %v4410_v46 = vadd.f32 %v3043_v44, %v2465_v43  ;;  %v3045_v47 = vpop.f32.mrb[41].mxu0  ;;  %v2468_v48 = vpop.f32.mrb[42].mxu1 }
 0x267   :  { %v3046_v49 = vpop.f32.mrb[42].mxu0  ;;  %v2470_v50 = vpop.f32.mrb[43].mxu1 }
 0x268   :  { %v3558_v51 = vadd.f32 %v4410_v46, %v3557_v40  ;;  %v3629_v52 = vmul.f32 %v4410_v46, %v4410_v46  ;;  %v4411_v53 = vadd.f32 %v3046_v49, %v2468_v48  ;;  %v3048_v54 = vpop.f32.mrb[43].mxu0 }
 0x26a   :  { %v3692_v55 = vadd.f32 %v3691_v42, %v3629_v52  ;;  %v4252_v56 = vpack.c.bf16 %v4411_v53, %v4410_v46  ;;  %v3559_v57 = vadd.f32 %v4411_v53, %v3558_v51  ;;  %v3630_v0 = vmul.f32 %v4411_v53, %v4411_v53 }
 0x26c   :  { %4368 = vst [vmem:[%s5945_s2 + $0x50] sm:$0xff] %v4252_v56   ;;  %v3693_v58 = vadd.f32 %v3692_v55, %v3630_v0  ;;  %v2473_v59 = vpop.f32.mrb[44].mxu1 }
 0x26d   :  { %v3051_v60 = vpop.f32.mrb[44].mxu0  ;;  %v2475_v61 = vpop.f32.mrb[45].mxu1 }
 0x26e   :  { %v4412_v62 = vadd.f32 %v3051_v60, %v2473_v59  ;;  %v3053_v63 = vpop.f32.mrb[45].mxu0  ;;  %v2476_v1 = vpop.f32.mrb[46].mxu1 }
 0x26f   :  { %v3054_v2 = vpop.f32.mrb[46].mxu0  ;;  %v2478_v3 = vpop.f32.mrb[47].mxu1 }
 0x270   :  { %v3560_v4 = vadd.f32 %v4412_v62, %v3559_v57  ;;  %v3631_v5 = vmul.f32 %v4412_v62, %v4412_v62  ;;  %v4413_v6 = vadd.f32 %v3054_v2, %v2476_v1  ;;  %v3056_v7 = vpop.f32.mrb[47].mxu0 }
 0x272   :  { %v3694_v8 = vadd.f32 %v3693_v58, %v3631_v5  ;;  %v4257_v9 = vpack.c.bf16 %v4413_v6, %v4412_v62  ;;  %v3561_v10 = vadd.f32 %v4413_v6, %v3560_v4  ;;  %v3632_v11 = vmul.f32 %v4413_v6, %v4413_v6 }
 0x274   :  { %4369 = vst [vmem:[%s5945_s2 + $0x58] sm:$0xff] %v4257_v9   ;;  %v3695_v12 = vadd.f32 %v3694_v8, %v3632_v11  ;;  %v2481_v13 = vpop.f32.mrb[48].mxu1 }
 0x275   :  { %v3059_v14 = vpop.f32.mrb[48].mxu0  ;;  %v2483_v15 = vpop.f32.mrb[49].mxu1 }
 0x276   :  { %v4414_v16 = vadd.f32 %v3059_v14, %v2481_v13  ;;  %v3061_v17 = vpop.f32.mrb[49].mxu0  ;;  %v2484_v18 = vpop.f32.mrb[50].mxu1 }
 0x277   :  { %v3062_v19 = vpop.f32.mrb[50].mxu0  ;;  %v2486_v20 = vpop.f32.mrb[51].mxu1 }
 0x278   :  { %v3562_v21 = vadd.f32 %v4414_v16, %v3561_v10  ;;  %v3633_v22 = vmul.f32 %v4414_v16, %v4414_v16  ;;  %v4415_v23 = vadd.f32 %v3062_v19, %v2484_v18  ;;  %v3064_v24 = vpop.f32.mrb[51].mxu0  ;;  %v4777_v20 = vmov 0.0  }
 0x279   :  { %3538 = vst [vmem:[%s5946_s3] sm:$0xff] %v4777_v20 }
 0x27a   :  { %v3696_v25 = vadd.f32 %v3695_v12, %v3633_v22  ;;  %v4262_v26 = vpack.c.bf16 %v4415_v23, %v4414_v16  ;;  %v3563_v27 = vadd.f32 %v4415_v23, %v3562_v21  ;;  %v3634_v28 = vmul.f32 %v4415_v23, %v4415_v23 }
 0x27c   :  { %4370 = vst [vmem:[%s5945_s2 + $0x60] sm:$0xff] %v4262_v26   ;;  %v3697_v29 = vadd.f32 %v3696_v25, %v3634_v28  ;;  %v2489_v30 = vpop.f32.mrb[52].mxu1 }
 0x27d   :  { %v3067_v31 = vpop.f32.mrb[52].mxu0  ;;  %v2491_v32 = vpop.f32.mrb[53].mxu1 }
 0x27e   :  { %v4416_v33 = vadd.f32 %v3067_v31, %v2489_v30  ;;  %v3069_v34 = vpop.f32.mrb[53].mxu0  ;;  %v2492_v35 = vpop.f32.mrb[54].mxu1 }
 0x27f   :  { %v3070_v36 = vpop.f32.mrb[54].mxu0  ;;  %v2494_v37 = vpop.f32.mrb[55].mxu1 }
 0x280   :  { %v3564_v38 = vadd.f32 %v4416_v33, %v3563_v27  ;;  %v3635_v39 = vmul.f32 %v4416_v33, %v4416_v33  ;;  %v4417_v40 = vadd.f32 %v3070_v36, %v2492_v35  ;;  %v3072_v41 = vpop.f32.mrb[55].mxu0 }
 0x282   :  { %v3698_v42 = vadd.f32 %v3697_v29, %v3635_v39  ;;  %v4267_v43 = vpack.c.bf16 %v4417_v40, %v4416_v33  ;;  %v3565_v44 = vadd.f32 %v4417_v40, %v3564_v38  ;;  %v3636_v45 = vmul.f32 %v4417_v40, %v4417_v40 }
 0x284   :  { %4371 = vst [vmem:[%s5945_s2 + $0x68] sm:$0xff] %v4267_v43   ;;  %v3699_v46 = vadd.f32 %v3698_v42, %v3636_v45  ;;  %v2497_v47 = vpop.f32.mrb[56].mxu1 }
 0x285   :  { %v3075_v48 = vpop.f32.mrb[56].mxu0  ;;  %v2499_v49 = vpop.f32.mrb[57].mxu1 }
 0x286   :  { %v4418_v50 = vadd.f32 %v3075_v48, %v2497_v47  ;;  %v3077_v51 = vpop.f32.mrb[57].mxu0  ;;  %v2500_v52 = vpop.f32.mrb[58].mxu1 }
 0x287   :  { %v3078_v53 = vpop.f32.mrb[58].mxu0  ;;  %v2502_v54 = vpop.f32.mrb[59].mxu1 }
 0x288   :  { %v3566_v55 = vadd.f32 %v4418_v50, %v3565_v44  ;;  %v3637_v56 = vmul.f32 %v4418_v50, %v4418_v50  ;;  %v4419_v57 = vadd.f32 %v3078_v53, %v2500_v52  ;;  %v3080_v0 = vpop.f32.mrb[59].mxu0 }
 0x28a   :  { %v3700_v58 = vadd.f32 %v3699_v46, %v3637_v56  ;;  %v4272_v59 = vpack.c.bf16 %v4419_v57, %v4418_v50  ;;  %v3567_v60 = vadd.f32 %v4419_v57, %v3566_v55  ;;  %v3638_v61 = vmul.f32 %v4419_v57, %v4419_v57 }
 0x28c   :  { %4372 = vst [vmem:[%s5945_s2 + $0x70] sm:$0xff] %v4272_v59   ;;  %v3701_v62 = vadd.f32 %v3700_v58, %v3638_v61  ;;  %v2505_v63 = vpop.f32.mrb[60].mxu1 }
 0x28d   :  { %v3083_v1 = vpop.f32.mrb[60].mxu0  ;;  %v2507_v2 = vpop.f32.mrb[61].mxu1 }
 0x28e   :  { %v4420_v3 = vadd.f32 %v3083_v1, %v2505_v63  ;;  %v3085_v4 = vpop.f32.mrb[61].mxu0  ;;  %v2508_v5 = vpop.f32.mrb[62].mxu1 }
 0x28f   :  { %v3086_v6 = vpop.f32.mrb[62].mxu0  ;;  %v2510_v7 = vpop.f32.mrb[63].mxu1 }
 0x290   :  { %v3568_v8 = vadd.f32 %v4420_v3, %v3567_v60  ;;  %v3639_v9 = vmul.f32 %v4420_v3, %v4420_v3  ;;  %v4421_v10 = vadd.f32 %v3086_v6, %v2508_v5  ;;  %v3088_v11 = vpop.f32.mrb[63].mxu0 }
 0x292   :  { %v3702_v12 = vadd.f32 %v3701_v62, %v3639_v9  ;;  %v4277_v13 = vpack.c.bf16 %v4421_v10, %v4420_v3  ;;  %v3569_v14 = vadd.f32 %v4421_v10, %v3568_v8  ;;  %v3640_v15 = vmul.f32 %v4421_v10, %v4421_v10 }
 0x294   :  { %4373 = vst [vmem:[%s5945_s2 + $0x78] sm:$0xff] %v4277_v13   ;;  %v3703_v16 = vadd.f32 %v3702_v12, %v3640_v15  ;;  %v2513_v17 = vpop.f32.mrb[64].mxu1 }
 0x295   :  { %v3091_v18 = vpop.f32.mrb[64].mxu0  ;;  %v2515_v19 = vpop.f32.mrb[65].mxu1 }
 0x296   :  { %v4422_v21 = vadd.f32 %v3091_v18, %v2513_v17  ;;  %v3093_v22 = vpop.f32.mrb[65].mxu0  ;;  %v2516_v23 = vpop.f32.mrb[66].mxu1 }
 0x297   :  { %v3094_v24 = vpop.f32.mrb[66].mxu0  ;;  %v2518_v25 = vpop.f32.mrb[67].mxu1 }
 0x298   :  { %v3570_v26 = vadd.f32 %v4422_v21, %v3569_v14  ;;  %v3641_v27 = vmul.f32 %v4422_v21, %v4422_v21  ;;  %v4423_v28 = vadd.f32 %v3094_v24, %v2516_v23  ;;  %v3096_v29 = vpop.f32.mrb[67].mxu0 }
 0x29a   :  { %v3704_v30 = vadd.f32 %v3703_v16, %v3641_v27  ;;  %v4282_v31 = vpack.c.bf16 %v4423_v28, %v4422_v21  ;;  %v3571_v32 = vadd.f32 %v4423_v28, %v3570_v26  ;;  %v3642_v33 = vmul.f32 %v4423_v28, %v4423_v28 }
 0x29c   :  { %4374 = vst [vmem:[%s5945_s2 + $0x80] sm:$0xff] %v4282_v31   ;;  %v3705_v34 = vadd.f32 %v3704_v30, %v3642_v33  ;;  %v2521_v35 = vpop.f32.mrb[68].mxu1 }
 0x29d   :  { %v3099_v36 = vpop.f32.mrb[68].mxu0  ;;  %v2523_v37 = vpop.f32.mrb[69].mxu1 }
 0x29e   :  { %v4424_v38 = vadd.f32 %v3099_v36, %v2521_v35  ;;  %v3101_v39 = vpop.f32.mrb[69].mxu0  ;;  %v2524_v40 = vpop.f32.mrb[70].mxu1 }
 0x29f   :  { %v3102_v41 = vpop.f32.mrb[70].mxu0  ;;  %v2526_v42 = vpop.f32.mrb[71].mxu1 }
 0x2a0   :  { %v3572_v43 = vadd.f32 %v4424_v38, %v3571_v32  ;;  %v3643_v44 = vmul.f32 %v4424_v38, %v4424_v38  ;;  %v4425_v45 = vadd.f32 %v3102_v41, %v2524_v40  ;;  %v3104_v46 = vpop.f32.mrb[71].mxu0 }
 0x2a2   :  { %v3706_v47 = vadd.f32 %v3705_v34, %v3643_v44  ;;  %v4287_v48 = vpack.c.bf16 %v4425_v45, %v4424_v38  ;;  %v3573_v49 = vadd.f32 %v4425_v45, %v3572_v43  ;;  %v3644_v50 = vmul.f32 %v4425_v45, %v4425_v45 }
 0x2a4   :  { %4375 = vst [vmem:[%s5945_s2 + $0x88] sm:$0xff] %v4287_v48   ;;  %v3707_v51 = vadd.f32 %v3706_v47, %v3644_v50  ;;  %v2529_v52 = vpop.f32.mrb[72].mxu1 }
 0x2a5   :  { %v3107_v53 = vpop.f32.mrb[72].mxu0  ;;  %v2531_v54 = vpop.f32.mrb[73].mxu1 }
 0x2a6   :  { %v4426_v55 = vadd.f32 %v3107_v53, %v2529_v52  ;;  %v3109_v56 = vpop.f32.mrb[73].mxu0  ;;  %v2532_v57 = vpop.f32.mrb[74].mxu1 }
 0x2a7   :  { %v3110_v0 = vpop.f32.mrb[74].mxu0  ;;  %v2534_v58 = vpop.f32.mrb[75].mxu1 }
 0x2a8   :  { %v3574_v59 = vadd.f32 %v4426_v55, %v3573_v49  ;;  %v3645_v60 = vmul.f32 %v4426_v55, %v4426_v55  ;;  %v4427_v61 = vadd.f32 %v3110_v0, %v2532_v57  ;;  %v3112_v62 = vpop.f32.mrb[75].mxu0 }
 0x2aa   :  { %v3708_v63 = vadd.f32 %v3707_v51, %v3645_v60  ;;  %v4292_v1 = vpack.c.bf16 %v4427_v61, %v4426_v55  ;;  %v3575_v2 = vadd.f32 %v4427_v61, %v3574_v59  ;;  %v3646_v3 = vmul.f32 %v4427_v61, %v4427_v61 }
 0x2ac   :  { %4376 = vst [vmem:[%s5945_s2 + $0x90] sm:$0xff] %v4292_v1   ;;  %v3709_v4 = vadd.f32 %v3708_v63, %v3646_v3  ;;  %v2537_v5 = vpop.f32.mrb[76].mxu1 }
 0x2ad   :  { %v3115_v6 = vpop.f32.mrb[76].mxu0  ;;  %v2539_v7 = vpop.f32.mrb[77].mxu1 }
 0x2ae   :  { %v4428_v8 = vadd.f32 %v3115_v6, %v2537_v5  ;;  %v3117_v9 = vpop.f32.mrb[77].mxu0  ;;  %v2540_v10 = vpop.f32.mrb[78].mxu1 }
 0x2af   :  { %v3118_v11 = vpop.f32.mrb[78].mxu0  ;;  %v2542_v12 = vpop.f32.mrb[79].mxu1 }
 0x2b0   :  { %v3576_v13 = vadd.f32 %v4428_v8, %v3575_v2  ;;  %v3647_v14 = vmul.f32 %v4428_v8, %v4428_v8  ;;  %v4429_v15 = vadd.f32 %v3118_v11, %v2540_v10  ;;  %v3120_v16 = vpop.f32.mrb[79].mxu0 }
 0x2b2   :  { %v3710_v17 = vadd.f32 %v3709_v4, %v3647_v14  ;;  %v4297_v18 = vpack.c.bf16 %v4429_v15, %v4428_v8  ;;  %v3577_v19 = vadd.f32 %v4429_v15, %v3576_v13  ;;  %v3648_v20 = vmul.f32 %v4429_v15, %v4429_v15 }
 0x2b4   :  { %4377 = vst [vmem:[%s5945_s2 + $0x98] sm:$0xff] %v4297_v18   ;;  %v3711_v21 = vadd.f32 %v3710_v17, %v3648_v20  ;;  %v2545_v22 = vpop.f32.mrb[80].mxu1 }
 0x2b5   :  { %v3123_v23 = vpop.f32.mrb[80].mxu0  ;;  %v2547_v24 = vpop.f32.mrb[81].mxu1 }
 0x2b6   :  { %v4430_v25 = vadd.f32 %v3123_v23, %v2545_v22  ;;  %v3125_v26 = vpop.f32.mrb[81].mxu0  ;;  %v2548_v27 = vpop.f32.mrb[82].mxu1 }
 0x2b7   :  { %v3126_v28 = vpop.f32.mrb[82].mxu0  ;;  %v2550_v29 = vpop.f32.mrb[83].mxu1 }
 0x2b8   :  { %v3578_v30 = vadd.f32 %v4430_v25, %v3577_v19  ;;  %v3649_v31 = vmul.f32 %v4430_v25, %v4430_v25  ;;  %v4431_v32 = vadd.f32 %v3126_v28, %v2548_v27  ;;  %v3128_v33 = vpop.f32.mrb[83].mxu0 }
 0x2ba   :  { %v3712_v34 = vadd.f32 %v3711_v21, %v3649_v31  ;;  %v4302_v35 = vpack.c.bf16 %v4431_v32, %v4430_v25  ;;  %v3579_v36 = vadd.f32 %v4431_v32, %v3578_v30  ;;  %v3650_v37 = vmul.f32 %v4431_v32, %v4431_v32 }
 0x2bc   :  { %4378 = vst [vmem:[%s5945_s2 + $0xa0] sm:$0xff] %v4302_v35   ;;  %v3713_v38 = vadd.f32 %v3712_v34, %v3650_v37  ;;  %v2553_v39 = vpop.f32.mrb[84].mxu1 }
 0x2bd   :  { %v3131_v40 = vpop.f32.mrb[84].mxu0  ;;  %v2555_v41 = vpop.f32.mrb[85].mxu1 }
 0x2be   :  { %v4432_v42 = vadd.f32 %v3131_v40, %v2553_v39  ;;  %v3133_v43 = vpop.f32.mrb[85].mxu0  ;;  %v2556_v44 = vpop.f32.mrb[86].mxu1 }
 0x2bf   :  { %v3134_v45 = vpop.f32.mrb[86].mxu0  ;;  %v2558_v46 = vpop.f32.mrb[87].mxu1 }
 0x2c0   :  { %v3580_v47 = vadd.f32 %v4432_v42, %v3579_v36  ;;  %v3651_v48 = vmul.f32 %v4432_v42, %v4432_v42  ;;  %v4433_v49 = vadd.f32 %v3134_v45, %v2556_v44  ;;  %v3136_v50 = vpop.f32.mrb[87].mxu0 }
 0x2c2   :  { %v3714_v51 = vadd.f32 %v3713_v38, %v3651_v48  ;;  %v4307_v52 = vpack.c.bf16 %v4433_v49, %v4432_v42  ;;  %v3581_v53 = vadd.f32 %v4433_v49, %v3580_v47  ;;  %v3652_v54 = vmul.f32 %v4433_v49, %v4433_v49 }
 0x2c4   :  { %4379 = vst [vmem:[%s5945_s2 + $0xa8] sm:$0xff] %v4307_v52   ;;  %v3715_v55 = vadd.f32 %v3714_v51, %v3652_v54  ;;  %v2561_v56 = vpop.f32.mrb[88].mxu1 }
 0x2c5   :  { %v3139_v57 = vpop.f32.mrb[88].mxu0  ;;  %v2563_v0 = vpop.f32.mrb[89].mxu1 }
 0x2c6   :  { %v4434_v58 = vadd.f32 %v3139_v57, %v2561_v56  ;;  %v3141_v59 = vpop.f32.mrb[89].mxu0  ;;  %v2564_v60 = vpop.f32.mrb[90].mxu1 }
 0x2c7   :  { %v3142_v61 = vpop.f32.mrb[90].mxu0  ;;  %v2566_v62 = vpop.f32.mrb[91].mxu1 }
 0x2c8   :  { %v3582_v63 = vadd.f32 %v4434_v58, %v3581_v53  ;;  %v3653_v1 = vmul.f32 %v4434_v58, %v4434_v58  ;;  %v4435_v2 = vadd.f32 %v3142_v61, %v2564_v60  ;;  %v3144_v3 = vpop.f32.mrb[91].mxu0 }
 0x2ca   :  { %v3716_v4 = vadd.f32 %v3715_v55, %v3653_v1  ;;  %v4312_v5 = vpack.c.bf16 %v4435_v2, %v4434_v58  ;;  %v3583_v6 = vadd.f32 %v4435_v2, %v3582_v63  ;;  %v3654_v7 = vmul.f32 %v4435_v2, %v4435_v2 }
 0x2cc   :  { %4380 = vst [vmem:[%s5945_s2 + $0xb0] sm:$0xff] %v4312_v5   ;;  %v3717_v8 = vadd.f32 %v3716_v4, %v3654_v7  ;;  %v2569_v9 = vpop.f32.mrb[92].mxu1 }
 0x2cd   :  { %v3147_v10 = vpop.f32.mrb[92].mxu0  ;;  %v2571_v11 = vpop.f32.mrb[93].mxu1 }
 0x2ce   :  { %v4436_v12 = vadd.f32 %v3147_v10, %v2569_v9  ;;  %v3149_v13 = vpop.f32.mrb[93].mxu0  ;;  %v2572_v14 = vpop.f32.mrb[94].mxu1 }
 0x2cf   :  { %v3150_v15 = vpop.f32.mrb[94].mxu0  ;;  %v2574_v16 = vpop.f32.mrb[95].mxu1 }
 0x2d0   :  { %v3584_v17 = vadd.f32 %v4436_v12, %v3583_v6  ;;  %v3655_v18 = vmul.f32 %v4436_v12, %v4436_v12  ;;  %v4437_v19 = vadd.f32 %v3150_v15, %v2572_v14  ;;  %v3152_v20 = vpop.f32.mrb[95].mxu0 }
 0x2d2   :  { %v3718_v21 = vadd.f32 %v3717_v8, %v3655_v18  ;;  %v4317_v22 = vpack.c.bf16 %v4437_v19, %v4436_v12  ;;  %v3585_v23 = vadd.f32 %v4437_v19, %v3584_v17  ;;  %v3656_v24 = vmul.f32 %v4437_v19, %v4437_v19 }
 0x2d4   :  { %4381 = vst [vmem:[%s5945_s2 + $0xb8] sm:$0xff] %v4317_v22   ;;  %v3719_v25 = vadd.f32 %v3718_v21, %v3656_v24  ;;  %v2577_v26 = vpop.f32.mrb[96].mxu1 }
 0x2d5   :  { %v3155_v27 = vpop.f32.mrb[96].mxu0  ;;  %v2579_v28 = vpop.f32.mrb[97].mxu1 }
 0x2d6   :  { %v4438_v29 = vadd.f32 %v3155_v27, %v2577_v26  ;;  %v3157_v30 = vpop.f32.mrb[97].mxu0  ;;  %v2580_v31 = vpop.f32.mrb[98].mxu1 }
 0x2d7   :  { %v3158_v32 = vpop.f32.mrb[98].mxu0  ;;  %v2582_v33 = vpop.f32.mrb[99].mxu1 }
 0x2d8   :  { %v3586_v34 = vadd.f32 %v4438_v29, %v3585_v23  ;;  %v3657_v35 = vmul.f32 %v4438_v29, %v4438_v29  ;;  %v4439_v36 = vadd.f32 %v3158_v32, %v2580_v31  ;;  %v3160_v37 = vpop.f32.mrb[99].mxu0 }
 0x2da   :  { %v3720_v38 = vadd.f32 %v3719_v25, %v3657_v35  ;;  %v4322_v39 = vpack.c.bf16 %v4439_v36, %v4438_v29  ;;  %v3587_v40 = vadd.f32 %v4439_v36, %v3586_v34  ;;  %v3658_v41 = vmul.f32 %v4439_v36, %v4439_v36 }
 0x2dc   :  { %4382 = vst [vmem:[%s5945_s2 + $0xc0] sm:$0xff] %v4322_v39   ;;  %v3721_v42 = vadd.f32 %v3720_v38, %v3658_v41  ;;  %v2585_v43 = vpop.f32.mrb[100].mxu1 }
 0x2dd   :  { %v3163_v44 = vpop.f32.mrb[100].mxu0  ;;  %v2587_v45 = vpop.f32.mrb[101].mxu1 }
 0x2de   :  { %v4440_v46 = vadd.f32 %v3163_v44, %v2585_v43  ;;  %v3165_v47 = vpop.f32.mrb[101].mxu0  ;;  %v2588_v48 = vpop.f32.mrb[102].mxu1 }
 0x2df   :  { %v3166_v49 = vpop.f32.mrb[102].mxu0  ;;  %v2590_v50 = vpop.f32.mrb[103].mxu1 }
 0x2e0   :  { %v3588_v51 = vadd.f32 %v4440_v46, %v3587_v40  ;;  %v3659_v52 = vmul.f32 %v4440_v46, %v4440_v46  ;;  %v4441_v53 = vadd.f32 %v3166_v49, %v2588_v48  ;;  %v3168_v54 = vpop.f32.mrb[103].mxu0 }
 0x2e2   :  { %v3722_v55 = vadd.f32 %v3721_v42, %v3659_v52  ;;  %v4327_v56 = vpack.c.bf16 %v4441_v53, %v4440_v46  ;;  %v3589_v57 = vadd.f32 %v4441_v53, %v3588_v51  ;;  %v3660_v0 = vmul.f32 %v4441_v53, %v4441_v53 }
 0x2e4   :  { %4383 = vst [vmem:[%s5945_s2 + $0xc8] sm:$0xff] %v4327_v56   ;;  %v3723_v58 = vadd.f32 %v3722_v55, %v3660_v0  ;;  %v2593_v59 = vpop.f32.mrb[104].mxu1 }
 0x2e5   :  { %v3171_v60 = vpop.f32.mrb[104].mxu0  ;;  %v2595_v61 = vpop.f32.mrb[105].mxu1 }
 0x2e6   :  { %v4442_v62 = vadd.f32 %v3171_v60, %v2593_v59  ;;  %v3173_v63 = vpop.f32.mrb[105].mxu0  ;;  %v2596_v1 = vpop.f32.mrb[106].mxu1 }
 0x2e7   :  { %v3174_v2 = vpop.f32.mrb[106].mxu0  ;;  %v2598_v3 = vpop.f32.mrb[107].mxu1 }
 0x2e8   :  { %v3590_v4 = vadd.f32 %v4442_v62, %v3589_v57  ;;  %v3661_v5 = vmul.f32 %v4442_v62, %v4442_v62  ;;  %v4443_v6 = vadd.f32 %v3174_v2, %v2596_v1  ;;  %v3176_v7 = vpop.f32.mrb[107].mxu0 }
 0x2ea   :  { %v3724_v8 = vadd.f32 %v3723_v58, %v3661_v5  ;;  %v4332_v9 = vpack.c.bf16 %v4443_v6, %v4442_v62  ;;  %v3591_v10 = vadd.f32 %v4443_v6, %v3590_v4  ;;  %v3662_v11 = vmul.f32 %v4443_v6, %v4443_v6 }
 0x2ec   :  { %4384 = vst [vmem:[%s5945_s2 + $0xd0] sm:$0xff] %v4332_v9   ;;  %v3725_v12 = vadd.f32 %v3724_v8, %v3662_v11  ;;  %v2601_v13 = vpop.f32.mrb[108].mxu1 }
 0x2ed   :  { %v3179_v14 = vpop.f32.mrb[108].mxu0  ;;  %v2603_v15 = vpop.f32.mrb[109].mxu1 }
 0x2ee   :  { %v4444_v16 = vadd.f32 %v3179_v14, %v2601_v13  ;;  %v3181_v17 = vpop.f32.mrb[109].mxu0  ;;  %v2604_v18 = vpop.f32.mrb[110].mxu1 }
 0x2ef   :  { %v3182_v19 = vpop.f32.mrb[110].mxu0  ;;  %v2606_v20 = vpop.f32.mrb[111].mxu1 }
 0x2f0   :  { %v3592_v21 = vadd.f32 %v4444_v16, %v3591_v10  ;;  %v3663_v22 = vmul.f32 %v4444_v16, %v4444_v16  ;;  %v4445_v23 = vadd.f32 %v3182_v19, %v2604_v18  ;;  %v3184_v24 = vpop.f32.mrb[111].mxu0 }
 0x2f2   :  { %v3726_v25 = vadd.f32 %v3725_v12, %v3663_v22  ;;  %v4337_v26 = vpack.c.bf16 %v4445_v23, %v4444_v16  ;;  %v3593_v27 = vadd.f32 %v4445_v23, %v3592_v21  ;;  %v3664_v28 = vmul.f32 %v4445_v23, %v4445_v23 }
 0x2f4   :  { %4385 = vst [vmem:[%s5945_s2 + $0xd8] sm:$0xff] %v4337_v26   ;;  %v3727_v29 = vadd.f32 %v3726_v25, %v3664_v28  ;;  %v2609_v30 = vpop.f32.mrb[112].mxu1 }
 0x2f5   :  { %v3187_v31 = vpop.f32.mrb[112].mxu0  ;;  %v2611_v32 = vpop.f32.mrb[113].mxu1 }
 0x2f6   :  { %v4446_v33 = vadd.f32 %v3187_v31, %v2609_v30  ;;  %v3189_v34 = vpop.f32.mrb[113].mxu0  ;;  %v2612_v35 = vpop.f32.mrb[114].mxu1 }
 0x2f7   :  { %v3190_v36 = vpop.f32.mrb[114].mxu0  ;;  %v2614_v37 = vpop.f32.mrb[115].mxu1 }
 0x2f8   :  { %v3594_v38 = vadd.f32 %v4446_v33, %v3593_v27  ;;  %v3665_v39 = vmul.f32 %v4446_v33, %v4446_v33  ;;  %v4447_v40 = vadd.f32 %v3190_v36, %v2612_v35  ;;  %v3192_v41 = vpop.f32.mrb[115].mxu0 }
 0x2fa   :  { %v3728_v42 = vadd.f32 %v3727_v29, %v3665_v39  ;;  %v4342_v43 = vpack.c.bf16 %v4447_v40, %v4446_v33  ;;  %v3595_v44 = vadd.f32 %v4447_v40, %v3594_v38  ;;  %v3666_v45 = vmul.f32 %v4447_v40, %v4447_v40 }
 0x2fc   :  { %4386 = vst [vmem:[%s5945_s2 + $0xe0] sm:$0xff] %v4342_v43   ;;  %v3729_v46 = vadd.f32 %v3728_v42, %v3666_v45  ;;  %v2617_v47 = vpop.f32.mrb[116].mxu1 }
 0x2fd   :  { %v3195_v48 = vpop.f32.mrb[116].mxu0  ;;  %v2619_v49 = vpop.f32.mrb[117].mxu1 }
 0x2fe   :  { %v4448_v50 = vadd.f32 %v3195_v48, %v2617_v47  ;;  %v3197_v51 = vpop.f32.mrb[117].mxu0  ;;  %v2620_v52 = vpop.f32.mrb[118].mxu1 }
 0x2ff   :  { %v3198_v53 = vpop.f32.mrb[118].mxu0  ;;  %v2622_v54 = vpop.f32.mrb[119].mxu1 }
 0x300   :  { %v3596_v55 = vadd.f32 %v4448_v50, %v3595_v44  ;;  %v3667_v56 = vmul.f32 %v4448_v50, %v4448_v50  ;;  %v4449_v57 = vadd.f32 %v3198_v53, %v2620_v52  ;;  %v3200_v0 = vpop.f32.mrb[119].mxu0 }
 0x302   :  { %v3730_v58 = vadd.f32 %v3729_v46, %v3667_v56  ;;  %v4347_v59 = vpack.c.bf16 %v4449_v57, %v4448_v50  ;;  %v3597_v60 = vadd.f32 %v4449_v57, %v3596_v55  ;;  %v3668_v61 = vmul.f32 %v4449_v57, %v4449_v57 }
 0x304   :  { %4387 = vst [vmem:[%s5945_s2 + $0xe8] sm:$0xff] %v4347_v59   ;;  %v3731_v62 = vadd.f32 %v3730_v58, %v3668_v61  ;;  %v2625_v63 = vpop.f32.mrb[120].mxu1 }
 0x305   :  { %v3203_v1 = vpop.f32.mrb[120].mxu0  ;;  %v2627_v2 = vpop.f32.mrb[121].mxu1 }
 0x306   :  { %v4450_v3 = vadd.f32 %v3203_v1, %v2625_v63  ;;  %v3205_v4 = vpop.f32.mrb[121].mxu0  ;;  %v2628_v5 = vpop.f32.mrb[122].mxu1 }
 0x307   :  { %v3206_v6 = vpop.f32.mrb[122].mxu0  ;;  %v2630_v7 = vpop.f32.mrb[123].mxu1 }
 0x308   :  { %v3598_v8 = vadd.f32 %v4450_v3, %v3597_v60  ;;  %v3669_v9 = vmul.f32 %v4450_v3, %v4450_v3  ;;  %v4451_v10 = vadd.f32 %v3206_v6, %v2628_v5  ;;  %v3208_v11 = vpop.f32.mrb[123].mxu0 }
 0x30a   :  { %v3732_v12 = vadd.f32 %v3731_v62, %v3669_v9  ;;  %v4352_v13 = vpack.c.bf16 %v4451_v10, %v4450_v3  ;;  %v3599_v14 = vadd.f32 %v4451_v10, %v3598_v8  ;;  %v3670_v15 = vmul.f32 %v4451_v10, %v4451_v10 }
 0x30c   :  { %4388 = vst [vmem:[%s5945_s2 + $0xf0] sm:$0xff] %v4352_v13   ;;  %v3733_v16 = vadd.f32 %v3732_v12, %v3670_v15  ;;  %v2633_v17 = vpop.f32.mrb[124].mxu1 }
 0x30d   :  { %v3211_v18 = vpop.f32.mrb[124].mxu0  ;;  %v2635_v19 = vpop.f32.mrb[125].mxu1 }
 0x30e   :  { %v4452_v20 = vadd.f32 %v3211_v18, %v2633_v17  ;;  %v3213_v21 = vpop.f32.mrb[125].mxu0  ;;  %v2636_v22 = vpop.f32.mrb[126].mxu1 }
 0x30f   :  { %v3214_v23 = vpop.f32.mrb[126].mxu0  ;;  %v2638_v24 = vpop.f32.mrb[127].mxu1 }
 0x310   :  { %v3600_v25 = vadd.f32 %v4452_v20, %v3599_v14  ;;  %v3671_v26 = vmul.f32 %v4452_v20, %v4452_v20  ;;  %v4453_v27 = vadd.f32 %v3214_v23, %v2636_v22  ;;  %v3216_v28 = vpop.f32.mrb[127].mxu0 }
 0x312   :  { %v3734_v29 = vadd.f32 %v3733_v16, %v3671_v26  ;;  %v4357_v30 = vpack.c.bf16 %v4453_v27, %v4452_v20  ;;  %v3601_v31 = vadd.f32 %v4453_v27, %v3600_v25  ;;  %v3672_v32 = vmul.f32 %v4453_v27, %v4453_v27 }
 0x314   :  { %4389 = vst [vmem:[%s5945_s2 + $0xf8] sm:$0xff] %v4357_v30   ;;  %v3602_v33 = vrot.slane %v3601_v31, 4  ;;  %v3735_v34 = vadd.f32 %v3734_v29, %v3672_v32 }
 0x316   :  { %v3603_v35 = vadd.f32 %v3602_v33, %v3601_v31  ;;  %v3736_v36 = vrot.slane %v3735_v34, 4 }
 0x318   :  { %v3604_v37 = vrot.slane %v3603_v35, 2  ;;  %v3737_v38 = vadd.f32 %v3736_v36, %v3735_v34 }
 0x31a   :  { %v3605_v39 = vadd.f32 %v3604_v37, %v3603_v35  ;;  %v3738_v40 = vrot.slane %v3737_v38, 2 }
 0x31c   :  { %v3606_v41 = vrot.slane %v3605_v39, 1  ;;  %v3739_v42 = vadd.f32 %v3738_v40, %v3737_v38 }
 0x31e   :  { %v3607_v43 = vadd.f32 %v3606_v41, %v3605_v39  ;;  %v3740_v44 = vrot.slane %v3739_v42, 1 }
 0x320   :  { %3608 = vst [vmem:[%s5946_s3] sm:$0x1] %v3607_v43  ;;  %v3741_v45 = vadd.f32 %v3740_v44, %v3739_v42 }
 0x322   :  { %3742 = vst [vmem:[%s5946_s3 + $0x1] sm:$0x1] %v3741_v45 }

// kernel: discriminator_forward.12
= control target key start
LH: loop header
LB: loop body
LE: loop exit
PB: predicated region body
PF: predicated region fallthrough
CT: control target
= control target key end

     0   :  { %v64_v0 = vlaneseq  ;;  %s524_s0 = inlined_call_operand.vmem [shape: bf16[128,256], index: 0, kind: input, shape index: {}]   ;;  %s525_s1 = inlined_call_operand.vmem [shape: f32[1,256], index: 1, kind: input, shape index: {}]   ;;  %s526_s2 = inlined_call_operand.vmem [shape: f32[1,256], index: 2, kind: input, shape index: {}]   ;;  %s527_s3 = inlined_call_operand.vmem [shape: bf16[128,256], index: 3, kind: output, shape index: {}]  }
   0x1   :  { %v14_v1 = vld [vmem:[%s524_s0] sm:$0xff]  ;;  %v15_v6 = vld [vmem:[%s524_s0 + $0x8] sm:$0xff]  ;;  %v16_v7 = vld [vmem:[%s524_s0 + $0x10] sm:$0xff] }
   0x2   :  { %v62_v2 = vld [vmem:[%s525_s1] sm:$0x3]  ;;  %v30_v3 = vunpack.c.l.bf16 %v14_v1  ;;  %v31_v4 = vunpack.c.h.bf16 %v14_v1  ;;  %v65_v5 = vshrl.u32 %v64_v0, 7  ;;  %v17_v8 = vld [vmem:[%s524_s0 + $0x18] sm:$0xff]  ;;  %v32_v10 = vunpack.c.l.bf16 %v15_v6  ;;  %v19_v15 = vld [vmem:[%s524_s0 + $0x28] sm:$0xff] }
   0x3   :  { %v106_v9 = vld [vmem:[%s526_s2] sm:$0x3]  ;;  %v33_v11 = vunpack.c.h.bf16 %v15_v6  ;;  %v34_v12 = vunpack.c.l.bf16 %v16_v7  ;;  %v35_v13 = vunpack.c.h.bf16 %v16_v7  ;;  %v36_v18 = vunpack.c.l.bf16 %v17_v8  ;;  %v20_v20 = vld [vmem:[%s524_s0 + $0x30] sm:$0xff]  ;;  %v21_v21 = vld [vmem:[%s524_s0 + $0x38] sm:$0xff] }
   0x4   :  { %v18_v14 = vld [vmem:[%s524_s0 + $0x20] sm:$0xff]  ;;  %v66_v16 = vsub.s32 0, %v65_v5  ;;  %v70_v17 = vsub.s32 1, %v65_v5  ;;  %v37_v19 = vunpack.c.h.bf16 %v17_v8  ;;  %v40_v24 = vunpack.c.l.bf16 %v19_v15 }
   0x5   :  { %v38_v22 = vunpack.c.l.bf16 %v18_v14  ;;  %v39_v23 = vunpack.c.h.bf16 %v18_v14  ;;  %v41_v25 = vunpack.c.h.bf16 %v19_v15  ;;  %v42_v30 = vunpack.c.l.bf16 %v20_v20 }
   0x6   :  { %v380_v26 = vrot.slane %v62_v2, %v66_v16  ;;  %v382_v27 = vrot.slane %v62_v2, %v70_v17  ;;  %v384_v28 = vrot.slane %v106_v9, %v66_v16  ;;  %v386_v29 = vrot.slane %v106_v9, %v70_v17 }
   0x7   :  { %v43_v31 = vunpack.c.h.bf16 %v20_v20  ;;  %v44_v32 = vunpack.c.l.bf16 %v21_v21  ;;  %v45_v33 = vunpack.c.h.bf16 %v21_v21 }
   0x8   :  { %v74_v34 = vmul.f32 %v380_v26, %v30_v3  ;;  %v75_v35 = vmul.f32 %v382_v27, %v31_v4  ;;  %v76_v36 = vmul.f32 %v380_v26, %v32_v10  ;;  %v77_v37 = vmul.f32 %v382_v27, %v33_v11  ;;  %v22_v10 = vld [vmem:[%s524_s0 + $0x40] sm:$0xff] }
   0x9   :  { %v78_v38 = vmul.f32 %v380_v26, %v34_v12  ;;  %v79_v39 = vmul.f32 %v382_v27, %v35_v13  ;;  %v80_v40 = vmul.f32 %v380_v26, %v36_v18  ;;  %v81_v41 = vmul.f32 %v382_v27, %v37_v19  ;;  %v23_v19 = vld [vmem:[%s524_s0 + $0x48] sm:$0xff] }
   0xa   :  { %v118_v42 = vadd.f32 %v384_v28, %v74_v34  ;;  %v119_v43 = vadd.f32 %v386_v29, %v75_v35  ;;  %v120_v44 = vadd.f32 %v384_v28, %v76_v36  ;;  %v121_v45 = vadd.f32 %v386_v29, %v77_v37 }
   0xb   :  { %v122_v46 = vadd.f32 %v384_v28, %v78_v38  ;;  %v123_v47 = vadd.f32 %v386_v29, %v79_v39  ;;  %v124_v48 = vadd.f32 %v384_v28, %v80_v40  ;;  %v125_v49 = vadd.f32 %v386_v29, %v81_v41 }
   0xc   :  { %v150_v50 = vmax.f32 %v118_v42, 0.0  ;;  %v151_v51 = vmax.f32 %v119_v43, 0.0  ;;  %v152_v52 = vmax.f32 %v120_v44, 0.0  ;;  %v153_v53 = vmax.f32 %v121_v45, 0.0 }
   0xd   :  { %v154_v54 = vmax.f32 %v122_v46, 0.0  ;;  %v155_v55 = vmax.f32 %v123_v47, 0.0  ;;  %v156_v56 = vmax.f32 %v124_v48, 0.0  ;;  %v157_v57 = vmax.f32 %v125_v49, 0.0 }
   0xe   :  { %v314_v58 = vpack.c.bf16 %v151_v51, %v150_v50  ;;  %v315_v59 = vpack.c.bf16 %v153_v53, %v152_v52  ;;  %v82_v60 = vmul.f32 %v380_v26, %v38_v22  ;;  %v83_v61 = vmul.f32 %v382_v27, %v39_v23  ;;  %v26_v50 = vld [vmem:[%s524_s0 + $0x60] sm:$0xff] }
   0xf   :  { %v316_v62 = vpack.c.bf16 %v155_v55, %v154_v54  ;;  %v317_v63 = vpack.c.bf16 %v157_v57, %v156_v56  ;;  %v84_v0 = vmul.f32 %v380_v26, %v40_v24  ;;  %v85_v1 = vmul.f32 %v382_v27, %v41_v25  ;;  %v24_v24 = vld [vmem:[%s524_s0 + $0x50] sm:$0xff] }
  0x10   :  { %278 = vst [vmem:[%s527_s3] sm:$0xff] %v314_v58  ;;  %279 = vst [vmem:[%s527_s3 + $0x8] sm:$0xff] %v315_v59  ;;  %v126_v2 = vadd.f32 %v384_v28, %v82_v60  ;;  %v127_v3 = vadd.f32 %v386_v29, %v83_v61  ;;  %v86_v4 = vmul.f32 %v380_v26, %v42_v30  ;;  %v46_v23 = vunpack.c.l.bf16 %v22_v10 }
  0x11   :  { %v87_v5 = vmul.f32 %v382_v27, %v43_v31  ;;  %280 = vst [vmem:[%s527_s3 + $0x10] sm:$0xff] %v316_v62  ;;  %281 = vst [vmem:[%s527_s3 + $0x18] sm:$0xff] %v317_v63  ;;  %v128_v6 = vadd.f32 %v384_v28, %v84_v0  ;;  %v129_v7 = vadd.f32 %v386_v29, %v85_v1  ;;  %v48_v36 = vunpack.c.l.bf16 %v23_v19  ;;  %v27_v63 = vld [vmem:[%s524_s0 + $0x68] sm:$0xff] }
  0x12   :  { %v88_v8 = vmul.f32 %v380_v26, %v44_v32  ;;  %v89_v9 = vmul.f32 %v382_v27, %v45_v33  ;;  %v158_v11 = vmax.f32 %v126_v2, 0.0  ;;  %v159_v12 = vmax.f32 %v127_v3, 0.0  ;;  %v25_v33 = vld [vmem:[%s524_s0 + $0x58] sm:$0xff] }
  0x13   :  { %v130_v13 = vadd.f32 %v384_v28, %v86_v4  ;;  %v131_v14 = vadd.f32 %v386_v29, %v87_v5  ;;  %v160_v15 = vmax.f32 %v128_v6, 0.0  ;;  %v161_v16 = vmax.f32 %v129_v7, 0.0  ;;  %v28_v4 = vld [vmem:[%s524_s0 + $0x70] sm:$0xff] }
  0x14   :  { %v132_v17 = vadd.f32 %v384_v28, %v88_v8  ;;  %v133_v18 = vadd.f32 %v386_v29, %v89_v9  ;;  %v318_v20 = vpack.c.bf16 %v159_v12, %v158_v11  ;;  %v47_v32 = vunpack.c.h.bf16 %v22_v10  ;;  %v29_v9 = vld [vmem:[%s524_s0 + $0x78] sm:$0xff] }
  0x15   :  { %v162_v21 = vmax.f32 %v130_v13, 0.0  ;;  %v163_v22 = vmax.f32 %v131_v14, 0.0  ;;  %v319_v25 = vpack.c.bf16 %v161_v16, %v160_v15  ;;  %v90_v35 = vmul.f32 %v380_v26, %v46_v23 }
  0x16   :  { %v164_v30 = vmax.f32 %v132_v17, 0.0  ;;  %v165_v31 = vmax.f32 %v133_v18, 0.0  ;;  %282 = vst [vmem:[%s527_s3 + $0x20] sm:$0xff] %v318_v20  ;;  %v49_v37 = vunpack.c.h.bf16 %v23_v19  ;;  %v91_v39 = vmul.f32 %v382_v27, %v47_v32 }
  0x17   :  { %v320_v34 = vpack.c.bf16 %v163_v22, %v162_v21  ;;  %283 = vst [vmem:[%s527_s3 + $0x28] sm:$0xff] %v319_v25  ;;  %v50_v40 = vunpack.c.l.bf16 %v24_v24  ;;  %v51_v41 = vunpack.c.h.bf16 %v24_v24  ;;  %v134_v42 = vadd.f32 %v384_v28, %v90_v35 }
  0x18   :  { %v321_v38 = vpack.c.bf16 %v165_v31, %v164_v30  ;;  %v92_v43 = vmul.f32 %v380_v26, %v48_v36  ;;  %v93_v44 = vmul.f32 %v382_v27, %v49_v37  ;;  %v52_v45 = vunpack.c.l.bf16 %v25_v33 }
  0x19   :  { %284 = vst [vmem:[%s527_s3 + $0x30] sm:$0xff] %v320_v34  ;;  %v135_v46 = vadd.f32 %v386_v29, %v91_v39  ;;  %v94_v47 = vmul.f32 %v380_v26, %v50_v40  ;;  %v95_v48 = vmul.f32 %v382_v27, %v51_v41  ;;  %v53_v49 = vunpack.c.h.bf16 %v25_v33 }
  0x1a   :  { %285 = vst [vmem:[%s527_s3 + $0x38] sm:$0xff] %v321_v38  ;;  %v166_v51 = vmax.f32 %v134_v42, 0.0  ;;  %v136_v52 = vadd.f32 %v384_v28, %v92_v43  ;;  %v137_v53 = vadd.f32 %v386_v29, %v93_v44  ;;  %v96_v54 = vmul.f32 %v380_v26, %v52_v45 }
  0x1b   :  { %v167_v55 = vmax.f32 %v135_v46, 0.0  ;;  %v138_v56 = vadd.f32 %v384_v28, %v94_v47  ;;  %v139_v57 = vadd.f32 %v386_v29, %v95_v48  ;;  %v97_v58 = vmul.f32 %v382_v27, %v53_v49 }
  0x1c   :  { %v168_v59 = vmax.f32 %v136_v52, 0.0  ;;  %v169_v60 = vmax.f32 %v137_v53, 0.0  ;;  %v140_v61 = vadd.f32 %v384_v28, %v96_v54  ;;  %v54_v62 = vunpack.c.l.bf16 %v26_v50 }
  0x1d   :  { %v322_v0 = vpack.c.bf16 %v167_v55, %v166_v51  ;;  %v170_v1 = vmax.f32 %v138_v56, 0.0  ;;  %v171_v2 = vmax.f32 %v139_v57, 0.0  ;;  %v141_v3 = vadd.f32 %v386_v29, %v97_v58 }
  0x1e   :  { %v323_v5 = vpack.c.bf16 %v169_v60, %v168_v59  ;;  %v172_v6 = vmax.f32 %v140_v61, 0.0  ;;  %v55_v7 = vunpack.c.h.bf16 %v26_v50  ;;  %v98_v8 = vmul.f32 %v380_v26, %v54_v62 }
  0x1f   :  { %286 = vst [vmem:[%s527_s3 + $0x40] sm:$0xff] %v322_v0  ;;  %v324_v10 = vpack.c.bf16 %v171_v2, %v170_v1  ;;  %v173_v11 = vmax.f32 %v141_v3, 0.0  ;;  %v56_v12 = vunpack.c.l.bf16 %v27_v63  ;;  %v57_v13 = vunpack.c.h.bf16 %v27_v63 }
  0x20   :  { %287 = vst [vmem:[%s527_s3 + $0x48] sm:$0xff] %v323_v5  ;;  %v99_v14 = vmul.f32 %v382_v27, %v55_v7  ;;  %v142_v15 = vadd.f32 %v384_v28, %v98_v8  ;;  %v58_v16 = vunpack.c.l.bf16 %v28_v4  ;;  %v59_v17 = vunpack.c.h.bf16 %v28_v4 }
  0x21   :  { %288 = vst [vmem:[%s527_s3 + $0x50] sm:$0xff] %v324_v10  ;;  %v325_v18 = vpack.c.bf16 %v173_v11, %v172_v6  ;;  %v100_v19 = vmul.f32 %v380_v26, %v56_v12  ;;  %v101_v20 = vmul.f32 %v382_v27, %v57_v13  ;;  %v60_v21 = vunpack.c.l.bf16 %v29_v9 }
  0x22   :  { %v143_v22 = vadd.f32 %v386_v29, %v99_v14  ;;  %v174_v23 = vmax.f32 %v142_v15, 0.0  ;;  %v102_v24 = vmul.f32 %v380_v26, %v58_v16  ;;  %v103_v25 = vmul.f32 %v382_v27, %v59_v17 }
  0x23   :  { %289 = vst [vmem:[%s527_s3 + $0x58] sm:$0xff] %v325_v18  ;;  %v144_v30 = vadd.f32 %v384_v28, %v100_v19  ;;  %v145_v31 = vadd.f32 %v386_v29, %v101_v20  ;;  %v61_v32 = vunpack.c.h.bf16 %v29_v9  ;;  %v104_v33 = vmul.f32 %v380_v26, %v60_v21 }
  0x24   :  { %v175_v34 = vmax.f32 %v143_v22, 0.0  ;;  %v146_v35 = vadd.f32 %v384_v28, %v102_v24  ;;  %v147_v36 = vadd.f32 %v386_v29, %v103_v25 }
  0x25   :  { %v176_v37 = vmax.f32 %v144_v30, 0.0  ;;  %v177_v38 = vmax.f32 %v145_v31, 0.0  ;;  %v105_v39 = vmul.f32 %v382_v27, %v61_v32  ;;  %v148_v40 = vadd.f32 %v384_v28, %v104_v33 }
  0x26   :  { %v326_v41 = vpack.c.bf16 %v175_v34, %v174_v23  ;;  %v178_v42 = vmax.f32 %v146_v35, 0.0  ;;  %v179_v43 = vmax.f32 %v147_v36, 0.0 }
  0x27   :  { %v327_v44 = vpack.c.bf16 %v177_v38, %v176_v37  ;;  %v149_v45 = vadd.f32 %v386_v29, %v105_v39  ;;  %v180_v46 = vmax.f32 %v148_v40, 0.0 }
  0x28   :  { %290 = vst [vmem:[%s527_s3 + $0x60] sm:$0xff] %v326_v41  ;;  %v328_v26 = vpack.c.bf16 %v179_v43, %v178_v42 }
  0x29   :  { %291 = vst [vmem:[%s527_s3 + $0x68] sm:$0xff] %v327_v44  ;;  %v181_v47 = vmax.f32 %v149_v45, 0.0 }
  0x2a   :  { %292 = vst [vmem:[%s527_s3 + $0x70] sm:$0xff] %v328_v26 }
  0x2b   :  { %v329_v27 = vpack.c.bf16 %v181_v47, %v180_v46 }
  0x2d   :  { %293 = vst [vmem:[%s527_s3 + $0x78] sm:$0xff] %v329_v27 }

// kernel: discriminator_forward.11
= control target key start
LH: loop header
LB: loop body
LE: loop exit
PB: predicated region body
PF: predicated region fallthrough
CT: control target
= control target key end

     0   :  { %s5765_s1 = inlined_call_operand.vmem [shape: bf16[2048,256], index: 1, kind: input, shape index: {}]   ;;  %s5766_s0 = inlined_call_operand.vmem [shape: bf16[128,2048], index: 0, kind: input, shape index: {}]   ;;  %s5767_s3 = inlined_call_operand.vmem [shape: f32[8,256], index: 3, kind: output, shape index: {1}]   ;;  %s5768_s2 = inlined_call_operand.vmem [shape: bf16[128,256], index: 2, kind: output, shape index: {0}]  }
   0x1   :  { %v4147_v0 = vld [vmem:[%s5765_s1 + $0x4] ss:$8 sps:$4 sm:$0xff]   ;;  %v4151_v2 = vld [vmem:[%s5765_s1] ss:$8 sps:$4 sm:$0xff]   ;;  %v4153_v4 = vld [vmem:[%s5765_s1 + $0x14] ss:$8 sps:$4 sm:$0xff]  }
   0x2   :  { %v4149_v1 = vld [vmem:[%s5765_s1 + $0x404] ss:$8 sps:$4 sm:$0xff]   ;;  %2317 = vmatprep.subr.bf16.mxu1 %v4147_v0  ;;  %v4152_v3 = vld [vmem:[%s5765_s1 + $0x400] ss:$8 sps:$4 sm:$0xff]   ;;  %v4155_v5 = vld [vmem:[%s5765_s1 + $0x414] ss:$8 sps:$4 sm:$0xff]  }
   0x3   :  { %2769 = vmatprep.subr.bf16.mxu0 %v4149_v1  ;;  %2318 = vmatpush1.bf16.msra.mxu1 %v4151_v2  ;;  %v4157_v6 = vld [vmem:[%s5765_s1 + $0x10] ss:$8 sps:$4 sm:$0xff]   ;;  %v4159_v8 = vld [vmem:[%s5765_s1 + $0x24] ss:$8 sps:$4 sm:$0xff]   ;;  %v4163_v10 = vld [vmem:[%s5765_s1 + $0x20] ss:$8 sps:$4 sm:$0xff]  }
   0x4   :  { %2770 = vmatpush1.bf16.msra.mxu0 %v4152_v3  ;;  %2319 = vmatprep.subr.bf16.mxu1 %v4153_v4  ;;  %v4158_v7 = vld [vmem:[%s5765_s1 + $0x410] ss:$8 sps:$4 sm:$0xff]   ;;  %v4161_v9 = vld [vmem:[%s5765_s1 + $0x424] ss:$8 sps:$4 sm:$0xff]   ;;  %v4164_v11 = vld [vmem:[%s5765_s1 + $0x420] ss:$8 sps:$4 sm:$0xff]  }
   0x5   :  { %2771 = vmatprep.subr.bf16.mxu0 %v4155_v5  ;;  %v4165_v12 = vld [vmem:[%s5765_s1 + $0x34] ss:$8 sps:$4 sm:$0xff]   ;;  %v4169_v14 = vld [vmem:[%s5765_s1 + $0x30] ss:$8 sps:$4 sm:$0xff]   ;;  %v4171_v16 = vld [vmem:[%s5765_s1 + $0x44] ss:$8 sps:$4 sm:$0xff]  }
   0x6   :  { %v4167_v13 = vld [vmem:[%s5765_s1 + $0x434] ss:$8 sps:$4 sm:$0xff]   ;;  %v4170_v15 = vld [vmem:[%s5765_s1 + $0x430] ss:$8 sps:$4 sm:$0xff]   ;;  %v4173_v17 = vld [vmem:[%s5765_s1 + $0x444] ss:$8 sps:$4 sm:$0xff]  }
   0x7   :  { %2320 = vmatpush1.bf16.msra.mxu1 %v4157_v6  ;;  %v4175_v18 = vld [vmem:[%s5765_s1 + $0x40] ss:$8 sps:$4 sm:$0xff]   ;;  %v4177_v20 = vld [vmem:[%s5765_s1 + $0x54] ss:$8 sps:$4 sm:$0xff]   ;;  %v4181_v22 = vld [vmem:[%s5765_s1 + $0x50] ss:$8 sps:$4 sm:$0xff]  }
   0x8   :  { %2772 = vmatpush1.bf16.msra.mxu0 %v4158_v7  ;;  %2321 = vmatprep.subr.bf16.mxu1 %v4159_v8  ;;  %v4176_v19 = vld [vmem:[%s5765_s1 + $0x440] ss:$8 sps:$4 sm:$0xff]   ;;  %v4179_v21 = vld [vmem:[%s5765_s1 + $0x454] ss:$8 sps:$4 sm:$0xff]   ;;  %v4182_v23 = vld [vmem:[%s5765_s1 + $0x450] ss:$8 sps:$4 sm:$0xff]  }
   0x9   :  { %2773 = vmatprep.subr.bf16.mxu0 %v4161_v9  ;;  %v4183_v24 = vld [vmem:[%s5765_s1 + $0x64] ss:$8 sps:$4 sm:$0xff]   ;;  %v4187_v26 = vld [vmem:[%s5765_s1 + $0x60] ss:$8 sps:$4 sm:$0xff]   ;;  %v4189_v28 = vld [vmem:[%s5765_s1 + $0x74] ss:$8 sps:$4 sm:$0xff]  }
   0xa   :  { %v4185_v25 = vld [vmem:[%s5765_s1 + $0x464] ss:$8 sps:$4 sm:$0xff]   ;;  %v4188_v27 = vld [vmem:[%s5765_s1 + $0x460] ss:$8 sps:$4 sm:$0xff]   ;;  %v4191_v29 = vld [vmem:[%s5765_s1 + $0x474] ss:$8 sps:$4 sm:$0xff]  }
   0xb   :  { %2322 = vmatpush1.bf16.msra.mxu1 %v4163_v10  ;;  %v4193_v30 = vld [vmem:[%s5765_s1 + $0x70] ss:$8 sps:$4 sm:$0xff]   ;;  %v4195_v32 = vld [vmem:[%s5765_s1 + $0x84] ss:$8 sps:$4 sm:$0xff]   ;;  %v4199_v34 = vld [vmem:[%s5765_s1 + $0x80] ss:$8 sps:$4 sm:$0xff]  }
   0xc   :  { %2774 = vmatpush1.bf16.msra.mxu0 %v4164_v11  ;;  %2323 = vmatprep.subr.bf16.mxu1 %v4165_v12  ;;  %v4194_v31 = vld [vmem:[%s5765_s1 + $0x470] ss:$8 sps:$4 sm:$0xff]   ;;  %v4197_v33 = vld [vmem:[%s5765_s1 + $0x484] ss:$8 sps:$4 sm:$0xff]   ;;  %v4200_v35 = vld [vmem:[%s5765_s1 + $0x480] ss:$8 sps:$4 sm:$0xff]  }
   0xd   :  { %2775 = vmatprep.subr.bf16.mxu0 %v4167_v13  ;;  %v4201_v36 = vld [vmem:[%s5765_s1 + $0x94] ss:$8 sps:$4 sm:$0xff]   ;;  %v4205_v38 = vld [vmem:[%s5765_s1 + $0x90] ss:$8 sps:$4 sm:$0xff]   ;;  %v4207_v40 = vld [vmem:[%s5765_s1 + $0xa4] ss:$8 sps:$4 sm:$0xff]  }
   0xe   :  { %v4203_v37 = vld [vmem:[%s5765_s1 + $0x494] ss:$8 sps:$4 sm:$0xff]   ;;  %v4206_v39 = vld [vmem:[%s5765_s1 + $0x490] ss:$8 sps:$4 sm:$0xff]   ;;  %v4209_v41 = vld [vmem:[%s5765_s1 + $0x4a4] ss:$8 sps:$4 sm:$0xff]  }
   0xf   :  { %2324 = vmatpush1.bf16.msra.mxu1 %v4169_v14  ;;  %v4211_v42 = vld [vmem:[%s5765_s1 + $0xa0] ss:$8 sps:$4 sm:$0xff]   ;;  %v4213_v44 = vld [vmem:[%s5765_s1 + $0xb4] ss:$8 sps:$4 sm:$0xff]   ;;  %v4217_v46 = vld [vmem:[%s5765_s1 + $0xb0] ss:$8 sps:$4 sm:$0xff]  }
  0x10   :  { %2776 = vmatpush1.bf16.msra.mxu0 %v4170_v15  ;;  %2325 = vmatprep.subr.bf16.mxu1 %v4171_v16  ;;  %v4212_v43 = vld [vmem:[%s5765_s1 + $0x4a0] ss:$8 sps:$4 sm:$0xff]   ;;  %v4215_v45 = vld [vmem:[%s5765_s1 + $0x4b4] ss:$8 sps:$4 sm:$0xff]   ;;  %v4218_v47 = vld [vmem:[%s5765_s1 + $0x4b0] ss:$8 sps:$4 sm:$0xff]  }
  0x11   :  { %2777 = vmatprep.subr.bf16.mxu0 %v4173_v17  ;;  %v13_v48 = vld [vmem:[%s5766_s0] sm:$0xff]  ;;  %v4225_v58 = vld [vmem:[%s5765_s1 + $0xd4] ss:$8 sps:$4 sm:$0xff]   ;;  %v4229_v60 = vld [vmem:[%s5765_s1 + $0xd0] ss:$8 sps:$4 sm:$0xff]  }
  0x12   :  { %v21_v49 = vld [vmem:[%s5766_s0 + $0x40] sm:$0xff]  ;;  %v4227_v59 = vld [vmem:[%s5765_s1 + $0x4d4] ss:$8 sps:$4 sm:$0xff]   ;;  %v4230_v61 = vld [vmem:[%s5765_s1 + $0x4d0] ss:$8 sps:$4 sm:$0xff]  }
  0x13   :  { %2326 = vmatpush1.bf16.msra.mxu1 %v4175_v18  ;;  %v17_v50 = vld [vmem:[%s5766_s0 + $0x20] sm:$0xff]  ;;  %v3505_v53 = vcombine.high %v13_v48, %v21_v49  ;;  %v4237_v2 = vld [vmem:[%s5765_s1 + $0xf4] ss:$8 sps:$4 sm:$0xff]   ;;  %v4241_v4 = vld [vmem:[%s5765_s1 + $0xf0] ss:$8 sps:$4 sm:$0xff]   ;;  %v3504_v11 = vcombine.low %v13_v48, %v21_v49 }
  0x14   :  { %2778 = vmatpush1.bf16.msra.mxu0 %v4176_v19  ;;  %2327 = vmatprep.subr.bf16.mxu1 %v4177_v20  ;;  %v25_v51 = vld [vmem:[%s5766_s0 + $0x60] sm:$0xff]  ;;  %v4239_v3 = vld [vmem:[%s5765_s1 + $0x4f4] ss:$8 sps:$4 sm:$0xff]   ;;  %v4242_v5 = vld [vmem:[%s5765_s1 + $0x4f0] ss:$8 sps:$4 sm:$0xff]  }
  0x15   :  { %2779 = vmatprep.subr.bf16.mxu0 %v4179_v21  ;;  %v4219_v52 = vld [vmem:[%s5765_s1 + $0xc4] ss:$8 sps:$4 sm:$0xff]   ;;  %v3513_v55 = vcombine.high %v17_v50, %v25_v51  ;;  %2349 = vmatprep.mubr.bf16.mxu1 %v3505_v53  ;;  %v4223_v56 = vld [vmem:[%s5765_s1 + $0xc0] ss:$8 sps:$4 sm:$0xff]   ;;  %v3512_v12 = vcombine.low %v17_v50, %v25_v51  ;;  %v4251_v16 = vld [vmem:[%s5765_s1 + $0x114] ss:$8 sps:$4 sm:$0xff]  }
  0x16   :  { %v4221_v54 = vld [vmem:[%s5765_s1 + $0x4c4] ss:$8 sps:$4 sm:$0xff]   ;;  %v4224_v57 = vld [vmem:[%s5765_s1 + $0x4c0] ss:$8 sps:$4 sm:$0xff]   ;;  %v4254_v17 = vld [vmem:[%s5765_s1 + $0x514] ss:$8 sps:$4 sm:$0xff]  }
  0x17   :  { %2328 = vmatpush1.bf16.msra.mxu1 %v4181_v22  ;;  %2801 = vmatprep.mubr.bf16.mxu0 %v3513_v55  ;;  %v4231_v62 = vld [vmem:[%s5765_s1 + $0xe4] ss:$8 sps:$4 sm:$0xff]   ;;  %v4235_v0 = vld [vmem:[%s5765_s1 + $0xe0] ss:$8 sps:$4 sm:$0xff]   ;;  %v4249_v20 = vld [vmem:[%s5765_s1 + $0x110] ss:$8 sps:$4 sm:$0xff]  }
  0x18   :  { %2780 = vmatpush1.bf16.msra.mxu0 %v4182_v23  ;;  %2329 = vmatprep.subr.bf16.mxu1 %v4183_v24  ;;  %v4233_v63 = vld [vmem:[%s5765_s1 + $0x4e4] ss:$8 sps:$4 sm:$0xff]   ;;  %v4236_v1 = vld [vmem:[%s5765_s1 + $0x4e0] ss:$8 sps:$4 sm:$0xff]   ;;  %v4252_v21 = vld [vmem:[%s5765_s1 + $0x510] ss:$8 sps:$4 sm:$0xff]  }
  0x19   :  { %2781 = vmatprep.subr.bf16.mxu0 %v4185_v25  ;;  %v4245_v6 = vld [vmem:[%s5765_s1 + $0x104] ss:$8 sps:$4 sm:$0xff]   ;;  %v4243_v8 = vld [vmem:[%s5765_s1 + $0x100] ss:$8 sps:$4 sm:$0xff]   ;;  %v4275_v48 = vld [vmem:[%s5765_s1 + $0x154] ss:$8 sps:$4 sm:$0xff]  }
  0x1a   :  { %v4248_v7 = vld [vmem:[%s5765_s1 + $0x504] ss:$8 sps:$4 sm:$0xff]   ;;  %v4246_v9 = vld [vmem:[%s5765_s1 + $0x500] ss:$8 sps:$4 sm:$0xff]   ;;  %v4278_v49 = vld [vmem:[%s5765_s1 + $0x554] ss:$8 sps:$4 sm:$0xff]  }
  0x1b   :  { %2330 = vmatpush1.bf16.msra.mxu1 %v4187_v26  ;;  %v29_v10 = vld [vmem:[%s5766_s0 + $0x80] sm:$0xff]  ;;  %v4276_v53 = vld [vmem:[%s5765_s1 + $0x550] ss:$8 sps:$4 sm:$0xff]  }
  0x1c   :  { %2782 = vmatpush1.bf16.msra.mxu0 %v4188_v27  ;;  %2331 = vmatprep.subr.bf16.mxu1 %v4189_v28  ;;  %v37_v13 = vld [vmem:[%s5766_s0 + $0xc0] sm:$0xff] }
  0x1d   :  { %2783 = vmatprep.subr.bf16.mxu0 %v4191_v29  ;;  %v33_v14 = vld [vmem:[%s5766_s0 + $0xa0] sm:$0xff]  ;;  %v3521_v18 = vcombine.high %v29_v10, %v37_v13  ;;  %v3520_v28 = vcombine.low %v29_v10, %v37_v13 }
  0x1e   :  { %v41_v15 = vld [vmem:[%s5766_s0 + $0xe0] sm:$0xff] }
  0x1f   :  { %2332 = vmatpush1.bf16.msra.mxu1 %v4193_v30  ;;  %v3529_v19 = vcombine.high %v33_v14, %v41_v15  ;;  %v4257_v22 = vld [vmem:[%s5765_s1 + $0x124] ss:$8 sps:$4 sm:$0xff]   ;;  %v4255_v24 = vld [vmem:[%s5765_s1 + $0x120] ss:$8 sps:$4 sm:$0xff]   ;;  %v3528_v29 = vcombine.low %v33_v14, %v41_v15 }
  0x20   :  { %2784 = vmatpush1.bf16.msra.mxu0 %v4194_v31  ;;  %2333 = vmatprep.subr.bf16.mxu1 %v4195_v32  ;;  %v4260_v23 = vld [vmem:[%s5765_s1 + $0x524] ss:$8 sps:$4 sm:$0xff]   ;;  %v4258_v25 = vld [vmem:[%s5765_s1 + $0x520] ss:$8 sps:$4 sm:$0xff]   ;;  %v4263_v32 = vld [vmem:[%s5765_s1 + $0x134] ss:$8 sps:$4 sm:$0xff]  }
  0x21   :  { %2785 = vmatprep.subr.bf16.mxu0 %v4197_v33  ;;  %v45_v26 = vld [vmem:[%s5766_s0 + $0x100] sm:$0xff]  ;;  %v4266_v33 = vld [vmem:[%s5765_s1 + $0x534] ss:$8 sps:$4 sm:$0xff]  }
  0x22   :  { %v53_v27 = vld [vmem:[%s5766_s0 + $0x140] sm:$0xff] }
  0x23   :  { %2334 = vmatpush1.bf16.msra.mxu1 %v4199_v34  ;;  %v49_v30 = vld [vmem:[%s5766_s0 + $0x120] sm:$0xff]  ;;  %v3537_v34 = vcombine.high %v45_v26, %v53_v27 }
  0x24   :  { %2786 = vmatpush1.bf16.msra.mxu0 %v4200_v35  ;;  %2335 = vmatprep.subr.bf16.mxu1 %v4201_v36  ;;  %v57_v31 = vld [vmem:[%s5766_s0 + $0x160] sm:$0xff]  ;;  %v4261_v36 = vld [vmem:[%s5765_s1 + $0x130] ss:$8 sps:$4 sm:$0xff]  }
  0x25   :  { %2787 = vmatprep.subr.bf16.mxu0 %v4203_v37  ;;  %v3545_v35 = vcombine.high %v49_v30, %v57_v31  ;;  %v4264_v37 = vld [vmem:[%s5765_s1 + $0x530] ss:$8 sps:$4 sm:$0xff]   ;;  %v4284_v55 = vld [vmem:[%s5765_s1 + $0x564] ss:$8 sps:$4 sm:$0xff]   ;;  %v4291_v14 = vld [vmem:[%s5765_s1 + $0x180] ss:$8 sps:$4 sm:$0xff]  }
  0x26   :  { %v105_v13 = vld [vmem:[%s5766_s0 + $0x2e0] sm:$0xff] }
  0x27   :  { %2336 = vmatpush1.bf16.msra.mxu1 %v4205_v38  ;;  %v4269_v38 = vld [vmem:[%s5765_s1 + $0x144] ss:$8 sps:$4 sm:$0xff]   ;;  %v4294_v15 = vld [vmem:[%s5765_s1 + $0x580] ss:$8 sps:$4 sm:$0xff]  }
  0x28   :  { %2788 = vmatpush1.bf16.msra.mxu0 %v4206_v39  ;;  %2337 = vmatprep.subr.bf16.mxu1 %v4207_v40  ;;  %v4272_v39 = vld [vmem:[%s5765_s1 + $0x544] ss:$8 sps:$4 sm:$0xff]   ;;  %v4267_v40 = vld [vmem:[%s5765_s1 + $0x140] ss:$8 sps:$4 sm:$0xff]  }
  0x29   :  { %2789 = vmatprep.subr.bf16.mxu0 %v4209_v41  ;;  %v4270_v41 = vld [vmem:[%s5765_s1 + $0x540] ss:$8 sps:$4 sm:$0xff]  }
  0x2b   :  { %2338 = vmatpush1.bf16.msra.mxu1 %v4211_v42  ;;  %v61_v42 = vld [vmem:[%s5766_s0 + $0x180] sm:$0xff] }
  0x2c   :  { %2790 = vmatpush1.bf16.msra.mxu0 %v4212_v43  ;;  %2339 = vmatprep.subr.bf16.mxu1 %v4213_v44  ;;  %v69_v43 = vld [vmem:[%s5766_s0 + $0x1c0] sm:$0xff]  ;;  %v3536_v44 = vcombine.low %v45_v26, %v53_v27 }
  0x2d   :  { %2791 = vmatprep.subr.bf16.mxu0 %v4215_v45  ;;  %v3544_v45 = vcombine.low %v49_v30, %v57_v31  ;;  %v3553_v50 = vcombine.high %v61_v42, %v69_v43  ;;  %v109_v26 = vld [vmem:[%s5766_s0 + $0x300] sm:$0xff] }
  0x2e   :  { %v113_v30 = vld [vmem:[%s5766_s0 + $0x320] sm:$0xff] }
  0x2f   :  { %2340 = vmatpush1.bf16.msra.mxu1 %v4217_v46  ;;  %v65_v46 = vld [vmem:[%s5766_s0 + $0x1a0] sm:$0xff] }
  0x30   :  { %2792 = vmatpush1.bf16.msra.mxu0 %v4218_v47  ;;  %2341 = vmatprep.subr.bf16.mxu1 %v4219_v52  ;;  %v73_v47 = vld [vmem:[%s5766_s0 + $0x1e0] sm:$0xff]  ;;  %v4273_v52 = vld [vmem:[%s5765_s1 + $0x150] ss:$8 sps:$4 sm:$0xff]  }
  0x31   :  { %2793 = vmatprep.subr.bf16.mxu0 %v4221_v54  ;;  %v3561_v51 = vcombine.high %v65_v46, %v73_v47  ;;  %v4281_v54 = vld [vmem:[%s5765_s1 + $0x164] ss:$8 sps:$4 sm:$0xff]  }
  0x32   :  { %v121_v31 = vld [vmem:[%s5766_s0 + $0x360] sm:$0xff] }
  0x33   :  { %2342 = vmatpush1.bf16.msra.mxu1 %v4223_v56  ;;  %v4279_v56 = vld [vmem:[%s5765_s1 + $0x160] ss:$8 sps:$4 sm:$0xff]  }
  0x34   :  { %2794 = vmatpush1.bf16.msra.mxu0 %v4224_v57  ;;  %2343 = vmatprep.subr.bf16.mxu1 %v4225_v58  ;;  %v77_v57 = vld [vmem:[%s5766_s0 + $0x200] sm:$0xff] }
  0x35   :  { %2795 = vmatprep.subr.bf16.mxu0 %v4227_v59  ;;  %v85_v58 = vld [vmem:[%s5766_s0 + $0x240] sm:$0xff]  ;;  %v3552_v59 = vcombine.low %v61_v42, %v69_v43 }
  0x36   :  { %v3568_v10 = vcombine.low %v77_v57, %v85_v58  ;;  %v125_v42 = vld [vmem:[%s5766_s0 + $0x380] sm:$0xff] }
  0x37   :  { %2344 = vmatpush1.bf16.msra.mxu1 %v4229_v60  ;;  %v3560_v60 = vcombine.low %v65_v46, %v73_v47  ;;  %v133_v43 = vld [vmem:[%s5766_s0 + $0x3c0] sm:$0xff] }
  0x38   :  { %2796 = vmatpush1.bf16.msra.mxu0 %v4230_v61  ;;  %2345 = vmatprep.subr.bf16.mxu1 %v4231_v62  ;;  %v81_v61 = vld [vmem:[%s5766_s0 + $0x220] sm:$0xff] }
  0x39   :  { %2797 = vmatprep.subr.bf16.mxu0 %v4233_v63  ;;  %v89_v62 = vld [vmem:[%s5766_s0 + $0x260] sm:$0xff] }
  0x3a   :  { %v4282_v63 = vld [vmem:[%s5765_s1 + $0x560] ss:$8 sps:$4 sm:$0xff]  }
  0x3b   :  { %2346 = vmatpush1.bf16.msra.mxu1 %v4235_v0  ;;  %v4287_v0 = vld [vmem:[%s5765_s1 + $0x174] ss:$8 sps:$4 sm:$0xff]   ;;  %v129_v46 = vld [vmem:[%s5766_s0 + $0x3a0] sm:$0xff] }
  0x3c   :  { %2798 = vmatpush1.bf16.msra.mxu0 %v4236_v1  ;;  %2347 = vmatprep.subr.bf16.mxu1 %v4237_v2  ;;  %v4290_v1 = vld [vmem:[%s5765_s1 + $0x574] ss:$8 sps:$4 sm:$0xff]   ;;  %v3569_v2 = vcombine.high %v77_v57, %v85_v58  ;;  %v137_v47 = vld [vmem:[%s5766_s0 + $0x3e0] sm:$0xff]  ;;  %v14_v58 = vld [vmem:[%s5766_s0 + $0x8] sm:$0xff] }
  0x3d   :  { %2799 = vmatprep.subr.bf16.mxu0 %v4239_v3  ;;  %v3577_v3 = vcombine.high %v81_v61, %v89_v62  ;;  %v4330_v57 = vld [vmem:[%s5765_s1 + $0x5e0] ss:$8 sps:$4 sm:$0xff]  }
  0x3f   :  { %2348 = vmatpush1.bf16.msra.mxu1 %v4241_v4  ;;  %v4285_v4 = vld [vmem:[%s5765_s1 + $0x170] ss:$8 sps:$4 sm:$0xff]  }
  0x40   :  { %2800 = vmatpush1.bf16.msra.mxu0 %v4242_v5  ;;  %2430 = vmatprep.subr.bf16.mxu1 %v4245_v6  ;;  %v4288_v5 = vld [vmem:[%s5765_s1 + $0x570] ss:$8 sps:$4 sm:$0xff]   ;;  %v4293_v6 = vld [vmem:[%s5765_s1 + $0x184] ss:$8 sps:$4 sm:$0xff]  }
  0x41   :  { %2882 = vmatprep.subr.bf16.mxu0 %v4248_v7  ;;  %v4296_v7 = vld [vmem:[%s5765_s1 + $0x584] ss:$8 sps:$4 sm:$0xff]  }
  0x42   :  { %2350 = vmatmul.mubr.bf16.vlgmr.msra.gmra.mrb[0].mxu1 %v3504_v11  ;;  %v3576_v11 = vcombine.low %v81_v61, %v89_v62  ;;  %v3624_v61 = vcombine.low %v129_v46, %v137_v47  ;;  %v18_v62 = vld [vmem:[%s5766_s0 + $0x28] sm:$0xff] }
  0x43   :  { %2802 = vmatmul.mubr.bf16.vlgmr.msra.gmra.mrb[0].mxu0 %v3512_v12  ;;  %2431 = vmatpush1.bf16.msra.mxu1 %v4243_v8  ;;  %v93_v8 = vld [vmem:[%s5766_s0 + $0x280] sm:$0xff] }
  0x44   :  { %2883 = vmatpush1.bf16.msra.mxu0 %v4246_v9  ;;  %2432 = vmatprep.subr.bf16.mxu1 %v4251_v16  ;;  %v101_v9 = vld [vmem:[%s5766_s0 + $0x2c0] sm:$0xff]  ;;  %v4299_v16 = vld [vmem:[%s5765_s1 + $0x194] ss:$8 sps:$4 sm:$0xff]  }
  0x45   :  { %2884 = vmatprep.subr.bf16.mxu0 %v4254_v17  ;;  %2359 = vmatprep.mubr.bf16.mxu1 %v3521_v18  ;;  %v97_v12 = vld [vmem:[%s5766_s0 + $0x2a0] sm:$0xff]  ;;  %v4302_v17 = vld [vmem:[%s5765_s1 + $0x594] ss:$8 sps:$4 sm:$0xff]   ;;  %v3585_v18 = vcombine.high %v93_v8, %v101_v9  ;;  %v3584_v27 = vcombine.low %v93_v8, %v101_v9  ;;  %v30_v9 = vld [vmem:[%s5766_s0 + $0x88] sm:$0xff] }
  0x46   :  { %2811 = vmatprep.mubr.bf16.mxu0 %v3529_v19  ;;  %v3593_v19 = vcombine.high %v97_v12, %v105_v13  ;;  %v4339_v8 = vld [vmem:[%s5765_s1 + $0x200] ss:$8 sps:$4 sm:$0xff]  }
  0x47   :  { %2433 = vmatpush1.bf16.msra.mxu1 %v4249_v20  ;;  %v4297_v20 = vld [vmem:[%s5765_s1 + $0x190] ss:$8 sps:$4 sm:$0xff]  }
  0x48   :  { %2885 = vmatpush1.bf16.msra.mxu0 %v4252_v21  ;;  %2434 = vmatprep.subr.bf16.mxu1 %v4257_v22  ;;  %v4300_v21 = vld [vmem:[%s5765_s1 + $0x590] ss:$8 sps:$4 sm:$0xff]   ;;  %v4305_v22 = vld [vmem:[%s5765_s1 + $0x1a4] ss:$8 sps:$4 sm:$0xff]  }
  0x49   :  { %2886 = vmatprep.subr.bf16.mxu0 %v4260_v23  ;;  %v4308_v23 = vld [vmem:[%s5765_s1 + $0x5a4] ss:$8 sps:$4 sm:$0xff]  }
  0x4a   :  { %2360 = vmatmul.mubr.bf16.gmra.mrb[4].mxu1 %v3520_v28  ;;  %v3592_v28 = vcombine.low %v97_v12, %v105_v13  ;;  %v34_v13 = vld [vmem:[%s5766_s0 + $0xa8] sm:$0xff] }
  0x4b   :  { %2812 = vmatmul.mubr.bf16.gmra.mrb[4].mxu0 %v3528_v29  ;;  %2435 = vmatpush1.bf16.msra.mxu1 %v4255_v24  ;;  %v4303_v24 = vld [vmem:[%s5765_s1 + $0x1a0] ss:$8 sps:$4 sm:$0xff]  }
  0x4c   :  { %2887 = vmatpush1.bf16.msra.mxu0 %v4258_v25  ;;  %2436 = vmatprep.subr.bf16.mxu1 %v4263_v32  ;;  %v4306_v25 = vld [vmem:[%s5765_s1 + $0x5a0] ss:$8 sps:$4 sm:$0xff]   ;;  %v4311_v32 = vld [vmem:[%s5765_s1 + $0x1b4] ss:$8 sps:$4 sm:$0xff]  }
  0x4d   :  { %2888 = vmatprep.subr.bf16.mxu0 %v4266_v33  ;;  %2369 = vmatprep.mubr.bf16.mxu1 %v3537_v34  ;;  %v117_v29 = vld [vmem:[%s5766_s0 + $0x340] sm:$0xff]  ;;  %v4314_v33 = vld [vmem:[%s5765_s1 + $0x5b4] ss:$8 sps:$4 sm:$0xff]  }
  0x4e   :  { %2821 = vmatprep.mubr.bf16.mxu0 %v3545_v35  ;;  %v3601_v34 = vcombine.high %v109_v26, %v117_v29  ;;  %v3609_v35 = vcombine.high %v113_v30, %v121_v31 }
  0x4f   :  { %2437 = vmatpush1.bf16.msra.mxu1 %v4261_v36  ;;  %v4309_v36 = vld [vmem:[%s5765_s1 + $0x1b0] ss:$8 sps:$4 sm:$0xff]  }
  0x50   :  { %2889 = vmatpush1.bf16.msra.mxu0 %v4264_v37  ;;  %2438 = vmatprep.subr.bf16.mxu1 %v4269_v38  ;;  %v4312_v37 = vld [vmem:[%s5765_s1 + $0x5b0] ss:$8 sps:$4 sm:$0xff]   ;;  %v4317_v38 = vld [vmem:[%s5765_s1 + $0x1c4] ss:$8 sps:$4 sm:$0xff]  }
  0x51   :  { %2890 = vmatprep.subr.bf16.mxu0 %v4272_v39  ;;  %v4320_v39 = vld [vmem:[%s5765_s1 + $0x5c4] ss:$8 sps:$4 sm:$0xff]  }
  0x52   :  { %2370 = vmatmul.mubr.bf16.gmra.mrb[8].mxu1 %v3536_v44  ;;  %v3600_v44 = vcombine.low %v109_v26, %v117_v29  ;;  %v58_v29 = vld [vmem:[%s5766_s0 + $0x168] sm:$0xff] }
  0x53   :  { %2822 = vmatmul.mubr.bf16.gmra.mrb[8].mxu0 %v3544_v45  ;;  %2439 = vmatpush1.bf16.msra.mxu1 %v4267_v40  ;;  %v4315_v40 = vld [vmem:[%s5765_s1 + $0x1c0] ss:$8 sps:$4 sm:$0xff]   ;;  %v3608_v45 = vcombine.low %v113_v30, %v121_v31 }
  0x54   :  { %2891 = vmatpush1.bf16.msra.mxu0 %v4270_v41  ;;  %2440 = vmatprep.subr.bf16.mxu1 %v4275_v48  ;;  %v4318_v41 = vld [vmem:[%s5765_s1 + $0x5c0] ss:$8 sps:$4 sm:$0xff]   ;;  %v4323_v48 = vld [vmem:[%s5765_s1 + $0x1d4] ss:$8 sps:$4 sm:$0xff]  }
  0x55   :  { %2892 = vmatprep.subr.bf16.mxu0 %v4278_v49  ;;  %2379 = vmatprep.mubr.bf16.mxu1 %v3553_v50  ;;  %v4326_v49 = vld [vmem:[%s5765_s1 + $0x5d4] ss:$8 sps:$4 sm:$0xff]   ;;  %v3617_v50 = vcombine.high %v125_v42, %v133_v43  ;;  %v4351_v30 = vld [vmem:[%s5765_s1 + $0x220] ss:$8 sps:$4 sm:$0xff]  }
  0x56   :  { %2831 = vmatprep.mubr.bf16.mxu0 %v3561_v51  ;;  %v3625_v51 = vcombine.high %v129_v46, %v137_v47  ;;  %v4354_v31 = vld [vmem:[%s5765_s1 + $0x620] ss:$8 sps:$4 sm:$0xff]  }
  0x57   :  { %2441 = vmatpush1.bf16.msra.mxu1 %v4273_v52  ;;  %v4321_v52 = vld [vmem:[%s5765_s1 + $0x1d0] ss:$8 sps:$4 sm:$0xff]   ;;  %v66_v46 = vld [vmem:[%s5766_s0 + $0x1a8] sm:$0xff] }
  0x58   :  { %2893 = vmatpush1.bf16.msra.mxu0 %v4276_v53  ;;  %2442 = vmatprep.subr.bf16.mxu1 %v4281_v54  ;;  %v4324_v53 = vld [vmem:[%s5765_s1 + $0x5d0] ss:$8 sps:$4 sm:$0xff]   ;;  %v4329_v54 = vld [vmem:[%s5765_s1 + $0x1e4] ss:$8 sps:$4 sm:$0xff]  }
  0x59   :  { %2894 = vmatprep.subr.bf16.mxu0 %v4284_v55  ;;  %v4332_v55 = vld [vmem:[%s5765_s1 + $0x5e4] ss:$8 sps:$4 sm:$0xff]  }
  0x5a   :  { %2380 = vmatmul.mubr.bf16.gmra.mrb[12].mxu1 %v3552_v59  ;;  %v22_v59 = vld [vmem:[%s5766_s0 + $0x48] sm:$0xff] }
  0x5b   :  { %2832 = vmatmul.mubr.bf16.gmra.mrb[12].mxu0 %v3560_v60  ;;  %2443 = vmatpush1.bf16.msra.mxu1 %v4279_v56  ;;  %v4327_v56 = vld [vmem:[%s5765_s1 + $0x1e0] ss:$8 sps:$4 sm:$0xff]   ;;  %v3616_v60 = vcombine.low %v125_v42, %v133_v43 }
  0x5c   :  { %2895 = vmatpush1.bf16.msra.mxu0 %v4282_v63  ;;  %2444 = vmatprep.subr.bf16.mxu1 %v4287_v0  ;;  %v26_v63 = vld [vmem:[%s5766_s0 + $0x68] sm:$0xff]  ;;  %v4335_v0 = vld [vmem:[%s5765_s1 + $0x1f4] ss:$8 sps:$4 sm:$0xff]  }
  0x5d   :  { %2896 = vmatprep.subr.bf16.mxu0 %v4290_v1  ;;  %2389 = vmatprep.mubr.bf16.mxu1 %v3569_v2  ;;  %v4338_v1 = vld [vmem:[%s5765_s1 + $0x5f4] ss:$8 sps:$4 sm:$0xff]   ;;  %v3507_v2 = vcombine.high %v14_v58, %v22_v59  ;;  %v3514_v12 = vcombine.low %v18_v62, %v26_v63  ;;  %v62_v42 = vld [vmem:[%s5766_s0 + $0x188] sm:$0xff] }
  0x5e   :  { %2841 = vmatprep.mubr.bf16.mxu0 %v3577_v3  ;;  %v3515_v3 = vcombine.high %v18_v62, %v26_v63  ;;  %v74_v47 = vld [vmem:[%s5766_s0 + $0x1e8] sm:$0xff] }
  0x5f   :  { %2445 = vmatpush1.bf16.msra.mxu1 %v4285_v4  ;;  %v4333_v4 = vld [vmem:[%s5765_s1 + $0x1f0] ss:$8 sps:$4 sm:$0xff]   ;;  %v82_v62 = vld [vmem:[%s5766_s0 + $0x228] sm:$0xff] }
  0x60   :  { %2897 = vmatpush1.bf16.msra.mxu0 %v4288_v5  ;;  %2446 = vmatprep.subr.bf16.mxu1 %v4293_v6  ;;  %v4336_v5 = vld [vmem:[%s5765_s1 + $0x5f0] ss:$8 sps:$4 sm:$0xff]   ;;  %v4341_v6 = vld [vmem:[%s5765_s1 + $0x204] ss:$8 sps:$4 sm:$0xff]  }
  0x61   :  { %2898 = vmatprep.subr.bf16.mxu0 %v4296_v7  ;;  %v4344_v7 = vld [vmem:[%s5765_s1 + $0x604] ss:$8 sps:$4 sm:$0xff]  }
  0x62   :  { %2390 = vmatmul.mubr.bf16.gmra.mrb[16].mxu1 %v3568_v10  ;;  %v38_v10 = vld [vmem:[%s5766_s0 + $0xc8] sm:$0xff] }
  0x63   :  { %2842 = vmatmul.mubr.bf16.gmra.mrb[16].mxu0 %v3576_v11  ;;  %2447 = vmatpush1.bf16.msra.mxu1 %v4291_v14  ;;  %v3506_v11 = vcombine.low %v14_v58, %v22_v59  ;;  %v42_v14 = vld [vmem:[%s5766_s0 + $0xe8] sm:$0xff]  ;;  %v3522_v26 = vcombine.low %v30_v9, %v38_v10 }
  0x64   :  { %2899 = vmatpush1.bf16.msra.mxu0 %v4294_v15  ;;  %2448 = vmatprep.subr.bf16.mxu1 %v4299_v16  ;;  %v4342_v15 = vld [vmem:[%s5765_s1 + $0x600] ss:$8 sps:$4 sm:$0xff]   ;;  %v4347_v16 = vld [vmem:[%s5765_s1 + $0x214] ss:$8 sps:$4 sm:$0xff]  }
  0x65   :  { %2900 = vmatprep.subr.bf16.mxu0 %v4302_v17  ;;  %2399 = vmatprep.mubr.bf16.mxu1 %v3585_v18  ;;  %v4350_v17 = vld [vmem:[%s5765_s1 + $0x614] ss:$8 sps:$4 sm:$0xff]   ;;  %v3523_v18 = vcombine.high %v30_v9, %v38_v10  ;;  %v78_v58 = vld [vmem:[%s5766_s0 + $0x208] sm:$0xff] }
  0x66   :  { %2851 = vmatprep.mubr.bf16.mxu0 %v3593_v19  ;;  %v3531_v19 = vcombine.high %v34_v13, %v42_v14  ;;  %v86_v59 = vld [vmem:[%s5766_s0 + $0x248] sm:$0xff] }
  0x67   :  { %2449 = vmatpush1.bf16.msra.mxu1 %v4297_v20  ;;  %v4345_v20 = vld [vmem:[%s5765_s1 + $0x210] ss:$8 sps:$4 sm:$0xff]   ;;  %v90_v63 = vld [vmem:[%s5766_s0 + $0x268] sm:$0xff] }
  0x68   :  { %2901 = vmatpush1.bf16.msra.mxu0 %v4300_v21  ;;  %2450 = vmatprep.subr.bf16.mxu1 %v4305_v22  ;;  %v4348_v21 = vld [vmem:[%s5765_s1 + $0x610] ss:$8 sps:$4 sm:$0xff]   ;;  %v4353_v22 = vld [vmem:[%s5765_s1 + $0x224] ss:$8 sps:$4 sm:$0xff]   ;;  %v4390_v9 = vld [vmem:[%s5765_s1 + $0x680] ss:$8 sps:$4 sm:$0xff]  }
  0x69   :  { %2902 = vmatprep.subr.bf16.mxu0 %v4308_v23  ;;  %v4356_v23 = vld [vmem:[%s5765_s1 + $0x624] ss:$8 sps:$4 sm:$0xff]  }
  0x6a   :  { %2400 = vmatmul.mubr.bf16.gmra.mrb[20].mxu1 %v3584_v27  ;;  %v3530_v27 = vcombine.low %v34_v13, %v42_v14  ;;  %v94_v10 = vld [vmem:[%s5766_s0 + $0x288] sm:$0xff]  ;;  %v3578_v13 = vcombine.low %v82_v62, %v90_v63 }
  0x6b   :  { %2852 = vmatmul.mubr.bf16.gmra.mrb[20].mxu0 %v3592_v28  ;;  %2451 = vmatpush1.bf16.msra.mxu1 %v4303_v24  ;;  %v46_v24 = vld [vmem:[%s5766_s0 + $0x108] sm:$0xff] }
  0x6c   :  { %2903 = vmatpush1.bf16.msra.mxu0 %v4306_v25  ;;  %2452 = vmatprep.subr.bf16.mxu1 %v4311_v32  ;;  %v54_v25 = vld [vmem:[%s5766_s0 + $0x148] sm:$0xff]  ;;  %v4359_v32 = vld [vmem:[%s5765_s1 + $0x234] ss:$8 sps:$4 sm:$0xff]  }
  0x6d   :  { %2904 = vmatprep.subr.bf16.mxu0 %v4314_v33  ;;  %2409 = vmatprep.mubr.bf16.mxu1 %v3601_v34  ;;  %v50_v28 = vld [vmem:[%s5766_s0 + $0x128] sm:$0xff]  ;;  %v4362_v33 = vld [vmem:[%s5765_s1 + $0x634] ss:$8 sps:$4 sm:$0xff]   ;;  %v3539_v34 = vcombine.high %v46_v24, %v54_v25  ;;  %v3538_v43 = vcombine.low %v46_v24, %v54_v25 }
  0x6e   :  { %2861 = vmatprep.mubr.bf16.mxu0 %v3609_v35  ;;  %v3547_v35 = vcombine.high %v50_v28, %v58_v29  ;;  %v98_v14 = vld [vmem:[%s5766_s0 + $0x2a8] sm:$0xff] }
  0x6f   :  { %2453 = vmatpush1.bf16.msra.mxu1 %v4309_v36  ;;  %v4357_v36 = vld [vmem:[%s5765_s1 + $0x230] ss:$8 sps:$4 sm:$0xff]   ;;  %v4399_v24 = vld [vmem:[%s5765_s1 + $0x2a0] ss:$8 sps:$4 sm:$0xff]  }
  0x70   :  { %2905 = vmatpush1.bf16.msra.mxu0 %v4312_v37  ;;  %2454 = vmatprep.subr.bf16.mxu1 %v4317_v38  ;;  %v4360_v37 = vld [vmem:[%s5765_s1 + $0x630] ss:$8 sps:$4 sm:$0xff]   ;;  %v4365_v38 = vld [vmem:[%s5765_s1 + $0x244] ss:$8 sps:$4 sm:$0xff]  }
  0x71   :  { %2906 = vmatprep.subr.bf16.mxu0 %v4320_v39  ;;  %v4368_v39 = vld [vmem:[%s5765_s1 + $0x644] ss:$8 sps:$4 sm:$0xff]  }
  0x72   :  { %2410 = vmatmul.mubr.bf16.gmra.mrb[24].mxu1 %v3600_v44  ;;  %v3546_v44 = vcombine.low %v50_v28, %v58_v29  ;;  %v110_v25 = vld [vmem:[%s5766_s0 + $0x308] sm:$0xff] }
  0x73   :  { %2862 = vmatmul.mubr.bf16.gmra.mrb[24].mxu0 %v3608_v45  ;;  %2455 = vmatpush1.bf16.msra.mxu1 %v4315_v40  ;;  %v4363_v40 = vld [vmem:[%s5765_s1 + $0x240] ss:$8 sps:$4 sm:$0xff]  }
  0x74   :  { %2907 = vmatpush1.bf16.msra.mxu0 %v4318_v41  ;;  %2456 = vmatprep.subr.bf16.mxu1 %v4323_v48  ;;  %v4366_v41 = vld [vmem:[%s5765_s1 + $0x640] ss:$8 sps:$4 sm:$0xff]   ;;  %v4371_v48 = vld [vmem:[%s5765_s1 + $0x254] ss:$8 sps:$4 sm:$0xff]  }
  0x75   :  { %2908 = vmatprep.subr.bf16.mxu0 %v4326_v49  ;;  %2419 = vmatprep.mubr.bf16.mxu1 %v3617_v50  ;;  %v70_v45 = vld [vmem:[%s5766_s0 + $0x1c8] sm:$0xff]  ;;  %v4374_v49 = vld [vmem:[%s5765_s1 + $0x654] ss:$8 sps:$4 sm:$0xff]  }
  0x76   :  { %2871 = vmatprep.mubr.bf16.mxu0 %v3625_v51  ;;  %v3555_v50 = vcombine.high %v62_v42, %v70_v45  ;;  %v3563_v51 = vcombine.high %v66_v46, %v74_v47  ;;  %v114_v29 = vld [vmem:[%s5766_s0 + $0x328] sm:$0xff] }
  0x77   :  { %2457 = vmatpush1.bf16.msra.mxu1 %v4321_v52  ;;  %v4369_v52 = vld [vmem:[%s5765_s1 + $0x250] ss:$8 sps:$4 sm:$0xff]  }
  0x78   :  { %2909 = vmatpush1.bf16.msra.mxu0 %v4324_v53  ;;  %2458 = vmatprep.subr.bf16.mxu1 %v4329_v54  ;;  %v4372_v53 = vld [vmem:[%s5765_s1 + $0x650] ss:$8 sps:$4 sm:$0xff]   ;;  %v4377_v54 = vld [vmem:[%s5765_s1 + $0x264] ss:$8 sps:$4 sm:$0xff]  }
  0x79   :  { %2910 = vmatprep.subr.bf16.mxu0 %v4332_v55  ;;  %v4380_v55 = vld [vmem:[%s5765_s1 + $0x664] ss:$8 sps:$4 sm:$0xff]  }
  0x7a   :  { %2420 = vmatmul.mubr.bf16.gmra.mrb[28].mxu1 %v3616_v60  ;;  %v3554_v60 = vcombine.low %v62_v42, %v70_v45  ;;  %v138_v45 = vld [vmem:[%s5766_s0 + $0x3e8] sm:$0xff] }
  0x7b   :  { %2872 = vmatmul.mubr.bf16.gmra.mrb[28].mxu0 %v3624_v61  ;;  %2459 = vmatpush1.bf16.msra.mxu1 %v4327_v56  ;;  %v4375_v56 = vld [vmem:[%s5765_s1 + $0x260] ss:$8 sps:$4 sm:$0xff]   ;;  %v3562_v61 = vcombine.low %v66_v46, %v74_v47 }
  0x7c   :  { %2911 = vmatpush1.bf16.msra.mxu0 %v4330_v57  ;;  %2460 = vmatprep.subr.bf16.mxu1 %v4335_v0  ;;  %v4378_v57 = vld [vmem:[%s5765_s1 + $0x660] ss:$8 sps:$4 sm:$0xff]   ;;  %v4383_v0 = vld [vmem:[%s5765_s1 + $0x274] ss:$8 sps:$4 sm:$0xff]  }
  0x7d   :  { %2912 = vmatprep.subr.bf16.mxu0 %v4338_v1  ;;  %2462 = vmatprep.mubr.bf16.mxu1 %v3507_v2  ;;  %v4386_v1 = vld [vmem:[%s5765_s1 + $0x674] ss:$8 sps:$4 sm:$0xff]   ;;  %v3571_v2 = vcombine.high %v78_v58, %v86_v59  ;;  %v4411_v46 = vld [vmem:[%s5765_s1 + $0x2c0] ss:$8 sps:$4 sm:$0xff]  }
  0x7e   :  { %2914 = vmatprep.mubr.bf16.mxu0 %v3515_v3  ;;  %v3579_v3 = vcombine.high %v82_v62, %v90_v63  ;;  %v4414_v47 = vld [vmem:[%s5765_s1 + $0x6c0] ss:$8 sps:$4 sm:$0xff]   ;;  %v19_v62 = vld [vmem:[%s5766_s0 + $0x30] sm:$0xff] }
  0x7f   :  { %2461 = vmatpush1.bf16.msra.mxu1 %v4333_v4  ;;  %v4381_v4 = vld [vmem:[%s5765_s1 + $0x270] ss:$8 sps:$4 sm:$0xff]  }
  0x80   :  { %2913 = vmatpush1.bf16.msra.mxu0 %v4336_v5  ;;  %2543 = vmatprep.subr.bf16.mxu1 %v4341_v6  ;;  %v4384_v5 = vld [vmem:[%s5765_s1 + $0x670] ss:$8 sps:$4 sm:$0xff]   ;;  %v4389_v6 = vld [vmem:[%s5765_s1 + $0x284] ss:$8 sps:$4 sm:$0xff]  }
  0x81   :  { %2995 = vmatprep.subr.bf16.mxu0 %v4344_v7  ;;  %v4392_v7 = vld [vmem:[%s5765_s1 + $0x684] ss:$8 sps:$4 sm:$0xff]   ;;  %v27_v63 = vld [vmem:[%s5766_s0 + $0x70] sm:$0xff] }
  0x82   :  { %2463 = vmatmul.mubr.bf16.vlgmr.msra.gmra.mrb[0].mxu1 %v3506_v11  ;;  %v102_v11 = vld [vmem:[%s5766_s0 + $0x2c8] sm:$0xff] }
  0x83   :  { %2915 = vmatmul.mubr.bf16.vlgmr.msra.gmra.mrb[0].mxu0 %v3514_v12  ;;  %2544 = vmatpush1.bf16.msra.mxu1 %v4339_v8  ;;  %v4387_v8 = vld [vmem:[%s5765_s1 + $0x280] ss:$8 sps:$4 sm:$0xff]   ;;  %v3570_v12 = vcombine.low %v78_v58, %v86_v59  ;;  %v15_v58 = vld [vmem:[%s5766_s0 + $0x10] sm:$0xff] }
  0x84   :  { %2996 = vmatpush1.bf16.msra.mxu0 %v4342_v15  ;;  %2545 = vmatprep.subr.bf16.mxu1 %v4347_v16  ;;  %v106_v15 = vld [vmem:[%s5766_s0 + $0x2e8] sm:$0xff]  ;;  %v4395_v16 = vld [vmem:[%s5765_s1 + $0x294] ss:$8 sps:$4 sm:$0xff]  }
  0x85   :  { %2997 = vmatprep.subr.bf16.mxu0 %v4350_v17  ;;  %2472 = vmatprep.mubr.bf16.mxu1 %v3523_v18  ;;  %v4398_v17 = vld [vmem:[%s5765_s1 + $0x694] ss:$8 sps:$4 sm:$0xff]   ;;  %v3587_v18 = vcombine.high %v94_v10, %v102_v11  ;;  %v3594_v28 = vcombine.low %v98_v14, %v106_v15 }
  0x86   :  { %2924 = vmatprep.mubr.bf16.mxu0 %v3531_v19  ;;  %v3595_v19 = vcombine.high %v98_v14, %v106_v15  ;;  %v35_v14 = vld [vmem:[%s5766_s0 + $0xb0] sm:$0xff] }
  0x87   :  { %2546 = vmatpush1.bf16.msra.mxu1 %v4345_v20  ;;  %v4393_v20 = vld [vmem:[%s5765_s1 + $0x290] ss:$8 sps:$4 sm:$0xff]  }
  0x88   :  { %2998 = vmatpush1.bf16.msra.mxu0 %v4348_v21  ;;  %2547 = vmatprep.subr.bf16.mxu1 %v4353_v22  ;;  %v4396_v21 = vld [vmem:[%s5765_s1 + $0x690] ss:$8 sps:$4 sm:$0xff]   ;;  %v4401_v22 = vld [vmem:[%s5765_s1 + $0x2a4] ss:$8 sps:$4 sm:$0xff]  }
  0x89   :  { %2999 = vmatprep.subr.bf16.mxu0 %v4356_v23  ;;  %v4404_v23 = vld [vmem:[%s5765_s1 + $0x6a4] ss:$8 sps:$4 sm:$0xff]   ;;  %v43_v15 = vld [vmem:[%s5766_s0 + $0xf0] sm:$0xff] }
  0x8a   :  { %2473 = vmatmul.mubr.bf16.gmra.mrb[4].mxu1 %v3522_v26  ;;  %v118_v26 = vld [vmem:[%s5766_s0 + $0x348] sm:$0xff] }
  0x8b   :  { %2925 = vmatmul.mubr.bf16.gmra.mrb[4].mxu0 %v3530_v27  ;;  %2548 = vmatpush1.bf16.msra.mxu1 %v4351_v30  ;;  %v3586_v27 = vcombine.low %v94_v10, %v102_v11  ;;  %v122_v30 = vld [vmem:[%s5766_s0 + $0x368] sm:$0xff]  ;;  %v3602_v42 = vcombine.low %v110_v25, %v118_v26  ;;  %v31_v10 = vld [vmem:[%s5766_s0 + $0x90] sm:$0xff] }
  0x8c   :  { %3000 = vmatpush1.bf16.msra.mxu0 %v4354_v31  ;;  %2549 = vmatprep.subr.bf16.mxu1 %v4359_v32  ;;  %v4402_v31 = vld [vmem:[%s5765_s1 + $0x6a0] ss:$8 sps:$4 sm:$0xff]   ;;  %v4407_v32 = vld [vmem:[%s5765_s1 + $0x2b4] ss:$8 sps:$4 sm:$0xff]  }
  0x8d   :  { %3001 = vmatprep.subr.bf16.mxu0 %v4362_v33  ;;  %2482 = vmatprep.mubr.bf16.mxu1 %v3539_v34  ;;  %v4410_v33 = vld [vmem:[%s5765_s1 + $0x6b4] ss:$8 sps:$4 sm:$0xff]   ;;  %v3603_v34 = vcombine.high %v110_v25, %v118_v26  ;;  %v4450_v25 = vld [vmem:[%s5765_s1 + $0x720] ss:$8 sps:$4 sm:$0xff]  }
  0x8e   :  { %2934 = vmatprep.mubr.bf16.mxu0 %v3547_v35  ;;  %v3611_v35 = vcombine.high %v114_v29, %v122_v30  ;;  %v39_v11 = vld [vmem:[%s5766_s0 + $0xd0] sm:$0xff] }
  0x8f   :  { %2550 = vmatpush1.bf16.msra.mxu1 %v4357_v36  ;;  %v4405_v36 = vld [vmem:[%s5765_s1 + $0x2b0] ss:$8 sps:$4 sm:$0xff]  }
  0x90   :  { %3002 = vmatpush1.bf16.msra.mxu0 %v4360_v37  ;;  %2551 = vmatprep.subr.bf16.mxu1 %v4365_v38  ;;  %v4408_v37 = vld [vmem:[%s5765_s1 + $0x6b0] ss:$8 sps:$4 sm:$0xff]   ;;  %v4413_v38 = vld [vmem:[%s5765_s1 + $0x2c4] ss:$8 sps:$4 sm:$0xff]  }
  0x91   :  { %3003 = vmatprep.subr.bf16.mxu0 %v4368_v39  ;;  %v4416_v39 = vld [vmem:[%s5765_s1 + $0x6c4] ss:$8 sps:$4 sm:$0xff]   ;;  %v47_v26 = vld [vmem:[%s5766_s0 + $0x110] sm:$0xff] }
  0x92   :  { %2483 = vmatmul.mubr.bf16.gmra.mrb[8].mxu1 %v3538_v43  ;;  %v3610_v43 = vcombine.low %v114_v29, %v122_v30  ;;  %v3532_v29 = vcombine.low %v35_v14, %v43_v15  ;;  %v51_v30 = vld [vmem:[%s5766_s0 + $0x130] sm:$0xff] }
  0x93   :  { %2935 = vmatmul.mubr.bf16.gmra.mrb[8].mxu0 %v3546_v44  ;;  %2552 = vmatpush1.bf16.msra.mxu1 %v4363_v40  ;;  %v126_v40 = vld [vmem:[%s5766_s0 + $0x388] sm:$0xff] }
  0x94   :  { %3004 = vmatpush1.bf16.msra.mxu0 %v4366_v41  ;;  %2553 = vmatprep.subr.bf16.mxu1 %v4371_v48  ;;  %v134_v41 = vld [vmem:[%s5766_s0 + $0x3c8] sm:$0xff]  ;;  %v4419_v48 = vld [vmem:[%s5765_s1 + $0x2d4] ss:$8 sps:$4 sm:$0xff]  }
  0x95   :  { %3005 = vmatprep.subr.bf16.mxu0 %v4374_v49  ;;  %2492 = vmatprep.mubr.bf16.mxu1 %v3555_v50  ;;  %v130_v44 = vld [vmem:[%s5766_s0 + $0x3a8] sm:$0xff]  ;;  %v4422_v49 = vld [vmem:[%s5765_s1 + $0x6d4] ss:$8 sps:$4 sm:$0xff]   ;;  %v3619_v50 = vcombine.high %v126_v40, %v134_v41  ;;  %v3618_v59 = vcombine.low %v126_v40, %v134_v41 }
  0x96   :  { %2944 = vmatprep.mubr.bf16.mxu0 %v3563_v51  ;;  %v3627_v51 = vcombine.high %v130_v44, %v138_v45  ;;  %v63_v40 = vld [vmem:[%s5766_s0 + $0x190] sm:$0xff] }
  0x97   :  { %2554 = vmatpush1.bf16.msra.mxu1 %v4369_v52  ;;  %v4417_v52 = vld [vmem:[%s5765_s1 + $0x2d0] ss:$8 sps:$4 sm:$0xff]  }
  0x98   :  { %3006 = vmatpush1.bf16.msra.mxu0 %v4372_v53  ;;  %2555 = vmatprep.subr.bf16.mxu1 %v4377_v54  ;;  %v4420_v53 = vld [vmem:[%s5765_s1 + $0x6d0] ss:$8 sps:$4 sm:$0xff]   ;;  %v4425_v54 = vld [vmem:[%s5765_s1 + $0x2e4] ss:$8 sps:$4 sm:$0xff]  }
  0x99   :  { %3007 = vmatprep.subr.bf16.mxu0 %v4380_v55  ;;  %v4428_v55 = vld [vmem:[%s5765_s1 + $0x6e4] ss:$8 sps:$4 sm:$0xff]  }
  0x9a   :  { %2493 = vmatmul.mubr.bf16.gmra.mrb[12].mxu1 %v3554_v60  ;;  %v3626_v60 = vcombine.low %v130_v44, %v138_v45  ;;  %v67_v44 = vld [vmem:[%s5766_s0 + $0x1b0] sm:$0xff] }
  0x9b   :  { %2945 = vmatmul.mubr.bf16.gmra.mrb[12].mxu0 %v3562_v61  ;;  %2556 = vmatpush1.bf16.msra.mxu1 %v4375_v56  ;;  %v4423_v56 = vld [vmem:[%s5765_s1 + $0x2e0] ss:$8 sps:$4 sm:$0xff]   ;;  %v23_v61 = vld [vmem:[%s5766_s0 + $0x50] sm:$0xff] }
  0x9c   :  { %3008 = vmatpush1.bf16.msra.mxu0 %v4378_v57  ;;  %2557 = vmatprep.subr.bf16.mxu1 %v4383_v0  ;;  %v4426_v57 = vld [vmem:[%s5765_s1 + $0x6e0] ss:$8 sps:$4 sm:$0xff]   ;;  %v4431_v0 = vld [vmem:[%s5765_s1 + $0x2f4] ss:$8 sps:$4 sm:$0xff]  }
  0x9d   :  { %3009 = vmatprep.subr.bf16.mxu0 %v4386_v1  ;;  %2502 = vmatprep.mubr.bf16.mxu1 %v3571_v2  ;;  %v4434_v1 = vld [vmem:[%s5765_s1 + $0x6f4] ss:$8 sps:$4 sm:$0xff]   ;;  %v3509_v2 = vcombine.high %v15_v58, %v23_v61 }
  0x9e   :  { %2954 = vmatprep.mubr.bf16.mxu0 %v3579_v3  ;;  %v3517_v3 = vcombine.high %v19_v62, %v27_v63  ;;  %v75_v45 = vld [vmem:[%s5766_s0 + $0x1f0] sm:$0xff] }
  0x9f   :  { %2558 = vmatpush1.bf16.msra.mxu1 %v4381_v4  ;;  %v4429_v4 = vld [vmem:[%s5765_s1 + $0x2f0] ss:$8 sps:$4 sm:$0xff]  }
  0xa0   :  { %3010 = vmatpush1.bf16.msra.mxu0 %v4384_v5  ;;  %2559 = vmatprep.subr.bf16.mxu1 %v4389_v6  ;;  %v4432_v5 = vld [vmem:[%s5765_s1 + $0x6f0] ss:$8 sps:$4 sm:$0xff]   ;;  %v4437_v6 = vld [vmem:[%s5765_s1 + $0x304] ss:$8 sps:$4 sm:$0xff]  }
  0xa1   :  { %3011 = vmatprep.subr.bf16.mxu0 %v4392_v7  ;;  %v4440_v7 = vld [vmem:[%s5765_s1 + $0x704] ss:$8 sps:$4 sm:$0xff]  }
  0xa2   :  { %2503 = vmatmul.mubr.bf16.gmra.mrb[16].mxu1 %v3570_v12  ;;  %v3508_v12 = vcombine.low %v15_v58, %v23_v61  ;;  %v3564_v58 = vcombine.low %v67_v44, %v75_v45  ;;  %v91_v61 = vld [vmem:[%s5766_s0 + $0x270] sm:$0xff] }
  0xa3   :  { %2955 = vmatmul.mubr.bf16.gmra.mrb[16].mxu0 %v3578_v13  ;;  %2560 = vmatpush1.bf16.msra.mxu1 %v4387_v8  ;;  %v4435_v8 = vld [vmem:[%s5765_s1 + $0x300] ss:$8 sps:$4 sm:$0xff]   ;;  %v3516_v13 = vcombine.low %v19_v62, %v27_v63 }
  0xa4   :  { %3012 = vmatpush1.bf16.msra.mxu0 %v4390_v9  ;;  %2561 = vmatprep.subr.bf16.mxu1 %v4395_v16  ;;  %v4438_v9 = vld [vmem:[%s5765_s1 + $0x700] ss:$8 sps:$4 sm:$0xff]   ;;  %v4443_v16 = vld [vmem:[%s5765_s1 + $0x314] ss:$8 sps:$4 sm:$0xff]  }
  0xa5   :  { %3013 = vmatprep.subr.bf16.mxu0 %v4398_v17  ;;  %2512 = vmatprep.mubr.bf16.mxu1 %v3587_v18  ;;  %v4446_v17 = vld [vmem:[%s5765_s1 + $0x714] ss:$8 sps:$4 sm:$0xff]   ;;  %v3525_v18 = vcombine.high %v31_v10, %v39_v11  ;;  %v4471_v62 = vld [vmem:[%s5765_s1 + $0x360] ss:$8 sps:$4 sm:$0xff]  }
  0xa6   :  { %2964 = vmatprep.mubr.bf16.mxu0 %v3595_v19  ;;  %v3533_v19 = vcombine.high %v35_v14, %v43_v15  ;;  %v4474_v63 = vld [vmem:[%s5765_s1 + $0x760] ss:$8 sps:$4 sm:$0xff]  }
  0xa7   :  { %2562 = vmatpush1.bf16.msra.mxu1 %v4393_v20  ;;  %v4441_v20 = vld [vmem:[%s5765_s1 + $0x310] ss:$8 sps:$4 sm:$0xff]   ;;  %v4483_v14 = vld [vmem:[%s5765_s1 + $0x380] ss:$8 sps:$4 sm:$0xff]  }
  0xa8   :  { %3014 = vmatpush1.bf16.msra.mxu0 %v4396_v21  ;;  %2563 = vmatprep.subr.bf16.mxu1 %v4401_v22  ;;  %v4444_v21 = vld [vmem:[%s5765_s1 + $0x710] ss:$8 sps:$4 sm:$0xff]   ;;  %v4449_v22 = vld [vmem:[%s5765_s1 + $0x324] ss:$8 sps:$4 sm:$0xff]   ;;  %v4486_v15 = vld [vmem:[%s5765_s1 + $0x780] ss:$8 sps:$4 sm:$0xff]  }
  0xa9   :  { %3015 = vmatprep.subr.bf16.mxu0 %v4404_v23  ;;  %v4452_v23 = vld [vmem:[%s5765_s1 + $0x724] ss:$8 sps:$4 sm:$0xff]  }
  0xaa   :  { %2513 = vmatmul.mubr.bf16.gmra.mrb[20].mxu1 %v3586_v27  ;;  %v55_v27 = vld [vmem:[%s5766_s0 + $0x150] sm:$0xff] }
  0xab   :  { %2965 = vmatmul.mubr.bf16.gmra.mrb[20].mxu0 %v3594_v28  ;;  %2564 = vmatpush1.bf16.msra.mxu1 %v4399_v24  ;;  %v4447_v24 = vld [vmem:[%s5765_s1 + $0x320] ss:$8 sps:$4 sm:$0xff]   ;;  %v3524_v28 = vcombine.low %v31_v10, %v39_v11  ;;  %v3540_v41 = vcombine.low %v47_v26, %v55_v27  ;;  %v103_v11 = vld [vmem:[%s5766_s0 + $0x2d0] sm:$0xff] }
  0xac   :  { %3016 = vmatpush1.bf16.msra.mxu0 %v4402_v31  ;;  %2565 = vmatprep.subr.bf16.mxu1 %v4407_v32  ;;  %v59_v31 = vld [vmem:[%s5766_s0 + $0x170] sm:$0xff] }
  0xad   :  { %3017 = vmatprep.subr.bf16.mxu0 %v4410_v33  ;;  %2522 = vmatprep.mubr.bf16.mxu1 %v3603_v34  ;;  %v4455_v32 = vld [vmem:[%s5765_s1 + $0x334] ss:$8 sps:$4 sm:$0xff]   ;;  %v3541_v34 = vcombine.high %v47_v26, %v55_v27 }
  0xae   :  { %2974 = vmatprep.mubr.bf16.mxu0 %v3611_v35  ;;  %v4458_v33 = vld [vmem:[%s5765_s1 + $0x734] ss:$8 sps:$4 sm:$0xff]   ;;  %v3549_v35 = vcombine.high %v51_v30, %v59_v31 }
  0xaf   :  { %2566 = vmatpush1.bf16.msra.mxu1 %v4405_v36  ;;  %v4453_v36 = vld [vmem:[%s5765_s1 + $0x330] ss:$8 sps:$4 sm:$0xff]  }
  0xb0   :  { %3018 = vmatpush1.bf16.msra.mxu0 %v4408_v37  ;;  %2567 = vmatprep.subr.bf16.mxu1 %v4413_v38  ;;  %v4456_v37 = vld [vmem:[%s5765_s1 + $0x730] ss:$8 sps:$4 sm:$0xff]   ;;  %v4461_v38 = vld [vmem:[%s5765_s1 + $0x344] ss:$8 sps:$4 sm:$0xff]  }
  0xb1   :  { %3019 = vmatprep.subr.bf16.mxu0 %v4416_v39  ;;  %v4464_v39 = vld [vmem:[%s5765_s1 + $0x744] ss:$8 sps:$4 sm:$0xff]   ;;  %v119_v27 = vld [vmem:[%s5766_s0 + $0x350] sm:$0xff] }
  0xb2   :  { %2523 = vmatmul.mubr.bf16.gmra.mrb[24].mxu1 %v3602_v42  ;;  %v3548_v42 = vcombine.low %v51_v30, %v59_v31  ;;  %v4495_v30 = vld [vmem:[%s5765_s1 + $0x3a0] ss:$8 sps:$4 sm:$0xff]  }
  0xb3   :  { %2975 = vmatmul.mubr.bf16.gmra.mrb[24].mxu0 %v3610_v43  ;;  %2568 = vmatpush1.bf16.msra.mxu1 %v4411_v46  ;;  %v71_v43 = vld [vmem:[%s5766_s0 + $0x1d0] sm:$0xff]  ;;  %v4459_v46 = vld [vmem:[%s5765_s1 + $0x340] ss:$8 sps:$4 sm:$0xff]  }
  0xb4   :  { %3020 = vmatpush1.bf16.msra.mxu0 %v4414_v47  ;;  %2569 = vmatprep.subr.bf16.mxu1 %v4419_v48  ;;  %v4462_v47 = vld [vmem:[%s5765_s1 + $0x740] ss:$8 sps:$4 sm:$0xff]   ;;  %v4467_v48 = vld [vmem:[%s5765_s1 + $0x354] ss:$8 sps:$4 sm:$0xff]  }
  0xb5   :  { %3021 = vmatprep.subr.bf16.mxu0 %v4422_v49  ;;  %2532 = vmatprep.mubr.bf16.mxu1 %v3619_v50  ;;  %v4470_v49 = vld [vmem:[%s5765_s1 + $0x754] ss:$8 sps:$4 sm:$0xff]   ;;  %v3557_v50 = vcombine.high %v63_v40, %v71_v43  ;;  %v4498_v31 = vld [vmem:[%s5765_s1 + $0x7a0] ss:$8 sps:$4 sm:$0xff]  }
  0xb6   :  { %2984 = vmatprep.mubr.bf16.mxu0 %v3627_v51  ;;  %v3565_v51 = vcombine.high %v67_v44, %v75_v45  ;;  %v131_v44 = vld [vmem:[%s5766_s0 + $0x3b0] sm:$0xff] }
  0xb7   :  { %2570 = vmatpush1.bf16.msra.mxu1 %v4417_v52  ;;  %v4465_v52 = vld [vmem:[%s5765_s1 + $0x350] ss:$8 sps:$4 sm:$0xff]  }
  0xb8   :  { %3022 = vmatpush1.bf16.msra.mxu0 %v4420_v53  ;;  %2571 = vmatprep.subr.bf16.mxu1 %v4425_v54  ;;  %v4468_v53 = vld [vmem:[%s5765_s1 + $0x750] ss:$8 sps:$4 sm:$0xff]   ;;  %v4473_v54 = vld [vmem:[%s5765_s1 + $0x364] ss:$8 sps:$4 sm:$0xff]  }
  0xb9   :  { %3023 = vmatprep.subr.bf16.mxu0 %v4428_v55  ;;  %v4476_v55 = vld [vmem:[%s5765_s1 + $0x764] ss:$8 sps:$4 sm:$0xff]   ;;  %v139_v45 = vld [vmem:[%s5766_s0 + $0x3f0] sm:$0xff] }
  0xba   :  { %2533 = vmatmul.mubr.bf16.gmra.mrb[28].mxu1 %v3618_v59  ;;  %v87_v59 = vld [vmem:[%s5766_s0 + $0x250] sm:$0xff] }
  0xbb   :  { %2985 = vmatmul.mubr.bf16.gmra.mrb[28].mxu0 %v3626_v60  ;;  %2572 = vmatpush1.bf16.msra.mxu1 %v4423_v56  ;;  %v79_v56 = vld [vmem:[%s5766_s0 + $0x210] sm:$0xff] }
  0xbc   :  { %3024 = vmatpush1.bf16.msra.mxu0 %v4426_v57  ;;  %2573 = vmatprep.subr.bf16.mxu1 %v4431_v0  ;;  %v3556_v57 = vcombine.low %v63_v40, %v71_v43  ;;  %v83_v60 = vld [vmem:[%s5766_s0 + $0x230] sm:$0xff] }
  0xbd   :  { %3025 = vmatprep.subr.bf16.mxu0 %v4434_v1  ;;  %2575 = vmatprep.mubr.bf16.mxu1 %v3509_v2  ;;  %v4479_v0 = vld [vmem:[%s5765_s1 + $0x374] ss:$8 sps:$4 sm:$0xff]   ;;  %v3573_v2 = vcombine.high %v79_v56, %v87_v59  ;;  %v3580_v10 = vcombine.low %v83_v60, %v91_v61 }
  0xbe   :  { %3027 = vmatprep.mubr.bf16.mxu0 %v3517_v3  ;;  %v4482_v1 = vld [vmem:[%s5765_s1 + $0x774] ss:$8 sps:$4 sm:$0xff]   ;;  %v3581_v3 = vcombine.high %v83_v60, %v91_v61 }
  0xbf   :  { %2574 = vmatpush1.bf16.msra.mxu1 %v4429_v4  ;;  %v4477_v4 = vld [vmem:[%s5765_s1 + $0x370] ss:$8 sps:$4 sm:$0xff]  }
  0xc0   :  { %3026 = vmatpush1.bf16.msra.mxu0 %v4432_v5  ;;  %2656 = vmatprep.subr.bf16.mxu1 %v4437_v6  ;;  %v4480_v5 = vld [vmem:[%s5765_s1 + $0x770] ss:$8 sps:$4 sm:$0xff]   ;;  %v4485_v6 = vld [vmem:[%s5765_s1 + $0x384] ss:$8 sps:$4 sm:$0xff]  }
  0xc1   :  { %3108 = vmatprep.subr.bf16.mxu0 %v4440_v7  ;;  %v4488_v7 = vld [vmem:[%s5765_s1 + $0x784] ss:$8 sps:$4 sm:$0xff]   ;;  %v127_v40 = vld [vmem:[%s5766_s0 + $0x390] sm:$0xff]  ;;  %v20_v60 = vld [vmem:[%s5766_s0 + $0x38] sm:$0xff] }
  0xc2   :  { %2576 = vmatmul.mubr.bf16.vlgmr.msra.gmra.mrb[0].mxu1 %v3508_v12  ;;  %v99_v12 = vld [vmem:[%s5766_s0 + $0x2b0] sm:$0xff]  ;;  %v28_v61 = vld [vmem:[%s5766_s0 + $0x78] sm:$0xff] }
  0xc3   :  { %3028 = vmatmul.mubr.bf16.vlgmr.msra.gmra.mrb[0].mxu0 %v3516_v13  ;;  %2657 = vmatpush1.bf16.msra.mxu1 %v4435_v8  ;;  %v95_v8 = vld [vmem:[%s5766_s0 + $0x290] sm:$0xff] }
  0xc4   :  { %3109 = vmatpush1.bf16.msra.mxu0 %v4438_v9  ;;  %2658 = vmatprep.subr.bf16.mxu1 %v4443_v16  ;;  %v3572_v9 = vcombine.low %v79_v56, %v87_v59  ;;  %v107_v13 = vld [vmem:[%s5766_s0 + $0x2f0] sm:$0xff]  ;;  %v16_v56 = vld [vmem:[%s5766_s0 + $0x18] sm:$0xff] }
  0xc5   :  { %3110 = vmatprep.subr.bf16.mxu0 %v4446_v17  ;;  %2585 = vmatprep.mubr.bf16.mxu1 %v3525_v18  ;;  %v4491_v16 = vld [vmem:[%s5765_s1 + $0x394] ss:$8 sps:$4 sm:$0xff]   ;;  %v3589_v18 = vcombine.high %v95_v8, %v103_v11  ;;  %v3596_v26 = vcombine.low %v99_v12, %v107_v13 }
  0xc6   :  { %3037 = vmatprep.mubr.bf16.mxu0 %v3533_v19  ;;  %v4494_v17 = vld [vmem:[%s5765_s1 + $0x794] ss:$8 sps:$4 sm:$0xff]   ;;  %v3597_v19 = vcombine.high %v99_v12, %v107_v13 }
  0xc7   :  { %2659 = vmatpush1.bf16.msra.mxu1 %v4441_v20  ;;  %v4489_v20 = vld [vmem:[%s5765_s1 + $0x390] ss:$8 sps:$4 sm:$0xff]  }
  0xc8   :  { %3111 = vmatpush1.bf16.msra.mxu0 %v4444_v21  ;;  %2660 = vmatprep.subr.bf16.mxu1 %v4449_v22  ;;  %v4492_v21 = vld [vmem:[%s5765_s1 + $0x790] ss:$8 sps:$4 sm:$0xff]   ;;  %v4497_v22 = vld [vmem:[%s5765_s1 + $0x3a4] ss:$8 sps:$4 sm:$0xff]  }
  0xc9   :  { %3112 = vmatprep.subr.bf16.mxu0 %v4452_v23  ;;  %v4500_v23 = vld [vmem:[%s5765_s1 + $0x7a4] ss:$8 sps:$4 sm:$0xff]   ;;  %v135_v43 = vld [vmem:[%s5766_s0 + $0x3d0] sm:$0xff]  ;;  %v24_v59 = vld [vmem:[%s5766_s0 + $0x58] sm:$0xff] }
  0xca   :  { %2586 = vmatmul.mubr.bf16.gmra.mrb[4].mxu1 %v3524_v28  ;;  %v115_v28 = vld [vmem:[%s5766_s0 + $0x330] sm:$0xff] }
  0xcb   :  { %3038 = vmatmul.mubr.bf16.gmra.mrb[4].mxu0 %v3532_v29  ;;  %2661 = vmatpush1.bf16.msra.mxu1 %v4447_v24  ;;  %v111_v24 = vld [vmem:[%s5766_s0 + $0x310] sm:$0xff] }
  0xcc   :  { %3113 = vmatpush1.bf16.msra.mxu0 %v4450_v25  ;;  %2662 = vmatprep.subr.bf16.mxu1 %v4455_v32  ;;  %v3588_v25 = vcombine.low %v95_v8, %v103_v11  ;;  %v123_v29 = vld [vmem:[%s5766_s0 + $0x370] sm:$0xff]  ;;  %v36_v8 = vld [vmem:[%s5766_s0 + $0xb8] sm:$0xff]  ;;  %v3518_v11 = vcombine.low %v20_v60, %v28_v61 }
  0xcd   :  { %3114 = vmatprep.subr.bf16.mxu0 %v4458_v33  ;;  %2595 = vmatprep.mubr.bf16.mxu1 %v3541_v34  ;;  %v4503_v32 = vld [vmem:[%s5765_s1 + $0x3b4] ss:$8 sps:$4 sm:$0xff]   ;;  %v3605_v34 = vcombine.high %v111_v24, %v119_v27 }
  0xce   :  { %3047 = vmatprep.mubr.bf16.mxu0 %v3549_v35  ;;  %v4506_v33 = vld [vmem:[%s5765_s1 + $0x7b4] ss:$8 sps:$4 sm:$0xff]   ;;  %v3613_v35 = vcombine.high %v115_v28, %v123_v29 }
  0xcf   :  { %2663 = vmatpush1.bf16.msra.mxu1 %v4453_v36  ;;  %v4501_v36 = vld [vmem:[%s5765_s1 + $0x3b0] ss:$8 sps:$4 sm:$0xff]  }
  0xd0   :  { %3115 = vmatpush1.bf16.msra.mxu0 %v4456_v37  ;;  %2664 = vmatprep.subr.bf16.mxu1 %v4461_v38  ;;  %v4504_v37 = vld [vmem:[%s5765_s1 + $0x7b0] ss:$8 sps:$4 sm:$0xff]   ;;  %v4509_v38 = vld [vmem:[%s5765_s1 + $0x3c4] ss:$8 sps:$4 sm:$0xff]  }
  0xd1   :  { %3116 = vmatprep.subr.bf16.mxu0 %v4464_v39  ;;  %v4512_v39 = vld [vmem:[%s5765_s1 + $0x7c4] ss:$8 sps:$4 sm:$0xff]  }
  0xd2   :  { %2596 = vmatmul.mubr.bf16.gmra.mrb[8].mxu1 %v3540_v41  ;;  %v3604_v41 = vcombine.low %v111_v24, %v119_v27  ;;  %v68_v24 = vld [vmem:[%s5766_s0 + $0x1b8] sm:$0xff] }
  0xd3   :  { %3048 = vmatmul.mubr.bf16.gmra.mrb[8].mxu0 %v3548_v42  ;;  %2665 = vmatpush1.bf16.msra.mxu1 %v4459_v46  ;;  %v3612_v42 = vcombine.low %v115_v28, %v123_v29  ;;  %v4507_v46 = vld [vmem:[%s5765_s1 + $0x3c0] ss:$8 sps:$4 sm:$0xff]  }
  0xd4   :  { %3117 = vmatpush1.bf16.msra.mxu0 %v4462_v47  ;;  %2666 = vmatprep.subr.bf16.mxu1 %v4467_v48  ;;  %v4510_v47 = vld [vmem:[%s5765_s1 + $0x7c0] ss:$8 sps:$4 sm:$0xff]   ;;  %v4515_v48 = vld [vmem:[%s5765_s1 + $0x3d4] ss:$8 sps:$4 sm:$0xff]  }
  0xd5   :  { %3118 = vmatprep.subr.bf16.mxu0 %v4470_v49  ;;  %2605 = vmatprep.mubr.bf16.mxu1 %v3557_v50  ;;  %v4518_v49 = vld [vmem:[%s5765_s1 + $0x7d4] ss:$8 sps:$4 sm:$0xff]   ;;  %v3621_v50 = vcombine.high %v127_v40, %v135_v43 }
  0xd6   :  { %3057 = vmatprep.mubr.bf16.mxu0 %v3565_v51  ;;  %v3629_v51 = vcombine.high %v131_v44, %v139_v45 }
  0xd7   :  { %2667 = vmatpush1.bf16.msra.mxu1 %v4465_v52  ;;  %v4513_v52 = vld [vmem:[%s5765_s1 + $0x3d0] ss:$8 sps:$4 sm:$0xff]  }
  0xd8   :  { %3119 = vmatpush1.bf16.msra.mxu0 %v4468_v53  ;;  %2668 = vmatprep.subr.bf16.mxu1 %v4473_v54  ;;  %v4516_v53 = vld [vmem:[%s5765_s1 + $0x7d0] ss:$8 sps:$4 sm:$0xff]   ;;  %v4521_v54 = vld [vmem:[%s5765_s1 + $0x3e4] ss:$8 sps:$4 sm:$0xff]  }
  0xd9   :  { %3120 = vmatprep.subr.bf16.mxu0 %v4476_v55  ;;  %v4524_v55 = vld [vmem:[%s5765_s1 + $0x7e4] ss:$8 sps:$4 sm:$0xff]  }
  0xda   :  { %2606 = vmatmul.mubr.bf16.gmra.mrb[12].mxu1 %v3556_v57  ;;  %v3620_v57 = vcombine.low %v127_v40, %v135_v43  ;;  %v100_v40 = vld [vmem:[%s5766_s0 + $0x2b8] sm:$0xff] }
  0xdb   :  { %3058 = vmatmul.mubr.bf16.gmra.mrb[12].mxu0 %v3564_v58  ;;  %2669 = vmatpush1.bf16.msra.mxu1 %v4471_v62  ;;  %v3628_v58 = vcombine.low %v131_v44, %v139_v45  ;;  %v4519_v62 = vld [vmem:[%s5765_s1 + $0x3e0] ss:$8 sps:$4 sm:$0xff]  }
  0xdc   :  { %3121 = vmatpush1.bf16.msra.mxu0 %v4474_v63  ;;  %2670 = vmatprep.subr.bf16.mxu1 %v4479_v0  ;;  %v4522_v63 = vld [vmem:[%s5765_s1 + $0x7e0] ss:$8 sps:$4 sm:$0xff]   ;;  %v4527_v0 = vld [vmem:[%s5765_s1 + $0x3f4] ss:$8 sps:$4 sm:$0xff]  }
  0xdd   :  { %3122 = vmatprep.subr.bf16.mxu0 %v4482_v1  ;;  %2615 = vmatprep.mubr.bf16.mxu1 %v3573_v2  ;;  %v4530_v1 = vld [vmem:[%s5765_s1 + $0x7f4] ss:$8 sps:$4 sm:$0xff]   ;;  %v3511_v2 = vcombine.high %v16_v56, %v24_v59 }
  0xde   :  { %3067 = vmatprep.mubr.bf16.mxu0 %v3581_v3  ;;  %v3519_v3 = vcombine.high %v20_v60, %v28_v61 }
  0xdf   :  { %2671 = vmatpush1.bf16.msra.mxu1 %v4477_v4  ;;  %v4525_v4 = vld [vmem:[%s5765_s1 + $0x3f0] ss:$8 sps:$4 sm:$0xff]  }
  0xe0   :  { %3123 = vmatpush1.bf16.msra.mxu0 %v4480_v5  ;;  %2672 = vmatprep.subr.bf16.mxu1 %v4485_v6  ;;  %v4528_v5 = vld [vmem:[%s5765_s1 + $0x7f0] ss:$8 sps:$4 sm:$0xff]  }
  0xe1   :  { %3124 = vmatprep.subr.bf16.mxu0 %v4488_v7  ;;  %v32_v6 = vld [vmem:[%s5766_s0 + $0x98] sm:$0xff] }
  0xe2   :  { %2616 = vmatmul.mubr.bf16.gmra.mrb[16].mxu1 %v3572_v9  ;;  %v40_v7 = vld [vmem:[%s5766_s0 + $0xd8] sm:$0xff] }
  0xe3   :  { %3068 = vmatmul.mubr.bf16.gmra.mrb[16].mxu0 %v3580_v10  ;;  %2673 = vmatpush1.bf16.msra.mxu1 %v4483_v14  ;;  %v44_v9 = vld [vmem:[%s5766_s0 + $0xf8] sm:$0xff]  ;;  %v3510_v10 = vcombine.low %v16_v56, %v24_v59  ;;  %v3527_v12 = vcombine.high %v32_v6, %v40_v7 }
  0xe4   :  { %3125 = vmatpush1.bf16.msra.mxu0 %v4486_v15  ;;  %2674 = vmatprep.subr.bf16.mxu1 %v4491_v16  ;;  %v3535_v13 = vcombine.high %v36_v8, %v44_v9  ;;  %v48_v14 = vld [vmem:[%s5766_s0 + $0x118] sm:$0xff] }
  0xe5   :  { %3126 = vmatprep.subr.bf16.mxu0 %v4494_v17  ;;  %2625 = vmatprep.mubr.bf16.mxu1 %v3589_v18  ;;  %v56_v15 = vld [vmem:[%s5766_s0 + $0x158] sm:$0xff]  ;;  %v3526_v18 = vcombine.low %v32_v6, %v40_v7 }
  0xe6   :  { %3077 = vmatprep.mubr.bf16.mxu0 %v3597_v19  ;;  %v52_v16 = vld [vmem:[%s5766_s0 + $0x138] sm:$0xff]  ;;  %v3534_v19 = vcombine.low %v36_v8, %v44_v9 }
  0xe7   :  { %2675 = vmatpush1.bf16.msra.mxu1 %v4489_v20  ;;  %v60_v17 = vld [vmem:[%s5766_s0 + $0x178] sm:$0xff]  ;;  %v3543_v20 = vcombine.high %v48_v14, %v56_v15 }
  0xe8   :  { %3127 = vmatpush1.bf16.msra.mxu0 %v4492_v21  ;;  %2676 = vmatprep.subr.bf16.mxu1 %v4497_v22  ;;  %v3551_v21 = vcombine.high %v52_v16, %v60_v17  ;;  %v64_v22 = vld [vmem:[%s5766_s0 + $0x198] sm:$0xff]  ;;  %v3550_v27 = vcombine.low %v52_v16, %v60_v17 }
  0xe9   :  { %3128 = vmatprep.subr.bf16.mxu0 %v4500_v23  ;;  %v72_v23 = vld [vmem:[%s5766_s0 + $0x1d8] sm:$0xff] }
  0xea   :  { %2626 = vmatmul.mubr.bf16.gmra.mrb[20].mxu1 %v3588_v25  ;;  %v76_v25 = vld [vmem:[%s5766_s0 + $0x1f8] sm:$0xff]  ;;  %v3559_v28 = vcombine.high %v64_v22, %v72_v23 }
  0xeb   :  { %3078 = vmatmul.mubr.bf16.gmra.mrb[20].mxu0 %v3596_v26  ;;  %2677 = vmatpush1.bf16.msra.mxu1 %v4495_v30  ;;  %v3542_v26 = vcombine.low %v48_v14, %v56_v15  ;;  %v3567_v29 = vcombine.high %v68_v24, %v76_v25  ;;  %v80_v30 = vld [vmem:[%s5766_s0 + $0x218] sm:$0xff] }
  0xec   :  { %3129 = vmatpush1.bf16.msra.mxu0 %v4498_v31  ;;  %2678 = vmatprep.subr.bf16.mxu1 %v4503_v32  ;;  %v88_v31 = vld [vmem:[%s5766_s0 + $0x258] sm:$0xff] }
  0xed   :  { %3130 = vmatprep.subr.bf16.mxu0 %v4506_v33  ;;  %2635 = vmatprep.mubr.bf16.mxu1 %v3605_v34  ;;  %v84_v32 = vld [vmem:[%s5766_s0 + $0x238] sm:$0xff]  ;;  %v3558_v34 = vcombine.low %v64_v22, %v72_v23 }
  0xee   :  { %3087 = vmatprep.mubr.bf16.mxu0 %v3613_v35  ;;  %v92_v33 = vld [vmem:[%s5766_s0 + $0x278] sm:$0xff]  ;;  %v3566_v35 = vcombine.low %v68_v24, %v76_v25 }
  0xef   :  { %2679 = vmatpush1.bf16.msra.mxu1 %v4501_v36  ;;  %v3575_v36 = vcombine.high %v80_v30, %v88_v31  ;;  %v3582_v43 = vcombine.low %v84_v32, %v92_v33  ;;  %v132_v56 = vld [vmem:[%s5766_s0 + $0x3b8] sm:$0xff] }
  0xf0   :  { %3131 = vmatpush1.bf16.msra.mxu0 %v4504_v37  ;;  %2680 = vmatprep.subr.bf16.mxu1 %v4509_v38  ;;  %v3583_v37 = vcombine.high %v84_v32, %v92_v33  ;;  %v96_v38 = vld [vmem:[%s5766_s0 + $0x298] sm:$0xff] }
  0xf1   :  { %3132 = vmatprep.subr.bf16.mxu0 %v4512_v39  ;;  %v104_v39 = vld [vmem:[%s5766_s0 + $0x2d8] sm:$0xff] }
  0xf2   :  { %2636 = vmatmul.mubr.bf16.gmra.mrb[24].mxu1 %v3604_v41  ;;  %v108_v41 = vld [vmem:[%s5766_s0 + $0x2f8] sm:$0xff]  ;;  %v3591_v44 = vcombine.high %v96_v38, %v104_v39 }
  0xf3   :  { %3088 = vmatmul.mubr.bf16.gmra.mrb[24].mxu0 %v3612_v42  ;;  %2681 = vmatpush1.bf16.msra.mxu1 %v4507_v46  ;;  %v3574_v42 = vcombine.low %v80_v30, %v88_v31  ;;  %v3599_v45 = vcombine.high %v100_v40, %v108_v41  ;;  %v112_v46 = vld [vmem:[%s5766_s0 + $0x318] sm:$0xff] }
  0xf4   :  { %3133 = vmatpush1.bf16.msra.mxu0 %v4510_v47  ;;  %2682 = vmatprep.subr.bf16.mxu1 %v4515_v48  ;;  %v120_v47 = vld [vmem:[%s5766_s0 + $0x358] sm:$0xff] }
  0xf5   :  { %3134 = vmatprep.subr.bf16.mxu0 %v4518_v49  ;;  %2645 = vmatprep.mubr.bf16.mxu1 %v3621_v50  ;;  %v116_v48 = vld [vmem:[%s5766_s0 + $0x338] sm:$0xff]  ;;  %v3590_v50 = vcombine.low %v96_v38, %v104_v39 }
  0xf6   :  { %3097 = vmatprep.mubr.bf16.mxu0 %v3629_v51  ;;  %v124_v49 = vld [vmem:[%s5766_s0 + $0x378] sm:$0xff]  ;;  %v3598_v51 = vcombine.low %v100_v40, %v108_v41 }
  0xf7   :  { %2683 = vmatpush1.bf16.msra.mxu1 %v4513_v52  ;;  %v3607_v52 = vcombine.high %v112_v46, %v120_v47  ;;  %v3614_v59 = vcombine.low %v116_v48, %v124_v49 }
  0xf8   :  { %3135 = vmatpush1.bf16.msra.mxu0 %v4516_v53  ;;  %2684 = vmatprep.subr.bf16.mxu1 %v4521_v54  ;;  %v3615_v53 = vcombine.high %v116_v48, %v124_v49  ;;  %v128_v54 = vld [vmem:[%s5766_s0 + $0x398] sm:$0xff] }
  0xf9   :  { %3136 = vmatprep.subr.bf16.mxu0 %v4524_v55  ;;  %v136_v55 = vld [vmem:[%s5766_s0 + $0x3d8] sm:$0xff] }
  0xfa   :  { %2646 = vmatmul.mubr.bf16.gmra.mrb[28].mxu1 %v3620_v57  ;;  %v140_v57 = vld [vmem:[%s5766_s0 + $0x3f8] sm:$0xff]  ;;  %v3623_v60 = vcombine.high %v128_v54, %v136_v55 }
  0xfb   :  { %3098 = vmatmul.mubr.bf16.gmra.mrb[28].mxu0 %v3628_v58  ;;  %2685 = vmatpush1.bf16.msra.mxu1 %v4519_v62  ;;  %v3606_v58 = vcombine.low %v112_v46, %v120_v47  ;;  %v3631_v61 = vcombine.high %v132_v56, %v140_v57  ;;  %v3622_v62 = vcombine.low %v128_v54, %v136_v55 }
  0xfc   :  { %3137 = vmatpush1.bf16.msra.mxu0 %v4522_v63  ;;  %2686 = vmatprep.subr.bf16.mxu1 %v4527_v0  ;;  %v3630_v63 = vcombine.low %v132_v56, %v140_v57  ;;  %v4531_v0 = vmov 0.0  }
  0xfd   :  { %3138 = vmatprep.subr.bf16.mxu0 %v4530_v1  ;;  %2688 = vmatprep.mubr.bf16.mxu1 %v3511_v2  ;;  %3333 = vst [vmem:[%s5767_s3] sm:$0xff] %v4531_v0  ;;  %3334 = vst [vmem:[%s5767_s3 + $0x8] sm:$0xff] %v4531_v0 }
  0xfe   :  { %3140 = vmatprep.mubr.bf16.mxu0 %v3519_v3 }
  0xff   :  { %2687 = vmatpush1.bf16.msra.mxu1 %v4525_v4 }
 0x100   :  { %3139 = vmatpush1.bf16.msra.mxu0 %v4528_v5 }
 0x102   :  { %2689 = vmatmul.mubr.bf16.vlgmr.msra.gmra.mrb[0].mxu1 %v3510_v10 }
 0x103   :  { %3141 = vmatmul.mubr.bf16.vlgmr.msra.gmra.mrb[0].mxu0 %v3518_v11  ;;  %2698 = vmatprep.mubr.bf16.mxu1 %v3527_v12 }
 0x104   :  { %3150 = vmatprep.mubr.bf16.mxu0 %v3535_v13 }
 0x10a   :  { %2699 = vmatmul.mubr.bf16.gmra.mrb[4].mxu1 %v3526_v18 }
 0x10b   :  { %3151 = vmatmul.mubr.bf16.gmra.mrb[4].mxu0 %v3534_v19  ;;  %2708 = vmatprep.mubr.bf16.mxu1 %v3543_v20 }
 0x10c   :  { %3160 = vmatprep.mubr.bf16.mxu0 %v3551_v21 }
 0x112   :  { %2709 = vmatmul.mubr.bf16.gmra.mrb[8].mxu1 %v3542_v26 }
 0x113   :  { %3161 = vmatmul.mubr.bf16.gmra.mrb[8].mxu0 %v3550_v27  ;;  %2718 = vmatprep.mubr.bf16.mxu1 %v3559_v28 }
 0x114   :  { %3170 = vmatprep.mubr.bf16.mxu0 %v3567_v29 }
 0x11a   :  { %2719 = vmatmul.mubr.bf16.gmra.mrb[12].mxu1 %v3558_v34 }
 0x11b   :  { %3171 = vmatmul.mubr.bf16.gmra.mrb[12].mxu0 %v3566_v35  ;;  %2728 = vmatprep.mubr.bf16.mxu1 %v3575_v36 }
 0x11c   :  { %3180 = vmatprep.mubr.bf16.mxu0 %v3583_v37 }
 0x122   :  { %2729 = vmatmul.mubr.bf16.gmra.mrb[16].mxu1 %v3574_v42 }
 0x123   :  { %3181 = vmatmul.mubr.bf16.gmra.mrb[16].mxu0 %v3582_v43  ;;  %2738 = vmatprep.mubr.bf16.mxu1 %v3591_v44 }
 0x124   :  { %3190 = vmatprep.mubr.bf16.mxu0 %v3599_v45 }
 0x12a   :  { %2739 = vmatmul.mubr.bf16.gmra.mrb[20].mxu1 %v3590_v50 }
 0x12b   :  { %3191 = vmatmul.mubr.bf16.gmra.mrb[20].mxu0 %v3598_v51  ;;  %2748 = vmatprep.mubr.bf16.mxu1 %v3607_v52 }
 0x12c   :  { %3200 = vmatprep.mubr.bf16.mxu0 %v3615_v53 }
 0x132   :  { %2749 = vmatmul.mubr.bf16.gmra.mrb[24].mxu1 %v3606_v58 }
 0x133   :  { %3201 = vmatmul.mubr.bf16.gmra.mrb[24].mxu0 %v3614_v59  ;;  %2758 = vmatprep.mubr.bf16.mxu1 %v3623_v60 }
 0x134   :  { %3210 = vmatprep.mubr.bf16.mxu0 %v3631_v61 }
 0x13a   :  { %2759 = vmatmul.mubr.bf16.gmra.mrb[28].mxu1 %v3622_v62 }
 0x13b   :  { %3211 = vmatmul.mubr.bf16.gmra.mrb[28].mxu0 %v3630_v63 }
 0x1d5   :  { %v2690_v1 = vpop.f32.mrb[0].mxu1 }
 0x1d6   :  { %v3142_v2 = vpop.f32.mrb[0].mxu0  ;;  %v2692_v4 = vpop.f32.mrb[1].mxu1 }
 0x1d7   :  { %v3921_v3 = vadd.f32 %v3142_v2, %v2690_v1  ;;  %v3144_v5 = vpop.f32.mrb[1].mxu0  ;;  %v2694_v7 = vpop.f32.mrb[2].mxu1 }
 0x1d8   :  { %v3922_v6 = vadd.f32 %v3144_v5, %v2692_v4  ;;  %v3146_v8 = vpop.f32.mrb[2].mxu0  ;;  %v2696_v10 = vpop.f32.mrb[3].mxu1 }
 0x1d9   :  { %v3923_v9 = vadd.f32 %v3146_v8, %v2694_v7  ;;  %v3148_v11 = vpop.f32.mrb[3].mxu0  ;;  %v3401_v14 = vmul.f32 %v3921_v3, %v3921_v3 }
 0x1da   :  { %v3905_v12 = vpack.c.bf16 %v3922_v6, %v3921_v3  ;;  %v3924_v13 = vadd.f32 %v3148_v11, %v2696_v10  ;;  %v3402_v17 = vmul.f32 %v3922_v6, %v3922_v6 }
 0x1db   :  { %v3335_v15 = vadd.f32 %v3923_v9, %v3921_v3  ;;  %v3403_v16 = vmul.f32 %v3923_v9, %v3923_v9 }
 0x1dc   :  { %3317 = vst [vmem:[%s5768_s2] sm:$0xff] %v3905_v12  ;;  %v3906_v18 = vpack.c.bf16 %v3924_v13, %v3923_v9  ;;  %v3356_v19 = vadd.f32 %v3924_v13, %v3922_v6  ;;  %v3404_v20 = vmul.f32 %v3924_v13, %v3924_v13 }
 0x1dd   :  { %v3433_v21 = vadd.f32 %v3403_v16, %v3401_v14  ;;  %v2700_v23 = vpop.f32.mrb[4].mxu1 }
 0x1de   :  { %3318 = vst [vmem:[%s5768_s2 + $0x8] sm:$0xff] %v3906_v18  ;;  %v3454_v22 = vadd.f32 %v3404_v20, %v3402_v17  ;;  %v3152_v24 = vpop.f32.mrb[4].mxu0  ;;  %v2702_v26 = vpop.f32.mrb[5].mxu1 }
 0x1df   :  { %v3925_v25 = vadd.f32 %v3152_v24, %v2700_v23  ;;  %v3154_v27 = vpop.f32.mrb[5].mxu0  ;;  %v2704_v29 = vpop.f32.mrb[6].mxu1 }
 0x1e0   :  { %v3926_v28 = vadd.f32 %v3154_v27, %v2702_v26  ;;  %v3156_v30 = vpop.f32.mrb[6].mxu0  ;;  %v2706_v34 = vpop.f32.mrb[7].mxu1 }
 0x1e1   :  { %v3336_v31 = vadd.f32 %v3925_v25, %v3335_v15  ;;  %v3405_v32 = vmul.f32 %v3925_v25, %v3925_v25  ;;  %v3927_v33 = vadd.f32 %v3156_v30, %v2704_v29  ;;  %v3158_v35 = vpop.f32.mrb[7].mxu0 }
 0x1e2   :  { %v3907_v36 = vpack.c.bf16 %v3926_v28, %v3925_v25  ;;  %v3357_v37 = vadd.f32 %v3926_v28, %v3356_v19  ;;  %v3406_v38 = vmul.f32 %v3926_v28, %v3926_v28  ;;  %v3928_v39 = vadd.f32 %v3158_v35, %v2706_v34 }
 0x1e3   :  { %v3434_v40 = vadd.f32 %v3433_v21, %v3405_v32  ;;  %v3337_v41 = vadd.f32 %v3927_v33, %v3336_v31  ;;  %v3407_v42 = vmul.f32 %v3927_v33, %v3927_v33 }
 0x1e4   :  { %3319 = vst [vmem:[%s5768_s2 + $0x10] sm:$0xff] %v3907_v36  ;;  %v3455_v43 = vadd.f32 %v3454_v22, %v3406_v38  ;;  %v3908_v44 = vpack.c.bf16 %v3928_v39, %v3927_v33  ;;  %v3358_v45 = vadd.f32 %v3928_v39, %v3357_v37  ;;  %v3408_v46 = vmul.f32 %v3928_v39, %v3928_v39 }
 0x1e5   :  { %v3435_v47 = vadd.f32 %v3434_v40, %v3407_v42  ;;  %v2710_v49 = vpop.f32.mrb[8].mxu1 }
 0x1e6   :  { %3320 = vst [vmem:[%s5768_s2 + $0x18] sm:$0xff] %v3908_v44  ;;  %v3456_v48 = vadd.f32 %v3455_v43, %v3408_v46  ;;  %v3162_v50 = vpop.f32.mrb[8].mxu0  ;;  %v2712_v52 = vpop.f32.mrb[9].mxu1 }
 0x1e7   :  { %v3929_v51 = vadd.f32 %v3162_v50, %v2710_v49  ;;  %v3164_v53 = vpop.f32.mrb[9].mxu0  ;;  %v2714_v55 = vpop.f32.mrb[10].mxu1 }
 0x1e8   :  { %v3930_v54 = vadd.f32 %v3164_v53, %v2712_v52  ;;  %v3166_v56 = vpop.f32.mrb[10].mxu0  ;;  %v2716_v60 = vpop.f32.mrb[11].mxu1 }
 0x1e9   :  { %v3338_v57 = vadd.f32 %v3929_v51, %v3337_v41  ;;  %v3409_v58 = vmul.f32 %v3929_v51, %v3929_v51  ;;  %v3931_v59 = vadd.f32 %v3166_v56, %v2714_v55  ;;  %v3168_v61 = vpop.f32.mrb[11].mxu0 }
 0x1ea   :  { %v3909_v62 = vpack.c.bf16 %v3930_v54, %v3929_v51  ;;  %v3359_v63 = vadd.f32 %v3930_v54, %v3358_v45  ;;  %v3410_v0 = vmul.f32 %v3930_v54, %v3930_v54  ;;  %v3932_v1 = vadd.f32 %v3168_v61, %v2716_v60 }
 0x1eb   :  { %v3436_v2 = vadd.f32 %v3435_v47, %v3409_v58  ;;  %v3339_v3 = vadd.f32 %v3931_v59, %v3338_v57  ;;  %v3411_v4 = vmul.f32 %v3931_v59, %v3931_v59 }
 0x1ec   :  { %3321 = vst [vmem:[%s5768_s2 + $0x20] sm:$0xff] %v3909_v62  ;;  %v3457_v5 = vadd.f32 %v3456_v48, %v3410_v0  ;;  %v3910_v6 = vpack.c.bf16 %v3932_v1, %v3931_v59  ;;  %v3360_v7 = vadd.f32 %v3932_v1, %v3359_v63  ;;  %v3412_v8 = vmul.f32 %v3932_v1, %v3932_v1 }
 0x1ed   :  { %v3437_v9 = vadd.f32 %v3436_v2, %v3411_v4  ;;  %v2720_v11 = vpop.f32.mrb[12].mxu1 }
 0x1ee   :  { %3322 = vst [vmem:[%s5768_s2 + $0x28] sm:$0xff] %v3910_v6  ;;  %v3458_v10 = vadd.f32 %v3457_v5, %v3412_v8  ;;  %v3172_v12 = vpop.f32.mrb[12].mxu0  ;;  %v2722_v14 = vpop.f32.mrb[13].mxu1 }
 0x1ef   :  { %v3933_v13 = vadd.f32 %v3172_v12, %v2720_v11  ;;  %v3174_v15 = vpop.f32.mrb[13].mxu0  ;;  %v2724_v17 = vpop.f32.mrb[14].mxu1 }
 0x1f0   :  { %v3934_v16 = vadd.f32 %v3174_v15, %v2722_v14  ;;  %v3176_v18 = vpop.f32.mrb[14].mxu0  ;;  %v2726_v22 = vpop.f32.mrb[15].mxu1 }
 0x1f1   :  { %v3340_v19 = vadd.f32 %v3933_v13, %v3339_v3  ;;  %v3413_v20 = vmul.f32 %v3933_v13, %v3933_v13  ;;  %v3935_v21 = vadd.f32 %v3176_v18, %v2724_v17  ;;  %v3178_v23 = vpop.f32.mrb[15].mxu0 }
 0x1f2   :  { %v3911_v24 = vpack.c.bf16 %v3934_v16, %v3933_v13  ;;  %v3361_v25 = vadd.f32 %v3934_v16, %v3360_v7  ;;  %v3414_v26 = vmul.f32 %v3934_v16, %v3934_v16  ;;  %v3936_v27 = vadd.f32 %v3178_v23, %v2726_v22 }
 0x1f3   :  { %v3438_v28 = vadd.f32 %v3437_v9, %v3413_v20  ;;  %v3341_v29 = vadd.f32 %v3935_v21, %v3340_v19  ;;  %v3415_v30 = vmul.f32 %v3935_v21, %v3935_v21 }
 0x1f4   :  { %3323 = vst [vmem:[%s5768_s2 + $0x30] sm:$0xff] %v3911_v24  ;;  %v3459_v31 = vadd.f32 %v3458_v10, %v3414_v26  ;;  %v3912_v32 = vpack.c.bf16 %v3936_v27, %v3935_v21  ;;  %v3362_v33 = vadd.f32 %v3936_v27, %v3361_v25  ;;  %v3416_v34 = vmul.f32 %v3936_v27, %v3936_v27 }
 0x1f5   :  { %v3439_v35 = vadd.f32 %v3438_v28, %v3415_v30  ;;  %v2730_v37 = vpop.f32.mrb[16].mxu1 }
 0x1f6   :  { %3324 = vst [vmem:[%s5768_s2 + $0x38] sm:$0xff] %v3912_v32  ;;  %v3460_v36 = vadd.f32 %v3459_v31, %v3416_v34  ;;  %v3182_v38 = vpop.f32.mrb[16].mxu0  ;;  %v2732_v40 = vpop.f32.mrb[17].mxu1 }
 0x1f7   :  { %v3937_v39 = vadd.f32 %v3182_v38, %v2730_v37  ;;  %v3184_v41 = vpop.f32.mrb[17].mxu0  ;;  %v2734_v43 = vpop.f32.mrb[18].mxu1 }
 0x1f8   :  { %v3938_v42 = vadd.f32 %v3184_v41, %v2732_v40  ;;  %v3186_v44 = vpop.f32.mrb[18].mxu0  ;;  %v2736_v48 = vpop.f32.mrb[19].mxu1 }
 0x1f9   :  { %v3342_v45 = vadd.f32 %v3937_v39, %v3341_v29  ;;  %v3417_v46 = vmul.f32 %v3937_v39, %v3937_v39  ;;  %v3939_v47 = vadd.f32 %v3186_v44, %v2734_v43  ;;  %v3188_v49 = vpop.f32.mrb[19].mxu0 }
 0x1fa   :  { %v3913_v50 = vpack.c.bf16 %v3938_v42, %v3937_v39  ;;  %v3363_v51 = vadd.f32 %v3938_v42, %v3362_v33  ;;  %v3418_v52 = vmul.f32 %v3938_v42, %v3938_v42  ;;  %v3940_v53 = vadd.f32 %v3188_v49, %v2736_v48 }
 0x1fb   :  { %v3440_v54 = vadd.f32 %v3439_v35, %v3417_v46  ;;  %v3343_v55 = vadd.f32 %v3939_v47, %v3342_v45  ;;  %v3419_v56 = vmul.f32 %v3939_v47, %v3939_v47 }
 0x1fc   :  { %3325 = vst [vmem:[%s5768_s2 + $0x40] sm:$0xff] %v3913_v50  ;;  %v3461_v57 = vadd.f32 %v3460_v36, %v3418_v52  ;;  %v3914_v58 = vpack.c.bf16 %v3940_v53, %v3939_v47  ;;  %v3364_v59 = vadd.f32 %v3940_v53, %v3363_v51  ;;  %v3420_v60 = vmul.f32 %v3940_v53, %v3940_v53 }
 0x1fd   :  { %v3441_v61 = vadd.f32 %v3440_v54, %v3419_v56  ;;  %v2740_v63 = vpop.f32.mrb[20].mxu1 }
 0x1fe   :  { %3326 = vst [vmem:[%s5768_s2 + $0x48] sm:$0xff] %v3914_v58  ;;  %v3462_v62 = vadd.f32 %v3461_v57, %v3420_v60  ;;  %v3192_v0 = vpop.f32.mrb[20].mxu0  ;;  %v2742_v2 = vpop.f32.mrb[21].mxu1 }
 0x1ff   :  { %v3941_v1 = vadd.f32 %v3192_v0, %v2740_v63  ;;  %v3194_v3 = vpop.f32.mrb[21].mxu0  ;;  %v2744_v5 = vpop.f32.mrb[22].mxu1 }
 0x200   :  { %v3942_v4 = vadd.f32 %v3194_v3, %v2742_v2  ;;  %v3196_v6 = vpop.f32.mrb[22].mxu0  ;;  %v2746_v10 = vpop.f32.mrb[23].mxu1 }
 0x201   :  { %v3344_v7 = vadd.f32 %v3941_v1, %v3343_v55  ;;  %v3421_v8 = vmul.f32 %v3941_v1, %v3941_v1  ;;  %v3943_v9 = vadd.f32 %v3196_v6, %v2744_v5  ;;  %v3198_v11 = vpop.f32.mrb[23].mxu0 }
 0x202   :  { %v3915_v12 = vpack.c.bf16 %v3942_v4, %v3941_v1  ;;  %v3365_v13 = vadd.f32 %v3942_v4, %v3364_v59  ;;  %v3422_v14 = vmul.f32 %v3942_v4, %v3942_v4  ;;  %v3944_v15 = vadd.f32 %v3198_v11, %v2746_v10 }
 0x203   :  { %v3442_v16 = vadd.f32 %v3441_v61, %v3421_v8  ;;  %v3345_v17 = vadd.f32 %v3943_v9, %v3344_v7  ;;  %v3423_v18 = vmul.f32 %v3943_v9, %v3943_v9 }
 0x204   :  { %3327 = vst [vmem:[%s5768_s2 + $0x50] sm:$0xff] %v3915_v12  ;;  %v3463_v19 = vadd.f32 %v3462_v62, %v3422_v14  ;;  %v3916_v20 = vpack.c.bf16 %v3944_v15, %v3943_v9  ;;  %v3366_v21 = vadd.f32 %v3944_v15, %v3365_v13  ;;  %v3424_v22 = vmul.f32 %v3944_v15, %v3944_v15 }
 0x205   :  { %v3443_v23 = vadd.f32 %v3442_v16, %v3423_v18  ;;  %v2750_v25 = vpop.f32.mrb[24].mxu1  ;;  %v4532_v18 = vmov 1966171168  }
 0x206   :  { %3328 = vst [vmem:[%s5768_s2 + $0x58] sm:$0xff] %v3916_v20  ;;  %v3464_v24 = vadd.f32 %v3463_v19, %v3424_v22  ;;  %v3202_v26 = vpop.f32.mrb[24].mxu0  ;;  %v2752_v28 = vpop.f32.mrb[25].mxu1  ;;  %v3381_v19 = vunpack.c.l.s4 %v4532_v18  ;;  %v3383_v20 = vlaneseq }
 0x207   :  { %v3945_v27 = vadd.f32 %v3202_v26, %v2750_v25  ;;  %v3204_v29 = vpop.f32.mrb[25].mxu0  ;;  %v2754_v31 = vpop.f32.mrb[26].mxu1 }
 0x208   :  { %v3946_v30 = vadd.f32 %v3204_v29, %v2752_v28  ;;  %v3206_v32 = vpop.f32.mrb[26].mxu0  ;;  %v2756_v36 = vpop.f32.mrb[27].mxu1  ;;  %v3382_v29 = vunpack.c.0.s8 %v3381_v19  ;;  %vm3397_vm0 = vcmp.lt.s32.totalorder %v3383_v20, 256 }
 0x209   :  { %v3346_v33 = vadd.f32 %v3945_v27, %v3345_v17  ;;  %v3425_v34 = vmul.f32 %v3945_v27, %v3945_v27  ;;  %v3947_v35 = vadd.f32 %v3206_v32, %v2754_v31  ;;  %v3208_v37 = vpop.f32.mrb[27].mxu0 }
 0x20a   :  { %v3917_v38 = vpack.c.bf16 %v3946_v30, %v3945_v27  ;;  %v3367_v39 = vadd.f32 %v3946_v30, %v3366_v21  ;;  %v3426_v40 = vmul.f32 %v3946_v30, %v3946_v30  ;;  %v3948_v41 = vadd.f32 %v3208_v37, %v2756_v36 }
 0x20b   :  { %v3444_v42 = vadd.f32 %v3443_v23, %v3425_v34  ;;  %v3347_v43 = vadd.f32 %v3947_v35, %v3346_v33  ;;  %v3427_v44 = vmul.f32 %v3947_v35, %v3947_v35  ;;  %v3384_v30 = vshrl.u32 %v3383_v20, 7 }
 0x20c   :  { %3329 = vst [vmem:[%s5768_s2 + $0x60] sm:$0xff] %v3917_v38  ;;  %v3465_v45 = vadd.f32 %v3464_v24, %v3426_v40  ;;  %v3918_v46 = vpack.c.bf16 %v3948_v41, %v3947_v35  ;;  %v3368_v47 = vadd.f32 %v3948_v41, %v3367_v39  ;;  %v3428_v48 = vmul.f32 %v3948_v41, %v3948_v41 }
 0x20d   :  { %v3445_v49 = vadd.f32 %v3444_v42, %v3427_v44  ;;  %v2760_v51 = vpop.f32.mrb[28].mxu1  ;;  %v3385_v39 = vsub.s32 %v3382_v29, %v3384_v30 }
 0x20e   :  { %3330 = vst [vmem:[%s5768_s2 + $0x68] sm:$0xff] %v3918_v46  ;;  %v3466_v50 = vadd.f32 %v3465_v45, %v3428_v48  ;;  %v3212_v52 = vpop.f32.mrb[28].mxu0  ;;  %v2762_v54 = vpop.f32.mrb[29].mxu1 }
 0x20f   :  { %v3949_v53 = vadd.f32 %v3212_v52, %v2760_v51  ;;  %v3214_v55 = vpop.f32.mrb[29].mxu0  ;;  %v2764_v57 = vpop.f32.mrb[30].mxu1 }
 0x210   :  { %v3950_v56 = vadd.f32 %v3214_v55, %v2762_v54  ;;  %v3216_v58 = vpop.f32.mrb[30].mxu0  ;;  %v2766_v62 = vpop.f32.mrb[31].mxu1 }
 0x211   :  { %v3348_v59 = vadd.f32 %v3949_v53, %v3347_v43  ;;  %v3429_v60 = vmul.f32 %v3949_v53, %v3949_v53  ;;  %v3951_v61 = vadd.f32 %v3216_v58, %v2764_v57  ;;  %v3218_v63 = vpop.f32.mrb[31].mxu0 }
 0x212   :  { %v3919_v0 = vpack.c.bf16 %v3950_v56, %v3949_v53  ;;  %v3369_v1 = vadd.f32 %v3950_v56, %v3368_v47  ;;  %v3430_v2 = vmul.f32 %v3950_v56, %v3950_v56  ;;  %v3952_v3 = vadd.f32 %v3218_v63, %v2766_v62 }
 0x213   :  { %v3446_v4 = vadd.f32 %v3445_v49, %v3429_v60  ;;  %v3349_v5 = vadd.f32 %v3951_v61, %v3348_v59  ;;  %v3431_v6 = vmul.f32 %v3951_v61, %v3951_v61 }
 0x214   :  { %3331 = vst [vmem:[%s5768_s2 + $0x70] sm:$0xff] %v3919_v0  ;;  %v3467_v7 = vadd.f32 %v3466_v50, %v3430_v2  ;;  %v3920_v8 = vpack.c.bf16 %v3952_v3, %v3951_v61  ;;  %v3370_v9 = vadd.f32 %v3952_v3, %v3369_v1  ;;  %v3432_v10 = vmul.f32 %v3952_v3, %v3952_v3 }
 0x215   :  { %v3350_v11 = vrot.slane %v3349_v5, 4  ;;  %v3447_v12 = vadd.f32 %v3446_v4, %v3431_v6 }
 0x216   :  { %3332 = vst [vmem:[%s5768_s2 + $0x78] sm:$0xff] %v3920_v8  ;;  %v3371_v13 = vrot.slane %v3370_v9, 4  ;;  %v3468_v14 = vadd.f32 %v3467_v7, %v3432_v10 }
 0x217   :  { %v3351_v15 = vadd.f32 %v3350_v11, %v3349_v5  ;;  %v3448_v16 = vrot.slane %v3447_v12, 4 }
 0x218   :  { %v3372_v17 = vadd.f32 %v3371_v13, %v3370_v9  ;;  %v3469_v21 = vrot.slane %v3468_v14, 4 }
 0x219   :  { %v3352_v22 = vrot.slane %v3351_v15, 2  ;;  %v3449_v23 = vadd.f32 %v3448_v16, %v3447_v12 }
 0x21a   :  { %v3373_v24 = vrot.slane %v3372_v17, 2  ;;  %v3470_v25 = vadd.f32 %v3469_v21, %v3468_v14 }
 0x21b   :  { %v3353_v26 = vadd.f32 %v3352_v22, %v3351_v15  ;;  %v3450_v27 = vrot.slane %v3449_v23, 2 }
 0x21c   :  { %v3374_v28 = vadd.f32 %v3373_v24, %v3372_v17  ;;  %v3471_v31 = vrot.slane %v3470_v25, 2 }
 0x21d   :  { %v3354_v32 = vrot.slane %v3353_v26, 1  ;;  %v3451_v33 = vadd.f32 %v3450_v27, %v3449_v23 }
 0x21e   :  { %v3375_v34 = vrot.slane %v3374_v28, 1  ;;  %v3472_v35 = vadd.f32 %v3471_v31, %v3470_v25 }
 0x21f   :  { %v3355_v36 = vadd.f32 %v3354_v32, %v3353_v26  ;;  %v3452_v37 = vrot.slane %v3451_v33, 1 }
 0x220   :  { %v3376_v38 = vadd.f32 %v3375_v34, %v3374_v28  ;;  %v3473_v40 = vrot.slane %v3472_v35, 1 }
 0x221   :  { %v3453_v41 = vadd.f32 %v3452_v37, %v3451_v33 }
 0x222   :  { %v3379_v42 = vcombine.low %v3355_v36, %v3376_v38  ;;  %v3474_v43 = vadd.f32 %v3473_v40, %v3472_v35 }
 0x224   :  { %v3386_v44 = vrot.slane %v3379_v42, %v3385_v39  ;;  %v3477_v45 = vcombine.low %v3453_v41, %v3474_v43 }
 0x226   :  { %v3393_v46 = vrot.slane %v3386_v44, %v3385_v39  ;;  %v3484_v47 = vrot.slane %v3477_v45, %v3385_v39 }
 0x228   :  { %3399 = vst.msk [vmem:[%s5767_s3] ss:$8 sm:$0x3] %vm3397_vm0, %v3393_v46  ;;  %v3491_v48 = vrot.slane %v3484_v47, %v3385_v39 }
 0x22a   :  { %3904 = vst.msk [vmem:[%s5767_s3 + $0x1] ss:$8 sm:$0x3] %vm3397_vm0, %v3491_v48 }

// kernel: discriminator_forward.14
= control target key start
LH: loop header
LB: loop body
LE: loop exit
PB: predicated region body
PF: predicated region fallthrough
CT: control target
= control target key end

     0   :  { %v40_v0 = vlaneseq  ;;  %s304_s0 = inlined_call_operand.vmem [shape: bf16[32,512], index: 0, kind: input, shape index: {}]   ;;  %s305_s1 = inlined_call_operand.vmem [shape: f32[1,512], index: 1, kind: input, shape index: {}]   ;;  %s306_s2 = inlined_call_operand.vmem [shape: f32[1,512], index: 2, kind: input, shape index: {}]   ;;  %s307_s3 = inlined_call_operand.vmem [shape: bf16[32,512], index: 3, kind: output, shape index: {}]  }
   0x1   :  { %v14_v1 = vld [vmem:[%s304_s0] sm:$0xff]  ;;  %v15_v5 = vld [vmem:[%s304_s0 + $0x8] sm:$0xff]  ;;  %v16_v6 = vld [vmem:[%s304_s0 + $0x10] sm:$0xff] }
   0x2   :  { %v22_v2 = vunpack.c.l.bf16 %v14_v1  ;;  %v23_v3 = vunpack.c.h.bf16 %v14_v1  ;;  %v41_v4 = vshrl.u32 %v40_v0, 7  ;;  %v17_v7 = vld [vmem:[%s304_s0 + $0x18] sm:$0xff]  ;;  %v38_v8 = vld [vmem:[%s305_s1] sm:$0xf]  ;;  %v24_v10 = vunpack.c.l.bf16 %v15_v5  ;;  %v19_v51 = vld [vmem:[%s304_s0 + $0x28] sm:$0xff] }
   0x3   :  { %v76_v9 = vld [vmem:[%s306_s2] sm:$0xf]  ;;  %v25_v11 = vunpack.c.h.bf16 %v15_v5  ;;  %v26_v12 = vunpack.c.l.bf16 %v16_v6  ;;  %v27_v13 = vunpack.c.h.bf16 %v16_v6  ;;  %v28_v19 = vunpack.c.l.bf16 %v17_v7  ;;  %v20_v56 = vld [vmem:[%s304_s0 + $0x30] sm:$0xff]  ;;  %v21_v61 = vld [vmem:[%s304_s0 + $0x38] sm:$0xff] }
   0x4   :  { %v18_v14 = vld [vmem:[%s304_s0 + $0x20] sm:$0xff]  ;;  %v42_v15 = vsub.s32 0, %v41_v4  ;;  %v46_v16 = vsub.s32 1, %v41_v4  ;;  %v50_v17 = vsub.s32 2, %v41_v4  ;;  %v54_v18 = vsub.s32 3, %v41_v4 }
   0x5   :  { %v29_v20 = vunpack.c.h.bf16 %v17_v7  ;;  %v30_v21 = vunpack.c.l.bf16 %v18_v14  ;;  %v31_v22 = vunpack.c.h.bf16 %v18_v14  ;;  %v32_v0 = vunpack.c.l.bf16 %v19_v51 }
   0x6   :  { %v43_v23 = vrot.slane %v38_v8, %v42_v15  ;;  %v47_v24 = vrot.slane %v38_v8, %v46_v16  ;;  %v247_v25 = vrot.slane %v76_v9, %v42_v15  ;;  %v249_v26 = vrot.slane %v76_v9, %v46_v16 }
   0x7   :  { %v51_v27 = vrot.slane %v38_v8, %v50_v17  ;;  %v55_v28 = vrot.slane %v38_v8, %v54_v18  ;;  %v251_v29 = vrot.slane %v76_v9, %v50_v17  ;;  %v253_v30 = vrot.slane %v76_v9, %v54_v18 }
   0x8   :  { %v60_v31 = vmul.f32 %v43_v23, %v22_v2  ;;  %v61_v32 = vmul.f32 %v47_v24, %v23_v3  ;;  %v64_v33 = vmul.f32 %v43_v23, %v26_v12  ;;  %v65_v34 = vmul.f32 %v47_v24, %v27_v13 }
   0x9   :  { %v62_v35 = vmul.f32 %v51_v27, %v24_v10  ;;  %v63_v36 = vmul.f32 %v55_v28, %v25_v11  ;;  %v66_v37 = vmul.f32 %v51_v27, %v28_v19  ;;  %v67_v38 = vmul.f32 %v55_v28, %v29_v20 }
   0xa   :  { %v98_v39 = vadd.f32 %v247_v25, %v60_v31  ;;  %v99_v40 = vadd.f32 %v249_v26, %v61_v32  ;;  %v102_v41 = vadd.f32 %v247_v25, %v64_v33  ;;  %v103_v42 = vadd.f32 %v249_v26, %v65_v34 }
   0xb   :  { %v100_v43 = vadd.f32 %v251_v29, %v62_v35  ;;  %v101_v44 = vadd.f32 %v253_v30, %v63_v36  ;;  %v104_v45 = vadd.f32 %v251_v29, %v66_v37  ;;  %v105_v46 = vadd.f32 %v253_v30, %v67_v38 }
   0xc   :  { %v114_v47 = vmax.f32 %v98_v39, 0.0  ;;  %v115_v48 = vmax.f32 %v99_v40, 0.0  ;;  %v118_v49 = vmax.f32 %v102_v41, 0.0  ;;  %v119_v50 = vmax.f32 %v103_v42, 0.0 }
   0xd   :  { %v116_v52 = vmax.f32 %v100_v43, 0.0  ;;  %v117_v53 = vmax.f32 %v101_v44, 0.0  ;;  %v120_v54 = vmax.f32 %v104_v45, 0.0  ;;  %v121_v55 = vmax.f32 %v105_v46, 0.0 }
   0xe   :  { %v198_v57 = vpack.c.bf16 %v115_v48, %v114_v47  ;;  %v200_v58 = vpack.c.bf16 %v119_v50, %v118_v49  ;;  %v68_v59 = vmul.f32 %v43_v23, %v30_v21  ;;  %v69_v60 = vmul.f32 %v47_v24, %v31_v22 }
   0xf   :  { %v199_v62 = vpack.c.bf16 %v117_v53, %v116_v52  ;;  %v201_v63 = vpack.c.bf16 %v121_v55, %v120_v54  ;;  %v33_v1 = vunpack.c.h.bf16 %v19_v51  ;;  %v34_v4 = vunpack.c.l.bf16 %v20_v56 }
  0x10   :  { %178 = vst [vmem:[%s307_s3] sm:$0xff] %v198_v57  ;;  %180 = vst [vmem:[%s307_s3 + $0x10] sm:$0xff] %v200_v58  ;;  %v106_v2 = vadd.f32 %v247_v25, %v68_v59  ;;  %v107_v3 = vadd.f32 %v249_v26, %v69_v60  ;;  %v35_v5 = vunpack.c.h.bf16 %v20_v56  ;;  %v70_v6 = vmul.f32 %v51_v27, %v32_v0 }
  0x11   :  { %179 = vst [vmem:[%s307_s3 + $0x8] sm:$0xff] %v199_v62  ;;  %181 = vst [vmem:[%s307_s3 + $0x18] sm:$0xff] %v201_v63  ;;  %v71_v7 = vmul.f32 %v55_v28, %v33_v1  ;;  %v36_v8 = vunpack.c.l.bf16 %v21_v61  ;;  %v37_v9 = vunpack.c.h.bf16 %v21_v61  ;;  %v72_v12 = vmul.f32 %v43_v23, %v34_v4 }
  0x12   :  { %v122_v10 = vmax.f32 %v106_v2, 0.0  ;;  %v123_v11 = vmax.f32 %v107_v3, 0.0  ;;  %v73_v13 = vmul.f32 %v47_v24, %v35_v5  ;;  %v108_v14 = vadd.f32 %v251_v29, %v70_v6 }
  0x13   :  { %v109_v15 = vadd.f32 %v253_v30, %v71_v7  ;;  %v74_v16 = vmul.f32 %v51_v27, %v36_v8  ;;  %v75_v17 = vmul.f32 %v55_v28, %v37_v9  ;;  %v110_v19 = vadd.f32 %v247_v25, %v72_v12 }
  0x14   :  { %v202_v18 = vpack.c.bf16 %v123_v11, %v122_v10  ;;  %v111_v20 = vadd.f32 %v249_v26, %v73_v13  ;;  %v124_v21 = vmax.f32 %v108_v14, 0.0 }
  0x15   :  { %v125_v22 = vmax.f32 %v109_v15, 0.0  ;;  %v112_v31 = vadd.f32 %v251_v29, %v74_v16  ;;  %v113_v32 = vadd.f32 %v253_v30, %v75_v17  ;;  %v126_v23 = vmax.f32 %v110_v19, 0.0 }
  0x16   :  { %182 = vst [vmem:[%s307_s3 + $0x20] sm:$0xff] %v202_v18  ;;  %v127_v24 = vmax.f32 %v111_v20, 0.0 }
  0x17   :  { %v203_v33 = vpack.c.bf16 %v125_v22, %v124_v21  ;;  %v128_v27 = vmax.f32 %v112_v31, 0.0  ;;  %v129_v28 = vmax.f32 %v113_v32, 0.0 }
  0x18   :  { %v204_v34 = vpack.c.bf16 %v127_v24, %v126_v23 }
  0x19   :  { %183 = vst [vmem:[%s307_s3 + $0x28] sm:$0xff] %v203_v33  ;;  %v205_v25 = vpack.c.bf16 %v129_v28, %v128_v27 }
  0x1a   :  { %184 = vst [vmem:[%s307_s3 + $0x30] sm:$0xff] %v204_v34 }
  0x1b   :  { %185 = vst [vmem:[%s307_s3 + $0x38] sm:$0xff] %v205_v25 }

// kernel: discriminator_forward.15
= control target key start
LH: loop header
LB: loop body
LE: loop exit
PB: predicated region body
PF: predicated region fallthrough
CT: control target
= control target key end

     0   :  { %v151_v0 = vlaneseq  ;;  %vm865_vm0 = vcmask 7168   ;;  %s1578_s1 = inlined_call_operand.vmem [shape: bf16[1,8192], index: 1, kind: input, shape index: {}]   ;;  %s1579_s0 = inlined_call_operand.vmem [shape: bf16[8,8192], index: 0, kind: input, shape index: {}]   ;;  %s1580_s2 = inlined_call_operand.<no memory space> [shape: f32[1], index: 2, kind: input, shape index: {}]   ;;  %s1581_s3 = inlined_call_operand.vmem [shape: f32[8,1], index: 3, kind: output, shape index: {}]  }
   0x1   :  { %v116_v1 = vld [vmem:[%s1578_s1 + $0x28] sm:$0xff]  ;;  %v117_v2 = vld [vmem:[%s1578_s1 + $0x30] sm:$0xff]  ;;  %v118_v4 = vld [vmem:[%s1578_s1 + $0x38] sm:$0xff] }
   0x2   :  { %v152_v3 = vshrl.u32 %v151_v0, 7  ;;  %v905_v5 = vunpack.c.l.bf16 %v116_v1  ;;  %v907_v6 = vunpack.c.h.bf16 %v116_v1  ;;  %v909_v7 = vunpack.c.l.bf16 %v117_v2  ;;  %v960_v31 = vld [vmem:[%s1579_s0] sm:$0xff]  ;;  %v965_v32 = vld [vmem:[%s1579_s0 + $0x8] sm:$0xff]  ;;  %v978_v37 = vld [vmem:[%s1579_s0 + $0x10] sm:$0xff] }
   0x3   :  { %v919_v12 = vunpack.c.h.bf16 %v117_v2  ;;  %v921_v13 = vunpack.c.l.bf16 %v118_v4  ;;  %v923_v14 = vunpack.c.h.bf16 %v118_v4  ;;  %1599 = vst [vmem:[#allocation7_spill] sm:$0xff] %v978_v37  ;;  %v983_v38 = vld [vmem:[%s1579_s0 + $0x88] sm:$0xff]  ;;  %v115_v39 = vld [vmem:[%s1578_s1 + $0x20] sm:$0xff]  ;;  %v999_v44 = vld [vmem:[%s1579_s0 + $0x90] sm:$0xff] }
   0x4   :  { %v911_v8 = vsub.s32 0, %v152_v3  ;;  %v913_v9 = vsub.s32 2, %v152_v3  ;;  %v915_v10 = vsub.s32 4, %v152_v3  ;;  %v917_v11 = vsub.s32 6, %v152_v3  ;;  %v1004_v45 = vld [vmem:[%s1579_s0 + $0x98] sm:$0xff]  ;;  %v111_v53 = vld [vmem:[%s1578_s1] sm:$0xff] }
   0x5   :  { %v1016_v54 = vunpack.c.l.bf16 %v115_v39  ;;  %v1021_v55 = vld [vmem:[%s1579_s0 + $0xa0] sm:$0xff]  ;;  %v1026_v56 = vld [vmem:[%s1579_s0 + $0xa8] sm:$0xff]  ;;  %v1031_v60 = vunpack.c.h.bf16 %v115_v39  ;;  %v1036_v61 = vld [vmem:[%s1579_s0 + $0xb0] sm:$0xff]  ;;  %v1050_v3 = vunpack.c.l.bf16 %v111_v53  ;;  %v1066_v47 = vunpack.c.h.bf16 %v111_v53 }
   0x6   :  { %1595 = vst [vmem:[#allocation3_spill] sm:$0xff] %v911_v8  ;;  %1596 = vst [vmem:[#allocation4_spill] sm:$0xff] %v913_v9  ;;  %v314_v15 = vrot.slane %v905_v5, %v911_v8  ;;  %v318_v16 = vrot.slane %v905_v5, %v913_v9  ;;  %v322_v17 = vrot.slane %v905_v5, %v915_v10  ;;  %v1041_v62 = vld [vmem:[%s1579_s0 + $0xb8] sm:$0xff]  ;;  %v45_v49 = vld [vmem:[%s1579_s0 + $0xf0] sm:$0xff] }
   0x7   :  { %1597 = vst [vmem:[#allocation5_spill] sm:$0xff] %v915_v10  ;;  %1598 = vst [vmem:[#allocation6_spill] sm:$0xff] %v917_v11  ;;  %v326_v18 = vrot.slane %v905_v5, %v917_v11  ;;  %v330_v19 = vrot.slane %v907_v6, %v911_v8  ;;  %v334_v20 = vrot.slane %v907_v6, %v913_v9 }
   0x8   :  { %v338_v21 = vrot.slane %v907_v6, %v915_v10  ;;  %v342_v22 = vrot.slane %v907_v6, %v917_v11  ;;  %v346_v23 = vrot.slane %v909_v7, %v911_v8  ;;  %v350_v24 = vrot.slane %v909_v7, %v913_v9  ;;  %1600 = vst [vmem:[#allocation8_spill] sm:$0xff] %v1016_v54 }
   0x9   :  { %v354_v25 = vrot.slane %v909_v7, %v915_v10  ;;  %v358_v26 = vrot.slane %v909_v7, %v917_v11  ;;  %v362_v27 = vrot.slane %v919_v12, %v911_v8  ;;  %v366_v28 = vrot.slane %v919_v12, %v913_v9 }
   0xa   :  { %v370_v29 = vrot.slane %v919_v12, %v915_v10  ;;  %v374_v30 = vrot.slane %v919_v12, %v917_v11  ;;  %v378_v33 = vrot.slane %v921_v13, %v911_v8  ;;  %v382_v34 = vrot.slane %v921_v13, %v913_v9 }
   0xb   :  { %v386_v35 = vrot.slane %v921_v13, %v915_v10  ;;  %v390_v36 = vrot.slane %v921_v13, %v917_v11  ;;  %v394_v40 = vrot.slane %v923_v14, %v911_v8  ;;  %v398_v41 = vrot.slane %v923_v14, %v913_v9 }
   0xc   :  { %v402_v42 = vrot.slane %v923_v14, %v915_v10  ;;  %v406_v43 = vrot.slane %v923_v14, %v917_v11  ;;  %v286_v0 = vrot.slane %v1016_v54, %v913_v9  ;;  %v290_v1 = vrot.slane %v1016_v54, %v915_v10  ;;  %v44_v14 = vld [vmem:[%s1579_s0 + $0xe8] sm:$0xff] }
   0xd   :  { %v294_v2 = vrot.slane %v1016_v54, %v917_v11  ;;  %v302_v4 = vrot.slane %v1031_v60, %v913_v9  ;;  %v306_v39 = vrot.slane %v1031_v60, %v915_v10  ;;  %v310_v51 = vrot.slane %v1031_v60, %v917_v11 }
   0xe   :  { %v1069_v46 = vrot.slane %v286_v0, %v911_v8  ;;  %v1072_v50 = vrot.slane %v290_v1, %v911_v8  ;;  %v154_v58 = vrot.slane %v1050_v3, %v911_v8  ;;  %v1092_v0 = vrot.slane %v314_v15, %v911_v8 }
   0xf   :  { %v1075_v63 = vrot.slane %v294_v2, %v911_v8  ;;  %v1080_v57 = vrot.slane %v302_v4, %v911_v8  ;;  %v1083_v52 = vrot.slane %v306_v39, %v911_v8  ;;  %v1086_v53 = vrot.slane %v310_v51, %v911_v8 }
  0x10   :  { %1601 = vst [vmem:[#allocation9_spill] sm:$0xff] %v1069_v46  ;;  %v1098_v1 = vrot.slane %v318_v16, %v911_v8  ;;  %v1104_v2 = vrot.slane %v322_v17, %v911_v8  ;;  %v1110_v51 = vrot.slane %v326_v18, %v911_v8  ;;  %v1116_v15 = vrot.slane %v330_v19, %v911_v8 }
  0x11   :  { %v1122_v16 = vrot.slane %v334_v20, %v911_v8  ;;  %v1128_v17 = vrot.slane %v338_v21, %v911_v8  ;;  %v1134_v5 = vrot.slane %v342_v22, %v911_v8  ;;  %v1140_v18 = vrot.slane %v346_v23, %v911_v8  ;;  %v1163_v21 = vld [vmem:[%s1579_s0 + $0xc0] sm:$0xff] }
  0x12   :  { %v1146_v19 = vrot.slane %v350_v24, %v911_v8  ;;  %v1152_v20 = vrot.slane %v354_v25, %v911_v8  ;;  %v1158_v6 = vrot.slane %v358_v26, %v911_v8  ;;  %v1169_v22 = vrot.slane %v362_v27, %v911_v8  ;;  %v1192_v25 = vld [vmem:[%s1579_s0 + $0xc8] sm:$0xff] }
  0x13   :  { %v1175_v23 = vrot.slane %v366_v28, %v911_v8  ;;  %v1181_v7 = vrot.slane %v370_v29, %v911_v8  ;;  %v1187_v24 = vrot.slane %v374_v30, %v911_v8  ;;  %v1198_v26 = vrot.slane %v378_v33, %v911_v8  ;;  %v1221_v29 = vld [vmem:[%s1579_s0 + $0xd0] sm:$0xff]  ;;  %v1226_v30 = vld [vmem:[%s1579_s0 + $0xd8] sm:$0xff] }
  0x14   :  { %1602 = vst [vmem:[#allocation10_spill] sm:$0xff] %v1169_v22  ;;  %v1204_v27 = vrot.slane %v382_v34, %v911_v8  ;;  %v1210_v12 = vrot.slane %v386_v35, %v911_v8  ;;  %v1216_v28 = vrot.slane %v390_v36, %v911_v8  ;;  %v1232_v33 = vrot.slane %v394_v40, %v911_v8  ;;  %v1255_v36 = vld [vmem:[%s1579_s0 + $0xe0] sm:$0xff] }
  0x15   :  { %1603 = vst [vmem:[#allocation11_spill] sm:$0xff] %v1175_v23  ;;  %1604 = vst [vmem:[#allocation12_spill] sm:$0xff] %v1181_v7  ;;  %v1238_v13 = vrot.slane %v398_v41, %v911_v8  ;;  %v1244_v34 = vrot.slane %v402_v42, %v911_v8  ;;  %v1250_v35 = vrot.slane %v406_v43, %v911_v8  ;;  %v94_v40 = vunpack.c.h.bf16 %v1041_v62 }
  0x16   :  { %1605 = vst [vmem:[#allocation13_spill] sm:$0xff] %v1187_v24  ;;  %1606 = vst [vmem:[#allocation14_spill] sm:$0xff] %v1198_v26  ;;  %v95_v41 = vunpack.c.l.bf16 %v1163_v21  ;;  %v158_v4 = vrot.slane %v1050_v3, %v913_v9  ;;  %v162_v42 = vrot.slane %v1050_v3, %v915_v10  ;;  %v96_v43 = vunpack.c.h.bf16 %v1163_v21  ;;  %v46_v21 = vld [vmem:[%s1579_s0 + $0xf8] sm:$0xff] }
  0x17   :  { %1607 = vst [vmem:[#allocation15_spill] sm:$0xff] %v1204_v27  ;;  %1608 = vst [vmem:[#allocation16_spill] sm:$0xff] %v1210_v12  ;;  %v97_v39 = vunpack.c.l.bf16 %v1192_v25  ;;  %v98_v48 = vunpack.c.h.bf16 %v1192_v25  ;;  %v298_v59 = vrot.slane %v1031_v60, %v911_v8  ;;  %v99_v46 = vunpack.c.l.bf16 %v1221_v29  ;;  %v1285_v60 = vld [vmem:[%s1578_s1 + $0x8] sm:$0xff] }
  0x18   :  { %1609 = vst [vmem:[#allocation17_spill] sm:$0xff] %v1216_v28  ;;  %1610 = vst [vmem:[#allocation18_spill] sm:$0xff] %v1232_v33  ;;  %v100_v54 = vunpack.c.h.bf16 %v1221_v29  ;;  %v101_v37 = vunpack.c.l.bf16 %v1226_v30  ;;  %v103_v25 = vunpack.c.l.bf16 %v1255_v36  ;;  %v170_v29 = vrot.slane %v1066_v47, %v911_v8 }
  0x19   :  { %1611 = vst [vmem:[#allocation19_spill] sm:$0xff] %v1238_v13  ;;  %1612 = vst [vmem:[#allocation20_spill] sm:$0xff] %v1244_v34  ;;  %v166_v34 = vrot.slane %v1050_v3, %v917_v11  ;;  %v474_v13 = vrot.slane %v154_v58, %v911_v8  ;;  %v105_v33 = vunpack.c.l.bf16 %v44_v14  ;;  %v478_v28 = vrot.slane %v158_v4, %v911_v8 }
  0x1a   :  { %1613 = vst [vmem:[#allocation21_spill] sm:$0xff] %v1250_v35  ;;  %v102_v35 = vunpack.c.h.bf16 %v1226_v30  ;;  %1614 = vst [vmem:[#allocation22_spill] sm:$0xff] %v1285_v60  ;;  %v104_v30 = vunpack.c.h.bf16 %v1255_v36  ;;  %v482_v12 = vrot.slane %v162_v42, %v911_v8  ;;  %v106_v27 = vunpack.c.h.bf16 %v44_v14 }
  0x1b   :  { %v107_v26 = vunpack.c.l.bf16 %v45_v49  ;;  %v108_v24 = vunpack.c.h.bf16 %v45_v49  ;;  %v618_v7 = vrot.slane %v298_v59, %v911_v8  ;;  %v109_v23 = vunpack.c.l.bf16 %v46_v21 }
  0x1c   :  { %v110_v22 = vunpack.c.h.bf16 %v46_v21  ;;  %v1297_v3 = vunpack.c.l.bf16 %v1285_v60  ;;  %v174_v58 = vrot.slane %v1066_v47, %v913_v9  ;;  %v178_v36 = vrot.slane %v1066_v47, %v915_v10 }
  0x1d   :  { %v486_v4 = vrot.slane %v166_v34, %v911_v8  ;;  %v490_v42 = vrot.slane %v170_v29, %v911_v8  ;;  %v1616_v14 = vunpack.c.l.bf16 %v960_v31  ;;  %v1617_v59 = vunpack.c.h.bf16 %v960_v31 }
  0x1e   :  { %1615 = vst [vmem:[#allocation23_spill] sm:$0xff] %v1297_v3  ;;  %v1618_v21 = vunpack.c.l.bf16 %v965_v32  ;;  %v1619_v3 = vunpack.c.l.bf16 %v983_v38  ;;  %v1620_v10 = vunpack.c.h.bf16 %v983_v38  ;;  %v1621_v29 = vunpack.c.l.bf16 %v999_v44 }
  0x1f   :  { %v727_v49 = vmul.f32 %v474_v13, %v1616_v14  ;;  %v728_v11 = vmul.f32 %v478_v28, %v1617_v59  ;;  %v1622_v31 = vunpack.c.h.bf16 %v999_v44  ;;  %v1626_v44 = vunpack.c.h.bf16 %v1021_v55 }
  0x20   :  { %v729_v60 = vmul.f32 %v482_v12, %v1618_v21  ;;  %v1314_v9 = vmul.f32 %v1072_v50, %v1619_v3  ;;  %v1319_v34 = vmul.f32 %v1075_v63, %v1620_v10  ;;  %v1323_v8 = vmul.f32 %v618_v7, %v1621_v29 }
  0x21   :  { %v1328_v28 = vmul.f32 %v1080_v57, %v1622_v31  ;;  %v1623_v12 = vunpack.c.l.bf16 %v1004_v45  ;;  %v1624_v50 = vunpack.c.h.bf16 %v1004_v45  ;;  %v1625_v10 = vunpack.c.l.bf16 %v1021_v55 }
  0x22   :  { %v1348_v57 = vmul.f32 %v1098_v1, %v1626_v44  ;;  %v1627_v7 = vunpack.c.l.bf16 %v1026_v56  ;;  %v1628_v45 = vunpack.c.h.bf16 %v1026_v56  ;;  %v1629_v3 = vunpack.c.l.bf16 %v1036_v61 }
  0x23   :  { %v1333_v13 = vmul.f32 %v1083_v52, %v1623_v12  ;;  %v1338_v38 = vmul.f32 %v1086_v53, %v1624_v50  ;;  %v1343_v63 = vmul.f32 %v1092_v0, %v1625_v10  ;;  %v1630_v55 = vunpack.c.h.bf16 %v1036_v61  ;;  %v1642_v50 = vld [vmem:[#allocation20_spill] sm:$0xff] }
  0x24   :  { %v1353_v52 = vmul.f32 %v1104_v2, %v1627_v7  ;;  %v1358_v53 = vmul.f32 %v1110_v51, %v1628_v45  ;;  %v1363_v0 = vmul.f32 %v1116_v15, %v1629_v3  ;;  %v1631_v14 = vunpack.c.l.bf16 %v1041_v62 }
  0x25   :  { %v1368_v1 = vmul.f32 %v1122_v16, %v1630_v55  ;;  %v1376_v56 = vmul.f32 %v1134_v5, %v94_v40  ;;  %v1379_v51 = vmul.f32 %v1140_v18, %v95_v41  ;;  %v1382_v59 = vmul.f32 %v1146_v19, %v96_v43  ;;  %v1632_v16 = vld [vmem:[#allocation10_spill] sm:$0xff]  ;;  %v1634_v5 = vld [vmem:[#allocation12_spill] sm:$0xff]  ;;  %v1635_v18 = vld [vmem:[#allocation13_spill] sm:$0xff] }
  0x26   :  { %v1373_v2 = vmul.f32 %v1128_v17, %v1631_v14  ;;  %v1385_v15 = vmul.f32 %v1152_v20, %v97_v39  ;;  %v1388_v61 = vmul.f32 %v1158_v6, %v98_v48  ;;  %v1391_v62 = vmul.f32 %v1632_v16, %v99_v46  ;;  %v1633_v17 = vld [vmem:[#allocation11_spill] sm:$0xff]  ;;  %v18_v19 = vld [vmem:[%s1579_s0 + $0x18] sm:$0xff]  ;;  %v1638_v46 = vld [vmem:[#allocation16_spill] sm:$0xff] }
  0x27   :  { %v1394_v21 = vmul.f32 %v1633_v17, %v100_v54  ;;  %v1397_v40 = vmul.f32 %v1634_v5, %v101_v37  ;;  %v1400_v41 = vmul.f32 %v1635_v18, %v102_v35  ;;  %v1636_v20 = vld [vmem:[#allocation14_spill] sm:$0xff]  ;;  %v1637_v48 = vld [vmem:[#allocation15_spill] sm:$0xff]  ;;  %v1412_v39 = vmul.f32 %v1638_v46, %v105_v33  ;;  %v1639_v54 = vld [vmem:[#allocation17_spill] sm:$0xff] }
  0x28   :  { %v1406_v43 = vmul.f32 %v1636_v20, %v103_v25  ;;  %v1409_v6 = vmul.f32 %v1637_v48, %v104_v30  ;;  %v1415_v29 = vmul.f32 %v1639_v54, %v106_v27  ;;  %v1640_v37 = vld [vmem:[#allocation18_spill] sm:$0xff]  ;;  %v1641_v35 = vld [vmem:[#allocation19_spill] sm:$0xff]  ;;  %v1424_v10 = vmul.f32 %v1642_v50, %v109_v23  ;;  %v1643_v25 = vld [vmem:[#allocation21_spill] sm:$0xff] }
  0x29   :  { %v1418_v31 = vmul.f32 %v1640_v37, %v107_v26  ;;  %v1421_v12 = vmul.f32 %v1641_v35, %v108_v24  ;;  %v1427_v44 = vmul.f32 %v1643_v25, %v110_v22  ;;  %v1644_v30 = vld [vmem:[#allocation6_spill] sm:$0xff]  ;;  %v1645_v33 = vld [vmem:[#allocation3_spill] sm:$0xff]  ;;  %v1646_v27 = vunpack.c.h.bf16 %v965_v32  ;;  %v1653_v37 = vld [vmem:[#allocation5_spill] sm:$0xff] }
  0x2a   :  { %v182_v7 = vrot.slane %v1066_v47, %v1644_v30  ;;  %v494_v45 = vrot.slane %v174_v58, %v1645_v33  ;;  %v791_v55 = vadd.f32 %v728_v11, %v727_v49  ;;  %v53_v26 = vunpack.c.l.bf16 %v18_v19  ;;  %v19_v24 = vld [vmem:[%s1579_s0 + $0x20] sm:$0xff]  ;;  %v1650_v58 = vld [vmem:[#allocation4_spill] sm:$0xff]  ;;  %v1652_v46 = vld [vmem:[#allocation22_spill] sm:$0xff] }
  0x2b   :  { %v730_v3 = vmul.f32 %v486_v4, %v1646_v27  ;;  %v1647_v23 = vld [vmem:[#allocation23_spill] sm:$0xff]  ;;  %v498_v22 = vrot.slane %v178_v36, %v1645_v33  ;;  %v54_v18 = vunpack.c.h.bf16 %v18_v19  ;;  %v55_v48 = vunpack.c.l.bf16 %v19_v24  ;;  %v20_v36 = vld [vmem:[%s1579_s0 + $0x28] sm:$0xff] }
  0x2c   :  { %v186_v14 = vrot.slane %v1647_v23, %v1645_v33  ;;  %v1648_v16 = vld [vmem:[#allocation7_spill] sm:$0xff]  ;;  %v792_v47 = vadd.f32 %v791_v55, %v729_v60  ;;  %v190_v32 = vrot.slane %v1647_v23, %v1650_v58  ;;  %v502_v11 = vrot.slane %v182_v7, %v1645_v33  ;;  %v21_v55 = vld [vmem:[%s1579_s0 + $0x30] sm:$0xff] }
  0x2d   :  { %v1649_v17 = vunpack.c.l.bf16 %v1648_v16  ;;  %v1651_v4 = vunpack.c.h.bf16 %v1648_v16  ;;  %v122_v54 = vunpack.c.h.bf16 %v1652_v46  ;;  %v194_v60 = vrot.slane %v1647_v23, %v1653_v37  ;;  %v113_v16 = vld [vmem:[%s1578_s1 + $0x10] sm:$0xff] }
  0x2e   :  { %v793_v20 = vadd.f32 %v792_v47, %v730_v3  ;;  %v733_v19 = vmul.f32 %v498_v22, %v53_v26  ;;  %v56_v50 = vunpack.c.h.bf16 %v19_v24  ;;  %v198_v25 = vrot.slane %v1647_v23, %v1644_v30 }
  0x2f   :  { %v731_v5 = vmul.f32 %v490_v42, %v1649_v17  ;;  %v732_v49 = vmul.f32 %v494_v45, %v1651_v4  ;;  %v506_v42 = vrot.slane %v186_v14, %v1645_v33  ;;  %v510_v7 = vrot.slane %v190_v32, %v1645_v33  ;;  %v22_v4 = vld [vmem:[%s1579_s0 + $0x38] sm:$0xff] }
  0x30   :  { %v734_v45 = vmul.f32 %v502_v11, %v54_v18  ;;  %v57_v3 = vunpack.c.l.bf16 %v20_v36  ;;  %v202_v26 = vrot.slane %v122_v54, %v1645_v33  ;;  %v514_v24 = vrot.slane %v194_v60, %v1645_v33 }
  0x31   :  { %v794_v35 = vadd.f32 %v793_v20, %v731_v5  ;;  %v735_v14 = vmul.f32 %v506_v42, %v55_v48  ;;  %v58_v23 = vunpack.c.h.bf16 %v20_v36  ;;  %v206_v17 = vrot.slane %v122_v54, %v1650_v58 }
  0x32   :  { %v518_v5 = vrot.slane %v198_v25, %v1645_v33  ;;  %v736_v47 = vmul.f32 %v510_v7, %v56_v50  ;;  %v59_v32 = vunpack.c.l.bf16 %v21_v55  ;;  %v123_v11 = vunpack.c.l.bf16 %v113_v16  ;;  %v23_v25 = vld [vmem:[%s1579_s0 + $0x40] sm:$0xff] }
  0x33   :  { %v795_v27 = vadd.f32 %v794_v35, %v732_v49  ;;  %v210_v49 = vrot.slane %v122_v54, %v1653_v37  ;;  %v522_v20 = vrot.slane %v202_v26, %v1645_v33  ;;  %v737_v46 = vmul.f32 %v514_v24, %v57_v3 }
  0x34   :  { %v60_v60 = vunpack.c.h.bf16 %v21_v55  ;;  %v214_v36 = vrot.slane %v122_v54, %v1644_v30  ;;  %v526_v42 = vrot.slane %v206_v17, %v1645_v33  ;;  %v61_v50 = vunpack.c.l.bf16 %v22_v4  ;;  %v24_v17 = vld [vmem:[%s1579_s0 + $0x48] sm:$0xff] }
  0x35   :  { %v796_v22 = vadd.f32 %v795_v27, %v733_v19  ;;  %v738_v19 = vmul.f32 %v518_v5, %v58_v23  ;;  %v218_v7 = vrot.slane %v123_v11, %v1645_v33  ;;  %v739_v27 = vmul.f32 %v522_v20, %v59_v32 }
  0x36   :  { %v62_v3 = vunpack.c.h.bf16 %v22_v4  ;;  %v222_v55 = vrot.slane %v123_v11, %v1650_v58  ;;  %v534_v54 = vrot.slane %v214_v36, %v1645_v33  ;;  %v740_v24 = vmul.f32 %v526_v42, %v60_v60  ;;  %v114_v36 = vld [vmem:[%s1578_s1 + $0x18] sm:$0xff] }
  0x37   :  { %v797_v18 = vadd.f32 %v796_v22, %v734_v45  ;;  %v530_v45 = vrot.slane %v210_v49, %v1645_v33  ;;  %v63_v22 = vunpack.c.l.bf16 %v23_v25  ;;  %v124_v23 = vunpack.c.h.bf16 %v113_v16  ;;  %v25_v16 = vld [vmem:[%s1579_s0 + $0x50] sm:$0xff] }
  0x38   :  { %v226_v5 = vrot.slane %v123_v11, %v1653_v37  ;;  %v64_v49 = vunpack.c.h.bf16 %v23_v25  ;;  %v230_v4 = vrot.slane %v123_v11, %v1644_v30  ;;  %v542_v20 = vrot.slane %v222_v55, %v1645_v33  ;;  %v26_v55 = vld [vmem:[%s1579_s0 + $0x58] sm:$0xff] }
  0x39   :  { %v798_v48 = vadd.f32 %v797_v18, %v735_v14  ;;  %v741_v18 = vmul.f32 %v530_v45, %v61_v50  ;;  %v65_v60 = vunpack.c.l.bf16 %v24_v17  ;;  %v234_v42 = vrot.slane %v124_v23, %v1645_v33 }
  0x3a   :  { %v66_v11 = vunpack.c.h.bf16 %v24_v17  ;;  %v238_v25 = vrot.slane %v124_v23, %v1650_v58  ;;  %v744_v45 = vmul.f32 %v542_v20, %v64_v49  ;;  %v246_v17 = vrot.slane %v124_v23, %v1644_v30 }
  0x3b   :  { %v799_v35 = vadd.f32 %v798_v48, %v736_v47  ;;  %v538_v47 = vrot.slane %v218_v7, %v1645_v33  ;;  %v550_v7 = vrot.slane %v230_v4, %v1645_v33  ;;  %v69_v49 = vunpack.c.l.bf16 %v26_v55  ;;  %v27_v4 = vld [vmem:[%s1579_s0 + $0x60] sm:$0xff] }
  0x3d   :  { %v800_v26 = vadd.f32 %v799_v35, %v737_v46  ;;  %v742_v46 = vmul.f32 %v534_v54, %v62_v3  ;;  %v743_v35 = vmul.f32 %v538_v47, %v63_v22  ;;  %v125_v3 = vunpack.c.l.bf16 %v114_v36 }
  0x3e   :  { %v242_v54 = vrot.slane %v124_v23, %v1653_v37  ;;  %v558_v47 = vrot.slane %v238_v25, %v1645_v33  ;;  %v566_v23 = vrot.slane %v246_v17, %v1645_v33  ;;  %v28_v25 = vld [vmem:[%s1579_s0 + $0x68] sm:$0xff] }
  0x3f   :  { %v801_v14 = vadd.f32 %v800_v26, %v738_v19  ;;  %v546_v19 = vrot.slane %v226_v5, %v1645_v33  ;;  %v67_v26 = vunpack.c.l.bf16 %v25_v16  ;;  %v68_v5 = vunpack.c.h.bf16 %v25_v16 }
  0x40   :  { %v250_v20 = vrot.slane %v125_v3, %v1645_v33  ;;  %v254_v16 = vrot.slane %v125_v3, %v1650_v58 }
  0x41   :  { %v802_v32 = vadd.f32 %v801_v14, %v739_v27  ;;  %v745_v14 = vmul.f32 %v546_v19, %v65_v60  ;;  %v70_v60 = vunpack.c.h.bf16 %v26_v55  ;;  %v748_v19 = vmul.f32 %v558_v47, %v68_v5 }
  0x42   :  { %v262_v55 = vrot.slane %v125_v3, %v1644_v30  ;;  %v73_v5 = vunpack.c.l.bf16 %v28_v25 }
  0x43   :  { %v803_v48 = vadd.f32 %v802_v32, %v740_v24  ;;  %v554_v24 = vrot.slane %v234_v42, %v1645_v33 }
  0x45   :  { %v804_v50 = vadd.f32 %v803_v48, %v741_v18  ;;  %v746_v18 = vmul.f32 %v550_v7, %v66_v11  ;;  %v747_v48 = vmul.f32 %v554_v24, %v67_v26  ;;  %v126_v11 = vunpack.c.h.bf16 %v114_v36  ;;  %v29_v36 = vld [vmem:[%s1579_s0 + $0x70] sm:$0xff] }
  0x46   :  { %v258_v7 = vrot.slane %v125_v3, %v1653_v37  ;;  %v574_v24 = vrot.slane %v254_v16, %v1645_v33  ;;  %v582_v3 = vrot.slane %v262_v55, %v1645_v33 }
  0x47   :  { %v805_v27 = vadd.f32 %v804_v50, %v742_v46  ;;  %v562_v46 = vrot.slane %v242_v54, %v1645_v33  ;;  %v71_v50 = vunpack.c.l.bf16 %v27_v4  ;;  %v72_v54 = vunpack.c.h.bf16 %v27_v4 }
  0x48   :  { %v266_v17 = vrot.slane %v126_v11, %v1645_v33  ;;  %v578_v47 = vrot.slane %v258_v7, %v1645_v33  ;;  %v270_v4 = vrot.slane %v126_v11, %v1650_v58 }
  0x49   :  { %v806_v22 = vadd.f32 %v805_v27, %v743_v35  ;;  %v749_v27 = vmul.f32 %v562_v46, %v69_v49  ;;  %v74_v49 = vunpack.c.h.bf16 %v28_v25 }
  0x4a   :  { %v586_v16 = vrot.slane %v266_v17, %v1645_v33  ;;  %v590_v58 = vrot.slane %v270_v4, %v1645_v33 }
  0x4b   :  { %v807_v32 = vadd.f32 %v806_v22, %v744_v45  ;;  %v570_v45 = vrot.slane %v250_v20, %v1645_v33  ;;  %v752_v20 = vmul.f32 %v574_v24, %v72_v54  ;;  %v754_v25 = vmul.f32 %v582_v3, %v74_v49 }
  0x4d   :  { %v808_v42 = vadd.f32 %v807_v32, %v745_v14  ;;  %v750_v14 = vmul.f32 %v566_v23, %v70_v60  ;;  %v274_v60 = vrot.slane %v126_v11, %v1653_v37  ;;  %v753_v23 = vmul.f32 %v578_v47, %v73_v5  ;;  %v31_v37 = vld [vmem:[%s1579_s0 + $0x80] sm:$0xff] }
  0x4e   :  { %v79_v5 = vunpack.c.l.bf16 %v31_v37 }
  0x4f   :  { %v809_v35 = vadd.f32 %v808_v42, %v746_v18  ;;  %v751_v18 = vmul.f32 %v570_v45, %v71_v50  ;;  %v30_v42 = vld [vmem:[%s1579_s0 + $0x78] sm:$0xff]  ;;  %v278_v50 = vrot.slane %v126_v11, %v1644_v30  ;;  %v594_v54 = vrot.slane %v274_v60, %v1645_v33 }
  0x50   :  { %v77_v45 = vunpack.c.l.bf16 %v30_v42 }
  0x51   :  { %v810_v26 = vadd.f32 %v809_v35, %v747_v48  ;;  %v75_v48 = vunpack.c.l.bf16 %v29_v36  ;;  %v76_v35 = vunpack.c.h.bf16 %v29_v36 }
  0x52   :  { %v757_v17 = vmul.f32 %v594_v54, %v77_v45 }
  0x53   :  { %v811_v22 = vadd.f32 %v810_v26, %v748_v19  ;;  %v755_v55 = vmul.f32 %v586_v16, %v75_v48  ;;  %v756_v30 = vmul.f32 %v590_v58, %v76_v35 }
  0x55   :  { %v812_v32 = vadd.f32 %v811_v22, %v749_v27  ;;  %v1654_v27 = vld [vmem:[#allocation8_spill] sm:$0xff]  ;;  %v598_v22 = vrot.slane %v278_v50, %v1645_v33 }
  0x56   :  { %v282_v26 = vrot.slane %v1654_v27, %v1645_v33 }
  0x57   :  { %v813_v46 = vadd.f32 %v812_v32, %v750_v14  ;;  %v78_v14 = vunpack.c.h.bf16 %v30_v42 }
  0x58   :  { %v602_v36 = vrot.slane %v282_v26, %v1645_v33 }
  0x59   :  { %v814_v19 = vadd.f32 %v813_v46, %v751_v18  ;;  %v80_v18 = vunpack.c.h.bf16 %v31_v37  ;;  %v758_v32 = vmul.f32 %v598_v22, %v78_v14 }
  0x5a   :  { %v759_v4 = vmul.f32 %v602_v36, %v79_v5 }
  0x5b   :  { %v815_v7 = vadd.f32 %v814_v19, %v752_v20  ;;  %v1655_v20 = vld [vmem:[#allocation9_spill] sm:$0xff] }
  0x5c   :  { %v760_v46 = vmul.f32 %v1655_v20, %v80_v18 }
  0x5d   :  { %v816_v24 = vadd.f32 %v815_v7, %v753_v23 }
  0x5f   :  { %v817_v11 = vadd.f32 %v816_v24, %v754_v25 }
  0x61   :  { %v818_v47 = vadd.f32 %v817_v11, %v755_v55 }
  0x63   :  { %v819_v49 = vadd.f32 %v818_v47, %v756_v30 }
  0x65   :  { %v820_v3 = vadd.f32 %v819_v49, %v757_v17 }
  0x67   :  { %v821_v48 = vadd.f32 %v820_v3, %v758_v32 }
  0x69   :  { %v822_v60 = vadd.f32 %v821_v48, %v759_v4 }
  0x6b   :  { %v823_v16 = vadd.f32 %v822_v60, %v760_v46 }
  0x6d   :  { %v824_v42 = vadd.f32 %v823_v16, %v1314_v9 }
  0x6f   :  { %v825_v23 = vadd.f32 %v824_v42, %v1319_v34 }
  0x71   :  { %v826_v19 = vadd.f32 %v825_v23, %v1323_v8 }
  0x73   :  { %v827_v33 = vadd.f32 %v826_v19, %v1328_v28 }
  0x75   :  { %v828_v35 = vadd.f32 %v827_v33, %v1333_v13 }
  0x77   :  { %v829_v50 = vadd.f32 %v828_v35, %v1338_v38 }
  0x79   :  { %v830_v58 = vadd.f32 %v829_v50, %v1343_v63 }
  0x7b   :  { %v831_v25 = vadd.f32 %v830_v58, %v1348_v57 }
  0x7d   :  { %v832_v7 = vadd.f32 %v831_v25, %v1353_v52 }
  0x7f   :  { %v833_v45 = vadd.f32 %v832_v7, %v1358_v53 }
  0x81   :  { %v834_v9 = vadd.f32 %v833_v45, %v1363_v0 }
  0x83   :  { %v835_v34 = vadd.f32 %v834_v9, %v1368_v1 }
  0x85   :  { %v836_v8 = vadd.f32 %v835_v34, %v1373_v2 }
  0x87   :  { %v837_v28 = vadd.f32 %v836_v8, %v1376_v56 }
  0x89   :  { %v838_v13 = vadd.f32 %v837_v28, %v1379_v51 }
  0x8b   :  { %v839_v38 = vadd.f32 %v838_v13, %v1382_v59 }
  0x8d   :  { %v840_v63 = vadd.f32 %v839_v38, %v1385_v15 }
  0x8f   :  { %v841_v57 = vadd.f32 %v840_v63, %v1388_v61 }
  0x91   :  { %v842_v52 = vadd.f32 %v841_v57, %v1391_v62 }
  0x93   :  { %v843_v53 = vadd.f32 %v842_v52, %v1394_v21 }
  0x95   :  { %v844_v0 = vadd.f32 %v843_v53, %v1397_v40  ;;  %v857_v40 = vstv %s1580_s2 }
  0x97   :  { %v845_v1 = vadd.f32 %v844_v0, %v1400_v41 }
  0x99   :  { %v846_v2 = vadd.f32 %v845_v1, %v1406_v43 }
  0x9b   :  { %v847_v56 = vadd.f32 %v846_v2, %v1409_v6 }
  0x9d   :  { %v848_v51 = vadd.f32 %v847_v56, %v1412_v39 }
  0x9f   :  { %v849_v59 = vadd.f32 %v848_v51, %v1415_v29 }
  0xa1   :  { %v850_v15 = vadd.f32 %v849_v59, %v1418_v31 }
  0xa3   :  { %v851_v61 = vadd.f32 %v850_v15, %v1421_v12 }
  0xa5   :  { %v852_v62 = vadd.f32 %v851_v61, %v1424_v10 }
  0xa7   :  { %v853_v21 = vadd.f32 %v852_v62, %v1427_v44 }
  0xa9   :  { %854 = vadd.xlane.f32.xlu0 %v853_v21 }
 0x136   :  { %v855_v41 = vpop.xlane.xlu0 %854 }
 0x137   :  { %v858_v43 = vadd.f32 %v857_v40, %v855_v41 }
 0x139   :  { %v871_v6 = vmul.f32 -1.442695, %v858_v43 }
 0x13b   :  { %872 = vpow2.f32 %v871_v6 }
 0x145   :  { %v873_v39 = vpop.eup %872 }
 0x146   :  { %v862_v27 = vadd.f32 1.0, %v873_v39 }
 0x148   :  { %874 = vrcp.f32 %v862_v27 }
 0x152   :  { %v875_v29 = vpop.eup %874 }
 0x153   :  { %866 = vst.msk [vmem:[%s1581_s3] sm:$0xff] %vm865_vm0, %v875_v29 }

// kernel: discriminator_forward.13
= control target key start
LH: loop header
LB: loop body
LE: loop exit
PB: predicated region body
PF: predicated region fallthrough
CT: control target
= control target key end

     0   :  { %s14801_s1 = inlined_call_operand.vmem [shape: bf16[4096,512], index: 1, kind: input, shape index: {}]   ;;  %s14802_s0 = inlined_call_operand.vmem [shape: bf16[32,4096], index: 0, kind: input, shape index: {}]   ;;  %s14803_s3 = inlined_call_operand.vmem [shape: f32[8,512], index: 3, kind: output, shape index: {1}]   ;;  %s14804_s2 = inlined_call_operand.vmem [shape: bf16[32,512], index: 2, kind: output, shape index: {0}]  }
   0x1   :  { %v9807_v0 = vld [vmem:[%s14801_s1 + $0x4] ss:$16 sps:$4 sm:$0xff]   ;;  %v9809_v1 = vld [vmem:[%s14801_s1 + $0xc] ss:$16 sps:$4 sm:$0xff]   ;;  %v9811_v2 = vld [vmem:[%s14801_s1] ss:$16 sps:$4 sm:$0xff]  }
   0x2   :  { %6541 = vmatprep.subr.bf16.mxu0 %v9807_v0  ;;  %v9812_v3 = vld [vmem:[%s14801_s1 + $0x8] ss:$16 sps:$4 sm:$0xff]   ;;  %7389 = vmatprep.subr.bf16.mxu1 %v9809_v1  ;;  %v9813_v4 = vld [vmem:[%s14801_s1 + $0x24] ss:$16 sps:$4 sm:$0xff]   ;;  %v9815_v5 = vld [vmem:[%s14801_s1 + $0x2c] ss:$16 sps:$4 sm:$0xff]  }
   0x3   :  { %6542 = vmatpush1.bf16.msra.mxu0 %v9811_v2  ;;  %7390 = vmatpush1.bf16.msra.mxu1 %v9812_v3  ;;  %v9817_v6 = vld [vmem:[%s14801_s1 + $0x20] ss:$16 sps:$4 sm:$0xff]   ;;  %v9818_v7 = vld [vmem:[%s14801_s1 + $0x28] ss:$16 sps:$4 sm:$0xff]   ;;  %v9819_v8 = vld [vmem:[%s14801_s1 + $0x44] ss:$16 sps:$4 sm:$0xff]  }
   0x4   :  { %6543 = vmatprep.subr.bf16.mxu0 %v9813_v4  ;;  %7391 = vmatprep.subr.bf16.mxu1 %v9815_v5  ;;  %v9821_v9 = vld [vmem:[%s14801_s1 + $0x4c] ss:$16 sps:$4 sm:$0xff]   ;;  %v9823_v10 = vld [vmem:[%s14801_s1 + $0x40] ss:$16 sps:$4 sm:$0xff]   ;;  %v9824_v11 = vld [vmem:[%s14801_s1 + $0x48] ss:$16 sps:$4 sm:$0xff]  }
   0x5   :  { %v9825_v12 = vld [vmem:[%s14801_s1 + $0x64] ss:$16 sps:$4 sm:$0xff]   ;;  %v9827_v13 = vld [vmem:[%s14801_s1 + $0x6c] ss:$16 sps:$4 sm:$0xff]   ;;  %v9829_v14 = vld [vmem:[%s14801_s1 + $0x60] ss:$16 sps:$4 sm:$0xff]  }
   0x6   :  { %v9830_v15 = vld [vmem:[%s14801_s1 + $0x68] ss:$16 sps:$4 sm:$0xff]   ;;  %v9831_v16 = vld [vmem:[%s14801_s1 + $0x84] ss:$16 sps:$4 sm:$0xff]   ;;  %v9833_v17 = vld [vmem:[%s14801_s1 + $0x8c] ss:$16 sps:$4 sm:$0xff]  }
   0x7   :  { %6544 = vmatpush1.bf16.msra.mxu0 %v9817_v6  ;;  %7392 = vmatpush1.bf16.msra.mxu1 %v9818_v7  ;;  %v9835_v18 = vld [vmem:[%s14801_s1 + $0x80] ss:$16 sps:$4 sm:$0xff]   ;;  %v9836_v19 = vld [vmem:[%s14801_s1 + $0x88] ss:$16 sps:$4 sm:$0xff]   ;;  %v9837_v20 = vld [vmem:[%s14801_s1 + $0xa4] ss:$16 sps:$4 sm:$0xff]  }
   0x8   :  { %6545 = vmatprep.subr.bf16.mxu0 %v9819_v8  ;;  %7393 = vmatprep.subr.bf16.mxu1 %v9821_v9  ;;  %v9839_v21 = vld [vmem:[%s14801_s1 + $0xac] ss:$16 sps:$4 sm:$0xff]   ;;  %v9841_v22 = vld [vmem:[%s14801_s1 + $0xa0] ss:$16 sps:$4 sm:$0xff]   ;;  %v9842_v23 = vld [vmem:[%s14801_s1 + $0xa8] ss:$16 sps:$4 sm:$0xff]  }
   0x9   :  { %v9843_v24 = vld [vmem:[%s14801_s1 + $0xc4] ss:$16 sps:$4 sm:$0xff]   ;;  %v9845_v25 = vld [vmem:[%s14801_s1 + $0xcc] ss:$16 sps:$4 sm:$0xff]   ;;  %v9847_v26 = vld [vmem:[%s14801_s1 + $0xc0] ss:$16 sps:$4 sm:$0xff]  }
   0xa   :  { %v9848_v27 = vld [vmem:[%s14801_s1 + $0xc8] ss:$16 sps:$4 sm:$0xff]   ;;  %v9849_v28 = vld [vmem:[%s14801_s1 + $0xe4] ss:$16 sps:$4 sm:$0xff]   ;;  %v9851_v29 = vld [vmem:[%s14801_s1 + $0xec] ss:$16 sps:$4 sm:$0xff]  }
   0xb   :  { %6546 = vmatpush1.bf16.msra.mxu0 %v9823_v10  ;;  %7394 = vmatpush1.bf16.msra.mxu1 %v9824_v11  ;;  %v9853_v30 = vld [vmem:[%s14801_s1 + $0xe0] ss:$16 sps:$4 sm:$0xff]   ;;  %v9854_v31 = vld [vmem:[%s14801_s1 + $0xe8] ss:$16 sps:$4 sm:$0xff]   ;;  %v9855_v32 = vld [vmem:[%s14801_s1 + $0x104] ss:$16 sps:$4 sm:$0xff]  }
   0xc   :  { %6547 = vmatprep.subr.bf16.mxu0 %v9825_v12  ;;  %7395 = vmatprep.subr.bf16.mxu1 %v9827_v13  ;;  %v9857_v33 = vld [vmem:[%s14801_s1 + $0x10c] ss:$16 sps:$4 sm:$0xff]   ;;  %v9859_v34 = vld [vmem:[%s14801_s1 + $0x100] ss:$16 sps:$4 sm:$0xff]   ;;  %v9860_v35 = vld [vmem:[%s14801_s1 + $0x108] ss:$16 sps:$4 sm:$0xff]  }
   0xd   :  { %v9861_v36 = vld [vmem:[%s14801_s1 + $0x124] ss:$16 sps:$4 sm:$0xff]   ;;  %v9863_v37 = vld [vmem:[%s14801_s1 + $0x12c] ss:$16 sps:$4 sm:$0xff]   ;;  %v9865_v38 = vld [vmem:[%s14801_s1 + $0x120] ss:$16 sps:$4 sm:$0xff]  }
   0xe   :  { %v9866_v39 = vld [vmem:[%s14801_s1 + $0x128] ss:$16 sps:$4 sm:$0xff]   ;;  %v9867_v40 = vld [vmem:[%s14801_s1 + $0x144] ss:$16 sps:$4 sm:$0xff]   ;;  %v9869_v41 = vld [vmem:[%s14801_s1 + $0x14c] ss:$16 sps:$4 sm:$0xff]  }
   0xf   :  { %6548 = vmatpush1.bf16.msra.mxu0 %v9829_v14  ;;  %7396 = vmatpush1.bf16.msra.mxu1 %v9830_v15  ;;  %v9871_v42 = vld [vmem:[%s14801_s1 + $0x140] ss:$16 sps:$4 sm:$0xff]   ;;  %v9872_v43 = vld [vmem:[%s14801_s1 + $0x148] ss:$16 sps:$4 sm:$0xff]   ;;  %v9873_v44 = vld [vmem:[%s14801_s1 + $0x164] ss:$16 sps:$4 sm:$0xff]  }
  0x10   :  { %6549 = vmatprep.subr.bf16.mxu0 %v9831_v16  ;;  %7397 = vmatprep.subr.bf16.mxu1 %v9833_v17  ;;  %v9875_v45 = vld [vmem:[%s14801_s1 + $0x16c] ss:$16 sps:$4 sm:$0xff]   ;;  %v13_v46 = vld [vmem:[%s14802_s0] sm:$0xff]  ;;  %v9878_v49 = vld [vmem:[%s14801_s1 + $0x168] ss:$16 sps:$4 sm:$0xff]  }
  0x11   :  { %v29_v47 = vld [vmem:[%s14802_s0 + $0x80] sm:$0xff]  ;;  %v9881_v52 = vld [vmem:[%s14801_s1 + $0x18c] ss:$16 sps:$4 sm:$0xff]   ;;  %v9884_v54 = vld [vmem:[%s14801_s1 + $0x188] ss:$16 sps:$4 sm:$0xff]  }
  0x12   :  { %v9877_v48 = vld [vmem:[%s14801_s1 + $0x160] ss:$16 sps:$4 sm:$0xff]   ;;  %v8461_v50 = vcombine.high %v13_v46, %v29_v47  ;;  %v9879_v51 = vld [vmem:[%s14801_s1 + $0x184] ss:$16 sps:$4 sm:$0xff]   ;;  %v9887_v56 = vld [vmem:[%s14801_s1 + $0x1ac] ss:$16 sps:$4 sm:$0xff]   ;;  %v8460_v5 = vcombine.low %v13_v46, %v29_v47 }
  0x13   :  { %6550 = vmatpush1.bf16.msra.mxu0 %v9835_v18  ;;  %7398 = vmatpush1.bf16.msra.mxu1 %v9836_v19  ;;  %v9883_v53 = vld [vmem:[%s14801_s1 + $0x180] ss:$16 sps:$4 sm:$0xff]   ;;  %v9885_v55 = vld [vmem:[%s14801_s1 + $0x1a4] ss:$16 sps:$4 sm:$0xff]   ;;  %v9890_v58 = vld [vmem:[%s14801_s1 + $0x1a8] ss:$16 sps:$4 sm:$0xff]  }
  0x14   :  { %6551 = vmatprep.subr.bf16.mxu0 %v9837_v20  ;;  %7399 = vmatprep.subr.bf16.mxu1 %v9839_v21  ;;  %v9889_v57 = vld [vmem:[%s14801_s1 + $0x1a0] ss:$16 sps:$4 sm:$0xff]   ;;  %v9891_v59 = vld [vmem:[%s14801_s1 + $0x1c4] ss:$16 sps:$4 sm:$0xff]   ;;  %v9893_v60 = vld [vmem:[%s14801_s1 + $0x1cc] ss:$16 sps:$4 sm:$0xff]  }
  0x15   :  { %6573 = vmatprep.mubr.bf16.mxu0 %v8461_v50  ;;  %7421 = vmatprep.mubr.bf16.mxu1 %v8461_v50  ;;  %v9895_v61 = vld [vmem:[%s14801_s1 + $0x1c0] ss:$16 sps:$4 sm:$0xff]   ;;  %v9896_v62 = vld [vmem:[%s14801_s1 + $0x1c8] ss:$16 sps:$4 sm:$0xff]   ;;  %v9897_v63 = vld [vmem:[%s14801_s1 + $0x1e4] ss:$16 sps:$4 sm:$0xff]  }
  0x16   :  { %v9899_v0 = vld [vmem:[%s14801_s1 + $0x1ec] ss:$16 sps:$4 sm:$0xff]   ;;  %v9901_v1 = vld [vmem:[%s14801_s1 + $0x1e0] ss:$16 sps:$4 sm:$0xff]   ;;  %v9902_v2 = vld [vmem:[%s14801_s1 + $0x1e8] ss:$16 sps:$4 sm:$0xff]  }
  0x17   :  { %6552 = vmatpush1.bf16.msra.mxu0 %v9841_v22  ;;  %7400 = vmatpush1.bf16.msra.mxu1 %v9842_v23  ;;  %v9905_v3 = vld [vmem:[%s14801_s1 + $0x204] ss:$16 sps:$4 sm:$0xff]   ;;  %v9908_v4 = vld [vmem:[%s14801_s1 + $0x20c] ss:$16 sps:$4 sm:$0xff]   ;;  %v9903_v6 = vld [vmem:[%s14801_s1 + $0x200] ss:$16 sps:$4 sm:$0xff]  }
  0x18   :  { %6553 = vmatprep.subr.bf16.mxu0 %v9843_v24  ;;  %7401 = vmatprep.subr.bf16.mxu1 %v9845_v25  ;;  %v9906_v7 = vld [vmem:[%s14801_s1 + $0x208] ss:$16 sps:$4 sm:$0xff]   ;;  %v9911_v8 = vld [vmem:[%s14801_s1 + $0x224] ss:$16 sps:$4 sm:$0xff]   ;;  %v9914_v9 = vld [vmem:[%s14801_s1 + $0x22c] ss:$16 sps:$4 sm:$0xff]  }
  0x19   :  { %v9909_v10 = vld [vmem:[%s14801_s1 + $0x220] ss:$16 sps:$4 sm:$0xff]   ;;  %v9912_v11 = vld [vmem:[%s14801_s1 + $0x228] ss:$16 sps:$4 sm:$0xff]   ;;  %v9917_v12 = vld [vmem:[%s14801_s1 + $0x244] ss:$16 sps:$4 sm:$0xff]  }
  0x1a   :  { %v9920_v13 = vld [vmem:[%s14801_s1 + $0x24c] ss:$16 sps:$4 sm:$0xff]   ;;  %v9915_v14 = vld [vmem:[%s14801_s1 + $0x240] ss:$16 sps:$4 sm:$0xff]   ;;  %v9918_v15 = vld [vmem:[%s14801_s1 + $0x248] ss:$16 sps:$4 sm:$0xff]  }
  0x1b   :  { %6554 = vmatpush1.bf16.msra.mxu0 %v9847_v26  ;;  %7402 = vmatpush1.bf16.msra.mxu1 %v9848_v27  ;;  %v9923_v16 = vld [vmem:[%s14801_s1 + $0x264] ss:$16 sps:$4 sm:$0xff]   ;;  %v9926_v17 = vld [vmem:[%s14801_s1 + $0x26c] ss:$16 sps:$4 sm:$0xff]   ;;  %v9921_v18 = vld [vmem:[%s14801_s1 + $0x260] ss:$16 sps:$4 sm:$0xff]  }
  0x1c   :  { %6555 = vmatprep.subr.bf16.mxu0 %v9849_v28  ;;  %7403 = vmatprep.subr.bf16.mxu1 %v9851_v29  ;;  %v9924_v19 = vld [vmem:[%s14801_s1 + $0x268] ss:$16 sps:$4 sm:$0xff]   ;;  %v9929_v20 = vld [vmem:[%s14801_s1 + $0x284] ss:$16 sps:$4 sm:$0xff]   ;;  %v9932_v21 = vld [vmem:[%s14801_s1 + $0x28c] ss:$16 sps:$4 sm:$0xff]  }
  0x1d   :  { %v9927_v22 = vld [vmem:[%s14801_s1 + $0x280] ss:$16 sps:$4 sm:$0xff]   ;;  %v9930_v23 = vld [vmem:[%s14801_s1 + $0x288] ss:$16 sps:$4 sm:$0xff]   ;;  %v9935_v24 = vld [vmem:[%s14801_s1 + $0x2a4] ss:$16 sps:$4 sm:$0xff]  }
  0x1e   :  { %v9938_v25 = vld [vmem:[%s14801_s1 + $0x2ac] ss:$16 sps:$4 sm:$0xff]   ;;  %v45_v26 = vld [vmem:[%s14802_s0 + $0x100] sm:$0xff]  ;;  %v9954_v46 = vld [vmem:[%s14801_s1 + $0x308] ss:$16 sps:$4 sm:$0xff]  }
  0x1f   :  { %6556 = vmatpush1.bf16.msra.mxu0 %v9853_v30  ;;  %7404 = vmatpush1.bf16.msra.mxu1 %v9854_v31  ;;  %v61_v27 = vld [vmem:[%s14802_s0 + $0x180] sm:$0xff]  ;;  %v9936_v30 = vld [vmem:[%s14801_s1 + $0x2a8] ss:$16 sps:$4 sm:$0xff]  }
  0x20   :  { %6557 = vmatprep.subr.bf16.mxu0 %v9855_v32  ;;  %7405 = vmatprep.subr.bf16.mxu1 %v9857_v33  ;;  %v8493_v28 = vcombine.high %v45_v26, %v61_v27  ;;  %v9933_v29 = vld [vmem:[%s14801_s1 + $0x2a0] ss:$16 sps:$4 sm:$0xff]   ;;  %v8492_v31 = vcombine.low %v45_v26, %v61_v27  ;;  %v9941_v32 = vld [vmem:[%s14801_s1 + $0x2c4] ss:$16 sps:$4 sm:$0xff]   ;;  %v9944_v33 = vld [vmem:[%s14801_s1 + $0x2cc] ss:$16 sps:$4 sm:$0xff]  }
  0x21   :  { %v9959_v47 = vld [vmem:[%s14801_s1 + $0x324] ss:$16 sps:$4 sm:$0xff]   ;;  %v9960_v50 = vld [vmem:[%s14801_s1 + $0x328] ss:$16 sps:$4 sm:$0xff]  }
  0x22   :  { %v11819_v27 = vld [vmem:[%s14802_s0 + $0x90] sm:$0xff] }
  0x23   :  { %6558 = vmatpush1.bf16.msra.mxu0 %v9859_v34  ;;  %7406 = vmatpush1.bf16.msra.mxu1 %v9860_v35  ;;  %v11650_v34 = vld [vmem:[%s14802_s0 + $0x8] sm:$0xff] }
  0x24   :  { %6559 = vmatprep.subr.bf16.mxu0 %v9861_v36  ;;  %7407 = vmatprep.subr.bf16.mxu1 %v9863_v37  ;;  %v11655_v35 = vld [vmem:[%s14802_s0 + $0x88] sm:$0xff]  ;;  %v9939_v36 = vld [vmem:[%s14801_s1 + $0x2c0] ss:$16 sps:$4 sm:$0xff]  }
  0x25   :  { %v9942_v37 = vld [vmem:[%s14801_s1 + $0x2c8] ss:$16 sps:$4 sm:$0xff]  }
  0x27   :  { %6560 = vmatpush1.bf16.msra.mxu0 %v9865_v38  ;;  %7408 = vmatpush1.bf16.msra.mxu1 %v9866_v39  ;;  %v8463_v38 = vcombine.high %v11650_v34, %v11655_v35  ;;  %v9947_v39 = vld [vmem:[%s14801_s1 + $0x2e4] ss:$16 sps:$4 sm:$0xff]  }
  0x28   :  { %6561 = vmatprep.subr.bf16.mxu0 %v9867_v40  ;;  %7409 = vmatprep.subr.bf16.mxu1 %v9869_v41  ;;  %v9950_v40 = vld [vmem:[%s14801_s1 + $0x2ec] ss:$16 sps:$4 sm:$0xff]   ;;  %v9945_v41 = vld [vmem:[%s14801_s1 + $0x2e0] ss:$16 sps:$4 sm:$0xff]  }
  0x2b   :  { %6562 = vmatpush1.bf16.msra.mxu0 %v9871_v42  ;;  %7410 = vmatpush1.bf16.msra.mxu1 %v9872_v43  ;;  %v9948_v42 = vld [vmem:[%s14801_s1 + $0x2e8] ss:$16 sps:$4 sm:$0xff]   ;;  %v9953_v43 = vld [vmem:[%s14801_s1 + $0x304] ss:$16 sps:$4 sm:$0xff]  }
  0x2c   :  { %6563 = vmatprep.subr.bf16.mxu0 %v9873_v44  ;;  %7411 = vmatprep.subr.bf16.mxu1 %v9875_v45  ;;  %v9956_v44 = vld [vmem:[%s14801_s1 + $0x30c] ss:$16 sps:$4 sm:$0xff]   ;;  %v9951_v45 = vld [vmem:[%s14801_s1 + $0x300] ss:$16 sps:$4 sm:$0xff]  }
  0x2f   :  { %6564 = vmatpush1.bf16.msra.mxu0 %v9877_v48  ;;  %7412 = vmatpush1.bf16.msra.mxu1 %v9878_v49  ;;  %v9962_v48 = vld [vmem:[%s14801_s1 + $0x32c] ss:$16 sps:$4 sm:$0xff]   ;;  %v9957_v49 = vld [vmem:[%s14801_s1 + $0x320] ss:$16 sps:$4 sm:$0xff]  }
  0x30   :  { %6565 = vmatprep.subr.bf16.mxu0 %v9879_v51  ;;  %7413 = vmatprep.subr.bf16.mxu1 %v9881_v52  ;;  %v9965_v51 = vld [vmem:[%s14801_s1 + $0x344] ss:$16 sps:$4 sm:$0xff]   ;;  %v9968_v52 = vld [vmem:[%s14801_s1 + $0x34c] ss:$16 sps:$4 sm:$0xff]  }
  0x33   :  { %6566 = vmatpush1.bf16.msra.mxu0 %v9883_v53  ;;  %7414 = vmatpush1.bf16.msra.mxu1 %v9884_v54  ;;  %v9963_v53 = vld [vmem:[%s14801_s1 + $0x340] ss:$16 sps:$4 sm:$0xff]   ;;  %v9966_v54 = vld [vmem:[%s14801_s1 + $0x348] ss:$16 sps:$4 sm:$0xff]  }
  0x34   :  { %6567 = vmatprep.subr.bf16.mxu0 %v9885_v55  ;;  %7415 = vmatprep.subr.bf16.mxu1 %v9887_v56  ;;  %v9971_v55 = vld [vmem:[%s14801_s1 + $0x364] ss:$16 sps:$4 sm:$0xff]   ;;  %v9974_v56 = vld [vmem:[%s14801_s1 + $0x36c] ss:$16 sps:$4 sm:$0xff]  }
  0x37   :  { %6568 = vmatpush1.bf16.msra.mxu0 %v9889_v57  ;;  %7416 = vmatpush1.bf16.msra.mxu1 %v9890_v58  ;;  %v9969_v57 = vld [vmem:[%s14801_s1 + $0x360] ss:$16 sps:$4 sm:$0xff]   ;;  %v9972_v58 = vld [vmem:[%s14801_s1 + $0x368] ss:$16 sps:$4 sm:$0xff]  }
  0x38   :  { %6569 = vmatprep.subr.bf16.mxu0 %v9891_v59  ;;  %7417 = vmatprep.subr.bf16.mxu1 %v9893_v60  ;;  %v9977_v59 = vld [vmem:[%s14801_s1 + $0x384] ss:$16 sps:$4 sm:$0xff]   ;;  %v9980_v60 = vld [vmem:[%s14801_s1 + $0x38c] ss:$16 sps:$4 sm:$0xff]  }
  0x3b   :  { %6570 = vmatpush1.bf16.msra.mxu0 %v9895_v61  ;;  %7418 = vmatpush1.bf16.msra.mxu1 %v9896_v62  ;;  %v9975_v61 = vld [vmem:[%s14801_s1 + $0x380] ss:$16 sps:$4 sm:$0xff]   ;;  %v9978_v62 = vld [vmem:[%s14801_s1 + $0x388] ss:$16 sps:$4 sm:$0xff]  }
  0x3c   :  { %6571 = vmatprep.subr.bf16.mxu0 %v9897_v63  ;;  %7419 = vmatprep.subr.bf16.mxu1 %v9899_v0  ;;  %v9983_v63 = vld [vmem:[%s14801_s1 + $0x3a4] ss:$16 sps:$4 sm:$0xff]   ;;  %v9986_v0 = vld [vmem:[%s14801_s1 + $0x3ac] ss:$16 sps:$4 sm:$0xff]  }
  0x3f   :  { %6572 = vmatpush1.bf16.msra.mxu0 %v9901_v1  ;;  %7420 = vmatpush1.bf16.msra.mxu1 %v9902_v2  ;;  %v9981_v1 = vld [vmem:[%s14801_s1 + $0x3a0] ss:$16 sps:$4 sm:$0xff]   ;;  %v9984_v2 = vld [vmem:[%s14801_s1 + $0x3a8] ss:$16 sps:$4 sm:$0xff]  }
  0x40   :  { %6594 = vmatprep.subr.bf16.mxu0 %v9905_v3  ;;  %7442 = vmatprep.subr.bf16.mxu1 %v9908_v4  ;;  %v9989_v3 = vld [vmem:[%s14801_s1 + $0x3c4] ss:$16 sps:$4 sm:$0xff]   ;;  %v9992_v4 = vld [vmem:[%s14801_s1 + $0x3cc] ss:$16 sps:$4 sm:$0xff]  }
  0x42   :  { %6574 = vmatmul.mubr.bf16.vlgmr.msra.gmra.mrb[0].mxu0 %v8460_v5  ;;  %7422 = vmatmul.mubr.bf16.vlgmr.msra.gmra.mrb[0].mxu1 %v8460_v5  ;;  %v9987_v5 = vld [vmem:[%s14801_s1 + $0x3c0] ss:$16 sps:$4 sm:$0xff]  }
  0x43   :  { %6595 = vmatpush1.bf16.msra.mxu0 %v9903_v6  ;;  %7443 = vmatpush1.bf16.msra.mxu1 %v9906_v7  ;;  %v9990_v6 = vld [vmem:[%s14801_s1 + $0x3c8] ss:$16 sps:$4 sm:$0xff]   ;;  %v9995_v7 = vld [vmem:[%s14801_s1 + $0x3e4] ss:$16 sps:$4 sm:$0xff]  }
  0x44   :  { %6596 = vmatprep.subr.bf16.mxu0 %v9911_v8  ;;  %7444 = vmatprep.subr.bf16.mxu1 %v9914_v9  ;;  %v9998_v8 = vld [vmem:[%s14801_s1 + $0x3ec] ss:$16 sps:$4 sm:$0xff]   ;;  %v9993_v9 = vld [vmem:[%s14801_s1 + $0x3e0] ss:$16 sps:$4 sm:$0xff]  }
  0x45   :  { %6583 = vmatprep.mubr.bf16.mxu0 %v8493_v28  ;;  %7431 = vmatprep.mubr.bf16.mxu1 %v8493_v28  ;;  %v10011_v28 = vld [vmem:[%s14801_s1 + $0x440] ss:$16 sps:$4 sm:$0xff]  }
  0x47   :  { %6597 = vmatpush1.bf16.msra.mxu0 %v9909_v10  ;;  %7445 = vmatpush1.bf16.msra.mxu1 %v9912_v11  ;;  %v9996_v10 = vld [vmem:[%s14801_s1 + $0x3e8] ss:$16 sps:$4 sm:$0xff]   ;;  %v10001_v11 = vld [vmem:[%s14801_s1 + $0x404] ss:$16 sps:$4 sm:$0xff]  }
  0x48   :  { %6598 = vmatprep.subr.bf16.mxu0 %v9917_v12  ;;  %7446 = vmatprep.subr.bf16.mxu1 %v9920_v13  ;;  %v10004_v12 = vld [vmem:[%s14801_s1 + $0x40c] ss:$16 sps:$4 sm:$0xff]   ;;  %v9999_v13 = vld [vmem:[%s14801_s1 + $0x400] ss:$16 sps:$4 sm:$0xff]  }
  0x4a   :  { %6584 = vmatmul.mubr.bf16.gmra.mrb[4].mxu0 %v8492_v31  ;;  %7432 = vmatmul.mubr.bf16.gmra.mrb[4].mxu1 %v8492_v31  ;;  %v10022_v31 = vld [vmem:[%s14801_s1 + $0x46c] ss:$16 sps:$4 sm:$0xff]  }
  0x4b   :  { %6599 = vmatpush1.bf16.msra.mxu0 %v9915_v14  ;;  %7447 = vmatpush1.bf16.msra.mxu1 %v9918_v15  ;;  %v10002_v14 = vld [vmem:[%s14801_s1 + $0x408] ss:$16 sps:$4 sm:$0xff]   ;;  %v8462_v15 = vcombine.low %v11650_v34, %v11655_v35  ;;  %v10025_v35 = vld [vmem:[%s14801_s1 + $0x484] ss:$16 sps:$4 sm:$0xff]  }
  0x4c   :  { %6600 = vmatprep.subr.bf16.mxu0 %v9923_v16  ;;  %7448 = vmatprep.subr.bf16.mxu1 %v9926_v17  ;;  %v46_v16 = vld [vmem:[%s14802_s0 + $0x108] sm:$0xff] }
  0x4d   :  { %6626 = vmatprep.mubr.bf16.mxu0 %v8463_v38  ;;  %7474 = vmatprep.mubr.bf16.mxu1 %v8463_v38  ;;  %v62_v17 = vld [vmem:[%s14802_s0 + $0x188] sm:$0xff] }
  0x4e   :  { %v8494_v26 = vcombine.low %v46_v16, %v62_v17  ;;  %v10020_v34 = vld [vmem:[%s14801_s1 + $0x468] ss:$16 sps:$4 sm:$0xff]  }
  0x4f   :  { %6601 = vmatpush1.bf16.msra.mxu0 %v9921_v18  ;;  %7449 = vmatpush1.bf16.msra.mxu1 %v9924_v19  ;;  %v10007_v18 = vld [vmem:[%s14801_s1 + $0x424] ss:$16 sps:$4 sm:$0xff]   ;;  %v10010_v19 = vld [vmem:[%s14801_s1 + $0x42c] ss:$16 sps:$4 sm:$0xff]   ;;  %v10026_v38 = vld [vmem:[%s14801_s1 + $0x488] ss:$16 sps:$4 sm:$0xff]  }
  0x50   :  { %6602 = vmatprep.subr.bf16.mxu0 %v9929_v20  ;;  %7450 = vmatprep.subr.bf16.mxu1 %v9932_v21  ;;  %v8495_v20 = vcombine.high %v46_v16, %v62_v17  ;;  %v10005_v21 = vld [vmem:[%s14801_s1 + $0x420] ss:$16 sps:$4 sm:$0xff]   ;;  %v10094_v16 = vld [vmem:[%s14801_s1 + $0x5ec] ss:$16 sps:$4 sm:$0xff]  }
  0x51   :  { %v10089_v17 = vld [vmem:[%s14801_s1 + $0x5e0] ss:$16 sps:$4 sm:$0xff]  }
  0x53   :  { %6603 = vmatpush1.bf16.msra.mxu0 %v9927_v22  ;;  %7451 = vmatpush1.bf16.msra.mxu1 %v9930_v23  ;;  %v10008_v22 = vld [vmem:[%s14801_s1 + $0x428] ss:$16 sps:$4 sm:$0xff]   ;;  %v10013_v23 = vld [vmem:[%s14801_s1 + $0x444] ss:$16 sps:$4 sm:$0xff]  }
  0x54   :  { %6604 = vmatprep.subr.bf16.mxu0 %v9935_v24  ;;  %7452 = vmatprep.subr.bf16.mxu1 %v9938_v25  ;;  %v10016_v24 = vld [vmem:[%s14801_s1 + $0x44c] ss:$16 sps:$4 sm:$0xff]   ;;  %v11814_v25 = vld [vmem:[%s14802_s0 + $0x10] sm:$0xff] }
  0x57   :  { %6605 = vmatpush1.bf16.msra.mxu0 %v9933_v29  ;;  %7453 = vmatpush1.bf16.msra.mxu1 %v9936_v30  ;;  %v10014_v29 = vld [vmem:[%s14801_s1 + $0x448] ss:$16 sps:$4 sm:$0xff]   ;;  %v10019_v30 = vld [vmem:[%s14801_s1 + $0x464] ss:$16 sps:$4 sm:$0xff]  }
  0x58   :  { %6606 = vmatprep.subr.bf16.mxu0 %v9941_v32  ;;  %7454 = vmatprep.subr.bf16.mxu1 %v9944_v33  ;;  %v8465_v32 = vcombine.high %v11814_v25, %v11819_v27  ;;  %v10017_v33 = vld [vmem:[%s14801_s1 + $0x460] ss:$16 sps:$4 sm:$0xff]  }
  0x5b   :  { %6607 = vmatpush1.bf16.msra.mxu0 %v9939_v36  ;;  %7455 = vmatpush1.bf16.msra.mxu1 %v9942_v37  ;;  %v10028_v36 = vld [vmem:[%s14801_s1 + $0x48c] ss:$16 sps:$4 sm:$0xff]   ;;  %v10023_v37 = vld [vmem:[%s14801_s1 + $0x480] ss:$16 sps:$4 sm:$0xff]  }
  0x5c   :  { %6608 = vmatprep.subr.bf16.mxu0 %v9947_v39  ;;  %7456 = vmatprep.subr.bf16.mxu1 %v9950_v40  ;;  %v10031_v39 = vld [vmem:[%s14801_s1 + $0x4a4] ss:$16 sps:$4 sm:$0xff]   ;;  %v10034_v40 = vld [vmem:[%s14801_s1 + $0x4ac] ss:$16 sps:$4 sm:$0xff]  }
  0x5f   :  { %6609 = vmatpush1.bf16.msra.mxu0 %v9945_v41  ;;  %7457 = vmatpush1.bf16.msra.mxu1 %v9948_v42  ;;  %v10029_v41 = vld [vmem:[%s14801_s1 + $0x4a0] ss:$16 sps:$4 sm:$0xff]   ;;  %v10032_v42 = vld [vmem:[%s14801_s1 + $0x4a8] ss:$16 sps:$4 sm:$0xff]  }
  0x60   :  { %6610 = vmatprep.subr.bf16.mxu0 %v9953_v43  ;;  %7458 = vmatprep.subr.bf16.mxu1 %v9956_v44  ;;  %v10037_v43 = vld [vmem:[%s14801_s1 + $0x4c4] ss:$16 sps:$4 sm:$0xff]   ;;  %v10040_v44 = vld [vmem:[%s14801_s1 + $0x4cc] ss:$16 sps:$4 sm:$0xff]  }
  0x63   :  { %6611 = vmatpush1.bf16.msra.mxu0 %v9951_v45  ;;  %7459 = vmatpush1.bf16.msra.mxu1 %v9954_v46  ;;  %v10035_v45 = vld [vmem:[%s14801_s1 + $0x4c0] ss:$16 sps:$4 sm:$0xff]   ;;  %v10038_v46 = vld [vmem:[%s14801_s1 + $0x4c8] ss:$16 sps:$4 sm:$0xff]  }
  0x64   :  { %6612 = vmatprep.subr.bf16.mxu0 %v9959_v47  ;;  %7460 = vmatprep.subr.bf16.mxu1 %v9962_v48  ;;  %v10043_v47 = vld [vmem:[%s14801_s1 + $0x4e4] ss:$16 sps:$4 sm:$0xff]   ;;  %v10046_v48 = vld [vmem:[%s14801_s1 + $0x4ec] ss:$16 sps:$4 sm:$0xff]  }
  0x67   :  { %6613 = vmatpush1.bf16.msra.mxu0 %v9957_v49  ;;  %7461 = vmatpush1.bf16.msra.mxu1 %v9960_v50  ;;  %v10041_v49 = vld [vmem:[%s14801_s1 + $0x4e0] ss:$16 sps:$4 sm:$0xff]   ;;  %v10044_v50 = vld [vmem:[%s14801_s1 + $0x4e8] ss:$16 sps:$4 sm:$0xff]  }
  0x68   :  { %6614 = vmatprep.subr.bf16.mxu0 %v9965_v51  ;;  %7462 = vmatprep.subr.bf16.mxu1 %v9968_v52  ;;  %v10049_v51 = vld [vmem:[%s14801_s1 + $0x504] ss:$16 sps:$4 sm:$0xff]   ;;  %v10052_v52 = vld [vmem:[%s14801_s1 + $0x50c] ss:$16 sps:$4 sm:$0xff]  }
  0x6b   :  { %6615 = vmatpush1.bf16.msra.mxu0 %v9963_v53  ;;  %7463 = vmatpush1.bf16.msra.mxu1 %v9966_v54  ;;  %v10047_v53 = vld [vmem:[%s14801_s1 + $0x500] ss:$16 sps:$4 sm:$0xff]   ;;  %v10050_v54 = vld [vmem:[%s14801_s1 + $0x508] ss:$16 sps:$4 sm:$0xff]  }
  0x6c   :  { %6616 = vmatprep.subr.bf16.mxu0 %v9971_v55  ;;  %7464 = vmatprep.subr.bf16.mxu1 %v9974_v56  ;;  %v10055_v55 = vld [vmem:[%s14801_s1 + $0x524] ss:$16 sps:$4 sm:$0xff]   ;;  %v10058_v56 = vld [vmem:[%s14801_s1 + $0x52c] ss:$16 sps:$4 sm:$0xff]  }
  0x6f   :  { %6617 = vmatpush1.bf16.msra.mxu0 %v9969_v57  ;;  %7465 = vmatpush1.bf16.msra.mxu1 %v9972_v58  ;;  %v10053_v57 = vld [vmem:[%s14801_s1 + $0x520] ss:$16 sps:$4 sm:$0xff]   ;;  %v10056_v58 = vld [vmem:[%s14801_s1 + $0x528] ss:$16 sps:$4 sm:$0xff]  }
  0x70   :  { %6618 = vmatprep.subr.bf16.mxu0 %v9977_v59  ;;  %7466 = vmatprep.subr.bf16.mxu1 %v9980_v60  ;;  %v10061_v59 = vld [vmem:[%s14801_s1 + $0x544] ss:$16 sps:$4 sm:$0xff]   ;;  %v10064_v60 = vld [vmem:[%s14801_s1 + $0x54c] ss:$16 sps:$4 sm:$0xff]  }
  0x73   :  { %6619 = vmatpush1.bf16.msra.mxu0 %v9975_v61  ;;  %7467 = vmatpush1.bf16.msra.mxu1 %v9978_v62  ;;  %v10059_v61 = vld [vmem:[%s14801_s1 + $0x540] ss:$16 sps:$4 sm:$0xff]   ;;  %v10062_v62 = vld [vmem:[%s14801_s1 + $0x548] ss:$16 sps:$4 sm:$0xff]  }
  0x74   :  { %6620 = vmatprep.subr.bf16.mxu0 %v9983_v63  ;;  %7468 = vmatprep.subr.bf16.mxu1 %v9986_v0  ;;  %v10067_v63 = vld [vmem:[%s14801_s1 + $0x564] ss:$16 sps:$4 sm:$0xff]   ;;  %v10070_v0 = vld [vmem:[%s14801_s1 + $0x56c] ss:$16 sps:$4 sm:$0xff]  }
  0x77   :  { %6621 = vmatpush1.bf16.msra.mxu0 %v9981_v1  ;;  %7469 = vmatpush1.bf16.msra.mxu1 %v9984_v2  ;;  %v10065_v1 = vld [vmem:[%s14801_s1 + $0x560] ss:$16 sps:$4 sm:$0xff]   ;;  %v10068_v2 = vld [vmem:[%s14801_s1 + $0x568] ss:$16 sps:$4 sm:$0xff]  }
  0x78   :  { %6622 = vmatprep.subr.bf16.mxu0 %v9989_v3  ;;  %7470 = vmatprep.subr.bf16.mxu1 %v9992_v4  ;;  %v10073_v3 = vld [vmem:[%s14801_s1 + $0x584] ss:$16 sps:$4 sm:$0xff]   ;;  %v10076_v4 = vld [vmem:[%s14801_s1 + $0x58c] ss:$16 sps:$4 sm:$0xff]  }
  0x7b   :  { %6623 = vmatpush1.bf16.msra.mxu0 %v9987_v5  ;;  %7471 = vmatpush1.bf16.msra.mxu1 %v9990_v6  ;;  %v10071_v5 = vld [vmem:[%s14801_s1 + $0x580] ss:$16 sps:$4 sm:$0xff]   ;;  %v10074_v6 = vld [vmem:[%s14801_s1 + $0x588] ss:$16 sps:$4 sm:$0xff]  }
  0x7c   :  { %6624 = vmatprep.subr.bf16.mxu0 %v9995_v7  ;;  %7472 = vmatprep.subr.bf16.mxu1 %v9998_v8  ;;  %v10079_v7 = vld [vmem:[%s14801_s1 + $0x5a4] ss:$16 sps:$4 sm:$0xff]   ;;  %v10082_v8 = vld [vmem:[%s14801_s1 + $0x5ac] ss:$16 sps:$4 sm:$0xff]  }
  0x7f   :  { %6625 = vmatpush1.bf16.msra.mxu0 %v9993_v9  ;;  %7473 = vmatpush1.bf16.msra.mxu1 %v9996_v10  ;;  %v10077_v9 = vld [vmem:[%s14801_s1 + $0x5a0] ss:$16 sps:$4 sm:$0xff]   ;;  %v10080_v10 = vld [vmem:[%s14801_s1 + $0x5a8] ss:$16 sps:$4 sm:$0xff]  }
  0x80   :  { %6647 = vmatprep.subr.bf16.mxu0 %v10001_v11  ;;  %7495 = vmatprep.subr.bf16.mxu1 %v10004_v12  ;;  %v10085_v11 = vld [vmem:[%s14801_s1 + $0x5c4] ss:$16 sps:$4 sm:$0xff]   ;;  %v10088_v12 = vld [vmem:[%s14801_s1 + $0x5cc] ss:$16 sps:$4 sm:$0xff]  }
  0x82   :  { %6627 = vmatmul.mubr.bf16.vlgmr.msra.gmra.mrb[0].mxu0 %v8462_v15  ;;  %7475 = vmatmul.mubr.bf16.vlgmr.msra.gmra.mrb[0].mxu1 %v8462_v15  ;;  %v10091_v15 = vld [vmem:[%s14801_s1 + $0x5e4] ss:$16 sps:$4 sm:$0xff]  }
  0x83   :  { %6648 = vmatpush1.bf16.msra.mxu0 %v9999_v13  ;;  %7496 = vmatpush1.bf16.msra.mxu1 %v10002_v14  ;;  %v10083_v13 = vld [vmem:[%s14801_s1 + $0x5c0] ss:$16 sps:$4 sm:$0xff]   ;;  %v10086_v14 = vld [vmem:[%s14801_s1 + $0x5c8] ss:$16 sps:$4 sm:$0xff]  }
  0x84   :  { %6649 = vmatprep.subr.bf16.mxu0 %v10007_v18  ;;  %7497 = vmatprep.subr.bf16.mxu1 %v10010_v19  ;;  %v10092_v18 = vld [vmem:[%s14801_s1 + $0x5e8] ss:$16 sps:$4 sm:$0xff]   ;;  %v10097_v19 = vld [vmem:[%s14801_s1 + $0x604] ss:$16 sps:$4 sm:$0xff]  }
  0x85   :  { %6636 = vmatprep.mubr.bf16.mxu0 %v8495_v20  ;;  %7484 = vmatprep.mubr.bf16.mxu1 %v8495_v20  ;;  %v10100_v20 = vld [vmem:[%s14801_s1 + $0x60c] ss:$16 sps:$4 sm:$0xff]  }
  0x87   :  { %6650 = vmatpush1.bf16.msra.mxu0 %v10005_v21  ;;  %7498 = vmatpush1.bf16.msra.mxu1 %v10008_v22  ;;  %v47_v21 = vld [vmem:[%s14802_s0 + $0x110] sm:$0xff]  ;;  %v8464_v22 = vcombine.low %v11814_v25, %v11819_v27  ;;  %v10106_v27 = vld [vmem:[%s14801_s1 + $0x62c] ss:$16 sps:$4 sm:$0xff]  }
  0x88   :  { %6651 = vmatprep.subr.bf16.mxu0 %v10013_v23  ;;  %7499 = vmatprep.subr.bf16.mxu1 %v10016_v24  ;;  %v63_v23 = vld [vmem:[%s14802_s0 + $0x190] sm:$0xff] }
  0x89   :  { %v10095_v24 = vld [vmem:[%s14801_s1 + $0x600] ss:$16 sps:$4 sm:$0xff]   ;;  %v10103_v25 = vld [vmem:[%s14801_s1 + $0x624] ss:$16 sps:$4 sm:$0xff]  }
  0x8a   :  { %6637 = vmatmul.mubr.bf16.gmra.mrb[4].mxu0 %v8494_v26  ;;  %7485 = vmatmul.mubr.bf16.gmra.mrb[4].mxu1 %v8494_v26  ;;  %v10098_v26 = vld [vmem:[%s14801_s1 + $0x608] ss:$16 sps:$4 sm:$0xff]  }
  0x8b   :  { %6652 = vmatpush1.bf16.msra.mxu0 %v10011_v28  ;;  %7500 = vmatpush1.bf16.msra.mxu1 %v10014_v29  ;;  %v8497_v28 = vcombine.high %v47_v21, %v63_v23  ;;  %v10101_v29 = vld [vmem:[%s14801_s1 + $0x620] ss:$16 sps:$4 sm:$0xff]  }
  0x8c   :  { %6653 = vmatprep.subr.bf16.mxu0 %v10019_v30  ;;  %7501 = vmatprep.subr.bf16.mxu1 %v10022_v31  ;;  %v10104_v30 = vld [vmem:[%s14801_s1 + $0x628] ss:$16 sps:$4 sm:$0xff]   ;;  %v10109_v31 = vld [vmem:[%s14801_s1 + $0x644] ss:$16 sps:$4 sm:$0xff]  }
  0x8d   :  { %6679 = vmatprep.mubr.bf16.mxu0 %v8465_v32  ;;  %7527 = vmatprep.mubr.bf16.mxu1 %v8465_v32  ;;  %v10112_v32 = vld [vmem:[%s14801_s1 + $0x64c] ss:$16 sps:$4 sm:$0xff]  }
  0x8f   :  { %6654 = vmatpush1.bf16.msra.mxu0 %v10017_v33  ;;  %7502 = vmatpush1.bf16.msra.mxu1 %v10020_v34  ;;  %v12026_v33 = vld [vmem:[%s14802_s0 + $0x18] sm:$0xff]  ;;  %v8496_v34 = vcombine.low %v47_v21, %v63_v23  ;;  %v10179_v21 = vld [vmem:[%s14801_s1 + $0x7c0] ss:$16 sps:$4 sm:$0xff]   ;;  %v10187_v23 = vld [vmem:[%s14801_s1 + $0x7e4] ss:$16 sps:$4 sm:$0xff]  }
  0x90   :  { %6655 = vmatprep.subr.bf16.mxu0 %v10025_v35  ;;  %7503 = vmatprep.subr.bf16.mxu1 %v10028_v36  ;;  %v12031_v35 = vld [vmem:[%s14802_s0 + $0x98] sm:$0xff]  ;;  %v10107_v36 = vld [vmem:[%s14801_s1 + $0x640] ss:$16 sps:$4 sm:$0xff]  }
  0x93   :  { %6656 = vmatpush1.bf16.msra.mxu0 %v10023_v37  ;;  %7504 = vmatpush1.bf16.msra.mxu1 %v10026_v38  ;;  %v10110_v37 = vld [vmem:[%s14801_s1 + $0x648] ss:$16 sps:$4 sm:$0xff]   ;;  %v10115_v38 = vld [vmem:[%s14801_s1 + $0x664] ss:$16 sps:$4 sm:$0xff]  }
  0x94   :  { %6657 = vmatprep.subr.bf16.mxu0 %v10031_v39  ;;  %7505 = vmatprep.subr.bf16.mxu1 %v10034_v40  ;;  %v10118_v39 = vld [vmem:[%s14801_s1 + $0x66c] ss:$16 sps:$4 sm:$0xff]   ;;  %v8467_v40 = vcombine.high %v12026_v33, %v12031_v35 }
  0x97   :  { %6658 = vmatpush1.bf16.msra.mxu0 %v10029_v41  ;;  %7506 = vmatpush1.bf16.msra.mxu1 %v10032_v42  ;;  %v10113_v41 = vld [vmem:[%s14801_s1 + $0x660] ss:$16 sps:$4 sm:$0xff]   ;;  %v10116_v42 = vld [vmem:[%s14801_s1 + $0x668] ss:$16 sps:$4 sm:$0xff]  }
  0x98   :  { %6659 = vmatprep.subr.bf16.mxu0 %v10037_v43  ;;  %7507 = vmatprep.subr.bf16.mxu1 %v10040_v44  ;;  %v10121_v43 = vld [vmem:[%s14801_s1 + $0x684] ss:$16 sps:$4 sm:$0xff]   ;;  %v10124_v44 = vld [vmem:[%s14801_s1 + $0x68c] ss:$16 sps:$4 sm:$0xff]  }
  0x9b   :  { %6660 = vmatpush1.bf16.msra.mxu0 %v10035_v45  ;;  %7508 = vmatpush1.bf16.msra.mxu1 %v10038_v46  ;;  %v10119_v45 = vld [vmem:[%s14801_s1 + $0x680] ss:$16 sps:$4 sm:$0xff]   ;;  %v10122_v46 = vld [vmem:[%s14801_s1 + $0x688] ss:$16 sps:$4 sm:$0xff]  }
  0x9c   :  { %6661 = vmatprep.subr.bf16.mxu0 %v10043_v47  ;;  %7509 = vmatprep.subr.bf16.mxu1 %v10046_v48  ;;  %v10127_v47 = vld [vmem:[%s14801_s1 + $0x6a4] ss:$16 sps:$4 sm:$0xff]   ;;  %v10130_v48 = vld [vmem:[%s14801_s1 + $0x6ac] ss:$16 sps:$4 sm:$0xff]  }
  0x9f   :  { %6662 = vmatpush1.bf16.msra.mxu0 %v10041_v49  ;;  %7510 = vmatpush1.bf16.msra.mxu1 %v10044_v50  ;;  %v10125_v49 = vld [vmem:[%s14801_s1 + $0x6a0] ss:$16 sps:$4 sm:$0xff]   ;;  %v10128_v50 = vld [vmem:[%s14801_s1 + $0x6a8] ss:$16 sps:$4 sm:$0xff]  }
  0xa0   :  { %6663 = vmatprep.subr.bf16.mxu0 %v10049_v51  ;;  %7511 = vmatprep.subr.bf16.mxu1 %v10052_v52  ;;  %v10133_v51 = vld [vmem:[%s14801_s1 + $0x6c4] ss:$16 sps:$4 sm:$0xff]   ;;  %v10136_v52 = vld [vmem:[%s14801_s1 + $0x6cc] ss:$16 sps:$4 sm:$0xff]  }
  0xa3   :  { %6664 = vmatpush1.bf16.msra.mxu0 %v10047_v53  ;;  %7512 = vmatpush1.bf16.msra.mxu1 %v10050_v54  ;;  %v10131_v53 = vld [vmem:[%s14801_s1 + $0x6c0] ss:$16 sps:$4 sm:$0xff]   ;;  %v10134_v54 = vld [vmem:[%s14801_s1 + $0x6c8] ss:$16 sps:$4 sm:$0xff]  }
  0xa4   :  { %6665 = vmatprep.subr.bf16.mxu0 %v10055_v55  ;;  %7513 = vmatprep.subr.bf16.mxu1 %v10058_v56  ;;  %v10139_v55 = vld [vmem:[%s14801_s1 + $0x6e4] ss:$16 sps:$4 sm:$0xff]   ;;  %v10142_v56 = vld [vmem:[%s14801_s1 + $0x6ec] ss:$16 sps:$4 sm:$0xff]  }
  0xa7   :  { %6666 = vmatpush1.bf16.msra.mxu0 %v10053_v57  ;;  %7514 = vmatpush1.bf16.msra.mxu1 %v10056_v58  ;;  %v10137_v57 = vld [vmem:[%s14801_s1 + $0x6e0] ss:$16 sps:$4 sm:$0xff]   ;;  %v10140_v58 = vld [vmem:[%s14801_s1 + $0x6e8] ss:$16 sps:$4 sm:$0xff]  }
  0xa8   :  { %6667 = vmatprep.subr.bf16.mxu0 %v10061_v59  ;;  %7515 = vmatprep.subr.bf16.mxu1 %v10064_v60  ;;  %v10145_v59 = vld [vmem:[%s14801_s1 + $0x704] ss:$16 sps:$4 sm:$0xff]   ;;  %v10148_v60 = vld [vmem:[%s14801_s1 + $0x70c] ss:$16 sps:$4 sm:$0xff]  }
  0xab   :  { %6668 = vmatpush1.bf16.msra.mxu0 %v10059_v61  ;;  %7516 = vmatpush1.bf16.msra.mxu1 %v10062_v62  ;;  %v10143_v61 = vld [vmem:[%s14801_s1 + $0x700] ss:$16 sps:$4 sm:$0xff]   ;;  %v10146_v62 = vld [vmem:[%s14801_s1 + $0x708] ss:$16 sps:$4 sm:$0xff]  }
  0xac   :  { %6669 = vmatprep.subr.bf16.mxu0 %v10067_v63  ;;  %7517 = vmatprep.subr.bf16.mxu1 %v10070_v0  ;;  %v10151_v63 = vld [vmem:[%s14801_s1 + $0x724] ss:$16 sps:$4 sm:$0xff]   ;;  %v10154_v0 = vld [vmem:[%s14801_s1 + $0x72c] ss:$16 sps:$4 sm:$0xff]  }
  0xaf   :  { %6670 = vmatpush1.bf16.msra.mxu0 %v10065_v1  ;;  %7518 = vmatpush1.bf16.msra.mxu1 %v10068_v2  ;;  %v10149_v1 = vld [vmem:[%s14801_s1 + $0x720] ss:$16 sps:$4 sm:$0xff]   ;;  %v10152_v2 = vld [vmem:[%s14801_s1 + $0x728] ss:$16 sps:$4 sm:$0xff]  }
  0xb0   :  { %6671 = vmatprep.subr.bf16.mxu0 %v10073_v3  ;;  %7519 = vmatprep.subr.bf16.mxu1 %v10076_v4  ;;  %v10157_v3 = vld [vmem:[%s14801_s1 + $0x744] ss:$16 sps:$4 sm:$0xff]   ;;  %v10160_v4 = vld [vmem:[%s14801_s1 + $0x74c] ss:$16 sps:$4 sm:$0xff]  }
  0xb3   :  { %6672 = vmatpush1.bf16.msra.mxu0 %v10071_v5  ;;  %7520 = vmatpush1.bf16.msra.mxu1 %v10074_v6  ;;  %v10155_v5 = vld [vmem:[%s14801_s1 + $0x740] ss:$16 sps:$4 sm:$0xff]   ;;  %v10158_v6 = vld [vmem:[%s14801_s1 + $0x748] ss:$16 sps:$4 sm:$0xff]  }
  0xb4   :  { %6673 = vmatprep.subr.bf16.mxu0 %v10079_v7  ;;  %7521 = vmatprep.subr.bf16.mxu1 %v10082_v8  ;;  %v10163_v7 = vld [vmem:[%s14801_s1 + $0x764] ss:$16 sps:$4 sm:$0xff]   ;;  %v10166_v8 = vld [vmem:[%s14801_s1 + $0x76c] ss:$16 sps:$4 sm:$0xff]  }
  0xb7   :  { %6674 = vmatpush1.bf16.msra.mxu0 %v10077_v9  ;;  %7522 = vmatpush1.bf16.msra.mxu1 %v10080_v10  ;;  %v10161_v9 = vld [vmem:[%s14801_s1 + $0x760] ss:$16 sps:$4 sm:$0xff]   ;;  %v10164_v10 = vld [vmem:[%s14801_s1 + $0x768] ss:$16 sps:$4 sm:$0xff]  }
  0xb8   :  { %6675 = vmatprep.subr.bf16.mxu0 %v10085_v11  ;;  %7523 = vmatprep.subr.bf16.mxu1 %v10088_v12  ;;  %v10169_v11 = vld [vmem:[%s14801_s1 + $0x784] ss:$16 sps:$4 sm:$0xff]   ;;  %v10172_v12 = vld [vmem:[%s14801_s1 + $0x78c] ss:$16 sps:$4 sm:$0xff]  }
  0xbb   :  { %6676 = vmatpush1.bf16.msra.mxu0 %v10083_v13  ;;  %7524 = vmatpush1.bf16.msra.mxu1 %v10086_v14  ;;  %v10167_v13 = vld [vmem:[%s14801_s1 + $0x780] ss:$16 sps:$4 sm:$0xff]   ;;  %v10170_v14 = vld [vmem:[%s14801_s1 + $0x788] ss:$16 sps:$4 sm:$0xff]  }
  0xbc   :  { %6677 = vmatprep.subr.bf16.mxu0 %v10091_v15  ;;  %7525 = vmatprep.subr.bf16.mxu1 %v10094_v16  ;;  %v10175_v15 = vld [vmem:[%s14801_s1 + $0x7a4] ss:$16 sps:$4 sm:$0xff]   ;;  %v10178_v16 = vld [vmem:[%s14801_s1 + $0x7ac] ss:$16 sps:$4 sm:$0xff]  }
  0xbf   :  { %6678 = vmatpush1.bf16.msra.mxu0 %v10089_v17  ;;  %7526 = vmatpush1.bf16.msra.mxu1 %v10092_v18  ;;  %v10173_v17 = vld [vmem:[%s14801_s1 + $0x7a0] ss:$16 sps:$4 sm:$0xff]   ;;  %v10176_v18 = vld [vmem:[%s14801_s1 + $0x7a8] ss:$16 sps:$4 sm:$0xff]  }
  0xc0   :  { %6700 = vmatprep.subr.bf16.mxu0 %v10097_v19  ;;  %7548 = vmatprep.subr.bf16.mxu1 %v10100_v20  ;;  %v10181_v19 = vld [vmem:[%s14801_s1 + $0x7c4] ss:$16 sps:$4 sm:$0xff]   ;;  %v10184_v20 = vld [vmem:[%s14801_s1 + $0x7cc] ss:$16 sps:$4 sm:$0xff]  }
  0xc2   :  { %6680 = vmatmul.mubr.bf16.vlgmr.msra.gmra.mrb[0].mxu0 %v8464_v22  ;;  %7528 = vmatmul.mubr.bf16.vlgmr.msra.gmra.mrb[0].mxu1 %v8464_v22  ;;  %v10182_v22 = vld [vmem:[%s14801_s1 + $0x7c8] ss:$16 sps:$4 sm:$0xff]  }
  0xc3   :  { %6701 = vmatpush1.bf16.msra.mxu0 %v10095_v24  ;;  %7549 = vmatpush1.bf16.msra.mxu1 %v10098_v26  ;;  %v10190_v24 = vld [vmem:[%s14801_s1 + $0x7ec] ss:$16 sps:$4 sm:$0xff]   ;;  %v10185_v26 = vld [vmem:[%s14801_s1 + $0x7e0] ss:$16 sps:$4 sm:$0xff]  }
  0xc4   :  { %6702 = vmatprep.subr.bf16.mxu0 %v10103_v25  ;;  %7550 = vmatprep.subr.bf16.mxu1 %v10106_v27  ;;  %v10188_v25 = vld [vmem:[%s14801_s1 + $0x7e8] ss:$16 sps:$4 sm:$0xff]   ;;  %v10193_v27 = vld [vmem:[%s14801_s1 + $0x804] ss:$16 sps:$4 sm:$0xff]  }
  0xc5   :  { %6689 = vmatprep.mubr.bf16.mxu0 %v8497_v28  ;;  %7537 = vmatprep.mubr.bf16.mxu1 %v8497_v28  ;;  %v10196_v28 = vld [vmem:[%s14801_s1 + $0x80c] ss:$16 sps:$4 sm:$0xff]  }
  0xc7   :  { %6703 = vmatpush1.bf16.msra.mxu0 %v10101_v29  ;;  %7551 = vmatpush1.bf16.msra.mxu1 %v10104_v30  ;;  %v48_v29 = vld [vmem:[%s14802_s0 + $0x118] sm:$0xff]  ;;  %v8466_v30 = vcombine.low %v12026_v33, %v12031_v35 }
  0xc8   :  { %6704 = vmatprep.subr.bf16.mxu0 %v10109_v31  ;;  %7552 = vmatprep.subr.bf16.mxu1 %v10112_v32  ;;  %v64_v31 = vld [vmem:[%s14802_s0 + $0x198] sm:$0xff]  ;;  %v10191_v32 = vld [vmem:[%s14801_s1 + $0x800] ss:$16 sps:$4 sm:$0xff]  }
  0xc9   :  { %v10202_v33 = vld [vmem:[%s14801_s1 + $0x82c] ss:$16 sps:$4 sm:$0xff]   ;;  %v8499_v35 = vcombine.high %v48_v29, %v64_v31 }
  0xca   :  { %6690 = vmatmul.mubr.bf16.gmra.mrb[4].mxu0 %v8496_v34  ;;  %7538 = vmatmul.mubr.bf16.gmra.mrb[4].mxu1 %v8496_v34  ;;  %v10194_v34 = vld [vmem:[%s14801_s1 + $0x808] ss:$16 sps:$4 sm:$0xff]  }
  0xcb   :  { %6705 = vmatpush1.bf16.msra.mxu0 %v10107_v36  ;;  %7553 = vmatpush1.bf16.msra.mxu1 %v10110_v37  ;;  %v10199_v36 = vld [vmem:[%s14801_s1 + $0x824] ss:$16 sps:$4 sm:$0xff]   ;;  %v10197_v37 = vld [vmem:[%s14801_s1 + $0x820] ss:$16 sps:$4 sm:$0xff]  }
  0xcc   :  { %6706 = vmatprep.subr.bf16.mxu0 %v10115_v38  ;;  %7554 = vmatprep.subr.bf16.mxu1 %v10118_v39  ;;  %v10200_v38 = vld [vmem:[%s14801_s1 + $0x828] ss:$16 sps:$4 sm:$0xff]   ;;  %v10205_v39 = vld [vmem:[%s14801_s1 + $0x844] ss:$16 sps:$4 sm:$0xff]  }
  0xcd   :  { %6732 = vmatprep.mubr.bf16.mxu0 %v8467_v40  ;;  %7580 = vmatprep.mubr.bf16.mxu1 %v8467_v40  ;;  %v10208_v40 = vld [vmem:[%s14801_s1 + $0x84c] ss:$16 sps:$4 sm:$0xff]  }
  0xcf   :  { %6707 = vmatpush1.bf16.msra.mxu0 %v10113_v41  ;;  %7555 = vmatpush1.bf16.msra.mxu1 %v10116_v42  ;;  %v12238_v41 = vld [vmem:[%s14802_s0 + $0x20] sm:$0xff]  ;;  %v8498_v42 = vcombine.low %v48_v29, %v64_v31 }
  0xd0   :  { %6708 = vmatprep.subr.bf16.mxu0 %v10121_v43  ;;  %7556 = vmatprep.subr.bf16.mxu1 %v10124_v44  ;;  %v12243_v43 = vld [vmem:[%s14802_s0 + $0xa0] sm:$0xff] }
  0xd1   :  { %v10203_v44 = vld [vmem:[%s14801_s1 + $0x840] ss:$16 sps:$4 sm:$0xff]   ;;  %v10283_v31 = vld [vmem:[%s14801_s1 + $0x9e4] ss:$16 sps:$4 sm:$0xff]  }
  0xd2   :  { %v10275_v29 = vld [vmem:[%s14801_s1 + $0x9c0] ss:$16 sps:$4 sm:$0xff]  }
  0xd3   :  { %6709 = vmatpush1.bf16.msra.mxu0 %v10119_v45  ;;  %7557 = vmatpush1.bf16.msra.mxu1 %v10122_v46  ;;  %v10206_v45 = vld [vmem:[%s14801_s1 + $0x848] ss:$16 sps:$4 sm:$0xff]   ;;  %v10211_v46 = vld [vmem:[%s14801_s1 + $0x864] ss:$16 sps:$4 sm:$0xff]  }
  0xd4   :  { %6710 = vmatprep.subr.bf16.mxu0 %v10127_v47  ;;  %7558 = vmatprep.subr.bf16.mxu1 %v10130_v48  ;;  %v10214_v47 = vld [vmem:[%s14801_s1 + $0x86c] ss:$16 sps:$4 sm:$0xff]   ;;  %v8469_v48 = vcombine.high %v12238_v41, %v12243_v43 }
  0xd7   :  { %6711 = vmatpush1.bf16.msra.mxu0 %v10125_v49  ;;  %7559 = vmatpush1.bf16.msra.mxu1 %v10128_v50  ;;  %v10209_v49 = vld [vmem:[%s14801_s1 + $0x860] ss:$16 sps:$4 sm:$0xff]   ;;  %v10212_v50 = vld [vmem:[%s14801_s1 + $0x868] ss:$16 sps:$4 sm:$0xff]  }
  0xd8   :  { %6712 = vmatprep.subr.bf16.mxu0 %v10133_v51  ;;  %7560 = vmatprep.subr.bf16.mxu1 %v10136_v52  ;;  %v10217_v51 = vld [vmem:[%s14801_s1 + $0x884] ss:$16 sps:$4 sm:$0xff]   ;;  %v10220_v52 = vld [vmem:[%s14801_s1 + $0x88c] ss:$16 sps:$4 sm:$0xff]  }
  0xdb   :  { %6713 = vmatpush1.bf16.msra.mxu0 %v10131_v53  ;;  %7561 = vmatpush1.bf16.msra.mxu1 %v10134_v54  ;;  %v10215_v53 = vld [vmem:[%s14801_s1 + $0x880] ss:$16 sps:$4 sm:$0xff]   ;;  %v10218_v54 = vld [vmem:[%s14801_s1 + $0x888] ss:$16 sps:$4 sm:$0xff]  }
  0xdc   :  { %6714 = vmatprep.subr.bf16.mxu0 %v10139_v55  ;;  %7562 = vmatprep.subr.bf16.mxu1 %v10142_v56  ;;  %v10223_v55 = vld [vmem:[%s14801_s1 + $0x8a4] ss:$16 sps:$4 sm:$0xff]   ;;  %v10226_v56 = vld [vmem:[%s14801_s1 + $0x8ac] ss:$16 sps:$4 sm:$0xff]  }
  0xdf   :  { %6715 = vmatpush1.bf16.msra.mxu0 %v10137_v57  ;;  %7563 = vmatpush1.bf16.msra.mxu1 %v10140_v58  ;;  %v10221_v57 = vld [vmem:[%s14801_s1 + $0x8a0] ss:$16 sps:$4 sm:$0xff]   ;;  %v10224_v58 = vld [vmem:[%s14801_s1 + $0x8a8] ss:$16 sps:$4 sm:$0xff]  }
  0xe0   :  { %6716 = vmatprep.subr.bf16.mxu0 %v10145_v59  ;;  %7564 = vmatprep.subr.bf16.mxu1 %v10148_v60  ;;  %v10229_v59 = vld [vmem:[%s14801_s1 + $0x8c4] ss:$16 sps:$4 sm:$0xff]   ;;  %v10232_v60 = vld [vmem:[%s14801_s1 + $0x8cc] ss:$16 sps:$4 sm:$0xff]  }
  0xe3   :  { %6717 = vmatpush1.bf16.msra.mxu0 %v10143_v61  ;;  %7565 = vmatpush1.bf16.msra.mxu1 %v10146_v62  ;;  %v10227_v61 = vld [vmem:[%s14801_s1 + $0x8c0] ss:$16 sps:$4 sm:$0xff]   ;;  %v10230_v62 = vld [vmem:[%s14801_s1 + $0x8c8] ss:$16 sps:$4 sm:$0xff]  }
  0xe4   :  { %6718 = vmatprep.subr.bf16.mxu0 %v10151_v63  ;;  %7566 = vmatprep.subr.bf16.mxu1 %v10154_v0  ;;  %v10235_v63 = vld [vmem:[%s14801_s1 + $0x8e4] ss:$16 sps:$4 sm:$0xff]   ;;  %v10238_v0 = vld [vmem:[%s14801_s1 + $0x8ec] ss:$16 sps:$4 sm:$0xff]  }
  0xe7   :  { %6719 = vmatpush1.bf16.msra.mxu0 %v10149_v1  ;;  %7567 = vmatpush1.bf16.msra.mxu1 %v10152_v2  ;;  %v10233_v1 = vld [vmem:[%s14801_s1 + $0x8e0] ss:$16 sps:$4 sm:$0xff]   ;;  %v10236_v2 = vld [vmem:[%s14801_s1 + $0x8e8] ss:$16 sps:$4 sm:$0xff]  }
  0xe8   :  { %6720 = vmatprep.subr.bf16.mxu0 %v10157_v3  ;;  %7568 = vmatprep.subr.bf16.mxu1 %v10160_v4  ;;  %v10241_v3 = vld [vmem:[%s14801_s1 + $0x904] ss:$16 sps:$4 sm:$0xff]   ;;  %v10244_v4 = vld [vmem:[%s14801_s1 + $0x90c] ss:$16 sps:$4 sm:$0xff]  }
  0xeb   :  { %6721 = vmatpush1.bf16.msra.mxu0 %v10155_v5  ;;  %7569 = vmatpush1.bf16.msra.mxu1 %v10158_v6  ;;  %v10239_v5 = vld [vmem:[%s14801_s1 + $0x900] ss:$16 sps:$4 sm:$0xff]   ;;  %v10242_v6 = vld [vmem:[%s14801_s1 + $0x908] ss:$16 sps:$4 sm:$0xff]  }
  0xec   :  { %6722 = vmatprep.subr.bf16.mxu0 %v10163_v7  ;;  %7570 = vmatprep.subr.bf16.mxu1 %v10166_v8  ;;  %v10247_v7 = vld [vmem:[%s14801_s1 + $0x924] ss:$16 sps:$4 sm:$0xff]   ;;  %v10250_v8 = vld [vmem:[%s14801_s1 + $0x92c] ss:$16 sps:$4 sm:$0xff]  }
  0xef   :  { %6723 = vmatpush1.bf16.msra.mxu0 %v10161_v9  ;;  %7571 = vmatpush1.bf16.msra.mxu1 %v10164_v10  ;;  %v10245_v9 = vld [vmem:[%s14801_s1 + $0x920] ss:$16 sps:$4 sm:$0xff]   ;;  %v10248_v10 = vld [vmem:[%s14801_s1 + $0x928] ss:$16 sps:$4 sm:$0xff]  }
  0xf0   :  { %6724 = vmatprep.subr.bf16.mxu0 %v10169_v11  ;;  %7572 = vmatprep.subr.bf16.mxu1 %v10172_v12  ;;  %v10253_v11 = vld [vmem:[%s14801_s1 + $0x944] ss:$16 sps:$4 sm:$0xff]   ;;  %v10256_v12 = vld [vmem:[%s14801_s1 + $0x94c] ss:$16 sps:$4 sm:$0xff]  }
  0xf3   :  { %6725 = vmatpush1.bf16.msra.mxu0 %v10167_v13  ;;  %7573 = vmatpush1.bf16.msra.mxu1 %v10170_v14  ;;  %v10251_v13 = vld [vmem:[%s14801_s1 + $0x940] ss:$16 sps:$4 sm:$0xff]   ;;  %v10254_v14 = vld [vmem:[%s14801_s1 + $0x948] ss:$16 sps:$4 sm:$0xff]  }
  0xf4   :  { %6726 = vmatprep.subr.bf16.mxu0 %v10175_v15  ;;  %7574 = vmatprep.subr.bf16.mxu1 %v10178_v16  ;;  %v10259_v15 = vld [vmem:[%s14801_s1 + $0x964] ss:$16 sps:$4 sm:$0xff]   ;;  %v10262_v16 = vld [vmem:[%s14801_s1 + $0x96c] ss:$16 sps:$4 sm:$0xff]  }
  0xf7   :  { %6727 = vmatpush1.bf16.msra.mxu0 %v10173_v17  ;;  %7575 = vmatpush1.bf16.msra.mxu1 %v10176_v18  ;;  %v10257_v17 = vld [vmem:[%s14801_s1 + $0x960] ss:$16 sps:$4 sm:$0xff]   ;;  %v10260_v18 = vld [vmem:[%s14801_s1 + $0x968] ss:$16 sps:$4 sm:$0xff]  }
  0xf8   :  { %6728 = vmatprep.subr.bf16.mxu0 %v10181_v19  ;;  %7576 = vmatprep.subr.bf16.mxu1 %v10184_v20  ;;  %v10265_v19 = vld [vmem:[%s14801_s1 + $0x984] ss:$16 sps:$4 sm:$0xff]   ;;  %v10268_v20 = vld [vmem:[%s14801_s1 + $0x98c] ss:$16 sps:$4 sm:$0xff]  }
  0xfb   :  { %6729 = vmatpush1.bf16.msra.mxu0 %v10179_v21  ;;  %7577 = vmatpush1.bf16.msra.mxu1 %v10182_v22  ;;  %v10263_v21 = vld [vmem:[%s14801_s1 + $0x980] ss:$16 sps:$4 sm:$0xff]   ;;  %v10266_v22 = vld [vmem:[%s14801_s1 + $0x988] ss:$16 sps:$4 sm:$0xff]  }
  0xfc   :  { %6730 = vmatprep.subr.bf16.mxu0 %v10187_v23  ;;  %7578 = vmatprep.subr.bf16.mxu1 %v10190_v24  ;;  %v10271_v23 = vld [vmem:[%s14801_s1 + $0x9a4] ss:$16 sps:$4 sm:$0xff]   ;;  %v10274_v24 = vld [vmem:[%s14801_s1 + $0x9ac] ss:$16 sps:$4 sm:$0xff]  }
  0xff   :  { %6731 = vmatpush1.bf16.msra.mxu0 %v10185_v26  ;;  %7579 = vmatpush1.bf16.msra.mxu1 %v10188_v25  ;;  %v10269_v26 = vld [vmem:[%s14801_s1 + $0x9a0] ss:$16 sps:$4 sm:$0xff]   ;;  %v10272_v25 = vld [vmem:[%s14801_s1 + $0x9a8] ss:$16 sps:$4 sm:$0xff]  }
 0x100   :  { %6753 = vmatprep.subr.bf16.mxu0 %v10193_v27  ;;  %7601 = vmatprep.subr.bf16.mxu1 %v10196_v28  ;;  %v10277_v27 = vld [vmem:[%s14801_s1 + $0x9c4] ss:$16 sps:$4 sm:$0xff]   ;;  %v10280_v28 = vld [vmem:[%s14801_s1 + $0x9cc] ss:$16 sps:$4 sm:$0xff]  }
 0x102   :  { %6733 = vmatmul.mubr.bf16.vlgmr.msra.gmra.mrb[0].mxu0 %v8466_v30  ;;  %7581 = vmatmul.mubr.bf16.vlgmr.msra.gmra.mrb[0].mxu1 %v8466_v30  ;;  %v10278_v30 = vld [vmem:[%s14801_s1 + $0x9c8] ss:$16 sps:$4 sm:$0xff]  }
 0x103   :  { %6754 = vmatpush1.bf16.msra.mxu0 %v10191_v32  ;;  %7602 = vmatpush1.bf16.msra.mxu1 %v10194_v34  ;;  %v10286_v32 = vld [vmem:[%s14801_s1 + $0x9ec] ss:$16 sps:$4 sm:$0xff]   ;;  %v10281_v34 = vld [vmem:[%s14801_s1 + $0x9e0] ss:$16 sps:$4 sm:$0xff]  }
 0x104   :  { %6755 = vmatprep.subr.bf16.mxu0 %v10199_v36  ;;  %7603 = vmatprep.subr.bf16.mxu1 %v10202_v33  ;;  %v10284_v36 = vld [vmem:[%s14801_s1 + $0x9e8] ss:$16 sps:$4 sm:$0xff]   ;;  %v10289_v33 = vld [vmem:[%s14801_s1 + $0xa04] ss:$16 sps:$4 sm:$0xff]  }
 0x105   :  { %6742 = vmatprep.mubr.bf16.mxu0 %v8499_v35  ;;  %7590 = vmatprep.mubr.bf16.mxu1 %v8499_v35  ;;  %v10292_v35 = vld [vmem:[%s14801_s1 + $0xa0c] ss:$16 sps:$4 sm:$0xff]  }
 0x107   :  { %6756 = vmatpush1.bf16.msra.mxu0 %v10197_v37  ;;  %7604 = vmatpush1.bf16.msra.mxu1 %v10200_v38  ;;  %v49_v37 = vld [vmem:[%s14802_s0 + $0x120] sm:$0xff] }
 0x108   :  { %6757 = vmatprep.subr.bf16.mxu0 %v10205_v39  ;;  %7605 = vmatprep.subr.bf16.mxu1 %v10208_v40  ;;  %v65_v38 = vld [vmem:[%s14802_s0 + $0x1a0] sm:$0xff]  ;;  %v8468_v39 = vcombine.low %v12238_v41, %v12243_v43  ;;  %v10298_v41 = vld [vmem:[%s14801_s1 + $0xa2c] ss:$16 sps:$4 sm:$0xff]  }
 0x109   :  { %v10287_v40 = vld [vmem:[%s14801_s1 + $0xa00] ss:$16 sps:$4 sm:$0xff]  }
 0x10a   :  { %6743 = vmatmul.mubr.bf16.gmra.mrb[4].mxu0 %v8498_v42  ;;  %7591 = vmatmul.mubr.bf16.gmra.mrb[4].mxu1 %v8498_v42  ;;  %v10290_v42 = vld [vmem:[%s14801_s1 + $0xa08] ss:$16 sps:$4 sm:$0xff]   ;;  %v10293_v43 = vld [vmem:[%s14801_s1 + $0xa20] ss:$16 sps:$4 sm:$0xff]  }
 0x10b   :  { %6758 = vmatpush1.bf16.msra.mxu0 %v10203_v44  ;;  %7606 = vmatpush1.bf16.msra.mxu1 %v10206_v45  ;;  %v10295_v44 = vld [vmem:[%s14801_s1 + $0xa24] ss:$16 sps:$4 sm:$0xff]   ;;  %v10296_v45 = vld [vmem:[%s14801_s1 + $0xa28] ss:$16 sps:$4 sm:$0xff]  }
 0x10c   :  { %6759 = vmatprep.subr.bf16.mxu0 %v10211_v46  ;;  %7607 = vmatprep.subr.bf16.mxu1 %v10214_v47  ;;  %v8501_v46 = vcombine.high %v49_v37, %v65_v38  ;;  %v10301_v47 = vld [vmem:[%s14801_s1 + $0xa44] ss:$16 sps:$4 sm:$0xff]  }
 0x10d   :  { %6785 = vmatprep.mubr.bf16.mxu0 %v8469_v48  ;;  %7633 = vmatprep.mubr.bf16.mxu1 %v8469_v48  ;;  %v10304_v48 = vld [vmem:[%s14801_s1 + $0xa4c] ss:$16 sps:$4 sm:$0xff]  }
 0x10f   :  { %6760 = vmatpush1.bf16.msra.mxu0 %v10209_v49  ;;  %7608 = vmatpush1.bf16.msra.mxu1 %v10212_v50  ;;  %v12450_v49 = vld [vmem:[%s14802_s0 + $0x28] sm:$0xff] }
 0x110   :  { %6761 = vmatprep.subr.bf16.mxu0 %v10217_v51  ;;  %7609 = vmatprep.subr.bf16.mxu1 %v10220_v52  ;;  %v12455_v50 = vld [vmem:[%s14802_s0 + $0xa8] sm:$0xff]  ;;  %v8500_v51 = vcombine.low %v49_v37, %v65_v38  ;;  %v10299_v52 = vld [vmem:[%s14801_s1 + $0xa40] ss:$16 sps:$4 sm:$0xff]  }
 0x111   :  { %v10371_v37 = vld [vmem:[%s14801_s1 + $0xbc0] ss:$16 sps:$4 sm:$0xff]   ;;  %v10374_v38 = vld [vmem:[%s14801_s1 + $0xbc8] ss:$16 sps:$4 sm:$0xff]  }
 0x113   :  { %6762 = vmatpush1.bf16.msra.mxu0 %v10215_v53  ;;  %7610 = vmatpush1.bf16.msra.mxu1 %v10218_v54  ;;  %v10302_v53 = vld [vmem:[%s14801_s1 + $0xa48] ss:$16 sps:$4 sm:$0xff]   ;;  %v10307_v54 = vld [vmem:[%s14801_s1 + $0xa64] ss:$16 sps:$4 sm:$0xff]  }
 0x114   :  { %6763 = vmatprep.subr.bf16.mxu0 %v10223_v55  ;;  %7611 = vmatprep.subr.bf16.mxu1 %v10226_v56  ;;  %v10310_v55 = vld [vmem:[%s14801_s1 + $0xa6c] ss:$16 sps:$4 sm:$0xff]   ;;  %v8471_v56 = vcombine.high %v12450_v49, %v12455_v50 }
 0x117   :  { %6764 = vmatpush1.bf16.msra.mxu0 %v10221_v57  ;;  %7612 = vmatpush1.bf16.msra.mxu1 %v10224_v58  ;;  %v10305_v57 = vld [vmem:[%s14801_s1 + $0xa60] ss:$16 sps:$4 sm:$0xff]   ;;  %v10308_v58 = vld [vmem:[%s14801_s1 + $0xa68] ss:$16 sps:$4 sm:$0xff]  }
 0x118   :  { %6765 = vmatprep.subr.bf16.mxu0 %v10229_v59  ;;  %7613 = vmatprep.subr.bf16.mxu1 %v10232_v60  ;;  %v10313_v59 = vld [vmem:[%s14801_s1 + $0xa84] ss:$16 sps:$4 sm:$0xff]   ;;  %v10316_v60 = vld [vmem:[%s14801_s1 + $0xa8c] ss:$16 sps:$4 sm:$0xff]  }
 0x11b   :  { %6766 = vmatpush1.bf16.msra.mxu0 %v10227_v61  ;;  %7614 = vmatpush1.bf16.msra.mxu1 %v10230_v62  ;;  %v10311_v61 = vld [vmem:[%s14801_s1 + $0xa80] ss:$16 sps:$4 sm:$0xff]   ;;  %v10314_v62 = vld [vmem:[%s14801_s1 + $0xa88] ss:$16 sps:$4 sm:$0xff]  }
 0x11c   :  { %6767 = vmatprep.subr.bf16.mxu0 %v10235_v63  ;;  %7615 = vmatprep.subr.bf16.mxu1 %v10238_v0  ;;  %v10319_v63 = vld [vmem:[%s14801_s1 + $0xaa4] ss:$16 sps:$4 sm:$0xff]   ;;  %v10322_v0 = vld [vmem:[%s14801_s1 + $0xaac] ss:$16 sps:$4 sm:$0xff]  }
 0x11f   :  { %6768 = vmatpush1.bf16.msra.mxu0 %v10233_v1  ;;  %7616 = vmatpush1.bf16.msra.mxu1 %v10236_v2  ;;  %v10317_v1 = vld [vmem:[%s14801_s1 + $0xaa0] ss:$16 sps:$4 sm:$0xff]   ;;  %v10320_v2 = vld [vmem:[%s14801_s1 + $0xaa8] ss:$16 sps:$4 sm:$0xff]  }
 0x120   :  { %6769 = vmatprep.subr.bf16.mxu0 %v10241_v3  ;;  %7617 = vmatprep.subr.bf16.mxu1 %v10244_v4  ;;  %v10325_v3 = vld [vmem:[%s14801_s1 + $0xac4] ss:$16 sps:$4 sm:$0xff]   ;;  %v10328_v4 = vld [vmem:[%s14801_s1 + $0xacc] ss:$16 sps:$4 sm:$0xff]  }
 0x123   :  { %6770 = vmatpush1.bf16.msra.mxu0 %v10239_v5  ;;  %7618 = vmatpush1.bf16.msra.mxu1 %v10242_v6  ;;  %v10323_v5 = vld [vmem:[%s14801_s1 + $0xac0] ss:$16 sps:$4 sm:$0xff]   ;;  %v10326_v6 = vld [vmem:[%s14801_s1 + $0xac8] ss:$16 sps:$4 sm:$0xff]  }
 0x124   :  { %6771 = vmatprep.subr.bf16.mxu0 %v10247_v7  ;;  %7619 = vmatprep.subr.bf16.mxu1 %v10250_v8  ;;  %v10331_v7 = vld [vmem:[%s14801_s1 + $0xae4] ss:$16 sps:$4 sm:$0xff]   ;;  %v10334_v8 = vld [vmem:[%s14801_s1 + $0xaec] ss:$16 sps:$4 sm:$0xff]  }
 0x127   :  { %6772 = vmatpush1.bf16.msra.mxu0 %v10245_v9  ;;  %7620 = vmatpush1.bf16.msra.mxu1 %v10248_v10  ;;  %v10329_v9 = vld [vmem:[%s14801_s1 + $0xae0] ss:$16 sps:$4 sm:$0xff]   ;;  %v10332_v10 = vld [vmem:[%s14801_s1 + $0xae8] ss:$16 sps:$4 sm:$0xff]  }
 0x128   :  { %6773 = vmatprep.subr.bf16.mxu0 %v10253_v11  ;;  %7621 = vmatprep.subr.bf16.mxu1 %v10256_v12  ;;  %v10337_v11 = vld [vmem:[%s14801_s1 + $0xb04] ss:$16 sps:$4 sm:$0xff]   ;;  %v10340_v12 = vld [vmem:[%s14801_s1 + $0xb0c] ss:$16 sps:$4 sm:$0xff]  }
 0x12b   :  { %6774 = vmatpush1.bf16.msra.mxu0 %v10251_v13  ;;  %7622 = vmatpush1.bf16.msra.mxu1 %v10254_v14  ;;  %v10335_v13 = vld [vmem:[%s14801_s1 + $0xb00] ss:$16 sps:$4 sm:$0xff]   ;;  %v10338_v14 = vld [vmem:[%s14801_s1 + $0xb08] ss:$16 sps:$4 sm:$0xff]  }
 0x12c   :  { %6775 = vmatprep.subr.bf16.mxu0 %v10259_v15  ;;  %7623 = vmatprep.subr.bf16.mxu1 %v10262_v16  ;;  %v10343_v15 = vld [vmem:[%s14801_s1 + $0xb24] ss:$16 sps:$4 sm:$0xff]   ;;  %v10346_v16 = vld [vmem:[%s14801_s1 + $0xb2c] ss:$16 sps:$4 sm:$0xff]  }
 0x12f   :  { %6776 = vmatpush1.bf16.msra.mxu0 %v10257_v17  ;;  %7624 = vmatpush1.bf16.msra.mxu1 %v10260_v18  ;;  %v10341_v17 = vld [vmem:[%s14801_s1 + $0xb20] ss:$16 sps:$4 sm:$0xff]   ;;  %v10344_v18 = vld [vmem:[%s14801_s1 + $0xb28] ss:$16 sps:$4 sm:$0xff]  }
 0x130   :  { %6777 = vmatprep.subr.bf16.mxu0 %v10265_v19  ;;  %7625 = vmatprep.subr.bf16.mxu1 %v10268_v20  ;;  %v10349_v19 = vld [vmem:[%s14801_s1 + $0xb44] ss:$16 sps:$4 sm:$0xff]   ;;  %v10352_v20 = vld [vmem:[%s14801_s1 + $0xb4c] ss:$16 sps:$4 sm:$0xff]  }
 0x133   :  { %6778 = vmatpush1.bf16.msra.mxu0 %v10263_v21  ;;  %7626 = vmatpush1.bf16.msra.mxu1 %v10266_v22  ;;  %v10347_v21 = vld [vmem:[%s14801_s1 + $0xb40] ss:$16 sps:$4 sm:$0xff]   ;;  %v10350_v22 = vld [vmem:[%s14801_s1 + $0xb48] ss:$16 sps:$4 sm:$0xff]  }
 0x134   :  { %6779 = vmatprep.subr.bf16.mxu0 %v10271_v23  ;;  %7627 = vmatprep.subr.bf16.mxu1 %v10274_v24  ;;  %v10355_v23 = vld [vmem:[%s14801_s1 + $0xb64] ss:$16 sps:$4 sm:$0xff]   ;;  %v10358_v24 = vld [vmem:[%s14801_s1 + $0xb6c] ss:$16 sps:$4 sm:$0xff]  }
 0x137   :  { %6780 = vmatpush1.bf16.msra.mxu0 %v10269_v26  ;;  %7628 = vmatpush1.bf16.msra.mxu1 %v10272_v25  ;;  %v10353_v26 = vld [vmem:[%s14801_s1 + $0xb60] ss:$16 sps:$4 sm:$0xff]   ;;  %v10356_v25 = vld [vmem:[%s14801_s1 + $0xb68] ss:$16 sps:$4 sm:$0xff]  }
 0x138   :  { %6781 = vmatprep.subr.bf16.mxu0 %v10277_v27  ;;  %7629 = vmatprep.subr.bf16.mxu1 %v10280_v28  ;;  %v10361_v27 = vld [vmem:[%s14801_s1 + $0xb84] ss:$16 sps:$4 sm:$0xff]   ;;  %v10364_v28 = vld [vmem:[%s14801_s1 + $0xb8c] ss:$16 sps:$4 sm:$0xff]  }
 0x13b   :  { %6782 = vmatpush1.bf16.msra.mxu0 %v10275_v29  ;;  %7630 = vmatpush1.bf16.msra.mxu1 %v10278_v30  ;;  %v10359_v29 = vld [vmem:[%s14801_s1 + $0xb80] ss:$16 sps:$4 sm:$0xff]   ;;  %v10362_v30 = vld [vmem:[%s14801_s1 + $0xb88] ss:$16 sps:$4 sm:$0xff]  }
 0x13c   :  { %6783 = vmatprep.subr.bf16.mxu0 %v10283_v31  ;;  %7631 = vmatprep.subr.bf16.mxu1 %v10286_v32  ;;  %v10367_v31 = vld [vmem:[%s14801_s1 + $0xba4] ss:$16 sps:$4 sm:$0xff]   ;;  %v10370_v32 = vld [vmem:[%s14801_s1 + $0xbac] ss:$16 sps:$4 sm:$0xff]  }
 0x13f   :  { %6784 = vmatpush1.bf16.msra.mxu0 %v10281_v34  ;;  %7632 = vmatpush1.bf16.msra.mxu1 %v10284_v36  ;;  %v10365_v34 = vld [vmem:[%s14801_s1 + $0xba0] ss:$16 sps:$4 sm:$0xff]   ;;  %v10368_v36 = vld [vmem:[%s14801_s1 + $0xba8] ss:$16 sps:$4 sm:$0xff]  }
 0x140   :  { %6806 = vmatprep.subr.bf16.mxu0 %v10289_v33  ;;  %7654 = vmatprep.subr.bf16.mxu1 %v10292_v35  ;;  %v10373_v33 = vld [vmem:[%s14801_s1 + $0xbc4] ss:$16 sps:$4 sm:$0xff]   ;;  %v10376_v35 = vld [vmem:[%s14801_s1 + $0xbcc] ss:$16 sps:$4 sm:$0xff]  }
 0x142   :  { %6786 = vmatmul.mubr.bf16.vlgmr.msra.gmra.mrb[0].mxu0 %v8468_v39  ;;  %7634 = vmatmul.mubr.bf16.vlgmr.msra.gmra.mrb[0].mxu1 %v8468_v39  ;;  %v10379_v39 = vld [vmem:[%s14801_s1 + $0xbe4] ss:$16 sps:$4 sm:$0xff]  }
 0x143   :  { %6807 = vmatpush1.bf16.msra.mxu0 %v10287_v40  ;;  %7655 = vmatpush1.bf16.msra.mxu1 %v10290_v42  ;;  %v10382_v40 = vld [vmem:[%s14801_s1 + $0xbec] ss:$16 sps:$4 sm:$0xff]   ;;  %v10377_v42 = vld [vmem:[%s14801_s1 + $0xbe0] ss:$16 sps:$4 sm:$0xff]  }
 0x144   :  { %6808 = vmatprep.subr.bf16.mxu0 %v10295_v44  ;;  %7656 = vmatprep.subr.bf16.mxu1 %v10298_v41  ;;  %v10380_v44 = vld [vmem:[%s14801_s1 + $0xbe8] ss:$16 sps:$4 sm:$0xff]   ;;  %v10385_v41 = vld [vmem:[%s14801_s1 + $0xc04] ss:$16 sps:$4 sm:$0xff]  }
 0x145   :  { %6795 = vmatprep.mubr.bf16.mxu0 %v8501_v46  ;;  %7643 = vmatprep.mubr.bf16.mxu1 %v8501_v46  ;;  %v66_v46 = vld [vmem:[%s14802_s0 + $0x1a8] sm:$0xff] }
 0x147   :  { %6809 = vmatpush1.bf16.msra.mxu0 %v10293_v43  ;;  %7657 = vmatpush1.bf16.msra.mxu1 %v10296_v45  ;;  %v10388_v43 = vld [vmem:[%s14801_s1 + $0xc0c] ss:$16 sps:$4 sm:$0xff]  }
 0x148   :  { %6810 = vmatprep.subr.bf16.mxu0 %v10301_v47  ;;  %7658 = vmatprep.subr.bf16.mxu1 %v10304_v48  ;;  %v50_v45 = vld [vmem:[%s14802_s0 + $0x128] sm:$0xff]  ;;  %v8470_v47 = vcombine.low %v12450_v49, %v12455_v50  ;;  %v10383_v48 = vld [vmem:[%s14801_s1 + $0xc00] ss:$16 sps:$4 sm:$0xff]  }
 0x149   :  { %v10394_v49 = vld [vmem:[%s14801_s1 + $0xc2c] ss:$16 sps:$4 sm:$0xff]   ;;  %v10389_v50 = vld [vmem:[%s14801_s1 + $0xc20] ss:$16 sps:$4 sm:$0xff]  }
 0x14a   :  { %6796 = vmatmul.mubr.bf16.gmra.mrb[4].mxu0 %v8500_v51  ;;  %7644 = vmatmul.mubr.bf16.gmra.mrb[4].mxu1 %v8500_v51  ;;  %v10386_v51 = vld [vmem:[%s14801_s1 + $0xc08] ss:$16 sps:$4 sm:$0xff]  }
 0x14b   :  { %6811 = vmatpush1.bf16.msra.mxu0 %v10299_v52  ;;  %7659 = vmatpush1.bf16.msra.mxu1 %v10302_v53  ;;  %v10391_v52 = vld [vmem:[%s14801_s1 + $0xc24] ss:$16 sps:$4 sm:$0xff]   ;;  %v10392_v53 = vld [vmem:[%s14801_s1 + $0xc28] ss:$16 sps:$4 sm:$0xff]  }
 0x14c   :  { %6812 = vmatprep.subr.bf16.mxu0 %v10307_v54  ;;  %7660 = vmatprep.subr.bf16.mxu1 %v10310_v55  ;;  %v8503_v54 = vcombine.high %v50_v45, %v66_v46  ;;  %v10397_v55 = vld [vmem:[%s14801_s1 + $0xc44] ss:$16 sps:$4 sm:$0xff]  }
 0x14d   :  { %6838 = vmatprep.mubr.bf16.mxu0 %v8471_v56  ;;  %7686 = vmatprep.mubr.bf16.mxu1 %v8471_v56  ;;  %v10400_v56 = vld [vmem:[%s14801_s1 + $0xc4c] ss:$16 sps:$4 sm:$0xff]  }
 0x14f   :  { %6813 = vmatpush1.bf16.msra.mxu0 %v10305_v57  ;;  %7661 = vmatpush1.bf16.msra.mxu1 %v10308_v58  ;;  %v12662_v57 = vld [vmem:[%s14802_s0 + $0x30] sm:$0xff] }
 0x150   :  { %6814 = vmatprep.subr.bf16.mxu0 %v10313_v59  ;;  %7662 = vmatprep.subr.bf16.mxu1 %v10316_v60  ;;  %v12667_v58 = vld [vmem:[%s14802_s0 + $0xb0] sm:$0xff]  ;;  %v8502_v59 = vcombine.low %v50_v45, %v66_v46  ;;  %v10470_v46 = vld [vmem:[%s14801_s1 + $0xdc8] ss:$16 sps:$4 sm:$0xff]  }
 0x151   :  { %v10395_v60 = vld [vmem:[%s14801_s1 + $0xc40] ss:$16 sps:$4 sm:$0xff]  }
 0x152   :  { %v10467_v45 = vld [vmem:[%s14801_s1 + $0xdc0] ss:$16 sps:$4 sm:$0xff]  }
 0x153   :  { %6815 = vmatpush1.bf16.msra.mxu0 %v10311_v61  ;;  %7663 = vmatpush1.bf16.msra.mxu1 %v10314_v62  ;;  %v10398_v61 = vld [vmem:[%s14801_s1 + $0xc48] ss:$16 sps:$4 sm:$0xff]   ;;  %v10403_v62 = vld [vmem:[%s14801_s1 + $0xc64] ss:$16 sps:$4 sm:$0xff]  }
 0x154   :  { %6816 = vmatprep.subr.bf16.mxu0 %v10319_v63  ;;  %7664 = vmatprep.subr.bf16.mxu1 %v10322_v0  ;;  %v10406_v63 = vld [vmem:[%s14801_s1 + $0xc6c] ss:$16 sps:$4 sm:$0xff]   ;;  %v8473_v0 = vcombine.high %v12662_v57, %v12667_v58 }
 0x157   :  { %6817 = vmatpush1.bf16.msra.mxu0 %v10317_v1  ;;  %7665 = vmatpush1.bf16.msra.mxu1 %v10320_v2  ;;  %v10401_v1 = vld [vmem:[%s14801_s1 + $0xc60] ss:$16 sps:$4 sm:$0xff]   ;;  %v10404_v2 = vld [vmem:[%s14801_s1 + $0xc68] ss:$16 sps:$4 sm:$0xff]  }
 0x158   :  { %6818 = vmatprep.subr.bf16.mxu0 %v10325_v3  ;;  %7666 = vmatprep.subr.bf16.mxu1 %v10328_v4  ;;  %v10409_v3 = vld [vmem:[%s14801_s1 + $0xc84] ss:$16 sps:$4 sm:$0xff]   ;;  %v10412_v4 = vld [vmem:[%s14801_s1 + $0xc8c] ss:$16 sps:$4 sm:$0xff]  }
 0x15b   :  { %6819 = vmatpush1.bf16.msra.mxu0 %v10323_v5  ;;  %7667 = vmatpush1.bf16.msra.mxu1 %v10326_v6  ;;  %v10407_v5 = vld [vmem:[%s14801_s1 + $0xc80] ss:$16 sps:$4 sm:$0xff]   ;;  %v10410_v6 = vld [vmem:[%s14801_s1 + $0xc88] ss:$16 sps:$4 sm:$0xff]  }
 0x15c   :  { %6820 = vmatprep.subr.bf16.mxu0 %v10331_v7  ;;  %7668 = vmatprep.subr.bf16.mxu1 %v10334_v8  ;;  %v10415_v7 = vld [vmem:[%s14801_s1 + $0xca4] ss:$16 sps:$4 sm:$0xff]   ;;  %v10418_v8 = vld [vmem:[%s14801_s1 + $0xcac] ss:$16 sps:$4 sm:$0xff]  }
 0x15f   :  { %6821 = vmatpush1.bf16.msra.mxu0 %v10329_v9  ;;  %7669 = vmatpush1.bf16.msra.mxu1 %v10332_v10  ;;  %v10413_v9 = vld [vmem:[%s14801_s1 + $0xca0] ss:$16 sps:$4 sm:$0xff]   ;;  %v10416_v10 = vld [vmem:[%s14801_s1 + $0xca8] ss:$16 sps:$4 sm:$0xff]  }
 0x160   :  { %6822 = vmatprep.subr.bf16.mxu0 %v10337_v11  ;;  %7670 = vmatprep.subr.bf16.mxu1 %v10340_v12  ;;  %v10421_v11 = vld [vmem:[%s14801_s1 + $0xcc4] ss:$16 sps:$4 sm:$0xff]   ;;  %v10424_v12 = vld [vmem:[%s14801_s1 + $0xccc] ss:$16 sps:$4 sm:$0xff]  }
 0x163   :  { %6823 = vmatpush1.bf16.msra.mxu0 %v10335_v13  ;;  %7671 = vmatpush1.bf16.msra.mxu1 %v10338_v14  ;;  %v10419_v13 = vld [vmem:[%s14801_s1 + $0xcc0] ss:$16 sps:$4 sm:$0xff]   ;;  %v10422_v14 = vld [vmem:[%s14801_s1 + $0xcc8] ss:$16 sps:$4 sm:$0xff]  }
 0x164   :  { %6824 = vmatprep.subr.bf16.mxu0 %v10343_v15  ;;  %7672 = vmatprep.subr.bf16.mxu1 %v10346_v16  ;;  %v10427_v15 = vld [vmem:[%s14801_s1 + $0xce4] ss:$16 sps:$4 sm:$0xff]   ;;  %v10430_v16 = vld [vmem:[%s14801_s1 + $0xcec] ss:$16 sps:$4 sm:$0xff]  }
 0x167   :  { %6825 = vmatpush1.bf16.msra.mxu0 %v10341_v17  ;;  %7673 = vmatpush1.bf16.msra.mxu1 %v10344_v18  ;;  %v10425_v17 = vld [vmem:[%s14801_s1 + $0xce0] ss:$16 sps:$4 sm:$0xff]   ;;  %v10428_v18 = vld [vmem:[%s14801_s1 + $0xce8] ss:$16 sps:$4 sm:$0xff]  }
 0x168   :  { %6826 = vmatprep.subr.bf16.mxu0 %v10349_v19  ;;  %7674 = vmatprep.subr.bf16.mxu1 %v10352_v20  ;;  %v10433_v19 = vld [vmem:[%s14801_s1 + $0xd04] ss:$16 sps:$4 sm:$0xff]   ;;  %v10436_v20 = vld [vmem:[%s14801_s1 + $0xd0c] ss:$16 sps:$4 sm:$0xff]  }
 0x16b   :  { %6827 = vmatpush1.bf16.msra.mxu0 %v10347_v21  ;;  %7675 = vmatpush1.bf16.msra.mxu1 %v10350_v22  ;;  %v10431_v21 = vld [vmem:[%s14801_s1 + $0xd00] ss:$16 sps:$4 sm:$0xff]   ;;  %v10434_v22 = vld [vmem:[%s14801_s1 + $0xd08] ss:$16 sps:$4 sm:$0xff]  }
 0x16c   :  { %6828 = vmatprep.subr.bf16.mxu0 %v10355_v23  ;;  %7676 = vmatprep.subr.bf16.mxu1 %v10358_v24  ;;  %v10439_v23 = vld [vmem:[%s14801_s1 + $0xd24] ss:$16 sps:$4 sm:$0xff]   ;;  %v10442_v24 = vld [vmem:[%s14801_s1 + $0xd2c] ss:$16 sps:$4 sm:$0xff]  }
 0x16f   :  { %6829 = vmatpush1.bf16.msra.mxu0 %v10353_v26  ;;  %7677 = vmatpush1.bf16.msra.mxu1 %v10356_v25  ;;  %v10437_v26 = vld [vmem:[%s14801_s1 + $0xd20] ss:$16 sps:$4 sm:$0xff]   ;;  %v10440_v25 = vld [vmem:[%s14801_s1 + $0xd28] ss:$16 sps:$4 sm:$0xff]  }
 0x170   :  { %6830 = vmatprep.subr.bf16.mxu0 %v10361_v27  ;;  %7678 = vmatprep.subr.bf16.mxu1 %v10364_v28  ;;  %v10445_v27 = vld [vmem:[%s14801_s1 + $0xd44] ss:$16 sps:$4 sm:$0xff]   ;;  %v10448_v28 = vld [vmem:[%s14801_s1 + $0xd4c] ss:$16 sps:$4 sm:$0xff]  }
 0x173   :  { %6831 = vmatpush1.bf16.msra.mxu0 %v10359_v29  ;;  %7679 = vmatpush1.bf16.msra.mxu1 %v10362_v30  ;;  %v10443_v29 = vld [vmem:[%s14801_s1 + $0xd40] ss:$16 sps:$4 sm:$0xff]   ;;  %v10446_v30 = vld [vmem:[%s14801_s1 + $0xd48] ss:$16 sps:$4 sm:$0xff]  }
 0x174   :  { %6832 = vmatprep.subr.bf16.mxu0 %v10367_v31  ;;  %7680 = vmatprep.subr.bf16.mxu1 %v10370_v32  ;;  %v10451_v31 = vld [vmem:[%s14801_s1 + $0xd64] ss:$16 sps:$4 sm:$0xff]   ;;  %v10454_v32 = vld [vmem:[%s14801_s1 + $0xd6c] ss:$16 sps:$4 sm:$0xff]  }
 0x177   :  { %6833 = vmatpush1.bf16.msra.mxu0 %v10365_v34  ;;  %7681 = vmatpush1.bf16.msra.mxu1 %v10368_v36  ;;  %v10449_v34 = vld [vmem:[%s14801_s1 + $0xd60] ss:$16 sps:$4 sm:$0xff]   ;;  %v10452_v36 = vld [vmem:[%s14801_s1 + $0xd68] ss:$16 sps:$4 sm:$0xff]  }
 0x178   :  { %6834 = vmatprep.subr.bf16.mxu0 %v10373_v33  ;;  %7682 = vmatprep.subr.bf16.mxu1 %v10376_v35  ;;  %v10457_v33 = vld [vmem:[%s14801_s1 + $0xd84] ss:$16 sps:$4 sm:$0xff]   ;;  %v10460_v35 = vld [vmem:[%s14801_s1 + $0xd8c] ss:$16 sps:$4 sm:$0xff]  }
 0x17b   :  { %6835 = vmatpush1.bf16.msra.mxu0 %v10371_v37  ;;  %7683 = vmatpush1.bf16.msra.mxu1 %v10374_v38  ;;  %v10455_v37 = vld [vmem:[%s14801_s1 + $0xd80] ss:$16 sps:$4 sm:$0xff]   ;;  %v10458_v38 = vld [vmem:[%s14801_s1 + $0xd88] ss:$16 sps:$4 sm:$0xff]  }
 0x17c   :  { %6836 = vmatprep.subr.bf16.mxu0 %v10379_v39  ;;  %7684 = vmatprep.subr.bf16.mxu1 %v10382_v40  ;;  %v10463_v39 = vld [vmem:[%s14801_s1 + $0xda4] ss:$16 sps:$4 sm:$0xff]   ;;  %v10466_v40 = vld [vmem:[%s14801_s1 + $0xdac] ss:$16 sps:$4 sm:$0xff]  }
 0x17f   :  { %6837 = vmatpush1.bf16.msra.mxu0 %v10377_v42  ;;  %7685 = vmatpush1.bf16.msra.mxu1 %v10380_v44  ;;  %v10461_v42 = vld [vmem:[%s14801_s1 + $0xda0] ss:$16 sps:$4 sm:$0xff]   ;;  %v10464_v44 = vld [vmem:[%s14801_s1 + $0xda8] ss:$16 sps:$4 sm:$0xff]  }
 0x180   :  { %6859 = vmatprep.subr.bf16.mxu0 %v10385_v41  ;;  %7707 = vmatprep.subr.bf16.mxu1 %v10388_v43  ;;  %v10469_v41 = vld [vmem:[%s14801_s1 + $0xdc4] ss:$16 sps:$4 sm:$0xff]   ;;  %v10472_v43 = vld [vmem:[%s14801_s1 + $0xdcc] ss:$16 sps:$4 sm:$0xff]  }
 0x182   :  { %6839 = vmatmul.mubr.bf16.vlgmr.msra.gmra.mrb[0].mxu0 %v8470_v47  ;;  %7687 = vmatmul.mubr.bf16.vlgmr.msra.gmra.mrb[0].mxu1 %v8470_v47  ;;  %v10475_v47 = vld [vmem:[%s14801_s1 + $0xde4] ss:$16 sps:$4 sm:$0xff]  }
 0x183   :  { %6860 = vmatpush1.bf16.msra.mxu0 %v10383_v48  ;;  %7708 = vmatpush1.bf16.msra.mxu1 %v10386_v51  ;;  %v10478_v48 = vld [vmem:[%s14801_s1 + $0xdec] ss:$16 sps:$4 sm:$0xff]   ;;  %v10473_v51 = vld [vmem:[%s14801_s1 + $0xde0] ss:$16 sps:$4 sm:$0xff]  }
 0x184   :  { %6861 = vmatprep.subr.bf16.mxu0 %v10391_v52  ;;  %7709 = vmatprep.subr.bf16.mxu1 %v10394_v49  ;;  %v10476_v52 = vld [vmem:[%s14801_s1 + $0xde8] ss:$16 sps:$4 sm:$0xff]   ;;  %v10481_v49 = vld [vmem:[%s14801_s1 + $0xe04] ss:$16 sps:$4 sm:$0xff]  }
 0x185   :  { %6848 = vmatprep.mubr.bf16.mxu0 %v8503_v54  ;;  %7696 = vmatprep.mubr.bf16.mxu1 %v8503_v54  ;;  %v67_v54 = vld [vmem:[%s14802_s0 + $0x1b0] sm:$0xff] }
 0x187   :  { %6862 = vmatpush1.bf16.msra.mxu0 %v10389_v50  ;;  %7710 = vmatpush1.bf16.msra.mxu1 %v10392_v53  ;;  %v10484_v50 = vld [vmem:[%s14801_s1 + $0xe0c] ss:$16 sps:$4 sm:$0xff]   ;;  %v51_v53 = vld [vmem:[%s14802_s0 + $0x130] sm:$0xff] }
 0x188   :  { %6863 = vmatprep.subr.bf16.mxu0 %v10397_v55  ;;  %7711 = vmatprep.subr.bf16.mxu1 %v10400_v56  ;;  %v8472_v55 = vcombine.low %v12662_v57, %v12667_v58  ;;  %v10479_v56 = vld [vmem:[%s14801_s1 + $0xe00] ss:$16 sps:$4 sm:$0xff]   ;;  %v10490_v57 = vld [vmem:[%s14801_s1 + $0xe2c] ss:$16 sps:$4 sm:$0xff]  }
 0x189   :  { %v10485_v58 = vld [vmem:[%s14801_s1 + $0xe20] ss:$16 sps:$4 sm:$0xff]  }
 0x18a   :  { %6849 = vmatmul.mubr.bf16.gmra.mrb[4].mxu0 %v8502_v59  ;;  %7697 = vmatmul.mubr.bf16.gmra.mrb[4].mxu1 %v8502_v59  ;;  %v10482_v59 = vld [vmem:[%s14801_s1 + $0xe08] ss:$16 sps:$4 sm:$0xff]  }
 0x18b   :  { %6864 = vmatpush1.bf16.msra.mxu0 %v10395_v60  ;;  %7712 = vmatpush1.bf16.msra.mxu1 %v10398_v61  ;;  %v10487_v60 = vld [vmem:[%s14801_s1 + $0xe24] ss:$16 sps:$4 sm:$0xff]   ;;  %v10488_v61 = vld [vmem:[%s14801_s1 + $0xe28] ss:$16 sps:$4 sm:$0xff]  }
 0x18c   :  { %6865 = vmatprep.subr.bf16.mxu0 %v10403_v62  ;;  %7713 = vmatprep.subr.bf16.mxu1 %v10406_v63  ;;  %v8505_v62 = vcombine.high %v51_v53, %v67_v54  ;;  %v10493_v63 = vld [vmem:[%s14801_s1 + $0xe44] ss:$16 sps:$4 sm:$0xff]  }
 0x18d   :  { %6891 = vmatprep.mubr.bf16.mxu0 %v8473_v0  ;;  %7739 = vmatprep.mubr.bf16.mxu1 %v8473_v0  ;;  %v10496_v0 = vld [vmem:[%s14801_s1 + $0xe4c] ss:$16 sps:$4 sm:$0xff]  }
 0x18f   :  { %6866 = vmatpush1.bf16.msra.mxu0 %v10401_v1  ;;  %7714 = vmatpush1.bf16.msra.mxu1 %v10404_v2  ;;  %v12874_v1 = vld [vmem:[%s14802_s0 + $0x38] sm:$0xff] }
 0x190   :  { %6867 = vmatprep.subr.bf16.mxu0 %v10409_v3  ;;  %7715 = vmatprep.subr.bf16.mxu1 %v10412_v4  ;;  %v12879_v2 = vld [vmem:[%s14802_s0 + $0xb8] sm:$0xff]  ;;  %v8504_v3 = vcombine.low %v51_v53, %v67_v54  ;;  %v10491_v4 = vld [vmem:[%s14801_s1 + $0xe40] ss:$16 sps:$4 sm:$0xff]  }
 0x191   :  { %v10563_v53 = vld [vmem:[%s14801_s1 + $0xfc0] ss:$16 sps:$4 sm:$0xff]   ;;  %v10566_v54 = vld [vmem:[%s14801_s1 + $0xfc8] ss:$16 sps:$4 sm:$0xff]  }
 0x193   :  { %6868 = vmatpush1.bf16.msra.mxu0 %v10407_v5  ;;  %7716 = vmatpush1.bf16.msra.mxu1 %v10410_v6  ;;  %v10494_v5 = vld [vmem:[%s14801_s1 + $0xe48] ss:$16 sps:$4 sm:$0xff]   ;;  %v10499_v6 = vld [vmem:[%s14801_s1 + $0xe64] ss:$16 sps:$4 sm:$0xff]  }
 0x194   :  { %6869 = vmatprep.subr.bf16.mxu0 %v10415_v7  ;;  %7717 = vmatprep.subr.bf16.mxu1 %v10418_v8  ;;  %v10502_v7 = vld [vmem:[%s14801_s1 + $0xe6c] ss:$16 sps:$4 sm:$0xff]   ;;  %v8475_v8 = vcombine.high %v12874_v1, %v12879_v2 }
 0x197   :  { %6870 = vmatpush1.bf16.msra.mxu0 %v10413_v9  ;;  %7718 = vmatpush1.bf16.msra.mxu1 %v10416_v10  ;;  %v10497_v9 = vld [vmem:[%s14801_s1 + $0xe60] ss:$16 sps:$4 sm:$0xff]   ;;  %v10500_v10 = vld [vmem:[%s14801_s1 + $0xe68] ss:$16 sps:$4 sm:$0xff]  }
 0x198   :  { %6871 = vmatprep.subr.bf16.mxu0 %v10421_v11  ;;  %7719 = vmatprep.subr.bf16.mxu1 %v10424_v12  ;;  %v10505_v11 = vld [vmem:[%s14801_s1 + $0xe84] ss:$16 sps:$4 sm:$0xff]   ;;  %v10508_v12 = vld [vmem:[%s14801_s1 + $0xe8c] ss:$16 sps:$4 sm:$0xff]  }
 0x19b   :  { %6872 = vmatpush1.bf16.msra.mxu0 %v10419_v13  ;;  %7720 = vmatpush1.bf16.msra.mxu1 %v10422_v14  ;;  %v10503_v13 = vld [vmem:[%s14801_s1 + $0xe80] ss:$16 sps:$4 sm:$0xff]   ;;  %v10506_v14 = vld [vmem:[%s14801_s1 + $0xe88] ss:$16 sps:$4 sm:$0xff]  }
 0x19c   :  { %6873 = vmatprep.subr.bf16.mxu0 %v10427_v15  ;;  %7721 = vmatprep.subr.bf16.mxu1 %v10430_v16  ;;  %v10511_v15 = vld [vmem:[%s14801_s1 + $0xea4] ss:$16 sps:$4 sm:$0xff]   ;;  %v10514_v16 = vld [vmem:[%s14801_s1 + $0xeac] ss:$16 sps:$4 sm:$0xff]  }
 0x19f   :  { %6874 = vmatpush1.bf16.msra.mxu0 %v10425_v17  ;;  %7722 = vmatpush1.bf16.msra.mxu1 %v10428_v18  ;;  %v10509_v17 = vld [vmem:[%s14801_s1 + $0xea0] ss:$16 sps:$4 sm:$0xff]   ;;  %v10512_v18 = vld [vmem:[%s14801_s1 + $0xea8] ss:$16 sps:$4 sm:$0xff]  }
 0x1a0   :  { %6875 = vmatprep.subr.bf16.mxu0 %v10433_v19  ;;  %7723 = vmatprep.subr.bf16.mxu1 %v10436_v20  ;;  %v10517_v19 = vld [vmem:[%s14801_s1 + $0xec4] ss:$16 sps:$4 sm:$0xff]   ;;  %v10520_v20 = vld [vmem:[%s14801_s1 + $0xecc] ss:$16 sps:$4 sm:$0xff]  }
 0x1a3   :  { %6876 = vmatpush1.bf16.msra.mxu0 %v10431_v21  ;;  %7724 = vmatpush1.bf16.msra.mxu1 %v10434_v22  ;;  %v10515_v21 = vld [vmem:[%s14801_s1 + $0xec0] ss:$16 sps:$4 sm:$0xff]   ;;  %v10518_v22 = vld [vmem:[%s14801_s1 + $0xec8] ss:$16 sps:$4 sm:$0xff]  }
 0x1a4   :  { %6877 = vmatprep.subr.bf16.mxu0 %v10439_v23  ;;  %7725 = vmatprep.subr.bf16.mxu1 %v10442_v24  ;;  %v10523_v23 = vld [vmem:[%s14801_s1 + $0xee4] ss:$16 sps:$4 sm:$0xff]   ;;  %v10526_v24 = vld [vmem:[%s14801_s1 + $0xeec] ss:$16 sps:$4 sm:$0xff]  }
 0x1a7   :  { %6878 = vmatpush1.bf16.msra.mxu0 %v10437_v26  ;;  %7726 = vmatpush1.bf16.msra.mxu1 %v10440_v25  ;;  %v10521_v26 = vld [vmem:[%s14801_s1 + $0xee0] ss:$16 sps:$4 sm:$0xff]   ;;  %v10524_v25 = vld [vmem:[%s14801_s1 + $0xee8] ss:$16 sps:$4 sm:$0xff]  }
 0x1a8   :  { %6879 = vmatprep.subr.bf16.mxu0 %v10445_v27  ;;  %7727 = vmatprep.subr.bf16.mxu1 %v10448_v28  ;;  %v10529_v27 = vld [vmem:[%s14801_s1 + $0xf04] ss:$16 sps:$4 sm:$0xff]   ;;  %v10532_v28 = vld [vmem:[%s14801_s1 + $0xf0c] ss:$16 sps:$4 sm:$0xff]  }
 0x1ab   :  { %6880 = vmatpush1.bf16.msra.mxu0 %v10443_v29  ;;  %7728 = vmatpush1.bf16.msra.mxu1 %v10446_v30  ;;  %v10527_v29 = vld [vmem:[%s14801_s1 + $0xf00] ss:$16 sps:$4 sm:$0xff]   ;;  %v10530_v30 = vld [vmem:[%s14801_s1 + $0xf08] ss:$16 sps:$4 sm:$0xff]  }
 0x1ac   :  { %6881 = vmatprep.subr.bf16.mxu0 %v10451_v31  ;;  %7729 = vmatprep.subr.bf16.mxu1 %v10454_v32  ;;  %v10535_v31 = vld [vmem:[%s14801_s1 + $0xf24] ss:$16 sps:$4 sm:$0xff]   ;;  %v10538_v32 = vld [vmem:[%s14801_s1 + $0xf2c] ss:$16 sps:$4 sm:$0xff]  }
 0x1af   :  { %6882 = vmatpush1.bf16.msra.mxu0 %v10449_v34  ;;  %7730 = vmatpush1.bf16.msra.mxu1 %v10452_v36  ;;  %v10533_v34 = vld [vmem:[%s14801_s1 + $0xf20] ss:$16 sps:$4 sm:$0xff]   ;;  %v10536_v36 = vld [vmem:[%s14801_s1 + $0xf28] ss:$16 sps:$4 sm:$0xff]  }
 0x1b0   :  { %6883 = vmatprep.subr.bf16.mxu0 %v10457_v33  ;;  %7731 = vmatprep.subr.bf16.mxu1 %v10460_v35  ;;  %v10541_v33 = vld [vmem:[%s14801_s1 + $0xf44] ss:$16 sps:$4 sm:$0xff]   ;;  %v10544_v35 = vld [vmem:[%s14801_s1 + $0xf4c] ss:$16 sps:$4 sm:$0xff]  }
 0x1b3   :  { %6884 = vmatpush1.bf16.msra.mxu0 %v10455_v37  ;;  %7732 = vmatpush1.bf16.msra.mxu1 %v10458_v38  ;;  %v10539_v37 = vld [vmem:[%s14801_s1 + $0xf40] ss:$16 sps:$4 sm:$0xff]   ;;  %v10542_v38 = vld [vmem:[%s14801_s1 + $0xf48] ss:$16 sps:$4 sm:$0xff]  }
 0x1b4   :  { %6885 = vmatprep.subr.bf16.mxu0 %v10463_v39  ;;  %7733 = vmatprep.subr.bf16.mxu1 %v10466_v40  ;;  %v10547_v39 = vld [vmem:[%s14801_s1 + $0xf64] ss:$16 sps:$4 sm:$0xff]   ;;  %v10550_v40 = vld [vmem:[%s14801_s1 + $0xf6c] ss:$16 sps:$4 sm:$0xff]  }
 0x1b7   :  { %6886 = vmatpush1.bf16.msra.mxu0 %v10461_v42  ;;  %7734 = vmatpush1.bf16.msra.mxu1 %v10464_v44  ;;  %v10545_v42 = vld [vmem:[%s14801_s1 + $0xf60] ss:$16 sps:$4 sm:$0xff]   ;;  %v10548_v44 = vld [vmem:[%s14801_s1 + $0xf68] ss:$16 sps:$4 sm:$0xff]  }
 0x1b8   :  { %6887 = vmatprep.subr.bf16.mxu0 %v10469_v41  ;;  %7735 = vmatprep.subr.bf16.mxu1 %v10472_v43  ;;  %v10553_v41 = vld [vmem:[%s14801_s1 + $0xf84] ss:$16 sps:$4 sm:$0xff]   ;;  %v10556_v43 = vld [vmem:[%s14801_s1 + $0xf8c] ss:$16 sps:$4 sm:$0xff]  }
 0x1bb   :  { %6888 = vmatpush1.bf16.msra.mxu0 %v10467_v45  ;;  %7736 = vmatpush1.bf16.msra.mxu1 %v10470_v46  ;;  %v10551_v45 = vld [vmem:[%s14801_s1 + $0xf80] ss:$16 sps:$4 sm:$0xff]   ;;  %v10554_v46 = vld [vmem:[%s14801_s1 + $0xf88] ss:$16 sps:$4 sm:$0xff]  }
 0x1bc   :  { %6889 = vmatprep.subr.bf16.mxu0 %v10475_v47  ;;  %7737 = vmatprep.subr.bf16.mxu1 %v10478_v48  ;;  %v10559_v47 = vld [vmem:[%s14801_s1 + $0xfa4] ss:$16 sps:$4 sm:$0xff]   ;;  %v10562_v48 = vld [vmem:[%s14801_s1 + $0xfac] ss:$16 sps:$4 sm:$0xff]  }
 0x1bf   :  { %6890 = vmatpush1.bf16.msra.mxu0 %v10473_v51  ;;  %7738 = vmatpush1.bf16.msra.mxu1 %v10476_v52  ;;  %v10557_v51 = vld [vmem:[%s14801_s1 + $0xfa0] ss:$16 sps:$4 sm:$0xff]   ;;  %v10560_v52 = vld [vmem:[%s14801_s1 + $0xfa8] ss:$16 sps:$4 sm:$0xff]  }
 0x1c0   :  { %6912 = vmatprep.subr.bf16.mxu0 %v10481_v49  ;;  %7760 = vmatprep.subr.bf16.mxu1 %v10484_v50  ;;  %v10565_v49 = vld [vmem:[%s14801_s1 + $0xfc4] ss:$16 sps:$4 sm:$0xff]   ;;  %v10568_v50 = vld [vmem:[%s14801_s1 + $0xfcc] ss:$16 sps:$4 sm:$0xff]  }
 0x1c2   :  { %6892 = vmatmul.mubr.bf16.vlgmr.msra.gmra.mrb[0].mxu0 %v8472_v55  ;;  %7740 = vmatmul.mubr.bf16.vlgmr.msra.gmra.mrb[0].mxu1 %v8472_v55  ;;  %v10571_v55 = vld [vmem:[%s14801_s1 + $0xfe4] ss:$16 sps:$4 sm:$0xff]  }
 0x1c3   :  { %6913 = vmatpush1.bf16.msra.mxu0 %v10479_v56  ;;  %7761 = vmatpush1.bf16.msra.mxu1 %v10482_v59  ;;  %v10574_v56 = vld [vmem:[%s14801_s1 + $0xfec] ss:$16 sps:$4 sm:$0xff]   ;;  %v10569_v59 = vld [vmem:[%s14801_s1 + $0xfe0] ss:$16 sps:$4 sm:$0xff]  }
 0x1c4   :  { %6914 = vmatprep.subr.bf16.mxu0 %v10487_v60  ;;  %7762 = vmatprep.subr.bf16.mxu1 %v10490_v57  ;;  %v10572_v60 = vld [vmem:[%s14801_s1 + $0xfe8] ss:$16 sps:$4 sm:$0xff]   ;;  %v10577_v57 = vld [vmem:[%s14801_s1 + $0x1004] ss:$16 sps:$4 sm:$0xff]  }
 0x1c5   :  { %6901 = vmatprep.mubr.bf16.mxu0 %v8505_v62  ;;  %7749 = vmatprep.mubr.bf16.mxu1 %v8505_v62  ;;  %v68_v62 = vld [vmem:[%s14802_s0 + $0x1b8] sm:$0xff] }
 0x1c7   :  { %6915 = vmatpush1.bf16.msra.mxu0 %v10485_v58  ;;  %7763 = vmatpush1.bf16.msra.mxu1 %v10488_v61  ;;  %v10580_v58 = vld [vmem:[%s14801_s1 + $0x100c] ss:$16 sps:$4 sm:$0xff]  }
 0x1c8   :  { %6916 = vmatprep.subr.bf16.mxu0 %v10493_v63  ;;  %7764 = vmatprep.subr.bf16.mxu1 %v10496_v0  ;;  %v52_v61 = vld [vmem:[%s14802_s0 + $0x138] sm:$0xff]  ;;  %v8474_v63 = vcombine.low %v12874_v1, %v12879_v2  ;;  %v10575_v0 = vld [vmem:[%s14801_s1 + $0x1000] ss:$16 sps:$4 sm:$0xff]  }
 0x1c9   :  { %v10586_v1 = vld [vmem:[%s14801_s1 + $0x102c] ss:$16 sps:$4 sm:$0xff]   ;;  %v10581_v2 = vld [vmem:[%s14801_s1 + $0x1020] ss:$16 sps:$4 sm:$0xff]  }
 0x1ca   :  { %6902 = vmatmul.mubr.bf16.gmra.mrb[4].mxu0 %v8504_v3  ;;  %7750 = vmatmul.mubr.bf16.gmra.mrb[4].mxu1 %v8504_v3  ;;  %v10578_v3 = vld [vmem:[%s14801_s1 + $0x1008] ss:$16 sps:$4 sm:$0xff]  }
 0x1cb   :  { %6917 = vmatpush1.bf16.msra.mxu0 %v10491_v4  ;;  %7765 = vmatpush1.bf16.msra.mxu1 %v10494_v5  ;;  %v10583_v4 = vld [vmem:[%s14801_s1 + $0x1024] ss:$16 sps:$4 sm:$0xff]   ;;  %v10584_v5 = vld [vmem:[%s14801_s1 + $0x1028] ss:$16 sps:$4 sm:$0xff]  }
 0x1cc   :  { %6918 = vmatprep.subr.bf16.mxu0 %v10499_v6  ;;  %7766 = vmatprep.subr.bf16.mxu1 %v10502_v7  ;;  %v8507_v6 = vcombine.high %v52_v61, %v68_v62  ;;  %v10589_v7 = vld [vmem:[%s14801_s1 + $0x1044] ss:$16 sps:$4 sm:$0xff]  }
 0x1cd   :  { %6944 = vmatprep.mubr.bf16.mxu0 %v8475_v8  ;;  %7792 = vmatprep.mubr.bf16.mxu1 %v8475_v8  ;;  %v10592_v8 = vld [vmem:[%s14801_s1 + $0x104c] ss:$16 sps:$4 sm:$0xff]  }
 0x1cf   :  { %6919 = vmatpush1.bf16.msra.mxu0 %v10497_v9  ;;  %7767 = vmatpush1.bf16.msra.mxu1 %v10500_v10  ;;  %v13086_v9 = vld [vmem:[%s14802_s0 + $0x40] sm:$0xff] }
 0x1d0   :  { %6920 = vmatprep.subr.bf16.mxu0 %v10505_v11  ;;  %7768 = vmatprep.subr.bf16.mxu1 %v10508_v12  ;;  %v13091_v10 = vld [vmem:[%s14802_s0 + $0xc0] sm:$0xff]  ;;  %v8506_v11 = vcombine.low %v52_v61, %v68_v62  ;;  %v10662_v62 = vld [vmem:[%s14801_s1 + $0x11c8] ss:$16 sps:$4 sm:$0xff]  }
 0x1d1   :  { %v10587_v12 = vld [vmem:[%s14801_s1 + $0x1040] ss:$16 sps:$4 sm:$0xff]  }
 0x1d2   :  { %v10659_v61 = vld [vmem:[%s14801_s1 + $0x11c0] ss:$16 sps:$4 sm:$0xff]  }
 0x1d3   :  { %6921 = vmatpush1.bf16.msra.mxu0 %v10503_v13  ;;  %7769 = vmatpush1.bf16.msra.mxu1 %v10506_v14  ;;  %v10590_v13 = vld [vmem:[%s14801_s1 + $0x1048] ss:$16 sps:$4 sm:$0xff]   ;;  %v10595_v14 = vld [vmem:[%s14801_s1 + $0x1064] ss:$16 sps:$4 sm:$0xff]  }
 0x1d4   :  { %6922 = vmatprep.subr.bf16.mxu0 %v10511_v15  ;;  %7770 = vmatprep.subr.bf16.mxu1 %v10514_v16  ;;  %v10598_v15 = vld [vmem:[%s14801_s1 + $0x106c] ss:$16 sps:$4 sm:$0xff]   ;;  %v8477_v16 = vcombine.high %v13086_v9, %v13091_v10 }
 0x1d7   :  { %6923 = vmatpush1.bf16.msra.mxu0 %v10509_v17  ;;  %7771 = vmatpush1.bf16.msra.mxu1 %v10512_v18  ;;  %v10593_v17 = vld [vmem:[%s14801_s1 + $0x1060] ss:$16 sps:$4 sm:$0xff]   ;;  %v10596_v18 = vld [vmem:[%s14801_s1 + $0x1068] ss:$16 sps:$4 sm:$0xff]  }
 0x1d8   :  { %6924 = vmatprep.subr.bf16.mxu0 %v10517_v19  ;;  %7772 = vmatprep.subr.bf16.mxu1 %v10520_v20  ;;  %v10601_v19 = vld [vmem:[%s14801_s1 + $0x1084] ss:$16 sps:$4 sm:$0xff]   ;;  %v10604_v20 = vld [vmem:[%s14801_s1 + $0x108c] ss:$16 sps:$4 sm:$0xff]  }
 0x1db   :  { %6925 = vmatpush1.bf16.msra.mxu0 %v10515_v21  ;;  %7773 = vmatpush1.bf16.msra.mxu1 %v10518_v22  ;;  %v10599_v21 = vld [vmem:[%s14801_s1 + $0x1080] ss:$16 sps:$4 sm:$0xff]   ;;  %v10602_v22 = vld [vmem:[%s14801_s1 + $0x1088] ss:$16 sps:$4 sm:$0xff]  }
 0x1dc   :  { %6926 = vmatprep.subr.bf16.mxu0 %v10523_v23  ;;  %7774 = vmatprep.subr.bf16.mxu1 %v10526_v24  ;;  %v10607_v23 = vld [vmem:[%s14801_s1 + $0x10a4] ss:$16 sps:$4 sm:$0xff]   ;;  %v10610_v24 = vld [vmem:[%s14801_s1 + $0x10ac] ss:$16 sps:$4 sm:$0xff]  }
 0x1df   :  { %6927 = vmatpush1.bf16.msra.mxu0 %v10521_v26  ;;  %7775 = vmatpush1.bf16.msra.mxu1 %v10524_v25  ;;  %v10605_v26 = vld [vmem:[%s14801_s1 + $0x10a0] ss:$16 sps:$4 sm:$0xff]   ;;  %v10608_v25 = vld [vmem:[%s14801_s1 + $0x10a8] ss:$16 sps:$4 sm:$0xff]  }
 0x1e0   :  { %6928 = vmatprep.subr.bf16.mxu0 %v10529_v27  ;;  %7776 = vmatprep.subr.bf16.mxu1 %v10532_v28  ;;  %v10613_v27 = vld [vmem:[%s14801_s1 + $0x10c4] ss:$16 sps:$4 sm:$0xff]   ;;  %v10616_v28 = vld [vmem:[%s14801_s1 + $0x10cc] ss:$16 sps:$4 sm:$0xff]  }
 0x1e3   :  { %6929 = vmatpush1.bf16.msra.mxu0 %v10527_v29  ;;  %7777 = vmatpush1.bf16.msra.mxu1 %v10530_v30  ;;  %v10611_v29 = vld [vmem:[%s14801_s1 + $0x10c0] ss:$16 sps:$4 sm:$0xff]   ;;  %v10614_v30 = vld [vmem:[%s14801_s1 + $0x10c8] ss:$16 sps:$4 sm:$0xff]  }
 0x1e4   :  { %6930 = vmatprep.subr.bf16.mxu0 %v10535_v31  ;;  %7778 = vmatprep.subr.bf16.mxu1 %v10538_v32  ;;  %v10619_v31 = vld [vmem:[%s14801_s1 + $0x10e4] ss:$16 sps:$4 sm:$0xff]   ;;  %v10622_v32 = vld [vmem:[%s14801_s1 + $0x10ec] ss:$16 sps:$4 sm:$0xff]  }
 0x1e7   :  { %6931 = vmatpush1.bf16.msra.mxu0 %v10533_v34  ;;  %7779 = vmatpush1.bf16.msra.mxu1 %v10536_v36  ;;  %v10617_v34 = vld [vmem:[%s14801_s1 + $0x10e0] ss:$16 sps:$4 sm:$0xff]   ;;  %v10620_v36 = vld [vmem:[%s14801_s1 + $0x10e8] ss:$16 sps:$4 sm:$0xff]  }
 0x1e8   :  { %6932 = vmatprep.subr.bf16.mxu0 %v10541_v33  ;;  %7780 = vmatprep.subr.bf16.mxu1 %v10544_v35  ;;  %v10625_v33 = vld [vmem:[%s14801_s1 + $0x1104] ss:$16 sps:$4 sm:$0xff]   ;;  %v10628_v35 = vld [vmem:[%s14801_s1 + $0x110c] ss:$16 sps:$4 sm:$0xff]  }
 0x1eb   :  { %6933 = vmatpush1.bf16.msra.mxu0 %v10539_v37  ;;  %7781 = vmatpush1.bf16.msra.mxu1 %v10542_v38  ;;  %v10623_v37 = vld [vmem:[%s14801_s1 + $0x1100] ss:$16 sps:$4 sm:$0xff]   ;;  %v10626_v38 = vld [vmem:[%s14801_s1 + $0x1108] ss:$16 sps:$4 sm:$0xff]  }
 0x1ec   :  { %6934 = vmatprep.subr.bf16.mxu0 %v10547_v39  ;;  %7782 = vmatprep.subr.bf16.mxu1 %v10550_v40  ;;  %v10631_v39 = vld [vmem:[%s14801_s1 + $0x1124] ss:$16 sps:$4 sm:$0xff]   ;;  %v10634_v40 = vld [vmem:[%s14801_s1 + $0x112c] ss:$16 sps:$4 sm:$0xff]  }
 0x1ef   :  { %6935 = vmatpush1.bf16.msra.mxu0 %v10545_v42  ;;  %7783 = vmatpush1.bf16.msra.mxu1 %v10548_v44  ;;  %v10629_v42 = vld [vmem:[%s14801_s1 + $0x1120] ss:$16 sps:$4 sm:$0xff]   ;;  %v10632_v44 = vld [vmem:[%s14801_s1 + $0x1128] ss:$16 sps:$4 sm:$0xff]  }
 0x1f0   :  { %6936 = vmatprep.subr.bf16.mxu0 %v10553_v41  ;;  %7784 = vmatprep.subr.bf16.mxu1 %v10556_v43  ;;  %v10637_v41 = vld [vmem:[%s14801_s1 + $0x1144] ss:$16 sps:$4 sm:$0xff]   ;;  %v10640_v43 = vld [vmem:[%s14801_s1 + $0x114c] ss:$16 sps:$4 sm:$0xff]  }
 0x1f3   :  { %6937 = vmatpush1.bf16.msra.mxu0 %v10551_v45  ;;  %7785 = vmatpush1.bf16.msra.mxu1 %v10554_v46  ;;  %v10635_v45 = vld [vmem:[%s14801_s1 + $0x1140] ss:$16 sps:$4 sm:$0xff]   ;;  %v10638_v46 = vld [vmem:[%s14801_s1 + $0x1148] ss:$16 sps:$4 sm:$0xff]  }
 0x1f4   :  { %6938 = vmatprep.subr.bf16.mxu0 %v10559_v47  ;;  %7786 = vmatprep.subr.bf16.mxu1 %v10562_v48  ;;  %v10643_v47 = vld [vmem:[%s14801_s1 + $0x1164] ss:$16 sps:$4 sm:$0xff]   ;;  %v10646_v48 = vld [vmem:[%s14801_s1 + $0x116c] ss:$16 sps:$4 sm:$0xff]  }
 0x1f7   :  { %6939 = vmatpush1.bf16.msra.mxu0 %v10557_v51  ;;  %7787 = vmatpush1.bf16.msra.mxu1 %v10560_v52  ;;  %v10641_v51 = vld [vmem:[%s14801_s1 + $0x1160] ss:$16 sps:$4 sm:$0xff]   ;;  %v10644_v52 = vld [vmem:[%s14801_s1 + $0x1168] ss:$16 sps:$4 sm:$0xff]  }
 0x1f8   :  { %6940 = vmatprep.subr.bf16.mxu0 %v10565_v49  ;;  %7788 = vmatprep.subr.bf16.mxu1 %v10568_v50  ;;  %v10649_v49 = vld [vmem:[%s14801_s1 + $0x1184] ss:$16 sps:$4 sm:$0xff]   ;;  %v10652_v50 = vld [vmem:[%s14801_s1 + $0x118c] ss:$16 sps:$4 sm:$0xff]  }
 0x1fb   :  { %6941 = vmatpush1.bf16.msra.mxu0 %v10563_v53  ;;  %7789 = vmatpush1.bf16.msra.mxu1 %v10566_v54  ;;  %v10647_v53 = vld [vmem:[%s14801_s1 + $0x1180] ss:$16 sps:$4 sm:$0xff]   ;;  %v10650_v54 = vld [vmem:[%s14801_s1 + $0x1188] ss:$16 sps:$4 sm:$0xff]  }
 0x1fc   :  { %6942 = vmatprep.subr.bf16.mxu0 %v10571_v55  ;;  %7790 = vmatprep.subr.bf16.mxu1 %v10574_v56  ;;  %v10655_v55 = vld [vmem:[%s14801_s1 + $0x11a4] ss:$16 sps:$4 sm:$0xff]   ;;  %v10658_v56 = vld [vmem:[%s14801_s1 + $0x11ac] ss:$16 sps:$4 sm:$0xff]  }
 0x1ff   :  { %6943 = vmatpush1.bf16.msra.mxu0 %v10569_v59  ;;  %7791 = vmatpush1.bf16.msra.mxu1 %v10572_v60  ;;  %v10653_v59 = vld [vmem:[%s14801_s1 + $0x11a0] ss:$16 sps:$4 sm:$0xff]   ;;  %v10656_v60 = vld [vmem:[%s14801_s1 + $0x11a8] ss:$16 sps:$4 sm:$0xff]  }
 0x200   :  { %6965 = vmatprep.subr.bf16.mxu0 %v10577_v57  ;;  %7813 = vmatprep.subr.bf16.mxu1 %v10580_v58  ;;  %v10661_v57 = vld [vmem:[%s14801_s1 + $0x11c4] ss:$16 sps:$4 sm:$0xff]   ;;  %v10664_v58 = vld [vmem:[%s14801_s1 + $0x11cc] ss:$16 sps:$4 sm:$0xff]  }
 0x202   :  { %6945 = vmatmul.mubr.bf16.vlgmr.msra.gmra.mrb[0].mxu0 %v8474_v63  ;;  %7793 = vmatmul.mubr.bf16.vlgmr.msra.gmra.mrb[0].mxu1 %v8474_v63  ;;  %v10667_v63 = vld [vmem:[%s14801_s1 + $0x11e4] ss:$16 sps:$4 sm:$0xff]  }
 0x203   :  { %6966 = vmatpush1.bf16.msra.mxu0 %v10575_v0  ;;  %7814 = vmatpush1.bf16.msra.mxu1 %v10578_v3  ;;  %v10670_v0 = vld [vmem:[%s14801_s1 + $0x11ec] ss:$16 sps:$4 sm:$0xff]   ;;  %v10665_v3 = vld [vmem:[%s14801_s1 + $0x11e0] ss:$16 sps:$4 sm:$0xff]  }
 0x204   :  { %6967 = vmatprep.subr.bf16.mxu0 %v10583_v4  ;;  %7815 = vmatprep.subr.bf16.mxu1 %v10586_v1  ;;  %v10668_v4 = vld [vmem:[%s14801_s1 + $0x11e8] ss:$16 sps:$4 sm:$0xff]   ;;  %v10673_v1 = vld [vmem:[%s14801_s1 + $0x1204] ss:$16 sps:$4 sm:$0xff]  }
 0x205   :  { %6954 = vmatprep.mubr.bf16.mxu0 %v8507_v6  ;;  %7802 = vmatprep.mubr.bf16.mxu1 %v8507_v6  ;;  %v69_v6 = vld [vmem:[%s14802_s0 + $0x1c0] sm:$0xff] }
 0x207   :  { %6968 = vmatpush1.bf16.msra.mxu0 %v10581_v2  ;;  %7816 = vmatpush1.bf16.msra.mxu1 %v10584_v5  ;;  %v10676_v2 = vld [vmem:[%s14801_s1 + $0x120c] ss:$16 sps:$4 sm:$0xff]   ;;  %v53_v5 = vld [vmem:[%s14802_s0 + $0x140] sm:$0xff] }
 0x208   :  { %6969 = vmatprep.subr.bf16.mxu0 %v10589_v7  ;;  %7817 = vmatprep.subr.bf16.mxu1 %v10592_v8  ;;  %v8476_v7 = vcombine.low %v13086_v9, %v13091_v10  ;;  %v10671_v8 = vld [vmem:[%s14801_s1 + $0x1200] ss:$16 sps:$4 sm:$0xff]   ;;  %v10682_v9 = vld [vmem:[%s14801_s1 + $0x122c] ss:$16 sps:$4 sm:$0xff]  }
 0x209   :  { %v10677_v10 = vld [vmem:[%s14801_s1 + $0x1220] ss:$16 sps:$4 sm:$0xff]  }
 0x20a   :  { %6955 = vmatmul.mubr.bf16.gmra.mrb[4].mxu0 %v8506_v11  ;;  %7803 = vmatmul.mubr.bf16.gmra.mrb[4].mxu1 %v8506_v11  ;;  %v10674_v11 = vld [vmem:[%s14801_s1 + $0x1208] ss:$16 sps:$4 sm:$0xff]  }
 0x20b   :  { %6970 = vmatpush1.bf16.msra.mxu0 %v10587_v12  ;;  %7818 = vmatpush1.bf16.msra.mxu1 %v10590_v13  ;;  %v10679_v12 = vld [vmem:[%s14801_s1 + $0x1224] ss:$16 sps:$4 sm:$0xff]   ;;  %v10680_v13 = vld [vmem:[%s14801_s1 + $0x1228] ss:$16 sps:$4 sm:$0xff]  }
 0x20c   :  { %6971 = vmatprep.subr.bf16.mxu0 %v10595_v14  ;;  %7819 = vmatprep.subr.bf16.mxu1 %v10598_v15  ;;  %v8509_v14 = vcombine.high %v53_v5, %v69_v6  ;;  %v10685_v15 = vld [vmem:[%s14801_s1 + $0x1244] ss:$16 sps:$4 sm:$0xff]  }
 0x20d   :  { %6997 = vmatprep.mubr.bf16.mxu0 %v8477_v16  ;;  %7845 = vmatprep.mubr.bf16.mxu1 %v8477_v16  ;;  %v10688_v16 = vld [vmem:[%s14801_s1 + $0x124c] ss:$16 sps:$4 sm:$0xff]  }
 0x20f   :  { %6972 = vmatpush1.bf16.msra.mxu0 %v10593_v17  ;;  %7820 = vmatpush1.bf16.msra.mxu1 %v10596_v18  ;;  %v13298_v17 = vld [vmem:[%s14802_s0 + $0x48] sm:$0xff] }
 0x210   :  { %6973 = vmatprep.subr.bf16.mxu0 %v10601_v19  ;;  %7821 = vmatprep.subr.bf16.mxu1 %v10604_v20  ;;  %v13303_v18 = vld [vmem:[%s14802_s0 + $0xc8] sm:$0xff]  ;;  %v8508_v19 = vcombine.low %v53_v5, %v69_v6  ;;  %v10683_v20 = vld [vmem:[%s14801_s1 + $0x1240] ss:$16 sps:$4 sm:$0xff]  }
 0x211   :  { %v10755_v5 = vld [vmem:[%s14801_s1 + $0x13c0] ss:$16 sps:$4 sm:$0xff]   ;;  %v10758_v6 = vld [vmem:[%s14801_s1 + $0x13c8] ss:$16 sps:$4 sm:$0xff]  }
 0x213   :  { %6974 = vmatpush1.bf16.msra.mxu0 %v10599_v21  ;;  %7822 = vmatpush1.bf16.msra.mxu1 %v10602_v22  ;;  %v10686_v21 = vld [vmem:[%s14801_s1 + $0x1248] ss:$16 sps:$4 sm:$0xff]   ;;  %v10691_v22 = vld [vmem:[%s14801_s1 + $0x1264] ss:$16 sps:$4 sm:$0xff]  }
 0x214   :  { %6975 = vmatprep.subr.bf16.mxu0 %v10607_v23  ;;  %7823 = vmatprep.subr.bf16.mxu1 %v10610_v24  ;;  %v10694_v23 = vld [vmem:[%s14801_s1 + $0x126c] ss:$16 sps:$4 sm:$0xff]   ;;  %v8479_v24 = vcombine.high %v13298_v17, %v13303_v18 }
 0x217   :  { %6976 = vmatpush1.bf16.msra.mxu0 %v10605_v26  ;;  %7824 = vmatpush1.bf16.msra.mxu1 %v10608_v25  ;;  %v10689_v26 = vld [vmem:[%s14801_s1 + $0x1260] ss:$16 sps:$4 sm:$0xff]   ;;  %v10692_v25 = vld [vmem:[%s14801_s1 + $0x1268] ss:$16 sps:$4 sm:$0xff]  }
 0x218   :  { %6977 = vmatprep.subr.bf16.mxu0 %v10613_v27  ;;  %7825 = vmatprep.subr.bf16.mxu1 %v10616_v28  ;;  %v10697_v27 = vld [vmem:[%s14801_s1 + $0x1284] ss:$16 sps:$4 sm:$0xff]   ;;  %v10700_v28 = vld [vmem:[%s14801_s1 + $0x128c] ss:$16 sps:$4 sm:$0xff]  }
 0x21b   :  { %6978 = vmatpush1.bf16.msra.mxu0 %v10611_v29  ;;  %7826 = vmatpush1.bf16.msra.mxu1 %v10614_v30  ;;  %v10695_v29 = vld [vmem:[%s14801_s1 + $0x1280] ss:$16 sps:$4 sm:$0xff]   ;;  %v10698_v30 = vld [vmem:[%s14801_s1 + $0x1288] ss:$16 sps:$4 sm:$0xff]  }
 0x21c   :  { %6979 = vmatprep.subr.bf16.mxu0 %v10619_v31  ;;  %7827 = vmatprep.subr.bf16.mxu1 %v10622_v32  ;;  %v10703_v31 = vld [vmem:[%s14801_s1 + $0x12a4] ss:$16 sps:$4 sm:$0xff]   ;;  %v10706_v32 = vld [vmem:[%s14801_s1 + $0x12ac] ss:$16 sps:$4 sm:$0xff]  }
 0x21f   :  { %6980 = vmatpush1.bf16.msra.mxu0 %v10617_v34  ;;  %7828 = vmatpush1.bf16.msra.mxu1 %v10620_v36  ;;  %v10701_v34 = vld [vmem:[%s14801_s1 + $0x12a0] ss:$16 sps:$4 sm:$0xff]   ;;  %v10704_v36 = vld [vmem:[%s14801_s1 + $0x12a8] ss:$16 sps:$4 sm:$0xff]  }
 0x220   :  { %6981 = vmatprep.subr.bf16.mxu0 %v10625_v33  ;;  %7829 = vmatprep.subr.bf16.mxu1 %v10628_v35  ;;  %v10709_v33 = vld [vmem:[%s14801_s1 + $0x12c4] ss:$16 sps:$4 sm:$0xff]   ;;  %v10712_v35 = vld [vmem:[%s14801_s1 + $0x12cc] ss:$16 sps:$4 sm:$0xff]  }
 0x223   :  { %6982 = vmatpush1.bf16.msra.mxu0 %v10623_v37  ;;  %7830 = vmatpush1.bf16.msra.mxu1 %v10626_v38  ;;  %v10707_v37 = vld [vmem:[%s14801_s1 + $0x12c0] ss:$16 sps:$4 sm:$0xff]   ;;  %v10710_v38 = vld [vmem:[%s14801_s1 + $0x12c8] ss:$16 sps:$4 sm:$0xff]  }
 0x224   :  { %6983 = vmatprep.subr.bf16.mxu0 %v10631_v39  ;;  %7831 = vmatprep.subr.bf16.mxu1 %v10634_v40  ;;  %v10715_v39 = vld [vmem:[%s14801_s1 + $0x12e4] ss:$16 sps:$4 sm:$0xff]   ;;  %v10718_v40 = vld [vmem:[%s14801_s1 + $0x12ec] ss:$16 sps:$4 sm:$0xff]  }
 0x227   :  { %6984 = vmatpush1.bf16.msra.mxu0 %v10629_v42  ;;  %7832 = vmatpush1.bf16.msra.mxu1 %v10632_v44  ;;  %v10713_v42 = vld [vmem:[%s14801_s1 + $0x12e0] ss:$16 sps:$4 sm:$0xff]   ;;  %v10716_v44 = vld [vmem:[%s14801_s1 + $0x12e8] ss:$16 sps:$4 sm:$0xff]  }
 0x228   :  { %6985 = vmatprep.subr.bf16.mxu0 %v10637_v41  ;;  %7833 = vmatprep.subr.bf16.mxu1 %v10640_v43  ;;  %v10721_v41 = vld [vmem:[%s14801_s1 + $0x1304] ss:$16 sps:$4 sm:$0xff]   ;;  %v10724_v43 = vld [vmem:[%s14801_s1 + $0x130c] ss:$16 sps:$4 sm:$0xff]  }
 0x22b   :  { %6986 = vmatpush1.bf16.msra.mxu0 %v10635_v45  ;;  %7834 = vmatpush1.bf16.msra.mxu1 %v10638_v46  ;;  %v10719_v45 = vld [vmem:[%s14801_s1 + $0x1300] ss:$16 sps:$4 sm:$0xff]   ;;  %v10722_v46 = vld [vmem:[%s14801_s1 + $0x1308] ss:$16 sps:$4 sm:$0xff]  }
 0x22c   :  { %6987 = vmatprep.subr.bf16.mxu0 %v10643_v47  ;;  %7835 = vmatprep.subr.bf16.mxu1 %v10646_v48  ;;  %v10727_v47 = vld [vmem:[%s14801_s1 + $0x1324] ss:$16 sps:$4 sm:$0xff]   ;;  %v10730_v48 = vld [vmem:[%s14801_s1 + $0x132c] ss:$16 sps:$4 sm:$0xff]  }
 0x22f   :  { %6988 = vmatpush1.bf16.msra.mxu0 %v10641_v51  ;;  %7836 = vmatpush1.bf16.msra.mxu1 %v10644_v52  ;;  %v10725_v51 = vld [vmem:[%s14801_s1 + $0x1320] ss:$16 sps:$4 sm:$0xff]   ;;  %v10728_v52 = vld [vmem:[%s14801_s1 + $0x1328] ss:$16 sps:$4 sm:$0xff]  }
 0x230   :  { %6989 = vmatprep.subr.bf16.mxu0 %v10649_v49  ;;  %7837 = vmatprep.subr.bf16.mxu1 %v10652_v50  ;;  %v10733_v49 = vld [vmem:[%s14801_s1 + $0x1344] ss:$16 sps:$4 sm:$0xff]   ;;  %v10736_v50 = vld [vmem:[%s14801_s1 + $0x134c] ss:$16 sps:$4 sm:$0xff]  }
 0x233   :  { %6990 = vmatpush1.bf16.msra.mxu0 %v10647_v53  ;;  %7838 = vmatpush1.bf16.msra.mxu1 %v10650_v54  ;;  %v10731_v53 = vld [vmem:[%s14801_s1 + $0x1340] ss:$16 sps:$4 sm:$0xff]   ;;  %v10734_v54 = vld [vmem:[%s14801_s1 + $0x1348] ss:$16 sps:$4 sm:$0xff]  }
 0x234   :  { %6991 = vmatprep.subr.bf16.mxu0 %v10655_v55  ;;  %7839 = vmatprep.subr.bf16.mxu1 %v10658_v56  ;;  %v10739_v55 = vld [vmem:[%s14801_s1 + $0x1364] ss:$16 sps:$4 sm:$0xff]   ;;  %v10742_v56 = vld [vmem:[%s14801_s1 + $0x136c] ss:$16 sps:$4 sm:$0xff]  }
 0x237   :  { %6992 = vmatpush1.bf16.msra.mxu0 %v10653_v59  ;;  %7840 = vmatpush1.bf16.msra.mxu1 %v10656_v60  ;;  %v10737_v59 = vld [vmem:[%s14801_s1 + $0x1360] ss:$16 sps:$4 sm:$0xff]   ;;  %v10740_v60 = vld [vmem:[%s14801_s1 + $0x1368] ss:$16 sps:$4 sm:$0xff]  }
 0x238   :  { %6993 = vmatprep.subr.bf16.mxu0 %v10661_v57  ;;  %7841 = vmatprep.subr.bf16.mxu1 %v10664_v58  ;;  %v10745_v57 = vld [vmem:[%s14801_s1 + $0x1384] ss:$16 sps:$4 sm:$0xff]   ;;  %v10748_v58 = vld [vmem:[%s14801_s1 + $0x138c] ss:$16 sps:$4 sm:$0xff]  }
 0x23b   :  { %6994 = vmatpush1.bf16.msra.mxu0 %v10659_v61  ;;  %7842 = vmatpush1.bf16.msra.mxu1 %v10662_v62  ;;  %v10743_v61 = vld [vmem:[%s14801_s1 + $0x1380] ss:$16 sps:$4 sm:$0xff]   ;;  %v10746_v62 = vld [vmem:[%s14801_s1 + $0x1388] ss:$16 sps:$4 sm:$0xff]  }
 0x23c   :  { %6995 = vmatprep.subr.bf16.mxu0 %v10667_v63  ;;  %7843 = vmatprep.subr.bf16.mxu1 %v10670_v0  ;;  %v10751_v63 = vld [vmem:[%s14801_s1 + $0x13a4] ss:$16 sps:$4 sm:$0xff]   ;;  %v10754_v0 = vld [vmem:[%s14801_s1 + $0x13ac] ss:$16 sps:$4 sm:$0xff]  }
 0x23f   :  { %6996 = vmatpush1.bf16.msra.mxu0 %v10665_v3  ;;  %7844 = vmatpush1.bf16.msra.mxu1 %v10668_v4  ;;  %v10749_v3 = vld [vmem:[%s14801_s1 + $0x13a0] ss:$16 sps:$4 sm:$0xff]   ;;  %v10752_v4 = vld [vmem:[%s14801_s1 + $0x13a8] ss:$16 sps:$4 sm:$0xff]  }
 0x240   :  { %7018 = vmatprep.subr.bf16.mxu0 %v10673_v1  ;;  %7866 = vmatprep.subr.bf16.mxu1 %v10676_v2  ;;  %v10757_v1 = vld [vmem:[%s14801_s1 + $0x13c4] ss:$16 sps:$4 sm:$0xff]   ;;  %v10760_v2 = vld [vmem:[%s14801_s1 + $0x13cc] ss:$16 sps:$4 sm:$0xff]  }
 0x242   :  { %6998 = vmatmul.mubr.bf16.vlgmr.msra.gmra.mrb[0].mxu0 %v8476_v7  ;;  %7846 = vmatmul.mubr.bf16.vlgmr.msra.gmra.mrb[0].mxu1 %v8476_v7  ;;  %v10763_v7 = vld [vmem:[%s14801_s1 + $0x13e4] ss:$16 sps:$4 sm:$0xff]  }
 0x243   :  { %7019 = vmatpush1.bf16.msra.mxu0 %v10671_v8  ;;  %7867 = vmatpush1.bf16.msra.mxu1 %v10674_v11  ;;  %v10766_v8 = vld [vmem:[%s14801_s1 + $0x13ec] ss:$16 sps:$4 sm:$0xff]   ;;  %v10761_v11 = vld [vmem:[%s14801_s1 + $0x13e0] ss:$16 sps:$4 sm:$0xff]  }
 0x244   :  { %7020 = vmatprep.subr.bf16.mxu0 %v10679_v12  ;;  %7868 = vmatprep.subr.bf16.mxu1 %v10682_v9  ;;  %v10764_v12 = vld [vmem:[%s14801_s1 + $0x13e8] ss:$16 sps:$4 sm:$0xff]   ;;  %v10769_v9 = vld [vmem:[%s14801_s1 + $0x1404] ss:$16 sps:$4 sm:$0xff]  }
 0x245   :  { %7007 = vmatprep.mubr.bf16.mxu0 %v8509_v14  ;;  %7855 = vmatprep.mubr.bf16.mxu1 %v8509_v14  ;;  %v54_v14 = vld [vmem:[%s14802_s0 + $0x148] sm:$0xff] }
 0x247   :  { %7021 = vmatpush1.bf16.msra.mxu0 %v10677_v10  ;;  %7869 = vmatpush1.bf16.msra.mxu1 %v10680_v13  ;;  %v10772_v10 = vld [vmem:[%s14801_s1 + $0x140c] ss:$16 sps:$4 sm:$0xff]   ;;  %v8478_v13 = vcombine.low %v13298_v17, %v13303_v18  ;;  %v10775_v17 = vld [vmem:[%s14801_s1 + $0x1424] ss:$16 sps:$4 sm:$0xff]  }
 0x248   :  { %7022 = vmatprep.subr.bf16.mxu0 %v10685_v15  ;;  %7870 = vmatprep.subr.bf16.mxu1 %v10688_v16  ;;  %v70_v15 = vld [vmem:[%s14802_s0 + $0x1c8] sm:$0xff]  ;;  %v10767_v16 = vld [vmem:[%s14801_s1 + $0x1400] ss:$16 sps:$4 sm:$0xff]  }
 0x249   :  { %v10778_v18 = vld [vmem:[%s14801_s1 + $0x142c] ss:$16 sps:$4 sm:$0xff]  }
 0x24a   :  { %7008 = vmatmul.mubr.bf16.gmra.mrb[4].mxu0 %v8508_v19  ;;  %7856 = vmatmul.mubr.bf16.gmra.mrb[4].mxu1 %v8508_v19  ;;  %v10770_v19 = vld [vmem:[%s14801_s1 + $0x1408] ss:$16 sps:$4 sm:$0xff]  }
 0x24b   :  { %7023 = vmatpush1.bf16.msra.mxu0 %v10683_v20  ;;  %7871 = vmatpush1.bf16.msra.mxu1 %v10686_v21  ;;  %v8511_v20 = vcombine.high %v54_v14, %v70_v15  ;;  %v10773_v21 = vld [vmem:[%s14801_s1 + $0x1420] ss:$16 sps:$4 sm:$0xff]  }
 0x24c   :  { %7024 = vmatprep.subr.bf16.mxu0 %v10691_v22  ;;  %7872 = vmatprep.subr.bf16.mxu1 %v10694_v23  ;;  %v10776_v22 = vld [vmem:[%s14801_s1 + $0x1428] ss:$16 sps:$4 sm:$0xff]   ;;  %v10781_v23 = vld [vmem:[%s14801_s1 + $0x1444] ss:$16 sps:$4 sm:$0xff]  }
 0x24d   :  { %7050 = vmatprep.mubr.bf16.mxu0 %v8479_v24  ;;  %7898 = vmatprep.mubr.bf16.mxu1 %v8479_v24  ;;  %v10784_v24 = vld [vmem:[%s14801_s1 + $0x144c] ss:$16 sps:$4 sm:$0xff]  }
 0x24f   :  { %7025 = vmatpush1.bf16.msra.mxu0 %v10689_v26  ;;  %7873 = vmatpush1.bf16.msra.mxu1 %v10692_v25  ;;  %v8510_v26 = vcombine.low %v54_v14, %v70_v15  ;;  %v13510_v25 = vld [vmem:[%s14802_s0 + $0x50] sm:$0xff]  ;;  %v10854_v14 = vld [vmem:[%s14801_s1 + $0x15c8] ss:$16 sps:$4 sm:$0xff]  }
 0x250   :  { %7026 = vmatprep.subr.bf16.mxu0 %v10697_v27  ;;  %7874 = vmatprep.subr.bf16.mxu1 %v10700_v28  ;;  %v13515_v27 = vld [vmem:[%s14802_s0 + $0xd0] sm:$0xff] }
 0x251   :  { %v10779_v28 = vld [vmem:[%s14801_s1 + $0x1440] ss:$16 sps:$4 sm:$0xff]   ;;  %v10859_v15 = vld [vmem:[%s14801_s1 + $0x15e4] ss:$16 sps:$4 sm:$0xff]  }
 0x253   :  { %7027 = vmatpush1.bf16.msra.mxu0 %v10695_v29  ;;  %7875 = vmatpush1.bf16.msra.mxu1 %v10698_v30  ;;  %v10782_v29 = vld [vmem:[%s14801_s1 + $0x1448] ss:$16 sps:$4 sm:$0xff]   ;;  %v10787_v30 = vld [vmem:[%s14801_s1 + $0x1464] ss:$16 sps:$4 sm:$0xff]  }
 0x254   :  { %7028 = vmatprep.subr.bf16.mxu0 %v10703_v31  ;;  %7876 = vmatprep.subr.bf16.mxu1 %v10706_v32  ;;  %v10790_v31 = vld [vmem:[%s14801_s1 + $0x146c] ss:$16 sps:$4 sm:$0xff]   ;;  %v8481_v32 = vcombine.high %v13510_v25, %v13515_v27 }
 0x257   :  { %7029 = vmatpush1.bf16.msra.mxu0 %v10701_v34  ;;  %7877 = vmatpush1.bf16.msra.mxu1 %v10704_v36  ;;  %v10785_v34 = vld [vmem:[%s14801_s1 + $0x1460] ss:$16 sps:$4 sm:$0xff]   ;;  %v10788_v36 = vld [vmem:[%s14801_s1 + $0x1468] ss:$16 sps:$4 sm:$0xff]  }
 0x258   :  { %7030 = vmatprep.subr.bf16.mxu0 %v10709_v33  ;;  %7878 = vmatprep.subr.bf16.mxu1 %v10712_v35  ;;  %v10793_v33 = vld [vmem:[%s14801_s1 + $0x1484] ss:$16 sps:$4 sm:$0xff]   ;;  %v10796_v35 = vld [vmem:[%s14801_s1 + $0x148c] ss:$16 sps:$4 sm:$0xff]  }
 0x25b   :  { %7031 = vmatpush1.bf16.msra.mxu0 %v10707_v37  ;;  %7879 = vmatpush1.bf16.msra.mxu1 %v10710_v38  ;;  %v10791_v37 = vld [vmem:[%s14801_s1 + $0x1480] ss:$16 sps:$4 sm:$0xff]   ;;  %v10794_v38 = vld [vmem:[%s14801_s1 + $0x1488] ss:$16 sps:$4 sm:$0xff]  }
 0x25c   :  { %7032 = vmatprep.subr.bf16.mxu0 %v10715_v39  ;;  %7880 = vmatprep.subr.bf16.mxu1 %v10718_v40  ;;  %v10799_v39 = vld [vmem:[%s14801_s1 + $0x14a4] ss:$16 sps:$4 sm:$0xff]   ;;  %v10802_v40 = vld [vmem:[%s14801_s1 + $0x14ac] ss:$16 sps:$4 sm:$0xff]  }
 0x25f   :  { %7033 = vmatpush1.bf16.msra.mxu0 %v10713_v42  ;;  %7881 = vmatpush1.bf16.msra.mxu1 %v10716_v44  ;;  %v10797_v42 = vld [vmem:[%s14801_s1 + $0x14a0] ss:$16 sps:$4 sm:$0xff]   ;;  %v10800_v44 = vld [vmem:[%s14801_s1 + $0x14a8] ss:$16 sps:$4 sm:$0xff]  }
 0x260   :  { %7034 = vmatprep.subr.bf16.mxu0 %v10721_v41  ;;  %7882 = vmatprep.subr.bf16.mxu1 %v10724_v43  ;;  %v10805_v41 = vld [vmem:[%s14801_s1 + $0x14c4] ss:$16 sps:$4 sm:$0xff]   ;;  %v10808_v43 = vld [vmem:[%s14801_s1 + $0x14cc] ss:$16 sps:$4 sm:$0xff]  }
 0x263   :  { %7035 = vmatpush1.bf16.msra.mxu0 %v10719_v45  ;;  %7883 = vmatpush1.bf16.msra.mxu1 %v10722_v46  ;;  %v10803_v45 = vld [vmem:[%s14801_s1 + $0x14c0] ss:$16 sps:$4 sm:$0xff]   ;;  %v10806_v46 = vld [vmem:[%s14801_s1 + $0x14c8] ss:$16 sps:$4 sm:$0xff]  }
 0x264   :  { %7036 = vmatprep.subr.bf16.mxu0 %v10727_v47  ;;  %7884 = vmatprep.subr.bf16.mxu1 %v10730_v48  ;;  %v10811_v47 = vld [vmem:[%s14801_s1 + $0x14e4] ss:$16 sps:$4 sm:$0xff]   ;;  %v10814_v48 = vld [vmem:[%s14801_s1 + $0x14ec] ss:$16 sps:$4 sm:$0xff]  }
 0x267   :  { %7037 = vmatpush1.bf16.msra.mxu0 %v10725_v51  ;;  %7885 = vmatpush1.bf16.msra.mxu1 %v10728_v52  ;;  %v10809_v51 = vld [vmem:[%s14801_s1 + $0x14e0] ss:$16 sps:$4 sm:$0xff]   ;;  %v10812_v52 = vld [vmem:[%s14801_s1 + $0x14e8] ss:$16 sps:$4 sm:$0xff]  }
 0x268   :  { %7038 = vmatprep.subr.bf16.mxu0 %v10733_v49  ;;  %7886 = vmatprep.subr.bf16.mxu1 %v10736_v50  ;;  %v10817_v49 = vld [vmem:[%s14801_s1 + $0x1504] ss:$16 sps:$4 sm:$0xff]   ;;  %v10820_v50 = vld [vmem:[%s14801_s1 + $0x150c] ss:$16 sps:$4 sm:$0xff]  }
 0x26b   :  { %7039 = vmatpush1.bf16.msra.mxu0 %v10731_v53  ;;  %7887 = vmatpush1.bf16.msra.mxu1 %v10734_v54  ;;  %v10815_v53 = vld [vmem:[%s14801_s1 + $0x1500] ss:$16 sps:$4 sm:$0xff]   ;;  %v10818_v54 = vld [vmem:[%s14801_s1 + $0x1508] ss:$16 sps:$4 sm:$0xff]  }
 0x26c   :  { %7040 = vmatprep.subr.bf16.mxu0 %v10739_v55  ;;  %7888 = vmatprep.subr.bf16.mxu1 %v10742_v56  ;;  %v10823_v55 = vld [vmem:[%s14801_s1 + $0x1524] ss:$16 sps:$4 sm:$0xff]   ;;  %v10826_v56 = vld [vmem:[%s14801_s1 + $0x152c] ss:$16 sps:$4 sm:$0xff]  }
 0x26f   :  { %7041 = vmatpush1.bf16.msra.mxu0 %v10737_v59  ;;  %7889 = vmatpush1.bf16.msra.mxu1 %v10740_v60  ;;  %v10821_v59 = vld [vmem:[%s14801_s1 + $0x1520] ss:$16 sps:$4 sm:$0xff]   ;;  %v10824_v60 = vld [vmem:[%s14801_s1 + $0x1528] ss:$16 sps:$4 sm:$0xff]  }
 0x270   :  { %7042 = vmatprep.subr.bf16.mxu0 %v10745_v57  ;;  %7890 = vmatprep.subr.bf16.mxu1 %v10748_v58  ;;  %v10829_v57 = vld [vmem:[%s14801_s1 + $0x1544] ss:$16 sps:$4 sm:$0xff]   ;;  %v10832_v58 = vld [vmem:[%s14801_s1 + $0x154c] ss:$16 sps:$4 sm:$0xff]  }
 0x273   :  { %7043 = vmatpush1.bf16.msra.mxu0 %v10743_v61  ;;  %7891 = vmatpush1.bf16.msra.mxu1 %v10746_v62  ;;  %v10827_v61 = vld [vmem:[%s14801_s1 + $0x1540] ss:$16 sps:$4 sm:$0xff]   ;;  %v10830_v62 = vld [vmem:[%s14801_s1 + $0x1548] ss:$16 sps:$4 sm:$0xff]  }
 0x274   :  { %7044 = vmatprep.subr.bf16.mxu0 %v10751_v63  ;;  %7892 = vmatprep.subr.bf16.mxu1 %v10754_v0  ;;  %v10835_v63 = vld [vmem:[%s14801_s1 + $0x1564] ss:$16 sps:$4 sm:$0xff]   ;;  %v10838_v0 = vld [vmem:[%s14801_s1 + $0x156c] ss:$16 sps:$4 sm:$0xff]  }
 0x277   :  { %7045 = vmatpush1.bf16.msra.mxu0 %v10749_v3  ;;  %7893 = vmatpush1.bf16.msra.mxu1 %v10752_v4  ;;  %v10833_v3 = vld [vmem:[%s14801_s1 + $0x1560] ss:$16 sps:$4 sm:$0xff]   ;;  %v10836_v4 = vld [vmem:[%s14801_s1 + $0x1568] ss:$16 sps:$4 sm:$0xff]  }
 0x278   :  { %7046 = vmatprep.subr.bf16.mxu0 %v10757_v1  ;;  %7894 = vmatprep.subr.bf16.mxu1 %v10760_v2  ;;  %v10841_v1 = vld [vmem:[%s14801_s1 + $0x1584] ss:$16 sps:$4 sm:$0xff]   ;;  %v10844_v2 = vld [vmem:[%s14801_s1 + $0x158c] ss:$16 sps:$4 sm:$0xff]  }
 0x27b   :  { %7047 = vmatpush1.bf16.msra.mxu0 %v10755_v5  ;;  %7895 = vmatpush1.bf16.msra.mxu1 %v10758_v6  ;;  %v10839_v5 = vld [vmem:[%s14801_s1 + $0x1580] ss:$16 sps:$4 sm:$0xff]   ;;  %v10842_v6 = vld [vmem:[%s14801_s1 + $0x1588] ss:$16 sps:$4 sm:$0xff]  }
 0x27c   :  { %7048 = vmatprep.subr.bf16.mxu0 %v10763_v7  ;;  %7896 = vmatprep.subr.bf16.mxu1 %v10766_v8  ;;  %v10847_v7 = vld [vmem:[%s14801_s1 + $0x15a4] ss:$16 sps:$4 sm:$0xff]   ;;  %v10850_v8 = vld [vmem:[%s14801_s1 + $0x15ac] ss:$16 sps:$4 sm:$0xff]  }
 0x27f   :  { %7049 = vmatpush1.bf16.msra.mxu0 %v10761_v11  ;;  %7897 = vmatpush1.bf16.msra.mxu1 %v10764_v12  ;;  %v10845_v11 = vld [vmem:[%s14801_s1 + $0x15a0] ss:$16 sps:$4 sm:$0xff]   ;;  %v10848_v12 = vld [vmem:[%s14801_s1 + $0x15a8] ss:$16 sps:$4 sm:$0xff]  }
 0x280   :  { %7071 = vmatprep.subr.bf16.mxu0 %v10769_v9  ;;  %7919 = vmatprep.subr.bf16.mxu1 %v10772_v10  ;;  %v10853_v9 = vld [vmem:[%s14801_s1 + $0x15c4] ss:$16 sps:$4 sm:$0xff]   ;;  %v10856_v10 = vld [vmem:[%s14801_s1 + $0x15cc] ss:$16 sps:$4 sm:$0xff]  }
 0x282   :  { %7051 = vmatmul.mubr.bf16.vlgmr.msra.gmra.mrb[0].mxu0 %v8478_v13  ;;  %7899 = vmatmul.mubr.bf16.vlgmr.msra.gmra.mrb[0].mxu1 %v8478_v13  ;;  %v10851_v13 = vld [vmem:[%s14801_s1 + $0x15c0] ss:$16 sps:$4 sm:$0xff]  }
 0x283   :  { %7072 = vmatpush1.bf16.msra.mxu0 %v10767_v16  ;;  %7920 = vmatpush1.bf16.msra.mxu1 %v10770_v19  ;;  %v10862_v16 = vld [vmem:[%s14801_s1 + $0x15ec] ss:$16 sps:$4 sm:$0xff]   ;;  %v10857_v19 = vld [vmem:[%s14801_s1 + $0x15e0] ss:$16 sps:$4 sm:$0xff]  }
 0x284   :  { %7073 = vmatprep.subr.bf16.mxu0 %v10775_v17  ;;  %7921 = vmatprep.subr.bf16.mxu1 %v10778_v18  ;;  %v10860_v17 = vld [vmem:[%s14801_s1 + $0x15e8] ss:$16 sps:$4 sm:$0xff]   ;;  %v10865_v18 = vld [vmem:[%s14801_s1 + $0x1604] ss:$16 sps:$4 sm:$0xff]  }
 0x285   :  { %7060 = vmatprep.mubr.bf16.mxu0 %v8511_v20  ;;  %7908 = vmatprep.mubr.bf16.mxu1 %v8511_v20  ;;  %v10868_v20 = vld [vmem:[%s14801_s1 + $0x160c] ss:$16 sps:$4 sm:$0xff]  }
 0x287   :  { %7074 = vmatpush1.bf16.msra.mxu0 %v10773_v21  ;;  %7922 = vmatpush1.bf16.msra.mxu1 %v10776_v22  ;;  %v8480_v21 = vcombine.low %v13510_v25, %v13515_v27  ;;  %v55_v22 = vld [vmem:[%s14802_s0 + $0x150] sm:$0xff]  ;;  %v10874_v27 = vld [vmem:[%s14801_s1 + $0x162c] ss:$16 sps:$4 sm:$0xff]  }
 0x288   :  { %7075 = vmatprep.subr.bf16.mxu0 %v10781_v23  ;;  %7923 = vmatprep.subr.bf16.mxu1 %v10784_v24  ;;  %v71_v23 = vld [vmem:[%s14802_s0 + $0x1d0] sm:$0xff] }
 0x289   :  { %v10863_v24 = vld [vmem:[%s14801_s1 + $0x1600] ss:$16 sps:$4 sm:$0xff]   ;;  %v10871_v25 = vld [vmem:[%s14801_s1 + $0x1624] ss:$16 sps:$4 sm:$0xff]  }
 0x28a   :  { %7061 = vmatmul.mubr.bf16.gmra.mrb[4].mxu0 %v8510_v26  ;;  %7909 = vmatmul.mubr.bf16.gmra.mrb[4].mxu1 %v8510_v26  ;;  %v10866_v26 = vld [vmem:[%s14801_s1 + $0x1608] ss:$16 sps:$4 sm:$0xff]  }
 0x28b   :  { %7076 = vmatpush1.bf16.msra.mxu0 %v10779_v28  ;;  %7924 = vmatpush1.bf16.msra.mxu1 %v10782_v29  ;;  %v8513_v28 = vcombine.high %v55_v22, %v71_v23  ;;  %v10869_v29 = vld [vmem:[%s14801_s1 + $0x1620] ss:$16 sps:$4 sm:$0xff]  }
 0x28c   :  { %7077 = vmatprep.subr.bf16.mxu0 %v10787_v30  ;;  %7925 = vmatprep.subr.bf16.mxu1 %v10790_v31  ;;  %v10872_v30 = vld [vmem:[%s14801_s1 + $0x1628] ss:$16 sps:$4 sm:$0xff]   ;;  %v10877_v31 = vld [vmem:[%s14801_s1 + $0x1644] ss:$16 sps:$4 sm:$0xff]  }
 0x28d   :  { %7103 = vmatprep.mubr.bf16.mxu0 %v8481_v32  ;;  %7951 = vmatprep.mubr.bf16.mxu1 %v8481_v32  ;;  %v10880_v32 = vld [vmem:[%s14801_s1 + $0x164c] ss:$16 sps:$4 sm:$0xff]  }
 0x28f   :  { %7078 = vmatpush1.bf16.msra.mxu0 %v10785_v34  ;;  %7926 = vmatpush1.bf16.msra.mxu1 %v10788_v36  ;;  %v8512_v34 = vcombine.low %v55_v22, %v71_v23  ;;  %v13722_v36 = vld [vmem:[%s14802_s0 + $0x58] sm:$0xff]  ;;  %v10955_v23 = vld [vmem:[%s14801_s1 + $0x17e4] ss:$16 sps:$4 sm:$0xff]  }
 0x290   :  { %7079 = vmatprep.subr.bf16.mxu0 %v10793_v33  ;;  %7927 = vmatprep.subr.bf16.mxu1 %v10796_v35  ;;  %v13727_v33 = vld [vmem:[%s14802_s0 + $0xd8] sm:$0xff]  ;;  %v10875_v35 = vld [vmem:[%s14801_s1 + $0x1640] ss:$16 sps:$4 sm:$0xff]  }
 0x291   :  { %v10950_v22 = vld [vmem:[%s14801_s1 + $0x17c8] ss:$16 sps:$4 sm:$0xff]  }
 0x293   :  { %7080 = vmatpush1.bf16.msra.mxu0 %v10791_v37  ;;  %7928 = vmatpush1.bf16.msra.mxu1 %v10794_v38  ;;  %v10878_v37 = vld [vmem:[%s14801_s1 + $0x1648] ss:$16 sps:$4 sm:$0xff]   ;;  %v10883_v38 = vld [vmem:[%s14801_s1 + $0x1664] ss:$16 sps:$4 sm:$0xff]  }
 0x294   :  { %7081 = vmatprep.subr.bf16.mxu0 %v10799_v39  ;;  %7929 = vmatprep.subr.bf16.mxu1 %v10802_v40  ;;  %v10886_v39 = vld [vmem:[%s14801_s1 + $0x166c] ss:$16 sps:$4 sm:$0xff]   ;;  %v8483_v40 = vcombine.high %v13722_v36, %v13727_v33 }
 0x297   :  { %7082 = vmatpush1.bf16.msra.mxu0 %v10797_v42  ;;  %7930 = vmatpush1.bf16.msra.mxu1 %v10800_v44  ;;  %v10881_v42 = vld [vmem:[%s14801_s1 + $0x1660] ss:$16 sps:$4 sm:$0xff]   ;;  %v10884_v44 = vld [vmem:[%s14801_s1 + $0x1668] ss:$16 sps:$4 sm:$0xff]  }
 0x298   :  { %7083 = vmatprep.subr.bf16.mxu0 %v10805_v41  ;;  %7931 = vmatprep.subr.bf16.mxu1 %v10808_v43  ;;  %v10889_v41 = vld [vmem:[%s14801_s1 + $0x1684] ss:$16 sps:$4 sm:$0xff]   ;;  %v10892_v43 = vld [vmem:[%s14801_s1 + $0x168c] ss:$16 sps:$4 sm:$0xff]  }
 0x29b   :  { %7084 = vmatpush1.bf16.msra.mxu0 %v10803_v45  ;;  %7932 = vmatpush1.bf16.msra.mxu1 %v10806_v46  ;;  %v10887_v45 = vld [vmem:[%s14801_s1 + $0x1680] ss:$16 sps:$4 sm:$0xff]   ;;  %v10890_v46 = vld [vmem:[%s14801_s1 + $0x1688] ss:$16 sps:$4 sm:$0xff]  }
 0x29c   :  { %7085 = vmatprep.subr.bf16.mxu0 %v10811_v47  ;;  %7933 = vmatprep.subr.bf16.mxu1 %v10814_v48  ;;  %v10895_v47 = vld [vmem:[%s14801_s1 + $0x16a4] ss:$16 sps:$4 sm:$0xff]   ;;  %v10898_v48 = vld [vmem:[%s14801_s1 + $0x16ac] ss:$16 sps:$4 sm:$0xff]  }
 0x29f   :  { %7086 = vmatpush1.bf16.msra.mxu0 %v10809_v51  ;;  %7934 = vmatpush1.bf16.msra.mxu1 %v10812_v52  ;;  %v10893_v51 = vld [vmem:[%s14801_s1 + $0x16a0] ss:$16 sps:$4 sm:$0xff]   ;;  %v10896_v52 = vld [vmem:[%s14801_s1 + $0x16a8] ss:$16 sps:$4 sm:$0xff]  }
 0x2a0   :  { %7087 = vmatprep.subr.bf16.mxu0 %v10817_v49  ;;  %7935 = vmatprep.subr.bf16.mxu1 %v10820_v50  ;;  %v10901_v49 = vld [vmem:[%s14801_s1 + $0x16c4] ss:$16 sps:$4 sm:$0xff]   ;;  %v10904_v50 = vld [vmem:[%s14801_s1 + $0x16cc] ss:$16 sps:$4 sm:$0xff]  }
 0x2a3   :  { %7088 = vmatpush1.bf16.msra.mxu0 %v10815_v53  ;;  %7936 = vmatpush1.bf16.msra.mxu1 %v10818_v54  ;;  %v10899_v53 = vld [vmem:[%s14801_s1 + $0x16c0] ss:$16 sps:$4 sm:$0xff]   ;;  %v10902_v54 = vld [vmem:[%s14801_s1 + $0x16c8] ss:$16 sps:$4 sm:$0xff]  }
 0x2a4   :  { %7089 = vmatprep.subr.bf16.mxu0 %v10823_v55  ;;  %7937 = vmatprep.subr.bf16.mxu1 %v10826_v56  ;;  %v10907_v55 = vld [vmem:[%s14801_s1 + $0x16e4] ss:$16 sps:$4 sm:$0xff]   ;;  %v10910_v56 = vld [vmem:[%s14801_s1 + $0x16ec] ss:$16 sps:$4 sm:$0xff]  }
 0x2a7   :  { %7090 = vmatpush1.bf16.msra.mxu0 %v10821_v59  ;;  %7938 = vmatpush1.bf16.msra.mxu1 %v10824_v60  ;;  %v10905_v59 = vld [vmem:[%s14801_s1 + $0x16e0] ss:$16 sps:$4 sm:$0xff]   ;;  %v10908_v60 = vld [vmem:[%s14801_s1 + $0x16e8] ss:$16 sps:$4 sm:$0xff]  }
 0x2a8   :  { %7091 = vmatprep.subr.bf16.mxu0 %v10829_v57  ;;  %7939 = vmatprep.subr.bf16.mxu1 %v10832_v58  ;;  %v10913_v57 = vld [vmem:[%s14801_s1 + $0x1704] ss:$16 sps:$4 sm:$0xff]   ;;  %v10916_v58 = vld [vmem:[%s14801_s1 + $0x170c] ss:$16 sps:$4 sm:$0xff]  }
 0x2ab   :  { %7092 = vmatpush1.bf16.msra.mxu0 %v10827_v61  ;;  %7940 = vmatpush1.bf16.msra.mxu1 %v10830_v62  ;;  %v10911_v61 = vld [vmem:[%s14801_s1 + $0x1700] ss:$16 sps:$4 sm:$0xff]   ;;  %v10914_v62 = vld [vmem:[%s14801_s1 + $0x1708] ss:$16 sps:$4 sm:$0xff]  }
 0x2ac   :  { %7093 = vmatprep.subr.bf16.mxu0 %v10835_v63  ;;  %7941 = vmatprep.subr.bf16.mxu1 %v10838_v0  ;;  %v10919_v63 = vld [vmem:[%s14801_s1 + $0x1724] ss:$16 sps:$4 sm:$0xff]   ;;  %v10922_v0 = vld [vmem:[%s14801_s1 + $0x172c] ss:$16 sps:$4 sm:$0xff]  }
 0x2af   :  { %7094 = vmatpush1.bf16.msra.mxu0 %v10833_v3  ;;  %7942 = vmatpush1.bf16.msra.mxu1 %v10836_v4  ;;  %v10917_v3 = vld [vmem:[%s14801_s1 + $0x1720] ss:$16 sps:$4 sm:$0xff]   ;;  %v10920_v4 = vld [vmem:[%s14801_s1 + $0x1728] ss:$16 sps:$4 sm:$0xff]  }
 0x2b0   :  { %7095 = vmatprep.subr.bf16.mxu0 %v10841_v1  ;;  %7943 = vmatprep.subr.bf16.mxu1 %v10844_v2  ;;  %v10925_v1 = vld [vmem:[%s14801_s1 + $0x1744] ss:$16 sps:$4 sm:$0xff]   ;;  %v10928_v2 = vld [vmem:[%s14801_s1 + $0x174c] ss:$16 sps:$4 sm:$0xff]  }
 0x2b3   :  { %7096 = vmatpush1.bf16.msra.mxu0 %v10839_v5  ;;  %7944 = vmatpush1.bf16.msra.mxu1 %v10842_v6  ;;  %v10923_v5 = vld [vmem:[%s14801_s1 + $0x1740] ss:$16 sps:$4 sm:$0xff]   ;;  %v10926_v6 = vld [vmem:[%s14801_s1 + $0x1748] ss:$16 sps:$4 sm:$0xff]  }
 0x2b4   :  { %7097 = vmatprep.subr.bf16.mxu0 %v10847_v7  ;;  %7945 = vmatprep.subr.bf16.mxu1 %v10850_v8  ;;  %v10931_v7 = vld [vmem:[%s14801_s1 + $0x1764] ss:$16 sps:$4 sm:$0xff]   ;;  %v10934_v8 = vld [vmem:[%s14801_s1 + $0x176c] ss:$16 sps:$4 sm:$0xff]  }
 0x2b7   :  { %7098 = vmatpush1.bf16.msra.mxu0 %v10845_v11  ;;  %7946 = vmatpush1.bf16.msra.mxu1 %v10848_v12  ;;  %v10929_v11 = vld [vmem:[%s14801_s1 + $0x1760] ss:$16 sps:$4 sm:$0xff]   ;;  %v10932_v12 = vld [vmem:[%s14801_s1 + $0x1768] ss:$16 sps:$4 sm:$0xff]  }
 0x2b8   :  { %7099 = vmatprep.subr.bf16.mxu0 %v10853_v9  ;;  %7947 = vmatprep.subr.bf16.mxu1 %v10856_v10  ;;  %v10937_v9 = vld [vmem:[%s14801_s1 + $0x1784] ss:$16 sps:$4 sm:$0xff]   ;;  %v10940_v10 = vld [vmem:[%s14801_s1 + $0x178c] ss:$16 sps:$4 sm:$0xff]  }
 0x2bb   :  { %7100 = vmatpush1.bf16.msra.mxu0 %v10851_v13  ;;  %7948 = vmatpush1.bf16.msra.mxu1 %v10854_v14  ;;  %v10935_v13 = vld [vmem:[%s14801_s1 + $0x1780] ss:$16 sps:$4 sm:$0xff]   ;;  %v10938_v14 = vld [vmem:[%s14801_s1 + $0x1788] ss:$16 sps:$4 sm:$0xff]  }
 0x2bc   :  { %7101 = vmatprep.subr.bf16.mxu0 %v10859_v15  ;;  %7949 = vmatprep.subr.bf16.mxu1 %v10862_v16  ;;  %v10943_v15 = vld [vmem:[%s14801_s1 + $0x17a4] ss:$16 sps:$4 sm:$0xff]   ;;  %v10946_v16 = vld [vmem:[%s14801_s1 + $0x17ac] ss:$16 sps:$4 sm:$0xff]  }
 0x2bf   :  { %7102 = vmatpush1.bf16.msra.mxu0 %v10857_v19  ;;  %7950 = vmatpush1.bf16.msra.mxu1 %v10860_v17  ;;  %v10941_v19 = vld [vmem:[%s14801_s1 + $0x17a0] ss:$16 sps:$4 sm:$0xff]   ;;  %v10944_v17 = vld [vmem:[%s14801_s1 + $0x17a8] ss:$16 sps:$4 sm:$0xff]  }
 0x2c0   :  { %7124 = vmatprep.subr.bf16.mxu0 %v10865_v18  ;;  %7972 = vmatprep.subr.bf16.mxu1 %v10868_v20  ;;  %v10949_v18 = vld [vmem:[%s14801_s1 + $0x17c4] ss:$16 sps:$4 sm:$0xff]   ;;  %v10952_v20 = vld [vmem:[%s14801_s1 + $0x17cc] ss:$16 sps:$4 sm:$0xff]  }
 0x2c2   :  { %7104 = vmatmul.mubr.bf16.vlgmr.msra.gmra.mrb[0].mxu0 %v8480_v21  ;;  %7952 = vmatmul.mubr.bf16.vlgmr.msra.gmra.mrb[0].mxu1 %v8480_v21  ;;  %v10947_v21 = vld [vmem:[%s14801_s1 + $0x17c0] ss:$16 sps:$4 sm:$0xff]  }
 0x2c3   :  { %7125 = vmatpush1.bf16.msra.mxu0 %v10863_v24  ;;  %7973 = vmatpush1.bf16.msra.mxu1 %v10866_v26  ;;  %v10958_v24 = vld [vmem:[%s14801_s1 + $0x17ec] ss:$16 sps:$4 sm:$0xff]   ;;  %v10953_v26 = vld [vmem:[%s14801_s1 + $0x17e0] ss:$16 sps:$4 sm:$0xff]  }
 0x2c4   :  { %7126 = vmatprep.subr.bf16.mxu0 %v10871_v25  ;;  %7974 = vmatprep.subr.bf16.mxu1 %v10874_v27  ;;  %v10956_v25 = vld [vmem:[%s14801_s1 + $0x17e8] ss:$16 sps:$4 sm:$0xff]   ;;  %v10961_v27 = vld [vmem:[%s14801_s1 + $0x1804] ss:$16 sps:$4 sm:$0xff]  }
 0x2c5   :  { %7113 = vmatprep.mubr.bf16.mxu0 %v8513_v28  ;;  %7961 = vmatprep.mubr.bf16.mxu1 %v8513_v28  ;;  %v10964_v28 = vld [vmem:[%s14801_s1 + $0x180c] ss:$16 sps:$4 sm:$0xff]  }
 0x2c7   :  { %7127 = vmatpush1.bf16.msra.mxu0 %v10869_v29  ;;  %7975 = vmatpush1.bf16.msra.mxu1 %v10872_v30  ;;  %v8482_v29 = vcombine.low %v13722_v36, %v13727_v33  ;;  %v56_v30 = vld [vmem:[%s14802_s0 + $0x158] sm:$0xff]  ;;  %v10967_v36 = vld [vmem:[%s14801_s1 + $0x1824] ss:$16 sps:$4 sm:$0xff]  }
 0x2c8   :  { %7128 = vmatprep.subr.bf16.mxu0 %v10877_v31  ;;  %7976 = vmatprep.subr.bf16.mxu1 %v10880_v32  ;;  %v72_v31 = vld [vmem:[%s14802_s0 + $0x1d8] sm:$0xff]  ;;  %v10959_v32 = vld [vmem:[%s14801_s1 + $0x1800] ss:$16 sps:$4 sm:$0xff]  }
 0x2c9   :  { %v10970_v33 = vld [vmem:[%s14801_s1 + $0x182c] ss:$16 sps:$4 sm:$0xff]  }
 0x2ca   :  { %7114 = vmatmul.mubr.bf16.gmra.mrb[4].mxu0 %v8512_v34  ;;  %7962 = vmatmul.mubr.bf16.gmra.mrb[4].mxu1 %v8512_v34  ;;  %v10962_v34 = vld [vmem:[%s14801_s1 + $0x1808] ss:$16 sps:$4 sm:$0xff]  }
 0x2cb   :  { %7129 = vmatpush1.bf16.msra.mxu0 %v10875_v35  ;;  %7977 = vmatpush1.bf16.msra.mxu1 %v10878_v37  ;;  %v8515_v35 = vcombine.high %v56_v30, %v72_v31  ;;  %v10965_v37 = vld [vmem:[%s14801_s1 + $0x1820] ss:$16 sps:$4 sm:$0xff]  }
 0x2cc   :  { %7130 = vmatprep.subr.bf16.mxu0 %v10883_v38  ;;  %7978 = vmatprep.subr.bf16.mxu1 %v10886_v39  ;;  %v10968_v38 = vld [vmem:[%s14801_s1 + $0x1828] ss:$16 sps:$4 sm:$0xff]   ;;  %v10973_v39 = vld [vmem:[%s14801_s1 + $0x1844] ss:$16 sps:$4 sm:$0xff]  }
 0x2cd   :  { %7156 = vmatprep.mubr.bf16.mxu0 %v8483_v40  ;;  %8004 = vmatprep.mubr.bf16.mxu1 %v8483_v40  ;;  %v10976_v40 = vld [vmem:[%s14801_s1 + $0x184c] ss:$16 sps:$4 sm:$0xff]  }
 0x2cf   :  { %7131 = vmatpush1.bf16.msra.mxu0 %v10881_v42  ;;  %7979 = vmatpush1.bf16.msra.mxu1 %v10884_v44  ;;  %v8514_v42 = vcombine.low %v56_v30, %v72_v31  ;;  %v13934_v44 = vld [vmem:[%s14802_s0 + $0x60] sm:$0xff]  ;;  %v11046_v30 = vld [vmem:[%s14801_s1 + $0x19c8] ss:$16 sps:$4 sm:$0xff]  }
 0x2d0   :  { %7132 = vmatprep.subr.bf16.mxu0 %v10889_v41  ;;  %7980 = vmatprep.subr.bf16.mxu1 %v10892_v43  ;;  %v13939_v41 = vld [vmem:[%s14802_s0 + $0xe0] sm:$0xff] }
 0x2d1   :  { %v10971_v43 = vld [vmem:[%s14801_s1 + $0x1840] ss:$16 sps:$4 sm:$0xff]   ;;  %v11051_v31 = vld [vmem:[%s14801_s1 + $0x19e4] ss:$16 sps:$4 sm:$0xff]  }
 0x2d3   :  { %7133 = vmatpush1.bf16.msra.mxu0 %v10887_v45  ;;  %7981 = vmatpush1.bf16.msra.mxu1 %v10890_v46  ;;  %v10974_v45 = vld [vmem:[%s14801_s1 + $0x1848] ss:$16 sps:$4 sm:$0xff]   ;;  %v10979_v46 = vld [vmem:[%s14801_s1 + $0x1864] ss:$16 sps:$4 sm:$0xff]  }
 0x2d4   :  { %7134 = vmatprep.subr.bf16.mxu0 %v10895_v47  ;;  %7982 = vmatprep.subr.bf16.mxu1 %v10898_v48  ;;  %v10982_v47 = vld [vmem:[%s14801_s1 + $0x186c] ss:$16 sps:$4 sm:$0xff]   ;;  %v8485_v48 = vcombine.high %v13934_v44, %v13939_v41 }
 0x2d7   :  { %7135 = vmatpush1.bf16.msra.mxu0 %v10893_v51  ;;  %7983 = vmatpush1.bf16.msra.mxu1 %v10896_v52  ;;  %v10977_v51 = vld [vmem:[%s14801_s1 + $0x1860] ss:$16 sps:$4 sm:$0xff]   ;;  %v10980_v52 = vld [vmem:[%s14801_s1 + $0x1868] ss:$16 sps:$4 sm:$0xff]  }
 0x2d8   :  { %7136 = vmatprep.subr.bf16.mxu0 %v10901_v49  ;;  %7984 = vmatprep.subr.bf16.mxu1 %v10904_v50  ;;  %v10985_v49 = vld [vmem:[%s14801_s1 + $0x1884] ss:$16 sps:$4 sm:$0xff]   ;;  %v10988_v50 = vld [vmem:[%s14801_s1 + $0x188c] ss:$16 sps:$4 sm:$0xff]  }
 0x2db   :  { %7137 = vmatpush1.bf16.msra.mxu0 %v10899_v53  ;;  %7985 = vmatpush1.bf16.msra.mxu1 %v10902_v54  ;;  %v10983_v53 = vld [vmem:[%s14801_s1 + $0x1880] ss:$16 sps:$4 sm:$0xff]   ;;  %v10986_v54 = vld [vmem:[%s14801_s1 + $0x1888] ss:$16 sps:$4 sm:$0xff]  }
 0x2dc   :  { %7138 = vmatprep.subr.bf16.mxu0 %v10907_v55  ;;  %7986 = vmatprep.subr.bf16.mxu1 %v10910_v56  ;;  %v10991_v55 = vld [vmem:[%s14801_s1 + $0x18a4] ss:$16 sps:$4 sm:$0xff]   ;;  %v10994_v56 = vld [vmem:[%s14801_s1 + $0x18ac] ss:$16 sps:$4 sm:$0xff]  }
 0x2df   :  { %7139 = vmatpush1.bf16.msra.mxu0 %v10905_v59  ;;  %7987 = vmatpush1.bf16.msra.mxu1 %v10908_v60  ;;  %v10989_v59 = vld [vmem:[%s14801_s1 + $0x18a0] ss:$16 sps:$4 sm:$0xff]   ;;  %v10992_v60 = vld [vmem:[%s14801_s1 + $0x18a8] ss:$16 sps:$4 sm:$0xff]  }
 0x2e0   :  { %7140 = vmatprep.subr.bf16.mxu0 %v10913_v57  ;;  %7988 = vmatprep.subr.bf16.mxu1 %v10916_v58  ;;  %v10997_v57 = vld [vmem:[%s14801_s1 + $0x18c4] ss:$16 sps:$4 sm:$0xff]   ;;  %v11000_v58 = vld [vmem:[%s14801_s1 + $0x18cc] ss:$16 sps:$4 sm:$0xff]  }
 0x2e3   :  { %7141 = vmatpush1.bf16.msra.mxu0 %v10911_v61  ;;  %7989 = vmatpush1.bf16.msra.mxu1 %v10914_v62  ;;  %v10995_v61 = vld [vmem:[%s14801_s1 + $0x18c0] ss:$16 sps:$4 sm:$0xff]   ;;  %v10998_v62 = vld [vmem:[%s14801_s1 + $0x18c8] ss:$16 sps:$4 sm:$0xff]  }
 0x2e4   :  { %7142 = vmatprep.subr.bf16.mxu0 %v10919_v63  ;;  %7990 = vmatprep.subr.bf16.mxu1 %v10922_v0  ;;  %v11003_v63 = vld [vmem:[%s14801_s1 + $0x18e4] ss:$16 sps:$4 sm:$0xff]   ;;  %v11006_v0 = vld [vmem:[%s14801_s1 + $0x18ec] ss:$16 sps:$4 sm:$0xff]  }
 0x2e7   :  { %7143 = vmatpush1.bf16.msra.mxu0 %v10917_v3  ;;  %7991 = vmatpush1.bf16.msra.mxu1 %v10920_v4  ;;  %v11001_v3 = vld [vmem:[%s14801_s1 + $0x18e0] ss:$16 sps:$4 sm:$0xff]   ;;  %v11004_v4 = vld [vmem:[%s14801_s1 + $0x18e8] ss:$16 sps:$4 sm:$0xff]  }
 0x2e8   :  { %7144 = vmatprep.subr.bf16.mxu0 %v10925_v1  ;;  %7992 = vmatprep.subr.bf16.mxu1 %v10928_v2  ;;  %v11009_v1 = vld [vmem:[%s14801_s1 + $0x1904] ss:$16 sps:$4 sm:$0xff]   ;;  %v11012_v2 = vld [vmem:[%s14801_s1 + $0x190c] ss:$16 sps:$4 sm:$0xff]  }
 0x2eb   :  { %7145 = vmatpush1.bf16.msra.mxu0 %v10923_v5  ;;  %7993 = vmatpush1.bf16.msra.mxu1 %v10926_v6  ;;  %v11007_v5 = vld [vmem:[%s14801_s1 + $0x1900] ss:$16 sps:$4 sm:$0xff]   ;;  %v11010_v6 = vld [vmem:[%s14801_s1 + $0x1908] ss:$16 sps:$4 sm:$0xff]  }
 0x2ec   :  { %7146 = vmatprep.subr.bf16.mxu0 %v10931_v7  ;;  %7994 = vmatprep.subr.bf16.mxu1 %v10934_v8  ;;  %v11015_v7 = vld [vmem:[%s14801_s1 + $0x1924] ss:$16 sps:$4 sm:$0xff]   ;;  %v11018_v8 = vld [vmem:[%s14801_s1 + $0x192c] ss:$16 sps:$4 sm:$0xff]  }
 0x2ef   :  { %7147 = vmatpush1.bf16.msra.mxu0 %v10929_v11  ;;  %7995 = vmatpush1.bf16.msra.mxu1 %v10932_v12  ;;  %v11013_v11 = vld [vmem:[%s14801_s1 + $0x1920] ss:$16 sps:$4 sm:$0xff]   ;;  %v11016_v12 = vld [vmem:[%s14801_s1 + $0x1928] ss:$16 sps:$4 sm:$0xff]  }
 0x2f0   :  { %7148 = vmatprep.subr.bf16.mxu0 %v10937_v9  ;;  %7996 = vmatprep.subr.bf16.mxu1 %v10940_v10  ;;  %v11021_v9 = vld [vmem:[%s14801_s1 + $0x1944] ss:$16 sps:$4 sm:$0xff]   ;;  %v11024_v10 = vld [vmem:[%s14801_s1 + $0x194c] ss:$16 sps:$4 sm:$0xff]  }
 0x2f3   :  { %7149 = vmatpush1.bf16.msra.mxu0 %v10935_v13  ;;  %7997 = vmatpush1.bf16.msra.mxu1 %v10938_v14  ;;  %v11019_v13 = vld [vmem:[%s14801_s1 + $0x1940] ss:$16 sps:$4 sm:$0xff]   ;;  %v11022_v14 = vld [vmem:[%s14801_s1 + $0x1948] ss:$16 sps:$4 sm:$0xff]  }
 0x2f4   :  { %7150 = vmatprep.subr.bf16.mxu0 %v10943_v15  ;;  %7998 = vmatprep.subr.bf16.mxu1 %v10946_v16  ;;  %v11027_v15 = vld [vmem:[%s14801_s1 + $0x1964] ss:$16 sps:$4 sm:$0xff]   ;;  %v11030_v16 = vld [vmem:[%s14801_s1 + $0x196c] ss:$16 sps:$4 sm:$0xff]  }
 0x2f7   :  { %7151 = vmatpush1.bf16.msra.mxu0 %v10941_v19  ;;  %7999 = vmatpush1.bf16.msra.mxu1 %v10944_v17  ;;  %v11025_v19 = vld [vmem:[%s14801_s1 + $0x1960] ss:$16 sps:$4 sm:$0xff]   ;;  %v11028_v17 = vld [vmem:[%s14801_s1 + $0x1968] ss:$16 sps:$4 sm:$0xff]  }
 0x2f8   :  { %7152 = vmatprep.subr.bf16.mxu0 %v10949_v18  ;;  %8000 = vmatprep.subr.bf16.mxu1 %v10952_v20  ;;  %v11033_v18 = vld [vmem:[%s14801_s1 + $0x1984] ss:$16 sps:$4 sm:$0xff]   ;;  %v11036_v20 = vld [vmem:[%s14801_s1 + $0x198c] ss:$16 sps:$4 sm:$0xff]  }
 0x2fb   :  { %7153 = vmatpush1.bf16.msra.mxu0 %v10947_v21  ;;  %8001 = vmatpush1.bf16.msra.mxu1 %v10950_v22  ;;  %v11031_v21 = vld [vmem:[%s14801_s1 + $0x1980] ss:$16 sps:$4 sm:$0xff]   ;;  %v11034_v22 = vld [vmem:[%s14801_s1 + $0x1988] ss:$16 sps:$4 sm:$0xff]  }
 0x2fc   :  { %7154 = vmatprep.subr.bf16.mxu0 %v10955_v23  ;;  %8002 = vmatprep.subr.bf16.mxu1 %v10958_v24  ;;  %v11039_v23 = vld [vmem:[%s14801_s1 + $0x19a4] ss:$16 sps:$4 sm:$0xff]   ;;  %v11042_v24 = vld [vmem:[%s14801_s1 + $0x19ac] ss:$16 sps:$4 sm:$0xff]  }
 0x2ff   :  { %7155 = vmatpush1.bf16.msra.mxu0 %v10953_v26  ;;  %8003 = vmatpush1.bf16.msra.mxu1 %v10956_v25  ;;  %v11037_v26 = vld [vmem:[%s14801_s1 + $0x19a0] ss:$16 sps:$4 sm:$0xff]   ;;  %v11040_v25 = vld [vmem:[%s14801_s1 + $0x19a8] ss:$16 sps:$4 sm:$0xff]  }
 0x300   :  { %7177 = vmatprep.subr.bf16.mxu0 %v10961_v27  ;;  %8025 = vmatprep.subr.bf16.mxu1 %v10964_v28  ;;  %v11045_v27 = vld [vmem:[%s14801_s1 + $0x19c4] ss:$16 sps:$4 sm:$0xff]   ;;  %v11048_v28 = vld [vmem:[%s14801_s1 + $0x19cc] ss:$16 sps:$4 sm:$0xff]  }
 0x302   :  { %7157 = vmatmul.mubr.bf16.vlgmr.msra.gmra.mrb[0].mxu0 %v8482_v29  ;;  %8005 = vmatmul.mubr.bf16.vlgmr.msra.gmra.mrb[0].mxu1 %v8482_v29  ;;  %v11043_v29 = vld [vmem:[%s14801_s1 + $0x19c0] ss:$16 sps:$4 sm:$0xff]  }
 0x303   :  { %7178 = vmatpush1.bf16.msra.mxu0 %v10959_v32  ;;  %8026 = vmatpush1.bf16.msra.mxu1 %v10962_v34  ;;  %v11054_v32 = vld [vmem:[%s14801_s1 + $0x19ec] ss:$16 sps:$4 sm:$0xff]   ;;  %v11049_v34 = vld [vmem:[%s14801_s1 + $0x19e0] ss:$16 sps:$4 sm:$0xff]  }
 0x304   :  { %7179 = vmatprep.subr.bf16.mxu0 %v10967_v36  ;;  %8027 = vmatprep.subr.bf16.mxu1 %v10970_v33  ;;  %v11052_v36 = vld [vmem:[%s14801_s1 + $0x19e8] ss:$16 sps:$4 sm:$0xff]   ;;  %v11057_v33 = vld [vmem:[%s14801_s1 + $0x1a04] ss:$16 sps:$4 sm:$0xff]  }
 0x305   :  { %7166 = vmatprep.mubr.bf16.mxu0 %v8515_v35  ;;  %8014 = vmatprep.mubr.bf16.mxu1 %v8515_v35  ;;  %v11060_v35 = vld [vmem:[%s14801_s1 + $0x1a0c] ss:$16 sps:$4 sm:$0xff]  }
 0x307   :  { %7180 = vmatpush1.bf16.msra.mxu0 %v10965_v37  ;;  %8028 = vmatpush1.bf16.msra.mxu1 %v10968_v38  ;;  %v8484_v37 = vcombine.low %v13934_v44, %v13939_v41  ;;  %v57_v38 = vld [vmem:[%s14802_s0 + $0x160] sm:$0xff]  ;;  %v11066_v41 = vld [vmem:[%s14801_s1 + $0x1a2c] ss:$16 sps:$4 sm:$0xff]  }
 0x308   :  { %7181 = vmatprep.subr.bf16.mxu0 %v10973_v39  ;;  %8029 = vmatprep.subr.bf16.mxu1 %v10976_v40  ;;  %v73_v39 = vld [vmem:[%s14802_s0 + $0x1e0] sm:$0xff] }
 0x309   :  { %v11055_v40 = vld [vmem:[%s14801_s1 + $0x1a00] ss:$16 sps:$4 sm:$0xff]   ;;  %v11063_v44 = vld [vmem:[%s14801_s1 + $0x1a24] ss:$16 sps:$4 sm:$0xff]  }
 0x30a   :  { %7167 = vmatmul.mubr.bf16.gmra.mrb[4].mxu0 %v8514_v42  ;;  %8015 = vmatmul.mubr.bf16.gmra.mrb[4].mxu1 %v8514_v42  ;;  %v11058_v42 = vld [vmem:[%s14801_s1 + $0x1a08] ss:$16 sps:$4 sm:$0xff]  }
 0x30b   :  { %7182 = vmatpush1.bf16.msra.mxu0 %v10971_v43  ;;  %8030 = vmatpush1.bf16.msra.mxu1 %v10974_v45  ;;  %v8517_v43 = vcombine.high %v57_v38, %v73_v39  ;;  %v11061_v45 = vld [vmem:[%s14801_s1 + $0x1a20] ss:$16 sps:$4 sm:$0xff]  }
 0x30c   :  { %7183 = vmatprep.subr.bf16.mxu0 %v10979_v46  ;;  %8031 = vmatprep.subr.bf16.mxu1 %v10982_v47  ;;  %v11064_v46 = vld [vmem:[%s14801_s1 + $0x1a28] ss:$16 sps:$4 sm:$0xff]   ;;  %v11069_v47 = vld [vmem:[%s14801_s1 + $0x1a44] ss:$16 sps:$4 sm:$0xff]  }
 0x30d   :  { %7209 = vmatprep.mubr.bf16.mxu0 %v8485_v48  ;;  %8057 = vmatprep.mubr.bf16.mxu1 %v8485_v48  ;;  %v11072_v48 = vld [vmem:[%s14801_s1 + $0x1a4c] ss:$16 sps:$4 sm:$0xff]  }
 0x30f   :  { %7184 = vmatpush1.bf16.msra.mxu0 %v10977_v51  ;;  %8032 = vmatpush1.bf16.msra.mxu1 %v10980_v52  ;;  %v8516_v51 = vcombine.low %v57_v38, %v73_v39  ;;  %v14146_v52 = vld [vmem:[%s14802_s0 + $0x68] sm:$0xff]  ;;  %v11147_v39 = vld [vmem:[%s14801_s1 + $0x1be4] ss:$16 sps:$4 sm:$0xff]  }
 0x310   :  { %7185 = vmatprep.subr.bf16.mxu0 %v10985_v49  ;;  %8033 = vmatprep.subr.bf16.mxu1 %v10988_v50  ;;  %v14151_v49 = vld [vmem:[%s14802_s0 + $0xe8] sm:$0xff]  ;;  %v11067_v50 = vld [vmem:[%s14801_s1 + $0x1a40] ss:$16 sps:$4 sm:$0xff]  }
 0x311   :  { %v11142_v38 = vld [vmem:[%s14801_s1 + $0x1bc8] ss:$16 sps:$4 sm:$0xff]  }
 0x313   :  { %7186 = vmatpush1.bf16.msra.mxu0 %v10983_v53  ;;  %8034 = vmatpush1.bf16.msra.mxu1 %v10986_v54  ;;  %v11070_v53 = vld [vmem:[%s14801_s1 + $0x1a48] ss:$16 sps:$4 sm:$0xff]   ;;  %v11075_v54 = vld [vmem:[%s14801_s1 + $0x1a64] ss:$16 sps:$4 sm:$0xff]  }
 0x314   :  { %7187 = vmatprep.subr.bf16.mxu0 %v10991_v55  ;;  %8035 = vmatprep.subr.bf16.mxu1 %v10994_v56  ;;  %v11078_v55 = vld [vmem:[%s14801_s1 + $0x1a6c] ss:$16 sps:$4 sm:$0xff]   ;;  %v8487_v56 = vcombine.high %v14146_v52, %v14151_v49 }
 0x317   :  { %7188 = vmatpush1.bf16.msra.mxu0 %v10989_v59  ;;  %8036 = vmatpush1.bf16.msra.mxu1 %v10992_v60  ;;  %v11073_v59 = vld [vmem:[%s14801_s1 + $0x1a60] ss:$16 sps:$4 sm:$0xff]   ;;  %v11076_v60 = vld [vmem:[%s14801_s1 + $0x1a68] ss:$16 sps:$4 sm:$0xff]  }
 0x318   :  { %7189 = vmatprep.subr.bf16.mxu0 %v10997_v57  ;;  %8037 = vmatprep.subr.bf16.mxu1 %v11000_v58  ;;  %v11081_v57 = vld [vmem:[%s14801_s1 + $0x1a84] ss:$16 sps:$4 sm:$0xff]   ;;  %v11084_v58 = vld [vmem:[%s14801_s1 + $0x1a8c] ss:$16 sps:$4 sm:$0xff]  }
 0x31b   :  { %7190 = vmatpush1.bf16.msra.mxu0 %v10995_v61  ;;  %8038 = vmatpush1.bf16.msra.mxu1 %v10998_v62  ;;  %v11079_v61 = vld [vmem:[%s14801_s1 + $0x1a80] ss:$16 sps:$4 sm:$0xff]   ;;  %v11082_v62 = vld [vmem:[%s14801_s1 + $0x1a88] ss:$16 sps:$4 sm:$0xff]  }
 0x31c   :  { %7191 = vmatprep.subr.bf16.mxu0 %v11003_v63  ;;  %8039 = vmatprep.subr.bf16.mxu1 %v11006_v0  ;;  %v11087_v63 = vld [vmem:[%s14801_s1 + $0x1aa4] ss:$16 sps:$4 sm:$0xff]   ;;  %v11090_v0 = vld [vmem:[%s14801_s1 + $0x1aac] ss:$16 sps:$4 sm:$0xff]  }
 0x31f   :  { %7192 = vmatpush1.bf16.msra.mxu0 %v11001_v3  ;;  %8040 = vmatpush1.bf16.msra.mxu1 %v11004_v4  ;;  %v11085_v3 = vld [vmem:[%s14801_s1 + $0x1aa0] ss:$16 sps:$4 sm:$0xff]   ;;  %v11088_v4 = vld [vmem:[%s14801_s1 + $0x1aa8] ss:$16 sps:$4 sm:$0xff]  }
 0x320   :  { %7193 = vmatprep.subr.bf16.mxu0 %v11009_v1  ;;  %8041 = vmatprep.subr.bf16.mxu1 %v11012_v2  ;;  %v11093_v1 = vld [vmem:[%s14801_s1 + $0x1ac4] ss:$16 sps:$4 sm:$0xff]   ;;  %v11096_v2 = vld [vmem:[%s14801_s1 + $0x1acc] ss:$16 sps:$4 sm:$0xff]  }
 0x323   :  { %7194 = vmatpush1.bf16.msra.mxu0 %v11007_v5  ;;  %8042 = vmatpush1.bf16.msra.mxu1 %v11010_v6  ;;  %v11091_v5 = vld [vmem:[%s14801_s1 + $0x1ac0] ss:$16 sps:$4 sm:$0xff]   ;;  %v11094_v6 = vld [vmem:[%s14801_s1 + $0x1ac8] ss:$16 sps:$4 sm:$0xff]  }
 0x324   :  { %7195 = vmatprep.subr.bf16.mxu0 %v11015_v7  ;;  %8043 = vmatprep.subr.bf16.mxu1 %v11018_v8  ;;  %v11099_v7 = vld [vmem:[%s14801_s1 + $0x1ae4] ss:$16 sps:$4 sm:$0xff]   ;;  %v11102_v8 = vld [vmem:[%s14801_s1 + $0x1aec] ss:$16 sps:$4 sm:$0xff]  }
 0x327   :  { %7196 = vmatpush1.bf16.msra.mxu0 %v11013_v11  ;;  %8044 = vmatpush1.bf16.msra.mxu1 %v11016_v12  ;;  %v11097_v11 = vld [vmem:[%s14801_s1 + $0x1ae0] ss:$16 sps:$4 sm:$0xff]   ;;  %v11100_v12 = vld [vmem:[%s14801_s1 + $0x1ae8] ss:$16 sps:$4 sm:$0xff]  }
 0x328   :  { %7197 = vmatprep.subr.bf16.mxu0 %v11021_v9  ;;  %8045 = vmatprep.subr.bf16.mxu1 %v11024_v10  ;;  %v11105_v9 = vld [vmem:[%s14801_s1 + $0x1b04] ss:$16 sps:$4 sm:$0xff]   ;;  %v11108_v10 = vld [vmem:[%s14801_s1 + $0x1b0c] ss:$16 sps:$4 sm:$0xff]  }
 0x32b   :  { %7198 = vmatpush1.bf16.msra.mxu0 %v11019_v13  ;;  %8046 = vmatpush1.bf16.msra.mxu1 %v11022_v14  ;;  %v11103_v13 = vld [vmem:[%s14801_s1 + $0x1b00] ss:$16 sps:$4 sm:$0xff]   ;;  %v11106_v14 = vld [vmem:[%s14801_s1 + $0x1b08] ss:$16 sps:$4 sm:$0xff]  }
 0x32c   :  { %7199 = vmatprep.subr.bf16.mxu0 %v11027_v15  ;;  %8047 = vmatprep.subr.bf16.mxu1 %v11030_v16  ;;  %v11111_v15 = vld [vmem:[%s14801_s1 + $0x1b24] ss:$16 sps:$4 sm:$0xff]   ;;  %v11114_v16 = vld [vmem:[%s14801_s1 + $0x1b2c] ss:$16 sps:$4 sm:$0xff]  }
 0x32f   :  { %7200 = vmatpush1.bf16.msra.mxu0 %v11025_v19  ;;  %8048 = vmatpush1.bf16.msra.mxu1 %v11028_v17  ;;  %v11109_v19 = vld [vmem:[%s14801_s1 + $0x1b20] ss:$16 sps:$4 sm:$0xff]   ;;  %v11112_v17 = vld [vmem:[%s14801_s1 + $0x1b28] ss:$16 sps:$4 sm:$0xff]  }
 0x330   :  { %7201 = vmatprep.subr.bf16.mxu0 %v11033_v18  ;;  %8049 = vmatprep.subr.bf16.mxu1 %v11036_v20  ;;  %v11117_v18 = vld [vmem:[%s14801_s1 + $0x1b44] ss:$16 sps:$4 sm:$0xff]   ;;  %v11120_v20 = vld [vmem:[%s14801_s1 + $0x1b4c] ss:$16 sps:$4 sm:$0xff]  }
 0x333   :  { %7202 = vmatpush1.bf16.msra.mxu0 %v11031_v21  ;;  %8050 = vmatpush1.bf16.msra.mxu1 %v11034_v22  ;;  %v11115_v21 = vld [vmem:[%s14801_s1 + $0x1b40] ss:$16 sps:$4 sm:$0xff]   ;;  %v11118_v22 = vld [vmem:[%s14801_s1 + $0x1b48] ss:$16 sps:$4 sm:$0xff]  }
 0x334   :  { %7203 = vmatprep.subr.bf16.mxu0 %v11039_v23  ;;  %8051 = vmatprep.subr.bf16.mxu1 %v11042_v24  ;;  %v11123_v23 = vld [vmem:[%s14801_s1 + $0x1b64] ss:$16 sps:$4 sm:$0xff]   ;;  %v11126_v24 = vld [vmem:[%s14801_s1 + $0x1b6c] ss:$16 sps:$4 sm:$0xff]  }
 0x337   :  { %7204 = vmatpush1.bf16.msra.mxu0 %v11037_v26  ;;  %8052 = vmatpush1.bf16.msra.mxu1 %v11040_v25  ;;  %v11121_v26 = vld [vmem:[%s14801_s1 + $0x1b60] ss:$16 sps:$4 sm:$0xff]   ;;  %v11124_v25 = vld [vmem:[%s14801_s1 + $0x1b68] ss:$16 sps:$4 sm:$0xff]  }
 0x338   :  { %7205 = vmatprep.subr.bf16.mxu0 %v11045_v27  ;;  %8053 = vmatprep.subr.bf16.mxu1 %v11048_v28  ;;  %v11129_v27 = vld [vmem:[%s14801_s1 + $0x1b84] ss:$16 sps:$4 sm:$0xff]   ;;  %v11132_v28 = vld [vmem:[%s14801_s1 + $0x1b8c] ss:$16 sps:$4 sm:$0xff]  }
 0x33b   :  { %7206 = vmatpush1.bf16.msra.mxu0 %v11043_v29  ;;  %8054 = vmatpush1.bf16.msra.mxu1 %v11046_v30  ;;  %v11127_v29 = vld [vmem:[%s14801_s1 + $0x1b80] ss:$16 sps:$4 sm:$0xff]   ;;  %v11130_v30 = vld [vmem:[%s14801_s1 + $0x1b88] ss:$16 sps:$4 sm:$0xff]  }
 0x33c   :  { %7207 = vmatprep.subr.bf16.mxu0 %v11051_v31  ;;  %8055 = vmatprep.subr.bf16.mxu1 %v11054_v32  ;;  %v11135_v31 = vld [vmem:[%s14801_s1 + $0x1ba4] ss:$16 sps:$4 sm:$0xff]   ;;  %v11138_v32 = vld [vmem:[%s14801_s1 + $0x1bac] ss:$16 sps:$4 sm:$0xff]  }
 0x33f   :  { %7208 = vmatpush1.bf16.msra.mxu0 %v11049_v34  ;;  %8056 = vmatpush1.bf16.msra.mxu1 %v11052_v36  ;;  %v11133_v34 = vld [vmem:[%s14801_s1 + $0x1ba0] ss:$16 sps:$4 sm:$0xff]   ;;  %v11136_v36 = vld [vmem:[%s14801_s1 + $0x1ba8] ss:$16 sps:$4 sm:$0xff]  }
 0x340   :  { %7230 = vmatprep.subr.bf16.mxu0 %v11057_v33  ;;  %8078 = vmatprep.subr.bf16.mxu1 %v11060_v35  ;;  %v11141_v33 = vld [vmem:[%s14801_s1 + $0x1bc4] ss:$16 sps:$4 sm:$0xff]   ;;  %v11144_v35 = vld [vmem:[%s14801_s1 + $0x1bcc] ss:$16 sps:$4 sm:$0xff]  }
 0x342   :  { %7210 = vmatmul.mubr.bf16.vlgmr.msra.gmra.mrb[0].mxu0 %v8484_v37  ;;  %8058 = vmatmul.mubr.bf16.vlgmr.msra.gmra.mrb[0].mxu1 %v8484_v37  ;;  %v11139_v37 = vld [vmem:[%s14801_s1 + $0x1bc0] ss:$16 sps:$4 sm:$0xff]  }
 0x343   :  { %7231 = vmatpush1.bf16.msra.mxu0 %v11055_v40  ;;  %8079 = vmatpush1.bf16.msra.mxu1 %v11058_v42  ;;  %v11150_v40 = vld [vmem:[%s14801_s1 + $0x1bec] ss:$16 sps:$4 sm:$0xff]   ;;  %v11145_v42 = vld [vmem:[%s14801_s1 + $0x1be0] ss:$16 sps:$4 sm:$0xff]  }
 0x344   :  { %7232 = vmatprep.subr.bf16.mxu0 %v11063_v44  ;;  %8080 = vmatprep.subr.bf16.mxu1 %v11066_v41  ;;  %v11148_v44 = vld [vmem:[%s14801_s1 + $0x1be8] ss:$16 sps:$4 sm:$0xff]   ;;  %v11153_v41 = vld [vmem:[%s14801_s1 + $0x1c04] ss:$16 sps:$4 sm:$0xff]  }
 0x345   :  { %7219 = vmatprep.mubr.bf16.mxu0 %v8517_v43  ;;  %8067 = vmatprep.mubr.bf16.mxu1 %v8517_v43  ;;  %v11156_v43 = vld [vmem:[%s14801_s1 + $0x1c0c] ss:$16 sps:$4 sm:$0xff]  }
 0x347   :  { %7233 = vmatpush1.bf16.msra.mxu0 %v11061_v45  ;;  %8081 = vmatpush1.bf16.msra.mxu1 %v11064_v46  ;;  %v8486_v45 = vcombine.low %v14146_v52, %v14151_v49  ;;  %v58_v46 = vld [vmem:[%s14802_s0 + $0x168] sm:$0xff]  ;;  %v11159_v52 = vld [vmem:[%s14801_s1 + $0x1c24] ss:$16 sps:$4 sm:$0xff]  }
 0x348   :  { %7234 = vmatprep.subr.bf16.mxu0 %v11069_v47  ;;  %8082 = vmatprep.subr.bf16.mxu1 %v11072_v48  ;;  %v74_v47 = vld [vmem:[%s14802_s0 + $0x1e8] sm:$0xff]  ;;  %v11151_v48 = vld [vmem:[%s14801_s1 + $0x1c00] ss:$16 sps:$4 sm:$0xff]  }
 0x349   :  { %v11162_v49 = vld [vmem:[%s14801_s1 + $0x1c2c] ss:$16 sps:$4 sm:$0xff]  }
 0x34a   :  { %7220 = vmatmul.mubr.bf16.gmra.mrb[4].mxu0 %v8516_v51  ;;  %8068 = vmatmul.mubr.bf16.gmra.mrb[4].mxu1 %v8516_v51  ;;  %v11154_v51 = vld [vmem:[%s14801_s1 + $0x1c08] ss:$16 sps:$4 sm:$0xff]  }
 0x34b   :  { %7235 = vmatpush1.bf16.msra.mxu0 %v11067_v50  ;;  %8083 = vmatpush1.bf16.msra.mxu1 %v11070_v53  ;;  %v8519_v50 = vcombine.high %v58_v46, %v74_v47  ;;  %v11157_v53 = vld [vmem:[%s14801_s1 + $0x1c20] ss:$16 sps:$4 sm:$0xff]  }
 0x34c   :  { %7236 = vmatprep.subr.bf16.mxu0 %v11075_v54  ;;  %8084 = vmatprep.subr.bf16.mxu1 %v11078_v55  ;;  %v11160_v54 = vld [vmem:[%s14801_s1 + $0x1c28] ss:$16 sps:$4 sm:$0xff]   ;;  %v11165_v55 = vld [vmem:[%s14801_s1 + $0x1c44] ss:$16 sps:$4 sm:$0xff]  }
 0x34d   :  { %7262 = vmatprep.mubr.bf16.mxu0 %v8487_v56  ;;  %8110 = vmatprep.mubr.bf16.mxu1 %v8487_v56  ;;  %v11168_v56 = vld [vmem:[%s14801_s1 + $0x1c4c] ss:$16 sps:$4 sm:$0xff]  }
 0x34f   :  { %7237 = vmatpush1.bf16.msra.mxu0 %v11073_v59  ;;  %8085 = vmatpush1.bf16.msra.mxu1 %v11076_v60  ;;  %v8518_v59 = vcombine.low %v58_v46, %v74_v47  ;;  %v14358_v60 = vld [vmem:[%s14802_s0 + $0x70] sm:$0xff]  ;;  %v11238_v46 = vld [vmem:[%s14801_s1 + $0x1dc8] ss:$16 sps:$4 sm:$0xff]  }
 0x350   :  { %7238 = vmatprep.subr.bf16.mxu0 %v11081_v57  ;;  %8086 = vmatprep.subr.bf16.mxu1 %v11084_v58  ;;  %v14363_v57 = vld [vmem:[%s14802_s0 + $0xf0] sm:$0xff] }
 0x351   :  { %v11163_v58 = vld [vmem:[%s14801_s1 + $0x1c40] ss:$16 sps:$4 sm:$0xff]   ;;  %v11243_v47 = vld [vmem:[%s14801_s1 + $0x1de4] ss:$16 sps:$4 sm:$0xff]  }
 0x353   :  { %7239 = vmatpush1.bf16.msra.mxu0 %v11079_v61  ;;  %8087 = vmatpush1.bf16.msra.mxu1 %v11082_v62  ;;  %v11166_v61 = vld [vmem:[%s14801_s1 + $0x1c48] ss:$16 sps:$4 sm:$0xff]   ;;  %v11171_v62 = vld [vmem:[%s14801_s1 + $0x1c64] ss:$16 sps:$4 sm:$0xff]  }
 0x354   :  { %7240 = vmatprep.subr.bf16.mxu0 %v11087_v63  ;;  %8088 = vmatprep.subr.bf16.mxu1 %v11090_v0  ;;  %v11174_v63 = vld [vmem:[%s14801_s1 + $0x1c6c] ss:$16 sps:$4 sm:$0xff]   ;;  %v8489_v0 = vcombine.high %v14358_v60, %v14363_v57 }
 0x357   :  { %7241 = vmatpush1.bf16.msra.mxu0 %v11085_v3  ;;  %8089 = vmatpush1.bf16.msra.mxu1 %v11088_v4  ;;  %v11169_v3 = vld [vmem:[%s14801_s1 + $0x1c60] ss:$16 sps:$4 sm:$0xff]   ;;  %v11172_v4 = vld [vmem:[%s14801_s1 + $0x1c68] ss:$16 sps:$4 sm:$0xff]  }
 0x358   :  { %7242 = vmatprep.subr.bf16.mxu0 %v11093_v1  ;;  %8090 = vmatprep.subr.bf16.mxu1 %v11096_v2  ;;  %v11177_v1 = vld [vmem:[%s14801_s1 + $0x1c84] ss:$16 sps:$4 sm:$0xff]   ;;  %v11180_v2 = vld [vmem:[%s14801_s1 + $0x1c8c] ss:$16 sps:$4 sm:$0xff]  }
 0x35b   :  { %7243 = vmatpush1.bf16.msra.mxu0 %v11091_v5  ;;  %8091 = vmatpush1.bf16.msra.mxu1 %v11094_v6  ;;  %v11175_v5 = vld [vmem:[%s14801_s1 + $0x1c80] ss:$16 sps:$4 sm:$0xff]   ;;  %v11178_v6 = vld [vmem:[%s14801_s1 + $0x1c88] ss:$16 sps:$4 sm:$0xff]  }
 0x35c   :  { %7244 = vmatprep.subr.bf16.mxu0 %v11099_v7  ;;  %8092 = vmatprep.subr.bf16.mxu1 %v11102_v8  ;;  %v11183_v7 = vld [vmem:[%s14801_s1 + $0x1ca4] ss:$16 sps:$4 sm:$0xff]   ;;  %v11186_v8 = vld [vmem:[%s14801_s1 + $0x1cac] ss:$16 sps:$4 sm:$0xff]  }
 0x35f   :  { %7245 = vmatpush1.bf16.msra.mxu0 %v11097_v11  ;;  %8093 = vmatpush1.bf16.msra.mxu1 %v11100_v12  ;;  %v11181_v11 = vld [vmem:[%s14801_s1 + $0x1ca0] ss:$16 sps:$4 sm:$0xff]   ;;  %v11184_v12 = vld [vmem:[%s14801_s1 + $0x1ca8] ss:$16 sps:$4 sm:$0xff]  }
 0x360   :  { %7246 = vmatprep.subr.bf16.mxu0 %v11105_v9  ;;  %8094 = vmatprep.subr.bf16.mxu1 %v11108_v10  ;;  %v11189_v9 = vld [vmem:[%s14801_s1 + $0x1cc4] ss:$16 sps:$4 sm:$0xff]   ;;  %v11192_v10 = vld [vmem:[%s14801_s1 + $0x1ccc] ss:$16 sps:$4 sm:$0xff]  }
 0x363   :  { %7247 = vmatpush1.bf16.msra.mxu0 %v11103_v13  ;;  %8095 = vmatpush1.bf16.msra.mxu1 %v11106_v14  ;;  %v11187_v13 = vld [vmem:[%s14801_s1 + $0x1cc0] ss:$16 sps:$4 sm:$0xff]   ;;  %v11190_v14 = vld [vmem:[%s14801_s1 + $0x1cc8] ss:$16 sps:$4 sm:$0xff]  }
 0x364   :  { %7248 = vmatprep.subr.bf16.mxu0 %v11111_v15  ;;  %8096 = vmatprep.subr.bf16.mxu1 %v11114_v16  ;;  %v11195_v15 = vld [vmem:[%s14801_s1 + $0x1ce4] ss:$16 sps:$4 sm:$0xff]   ;;  %v11198_v16 = vld [vmem:[%s14801_s1 + $0x1cec] ss:$16 sps:$4 sm:$0xff]  }
 0x367   :  { %7249 = vmatpush1.bf16.msra.mxu0 %v11109_v19  ;;  %8097 = vmatpush1.bf16.msra.mxu1 %v11112_v17  ;;  %v11193_v19 = vld [vmem:[%s14801_s1 + $0x1ce0] ss:$16 sps:$4 sm:$0xff]   ;;  %v11196_v17 = vld [vmem:[%s14801_s1 + $0x1ce8] ss:$16 sps:$4 sm:$0xff]  }
 0x368   :  { %7250 = vmatprep.subr.bf16.mxu0 %v11117_v18  ;;  %8098 = vmatprep.subr.bf16.mxu1 %v11120_v20  ;;  %v11201_v18 = vld [vmem:[%s14801_s1 + $0x1d04] ss:$16 sps:$4 sm:$0xff]   ;;  %v11204_v20 = vld [vmem:[%s14801_s1 + $0x1d0c] ss:$16 sps:$4 sm:$0xff]  }
 0x36b   :  { %7251 = vmatpush1.bf16.msra.mxu0 %v11115_v21  ;;  %8099 = vmatpush1.bf16.msra.mxu1 %v11118_v22  ;;  %v11199_v21 = vld [vmem:[%s14801_s1 + $0x1d00] ss:$16 sps:$4 sm:$0xff]   ;;  %v11202_v22 = vld [vmem:[%s14801_s1 + $0x1d08] ss:$16 sps:$4 sm:$0xff]  }
 0x36c   :  { %7252 = vmatprep.subr.bf16.mxu0 %v11123_v23  ;;  %8100 = vmatprep.subr.bf16.mxu1 %v11126_v24  ;;  %v11207_v23 = vld [vmem:[%s14801_s1 + $0x1d24] ss:$16 sps:$4 sm:$0xff]   ;;  %v11210_v24 = vld [vmem:[%s14801_s1 + $0x1d2c] ss:$16 sps:$4 sm:$0xff]  }
 0x36f   :  { %7253 = vmatpush1.bf16.msra.mxu0 %v11121_v26  ;;  %8101 = vmatpush1.bf16.msra.mxu1 %v11124_v25  ;;  %v11205_v26 = vld [vmem:[%s14801_s1 + $0x1d20] ss:$16 sps:$4 sm:$0xff]   ;;  %v11208_v25 = vld [vmem:[%s14801_s1 + $0x1d28] ss:$16 sps:$4 sm:$0xff]  }
 0x370   :  { %7254 = vmatprep.subr.bf16.mxu0 %v11129_v27  ;;  %8102 = vmatprep.subr.bf16.mxu1 %v11132_v28  ;;  %v11213_v27 = vld [vmem:[%s14801_s1 + $0x1d44] ss:$16 sps:$4 sm:$0xff]   ;;  %v11216_v28 = vld [vmem:[%s14801_s1 + $0x1d4c] ss:$16 sps:$4 sm:$0xff]  }
 0x373   :  { %7255 = vmatpush1.bf16.msra.mxu0 %v11127_v29  ;;  %8103 = vmatpush1.bf16.msra.mxu1 %v11130_v30  ;;  %v11211_v29 = vld [vmem:[%s14801_s1 + $0x1d40] ss:$16 sps:$4 sm:$0xff]   ;;  %v11214_v30 = vld [vmem:[%s14801_s1 + $0x1d48] ss:$16 sps:$4 sm:$0xff]  }
 0x374   :  { %7256 = vmatprep.subr.bf16.mxu0 %v11135_v31  ;;  %8104 = vmatprep.subr.bf16.mxu1 %v11138_v32  ;;  %v11219_v31 = vld [vmem:[%s14801_s1 + $0x1d64] ss:$16 sps:$4 sm:$0xff]   ;;  %v11222_v32 = vld [vmem:[%s14801_s1 + $0x1d6c] ss:$16 sps:$4 sm:$0xff]  }
 0x377   :  { %7257 = vmatpush1.bf16.msra.mxu0 %v11133_v34  ;;  %8105 = vmatpush1.bf16.msra.mxu1 %v11136_v36  ;;  %v11217_v34 = vld [vmem:[%s14801_s1 + $0x1d60] ss:$16 sps:$4 sm:$0xff]   ;;  %v11220_v36 = vld [vmem:[%s14801_s1 + $0x1d68] ss:$16 sps:$4 sm:$0xff]  }
 0x378   :  { %7258 = vmatprep.subr.bf16.mxu0 %v11141_v33  ;;  %8106 = vmatprep.subr.bf16.mxu1 %v11144_v35  ;;  %v11225_v33 = vld [vmem:[%s14801_s1 + $0x1d84] ss:$16 sps:$4 sm:$0xff]   ;;  %v11228_v35 = vld [vmem:[%s14801_s1 + $0x1d8c] ss:$16 sps:$4 sm:$0xff]  }
 0x37b   :  { %7259 = vmatpush1.bf16.msra.mxu0 %v11139_v37  ;;  %8107 = vmatpush1.bf16.msra.mxu1 %v11142_v38  ;;  %v11223_v37 = vld [vmem:[%s14801_s1 + $0x1d80] ss:$16 sps:$4 sm:$0xff]   ;;  %v11226_v38 = vld [vmem:[%s14801_s1 + $0x1d88] ss:$16 sps:$4 sm:$0xff]  }
 0x37c   :  { %7260 = vmatprep.subr.bf16.mxu0 %v11147_v39  ;;  %8108 = vmatprep.subr.bf16.mxu1 %v11150_v40  ;;  %v11231_v39 = vld [vmem:[%s14801_s1 + $0x1da4] ss:$16 sps:$4 sm:$0xff]   ;;  %v11234_v40 = vld [vmem:[%s14801_s1 + $0x1dac] ss:$16 sps:$4 sm:$0xff]  }
 0x37f   :  { %7261 = vmatpush1.bf16.msra.mxu0 %v11145_v42  ;;  %8109 = vmatpush1.bf16.msra.mxu1 %v11148_v44  ;;  %v11229_v42 = vld [vmem:[%s14801_s1 + $0x1da0] ss:$16 sps:$4 sm:$0xff]   ;;  %v11232_v44 = vld [vmem:[%s14801_s1 + $0x1da8] ss:$16 sps:$4 sm:$0xff]  }
 0x380   :  { %7283 = vmatprep.subr.bf16.mxu0 %v11153_v41  ;;  %8131 = vmatprep.subr.bf16.mxu1 %v11156_v43  ;;  %v11237_v41 = vld [vmem:[%s14801_s1 + $0x1dc4] ss:$16 sps:$4 sm:$0xff]   ;;  %v11240_v43 = vld [vmem:[%s14801_s1 + $0x1dcc] ss:$16 sps:$4 sm:$0xff]  }
 0x382   :  { %7263 = vmatmul.mubr.bf16.vlgmr.msra.gmra.mrb[0].mxu0 %v8486_v45  ;;  %8111 = vmatmul.mubr.bf16.vlgmr.msra.gmra.mrb[0].mxu1 %v8486_v45  ;;  %v11235_v45 = vld [vmem:[%s14801_s1 + $0x1dc0] ss:$16 sps:$4 sm:$0xff]  }
 0x383   :  { %7284 = vmatpush1.bf16.msra.mxu0 %v11151_v48  ;;  %8132 = vmatpush1.bf16.msra.mxu1 %v11154_v51  ;;  %v11246_v48 = vld [vmem:[%s14801_s1 + $0x1dec] ss:$16 sps:$4 sm:$0xff]   ;;  %v11241_v51 = vld [vmem:[%s14801_s1 + $0x1de0] ss:$16 sps:$4 sm:$0xff]  }
 0x384   :  { %7285 = vmatprep.subr.bf16.mxu0 %v11159_v52  ;;  %8133 = vmatprep.subr.bf16.mxu1 %v11162_v49  ;;  %v11244_v52 = vld [vmem:[%s14801_s1 + $0x1de8] ss:$16 sps:$4 sm:$0xff]   ;;  %v11249_v49 = vld [vmem:[%s14801_s1 + $0x1e04] ss:$16 sps:$4 sm:$0xff]  }
 0x385   :  { %7272 = vmatprep.mubr.bf16.mxu0 %v8519_v50  ;;  %8120 = vmatprep.mubr.bf16.mxu1 %v8519_v50  ;;  %v11252_v50 = vld [vmem:[%s14801_s1 + $0x1e0c] ss:$16 sps:$4 sm:$0xff]  }
 0x387   :  { %7286 = vmatpush1.bf16.msra.mxu0 %v11157_v53  ;;  %8134 = vmatpush1.bf16.msra.mxu1 %v11160_v54  ;;  %v8488_v53 = vcombine.low %v14358_v60, %v14363_v57  ;;  %v59_v54 = vld [vmem:[%s14802_s0 + $0x170] sm:$0xff]  ;;  %v11258_v57 = vld [vmem:[%s14801_s1 + $0x1e2c] ss:$16 sps:$4 sm:$0xff]  }
 0x388   :  { %7287 = vmatprep.subr.bf16.mxu0 %v11165_v55  ;;  %8135 = vmatprep.subr.bf16.mxu1 %v11168_v56  ;;  %v75_v55 = vld [vmem:[%s14802_s0 + $0x1f0] sm:$0xff] }
 0x389   :  { %v11247_v56 = vld [vmem:[%s14801_s1 + $0x1e00] ss:$16 sps:$4 sm:$0xff]   ;;  %v11255_v60 = vld [vmem:[%s14801_s1 + $0x1e24] ss:$16 sps:$4 sm:$0xff]  }
 0x38a   :  { %7273 = vmatmul.mubr.bf16.gmra.mrb[4].mxu0 %v8518_v59  ;;  %8121 = vmatmul.mubr.bf16.gmra.mrb[4].mxu1 %v8518_v59  ;;  %v11250_v59 = vld [vmem:[%s14801_s1 + $0x1e08] ss:$16 sps:$4 sm:$0xff]  }
 0x38b   :  { %7288 = vmatpush1.bf16.msra.mxu0 %v11163_v58  ;;  %8136 = vmatpush1.bf16.msra.mxu1 %v11166_v61  ;;  %v8521_v58 = vcombine.high %v59_v54, %v75_v55  ;;  %v11253_v61 = vld [vmem:[%s14801_s1 + $0x1e20] ss:$16 sps:$4 sm:$0xff]  }
 0x38c   :  { %7289 = vmatprep.subr.bf16.mxu0 %v11171_v62  ;;  %8137 = vmatprep.subr.bf16.mxu1 %v11174_v63  ;;  %v11256_v62 = vld [vmem:[%s14801_s1 + $0x1e28] ss:$16 sps:$4 sm:$0xff]   ;;  %v11261_v63 = vld [vmem:[%s14801_s1 + $0x1e44] ss:$16 sps:$4 sm:$0xff]  }
 0x38d   :  { %7315 = vmatprep.mubr.bf16.mxu0 %v8489_v0  ;;  %8163 = vmatprep.mubr.bf16.mxu1 %v8489_v0  ;;  %v11264_v0 = vld [vmem:[%s14801_s1 + $0x1e4c] ss:$16 sps:$4 sm:$0xff]  }
 0x38f   :  { %7290 = vmatpush1.bf16.msra.mxu0 %v11169_v3  ;;  %8138 = vmatpush1.bf16.msra.mxu1 %v11172_v4  ;;  %v8520_v3 = vcombine.low %v59_v54, %v75_v55  ;;  %v14570_v4 = vld [vmem:[%s14802_s0 + $0x78] sm:$0xff]  ;;  %v11339_v55 = vld [vmem:[%s14801_s1 + $0x1fe4] ss:$16 sps:$4 sm:$0xff]  }
 0x390   :  { %7291 = vmatprep.subr.bf16.mxu0 %v11177_v1  ;;  %8139 = vmatprep.subr.bf16.mxu1 %v11180_v2  ;;  %v14575_v1 = vld [vmem:[%s14802_s0 + $0xf8] sm:$0xff]  ;;  %v11259_v2 = vld [vmem:[%s14801_s1 + $0x1e40] ss:$16 sps:$4 sm:$0xff]  }
 0x391   :  { %v11334_v54 = vld [vmem:[%s14801_s1 + $0x1fc8] ss:$16 sps:$4 sm:$0xff]  }
 0x393   :  { %7292 = vmatpush1.bf16.msra.mxu0 %v11175_v5  ;;  %8140 = vmatpush1.bf16.msra.mxu1 %v11178_v6  ;;  %v11262_v5 = vld [vmem:[%s14801_s1 + $0x1e48] ss:$16 sps:$4 sm:$0xff]   ;;  %v11267_v6 = vld [vmem:[%s14801_s1 + $0x1e64] ss:$16 sps:$4 sm:$0xff]  }
 0x394   :  { %7293 = vmatprep.subr.bf16.mxu0 %v11183_v7  ;;  %8141 = vmatprep.subr.bf16.mxu1 %v11186_v8  ;;  %v11270_v7 = vld [vmem:[%s14801_s1 + $0x1e6c] ss:$16 sps:$4 sm:$0xff]   ;;  %v8491_v8 = vcombine.high %v14570_v4, %v14575_v1 }
 0x397   :  { %7294 = vmatpush1.bf16.msra.mxu0 %v11181_v11  ;;  %8142 = vmatpush1.bf16.msra.mxu1 %v11184_v12  ;;  %v11265_v11 = vld [vmem:[%s14801_s1 + $0x1e60] ss:$16 sps:$4 sm:$0xff]   ;;  %v11268_v12 = vld [vmem:[%s14801_s1 + $0x1e68] ss:$16 sps:$4 sm:$0xff]  }
 0x398   :  { %7295 = vmatprep.subr.bf16.mxu0 %v11189_v9  ;;  %8143 = vmatprep.subr.bf16.mxu1 %v11192_v10  ;;  %v11273_v9 = vld [vmem:[%s14801_s1 + $0x1e84] ss:$16 sps:$4 sm:$0xff]   ;;  %v11276_v10 = vld [vmem:[%s14801_s1 + $0x1e8c] ss:$16 sps:$4 sm:$0xff]  }
 0x39b   :  { %7296 = vmatpush1.bf16.msra.mxu0 %v11187_v13  ;;  %8144 = vmatpush1.bf16.msra.mxu1 %v11190_v14  ;;  %v11271_v13 = vld [vmem:[%s14801_s1 + $0x1e80] ss:$16 sps:$4 sm:$0xff]   ;;  %v11274_v14 = vld [vmem:[%s14801_s1 + $0x1e88] ss:$16 sps:$4 sm:$0xff]  }
 0x39c   :  { %7297 = vmatprep.subr.bf16.mxu0 %v11195_v15  ;;  %8145 = vmatprep.subr.bf16.mxu1 %v11198_v16  ;;  %v11279_v15 = vld [vmem:[%s14801_s1 + $0x1ea4] ss:$16 sps:$4 sm:$0xff]   ;;  %v11282_v16 = vld [vmem:[%s14801_s1 + $0x1eac] ss:$16 sps:$4 sm:$0xff]  }
 0x39f   :  { %7298 = vmatpush1.bf16.msra.mxu0 %v11193_v19  ;;  %8146 = vmatpush1.bf16.msra.mxu1 %v11196_v17  ;;  %v11277_v19 = vld [vmem:[%s14801_s1 + $0x1ea0] ss:$16 sps:$4 sm:$0xff]   ;;  %v11280_v17 = vld [vmem:[%s14801_s1 + $0x1ea8] ss:$16 sps:$4 sm:$0xff]  }
 0x3a0   :  { %7299 = vmatprep.subr.bf16.mxu0 %v11201_v18  ;;  %8147 = vmatprep.subr.bf16.mxu1 %v11204_v20  ;;  %v11285_v18 = vld [vmem:[%s14801_s1 + $0x1ec4] ss:$16 sps:$4 sm:$0xff]   ;;  %v11288_v20 = vld [vmem:[%s14801_s1 + $0x1ecc] ss:$16 sps:$4 sm:$0xff]  }
 0x3a3   :  { %7300 = vmatpush1.bf16.msra.mxu0 %v11199_v21  ;;  %8148 = vmatpush1.bf16.msra.mxu1 %v11202_v22  ;;  %v11283_v21 = vld [vmem:[%s14801_s1 + $0x1ec0] ss:$16 sps:$4 sm:$0xff]   ;;  %v11286_v22 = vld [vmem:[%s14801_s1 + $0x1ec8] ss:$16 sps:$4 sm:$0xff]  }
 0x3a4   :  { %7301 = vmatprep.subr.bf16.mxu0 %v11207_v23  ;;  %8149 = vmatprep.subr.bf16.mxu1 %v11210_v24  ;;  %v11291_v23 = vld [vmem:[%s14801_s1 + $0x1ee4] ss:$16 sps:$4 sm:$0xff]   ;;  %v11294_v24 = vld [vmem:[%s14801_s1 + $0x1eec] ss:$16 sps:$4 sm:$0xff]  }
 0x3a7   :  { %7302 = vmatpush1.bf16.msra.mxu0 %v11205_v26  ;;  %8150 = vmatpush1.bf16.msra.mxu1 %v11208_v25  ;;  %v11289_v26 = vld [vmem:[%s14801_s1 + $0x1ee0] ss:$16 sps:$4 sm:$0xff]   ;;  %v11292_v25 = vld [vmem:[%s14801_s1 + $0x1ee8] ss:$16 sps:$4 sm:$0xff]  }
 0x3a8   :  { %7303 = vmatprep.subr.bf16.mxu0 %v11213_v27  ;;  %8151 = vmatprep.subr.bf16.mxu1 %v11216_v28  ;;  %v11297_v27 = vld [vmem:[%s14801_s1 + $0x1f04] ss:$16 sps:$4 sm:$0xff]   ;;  %v11300_v28 = vld [vmem:[%s14801_s1 + $0x1f0c] ss:$16 sps:$4 sm:$0xff]  }
 0x3ab   :  { %7304 = vmatpush1.bf16.msra.mxu0 %v11211_v29  ;;  %8152 = vmatpush1.bf16.msra.mxu1 %v11214_v30  ;;  %v11295_v29 = vld [vmem:[%s14801_s1 + $0x1f00] ss:$16 sps:$4 sm:$0xff]   ;;  %v11298_v30 = vld [vmem:[%s14801_s1 + $0x1f08] ss:$16 sps:$4 sm:$0xff]  }
 0x3ac   :  { %7305 = vmatprep.subr.bf16.mxu0 %v11219_v31  ;;  %8153 = vmatprep.subr.bf16.mxu1 %v11222_v32  ;;  %v11303_v31 = vld [vmem:[%s14801_s1 + $0x1f24] ss:$16 sps:$4 sm:$0xff]   ;;  %v11306_v32 = vld [vmem:[%s14801_s1 + $0x1f2c] ss:$16 sps:$4 sm:$0xff]  }
 0x3af   :  { %7306 = vmatpush1.bf16.msra.mxu0 %v11217_v34  ;;  %8154 = vmatpush1.bf16.msra.mxu1 %v11220_v36  ;;  %v11301_v34 = vld [vmem:[%s14801_s1 + $0x1f20] ss:$16 sps:$4 sm:$0xff]   ;;  %v11304_v36 = vld [vmem:[%s14801_s1 + $0x1f28] ss:$16 sps:$4 sm:$0xff]  }
 0x3b0   :  { %7307 = vmatprep.subr.bf16.mxu0 %v11225_v33  ;;  %8155 = vmatprep.subr.bf16.mxu1 %v11228_v35  ;;  %v11309_v33 = vld [vmem:[%s14801_s1 + $0x1f44] ss:$16 sps:$4 sm:$0xff]   ;;  %v11312_v35 = vld [vmem:[%s14801_s1 + $0x1f4c] ss:$16 sps:$4 sm:$0xff]  }
 0x3b3   :  { %7308 = vmatpush1.bf16.msra.mxu0 %v11223_v37  ;;  %8156 = vmatpush1.bf16.msra.mxu1 %v11226_v38  ;;  %v11307_v37 = vld [vmem:[%s14801_s1 + $0x1f40] ss:$16 sps:$4 sm:$0xff]   ;;  %v11310_v38 = vld [vmem:[%s14801_s1 + $0x1f48] ss:$16 sps:$4 sm:$0xff]  }
 0x3b4   :  { %7309 = vmatprep.subr.bf16.mxu0 %v11231_v39  ;;  %8157 = vmatprep.subr.bf16.mxu1 %v11234_v40  ;;  %v11315_v39 = vld [vmem:[%s14801_s1 + $0x1f64] ss:$16 sps:$4 sm:$0xff]   ;;  %v11318_v40 = vld [vmem:[%s14801_s1 + $0x1f6c] ss:$16 sps:$4 sm:$0xff]  }
 0x3b7   :  { %7310 = vmatpush1.bf16.msra.mxu0 %v11229_v42  ;;  %8158 = vmatpush1.bf16.msra.mxu1 %v11232_v44  ;;  %v11313_v42 = vld [vmem:[%s14801_s1 + $0x1f60] ss:$16 sps:$4 sm:$0xff]   ;;  %v11316_v44 = vld [vmem:[%s14801_s1 + $0x1f68] ss:$16 sps:$4 sm:$0xff]  }
 0x3b8   :  { %7311 = vmatprep.subr.bf16.mxu0 %v11237_v41  ;;  %8159 = vmatprep.subr.bf16.mxu1 %v11240_v43  ;;  %v11321_v41 = vld [vmem:[%s14801_s1 + $0x1f84] ss:$16 sps:$4 sm:$0xff]   ;;  %v11324_v43 = vld [vmem:[%s14801_s1 + $0x1f8c] ss:$16 sps:$4 sm:$0xff]  }
 0x3bb   :  { %7312 = vmatpush1.bf16.msra.mxu0 %v11235_v45  ;;  %8160 = vmatpush1.bf16.msra.mxu1 %v11238_v46  ;;  %v11319_v45 = vld [vmem:[%s14801_s1 + $0x1f80] ss:$16 sps:$4 sm:$0xff]   ;;  %v11322_v46 = vld [vmem:[%s14801_s1 + $0x1f88] ss:$16 sps:$4 sm:$0xff]  }
 0x3bc   :  { %7313 = vmatprep.subr.bf16.mxu0 %v11243_v47  ;;  %8161 = vmatprep.subr.bf16.mxu1 %v11246_v48  ;;  %v11327_v47 = vld [vmem:[%s14801_s1 + $0x1fa4] ss:$16 sps:$4 sm:$0xff]   ;;  %v11330_v48 = vld [vmem:[%s14801_s1 + $0x1fac] ss:$16 sps:$4 sm:$0xff]  }
 0x3bf   :  { %7314 = vmatpush1.bf16.msra.mxu0 %v11241_v51  ;;  %8162 = vmatpush1.bf16.msra.mxu1 %v11244_v52  ;;  %v11325_v51 = vld [vmem:[%s14801_s1 + $0x1fa0] ss:$16 sps:$4 sm:$0xff]   ;;  %v11328_v52 = vld [vmem:[%s14801_s1 + $0x1fa8] ss:$16 sps:$4 sm:$0xff]  }
 0x3c0   :  { %7336 = vmatprep.subr.bf16.mxu0 %v11249_v49  ;;  %8184 = vmatprep.subr.bf16.mxu1 %v11252_v50  ;;  %v11333_v49 = vld [vmem:[%s14801_s1 + $0x1fc4] ss:$16 sps:$4 sm:$0xff]   ;;  %v11336_v50 = vld [vmem:[%s14801_s1 + $0x1fcc] ss:$16 sps:$4 sm:$0xff]  }
 0x3c2   :  { %7316 = vmatmul.mubr.bf16.vlgmr.msra.gmra.mrb[0].mxu0 %v8488_v53  ;;  %8164 = vmatmul.mubr.bf16.vlgmr.msra.gmra.mrb[0].mxu1 %v8488_v53  ;;  %v11331_v53 = vld [vmem:[%s14801_s1 + $0x1fc0] ss:$16 sps:$4 sm:$0xff]  }
 0x3c3   :  { %7337 = vmatpush1.bf16.msra.mxu0 %v11247_v56  ;;  %8185 = vmatpush1.bf16.msra.mxu1 %v11250_v59  ;;  %v11342_v56 = vld [vmem:[%s14801_s1 + $0x1fec] ss:$16 sps:$4 sm:$0xff]   ;;  %v11337_v59 = vld [vmem:[%s14801_s1 + $0x1fe0] ss:$16 sps:$4 sm:$0xff]  }
 0x3c4   :  { %7338 = vmatprep.subr.bf16.mxu0 %v11255_v60  ;;  %8186 = vmatprep.subr.bf16.mxu1 %v11258_v57  ;;  %v11340_v60 = vld [vmem:[%s14801_s1 + $0x1fe8] ss:$16 sps:$4 sm:$0xff]  }
 0x3c5   :  { %7325 = vmatprep.mubr.bf16.mxu0 %v8521_v58  ;;  %8173 = vmatprep.mubr.bf16.mxu1 %v8521_v58  ;;  %v60_v57 = vld [vmem:[%s14802_s0 + $0x178] sm:$0xff] }
 0x3c6   :  { %v76_v58 = vld [vmem:[%s14802_s0 + $0x1f8] sm:$0xff] }
 0x3c7   :  { %7339 = vmatpush1.bf16.msra.mxu0 %v11253_v61  ;;  %8187 = vmatpush1.bf16.msra.mxu1 %v11256_v62  ;;  %v8490_v61 = vcombine.low %v14570_v4, %v14575_v1  ;;  %v8523_v62 = vcombine.high %v60_v57, %v76_v58  ;;  %v8342_v1 = vlaneseq }
 0x3c8   :  { %7340 = vmatprep.subr.bf16.mxu0 %v11261_v63  ;;  %8188 = vmatprep.subr.bf16.mxu1 %v11264_v0  ;;  %v8522_v63 = vcombine.low %v60_v57, %v76_v58  ;;  %v11343_v0 = vmov 0.0  }
 0x3c9   :  { %8293 = vst [vmem:[%s14803_s3] sm:$0xff] %v11343_v0  ;;  %8294 = vst [vmem:[%s14803_s3 + $0x8] sm:$0xff] %v11343_v0  ;;  %vm8364_vm0 = vcmp.lt.s32.totalorder %v8342_v1, 512 }
 0x3ca   :  { %7326 = vmatmul.mubr.bf16.gmra.mrb[4].mxu0 %v8520_v3  ;;  %8174 = vmatmul.mubr.bf16.gmra.mrb[4].mxu1 %v8520_v3  ;;  %8295 = vst [vmem:[%s14803_s3 + $0x10] sm:$0xff] %v11343_v0  ;;  %8296 = vst [vmem:[%s14803_s3 + $0x18] sm:$0xff] %v11343_v0  ;;  %v11344_v3 = vmov 1966171168  }
 0x3cb   :  { %7341 = vmatpush1.bf16.msra.mxu0 %v11259_v2  ;;  %8189 = vmatpush1.bf16.msra.mxu1 %v11262_v5  ;;  %v8340_v4 = vunpack.c.l.s4 %v11344_v3 }
 0x3cc   :  { %7342 = vmatprep.subr.bf16.mxu0 %v11267_v6  ;;  %8190 = vmatprep.subr.bf16.mxu1 %v11270_v7 }
 0x3cd   :  { %7368 = vmatprep.mubr.bf16.mxu0 %v8491_v8  ;;  %8216 = vmatprep.mubr.bf16.mxu1 %v8491_v8 }
 0x3cf   :  { %7343 = vmatpush1.bf16.msra.mxu0 %v11265_v11  ;;  %8191 = vmatpush1.bf16.msra.mxu1 %v11268_v12  ;;  %v8341_v12 = vunpack.c.0.s8 %v8340_v4 }
 0x3d0   :  { %7344 = vmatprep.subr.bf16.mxu0 %v11273_v9  ;;  %8192 = vmatprep.subr.bf16.mxu1 %v11276_v10  ;;  %v8343_v9 = vshrl.u32 %v8342_v1, 7 }
 0x3d3   :  { %7345 = vmatpush1.bf16.msra.mxu0 %v11271_v13  ;;  %8193 = vmatpush1.bf16.msra.mxu1 %v11274_v14 }
 0x3d4   :  { %7346 = vmatprep.subr.bf16.mxu0 %v11279_v15  ;;  %8194 = vmatprep.subr.bf16.mxu1 %v11282_v16 }
 0x3d7   :  { %7347 = vmatpush1.bf16.msra.mxu0 %v11277_v19  ;;  %8195 = vmatpush1.bf16.msra.mxu1 %v11280_v17 }
 0x3d8   :  { %7348 = vmatprep.subr.bf16.mxu0 %v11285_v18  ;;  %8196 = vmatprep.subr.bf16.mxu1 %v11288_v20 }
 0x3db   :  { %7349 = vmatpush1.bf16.msra.mxu0 %v11283_v21  ;;  %8197 = vmatpush1.bf16.msra.mxu1 %v11286_v22 }
 0x3dc   :  { %7350 = vmatprep.subr.bf16.mxu0 %v11291_v23  ;;  %8198 = vmatprep.subr.bf16.mxu1 %v11294_v24 }
 0x3df   :  { %7351 = vmatpush1.bf16.msra.mxu0 %v11289_v26  ;;  %8199 = vmatpush1.bf16.msra.mxu1 %v11292_v25 }
 0x3e0   :  { %7352 = vmatprep.subr.bf16.mxu0 %v11297_v27  ;;  %8200 = vmatprep.subr.bf16.mxu1 %v11300_v28 }
 0x3e3   :  { %7353 = vmatpush1.bf16.msra.mxu0 %v11295_v29  ;;  %8201 = vmatpush1.bf16.msra.mxu1 %v11298_v30 }
 0x3e4   :  { %7354 = vmatprep.subr.bf16.mxu0 %v11303_v31  ;;  %8202 = vmatprep.subr.bf16.mxu1 %v11306_v32 }
 0x3e7   :  { %7355 = vmatpush1.bf16.msra.mxu0 %v11301_v34  ;;  %8203 = vmatpush1.bf16.msra.mxu1 %v11304_v36 }
 0x3e8   :  { %7356 = vmatprep.subr.bf16.mxu0 %v11309_v33  ;;  %8204 = vmatprep.subr.bf16.mxu1 %v11312_v35  ;;  %v14774_v35 = vsub.s32 %v8341_v12, %v8343_v9 }
 0x3eb   :  { %7357 = vmatpush1.bf16.msra.mxu0 %v11307_v37  ;;  %8205 = vmatpush1.bf16.msra.mxu1 %v11310_v38 }
 0x3ec   :  { %7358 = vmatprep.subr.bf16.mxu0 %v11315_v39  ;;  %8206 = vmatprep.subr.bf16.mxu1 %v11318_v40 }
 0x3ef   :  { %7359 = vmatpush1.bf16.msra.mxu0 %v11313_v42  ;;  %8207 = vmatpush1.bf16.msra.mxu1 %v11316_v44 }
 0x3f0   :  { %7360 = vmatprep.subr.bf16.mxu0 %v11321_v41  ;;  %8208 = vmatprep.subr.bf16.mxu1 %v11324_v43 }
 0x3f3   :  { %7361 = vmatpush1.bf16.msra.mxu0 %v11319_v45  ;;  %8209 = vmatpush1.bf16.msra.mxu1 %v11322_v46 }
 0x3f4   :  { %7362 = vmatprep.subr.bf16.mxu0 %v11327_v47  ;;  %8210 = vmatprep.subr.bf16.mxu1 %v11330_v48 }
 0x3f7   :  { %7363 = vmatpush1.bf16.msra.mxu0 %v11325_v51  ;;  %8211 = vmatpush1.bf16.msra.mxu1 %v11328_v52 }
 0x3f8   :  { %7364 = vmatprep.subr.bf16.mxu0 %v11333_v49  ;;  %8212 = vmatprep.subr.bf16.mxu1 %v11336_v50 }
 0x3fb   :  { %7365 = vmatpush1.bf16.msra.mxu0 %v11331_v53  ;;  %8213 = vmatpush1.bf16.msra.mxu1 %v11334_v54 }
 0x3fc   :  { %7366 = vmatprep.subr.bf16.mxu0 %v11339_v55  ;;  %8214 = vmatprep.subr.bf16.mxu1 %v11342_v56 }
 0x3ff   :  { %7367 = vmatpush1.bf16.msra.mxu0 %v11337_v59  ;;  %8215 = vmatpush1.bf16.msra.mxu1 %v11340_v60 }
 0x402   :  { %7369 = vmatmul.mubr.bf16.vlgmr.msra.gmra.mrb[0].mxu0 %v8490_v61  ;;  %8217 = vmatmul.mubr.bf16.vlgmr.msra.gmra.mrb[0].mxu1 %v8490_v61 }
 0x403   :  { %7378 = vmatprep.mubr.bf16.mxu0 %v8523_v62  ;;  %8226 = vmatprep.mubr.bf16.mxu1 %v8523_v62 }
 0x40a   :  { %7379 = vmatmul.mubr.bf16.gmra.mrb[4].mxu0 %v8522_v63  ;;  %8227 = vmatmul.mubr.bf16.gmra.mrb[4].mxu1 %v8522_v63 }
 0x4d5   :  { %v7370_v2 = vpop.f32.mrb[0].mxu0  ;;  %v8218_v5 = vpop.f32.mrb[0].mxu1 }
 0x4d6   :  { %v8368_v6 = vmul.f32 %v7370_v2, %v7370_v2  ;;  %v8370_v7 = vmul.f32 %v8218_v5, %v8218_v5  ;;  %v7372_v8 = vpop.f32.mrb[1].mxu0  ;;  %v8220_v11 = vpop.f32.mrb[1].mxu1 }
 0x4d7   :  { %v9557_v10 = vpack.c.bf16 %v7372_v8, %v7370_v2  ;;  %v8369_v13 = vmul.f32 %v7372_v8, %v7372_v8  ;;  %v9558_v14 = vpack.c.bf16 %v8220_v11, %v8218_v5  ;;  %v8371_v15 = vmul.f32 %v8220_v11, %v8220_v11  ;;  %v7374_v16 = vpop.f32.mrb[2].mxu0  ;;  %v8222_v19 = vpop.f32.mrb[2].mxu1 }
 0x4d8   :  { %v8297_v17 = vadd.f32 %v7374_v16, %v7370_v2  ;;  %v8372_v18 = vmul.f32 %v7374_v16, %v7374_v16  ;;  %v8315_v20 = vadd.f32 %v8222_v19, %v8218_v5  ;;  %v8374_v21 = vmul.f32 %v8222_v19, %v8222_v19  ;;  %v7376_v22 = vpop.f32.mrb[3].mxu0  ;;  %v8224_v23 = vpop.f32.mrb[3].mxu1 }
 0x4d9   :  { %8285 = vst [vmem:[%s14804_s2] sm:$0xff] %v9557_v10  ;;  %8286 = vst [vmem:[%s14804_s2 + $0x8] sm:$0xff] %v9558_v14  ;;  %v9559_v24 = vpack.c.bf16 %v7376_v22, %v7374_v16  ;;  %v8306_v26 = vadd.f32 %v7376_v22, %v7372_v8  ;;  %v8373_v25 = vmul.f32 %v7376_v22, %v7376_v22 }
 0x4da   :  { %v9560_v27 = vpack.c.bf16 %v8224_v23, %v8222_v19  ;;  %v8384_v28 = vadd.f32 %v8372_v18, %v8368_v6  ;;  %v8402_v29 = vadd.f32 %v8374_v21, %v8370_v7  ;;  %v8324_v30 = vadd.f32 %v8224_v23, %v8220_v11 }
 0x4db   :  { %v8375_v31 = vmul.f32 %v8224_v23, %v8224_v23  ;;  %8287 = vst [vmem:[%s14804_s2 + $0x10] sm:$0xff] %v9559_v24  ;;  %v8393_v32 = vadd.f32 %v8373_v25, %v8369_v13 }
 0x4dc   :  { %8288 = vst [vmem:[%s14804_s2 + $0x18] sm:$0xff] %v9560_v27 }
 0x4dd   :  { %v8411_v34 = vadd.f32 %v8375_v31, %v8371_v15  ;;  %v7380_v36 = vpop.f32.mrb[4].mxu0  ;;  %v8228_v33 = vpop.f32.mrb[4].mxu1 }
 0x4de   :  { %v8298_v37 = vadd.f32 %v8297_v17, %v7380_v36  ;;  %v8376_v38 = vmul.f32 %v7380_v36, %v7380_v36  ;;  %v8316_v39 = vadd.f32 %v8315_v20, %v8228_v33  ;;  %v8378_v40 = vmul.f32 %v8228_v33, %v8228_v33  ;;  %v7382_v42 = vpop.f32.mrb[5].mxu0  ;;  %v8230_v44 = vpop.f32.mrb[5].mxu1 }
 0x4df   :  { %v9561_v41 = vpack.c.bf16 %v7382_v42, %v7380_v36  ;;  %v8307_v43 = vadd.f32 %v8306_v26, %v7382_v42  ;;  %v8377_v45 = vmul.f32 %v7382_v42, %v7382_v42  ;;  %v9562_v46 = vpack.c.bf16 %v8230_v44, %v8228_v33  ;;  %v7384_v47 = vpop.f32.mrb[6].mxu0  ;;  %v8232_v48 = vpop.f32.mrb[6].mxu1 }
 0x4e0   :  { %v8385_v51 = vadd.f32 %v8384_v28, %v8376_v38  ;;  %v8403_v52 = vadd.f32 %v8402_v29, %v8378_v40  ;;  %v8325_v49 = vadd.f32 %v8324_v30, %v8230_v44  ;;  %v8379_v50 = vmul.f32 %v8230_v44, %v8230_v44  ;;  %v7386_v53 = vpop.f32.mrb[7].mxu0  ;;  %v8234_v54 = vpop.f32.mrb[7].mxu1 }
 0x4e1   :  { %8289 = vst [vmem:[%s14804_s2 + $0x20] sm:$0xff] %v9561_v41  ;;  %v8394_v55 = vadd.f32 %v8393_v32, %v8377_v45  ;;  %8290 = vst [vmem:[%s14804_s2 + $0x28] sm:$0xff] %v9562_v46  ;;  %v8299_v56 = vadd.f32 %v8298_v37, %v7384_v47  ;;  %v8380_v59 = vmul.f32 %v7384_v47, %v7384_v47 }
 0x4e2   :  { %v8317_v60 = vadd.f32 %v8316_v39, %v8232_v48  ;;  %v8412_v57 = vadd.f32 %v8411_v34, %v8379_v50  ;;  %v8382_v58 = vmul.f32 %v8232_v48, %v8232_v48  ;;  %v9563_v61 = vpack.c.bf16 %v7386_v53, %v7384_v47 }
 0x4e3   :  { %v8308_v62 = vadd.f32 %v8307_v43, %v7386_v53  ;;  %v8300_v63 = vrot.slane %v8299_v56, 4  ;;  %v8386_v0 = vadd.f32 %v8385_v51, %v8380_v59  ;;  %v8381_v4 = vmul.f32 %v7386_v53, %v7386_v53 }
 0x4e4   :  { %v8318_v3 = vrot.slane %v8317_v60, 4  ;;  %v8404_v2 = vadd.f32 %v8403_v52, %v8382_v58  ;;  %8291 = vst [vmem:[%s14804_s2 + $0x30] sm:$0xff] %v9563_v61  ;;  %v9564_v6 = vpack.c.bf16 %v8234_v54, %v8232_v48  ;;  %v8326_v7 = vadd.f32 %v8325_v49, %v8234_v54 }
 0x4e5   :  { %v8309_v5 = vrot.slane %v8308_v62, 4  ;;  %v8301_v8 = vadd.f32 %v8300_v63, %v8299_v56  ;;  %v8387_v11 = vrot.slane %v8386_v0, 4  ;;  %v8395_v9 = vadd.f32 %v8394_v55, %v8381_v4 }
 0x4e6   :  { %v8319_v12 = vadd.f32 %v8318_v3, %v8317_v60  ;;  %v8405_v10 = vrot.slane %v8404_v2, 4  ;;  %8292 = vst [vmem:[%s14804_s2 + $0x38] sm:$0xff] %v9564_v6  ;;  %v8327_v14 = vrot.slane %v8326_v7, 4  ;;  %v8383_v15 = vmul.f32 %v8234_v54, %v8234_v54 }
 0x4e7   :  { %v8310_v13 = vadd.f32 %v8309_v5, %v8308_v62  ;;  %v8302_v16 = vrot.slane %v8301_v8, 2  ;;  %v8388_v19 = vadd.f32 %v8387_v11, %v8386_v0  ;;  %v8396_v18 = vrot.slane %v8395_v9, 4 }
 0x4e8   :  { %v8320_v17 = vrot.slane %v8319_v12, 2  ;;  %v8406_v20 = vadd.f32 %v8405_v10, %v8404_v2  ;;  %v8328_v22 = vadd.f32 %v8327_v14, %v8326_v7  ;;  %v8413_v23 = vadd.f32 %v8412_v57, %v8383_v15 }
 0x4e9   :  { %v8311_v21 = vrot.slane %v8310_v13, 2  ;;  %v8303_v24 = vadd.f32 %v8302_v16, %v8301_v8  ;;  %v8389_v26 = vrot.slane %v8388_v19, 2  ;;  %v8397_v27 = vadd.f32 %v8396_v18, %v8395_v9 }
 0x4ea   :  { %v8321_v25 = vadd.f32 %v8320_v17, %v8319_v12  ;;  %v8407_v28 = vrot.slane %v8406_v20, 2  ;;  %v8329_v30 = vrot.slane %v8328_v22, 2  ;;  %v8414_v31 = vrot.slane %v8413_v23, 4 }
 0x4eb   :  { %v8312_v29 = vadd.f32 %v8311_v21, %v8310_v13  ;;  %v8304_v32 = vrot.slane %v8303_v24, 1  ;;  %v8390_v34 = vadd.f32 %v8389_v26, %v8388_v19  ;;  %v8398_v33 = vrot.slane %v8397_v27, 2 }
 0x4ec   :  { %v8322_v36 = vrot.slane %v8321_v25, 1  ;;  %v8408_v37 = vadd.f32 %v8407_v28, %v8406_v20  ;;  %v8330_v39 = vadd.f32 %v8329_v30, %v8328_v22  ;;  %v8415_v40 = vadd.f32 %v8414_v31, %v8413_v23 }
 0x4ed   :  { %v8313_v38 = vrot.slane %v8312_v29, 1  ;;  %v8305_v42 = vadd.f32 %v8304_v32, %v8303_v24  ;;  %v8391_v44 = vrot.slane %v8390_v34, 1  ;;  %v8399_v43 = vadd.f32 %v8398_v33, %v8397_v27 }
 0x4ee   :  { %v8323_v41 = vadd.f32 %v8322_v36, %v8321_v25  ;;  %v8409_v45 = vrot.slane %v8408_v37, 1  ;;  %v8331_v47 = vrot.slane %v8330_v39, 1  ;;  %v8416_v48 = vrot.slane %v8415_v40, 2 }
 0x4ef   :  { %v8314_v46 = vadd.f32 %v8313_v38, %v8312_v29  ;;  %v8392_v51 = vadd.f32 %v8391_v44, %v8390_v34  ;;  %v8400_v52 = vrot.slane %v8399_v43, 1 }
 0x4f0   :  { %v8332_v50 = vadd.f32 %v8331_v47, %v8330_v39  ;;  %v8417_v53 = vadd.f32 %v8416_v48, %v8415_v40  ;;  %v8410_v55 = vadd.f32 %v8409_v45, %v8408_v37 }
 0x4f1   :  { %v8337_v49 = vcombine.low %v8305_v42, %v8314_v46  ;;  %v8401_v54 = vadd.f32 %v8400_v52, %v8399_v43 }
 0x4f2   :  { %v8338_v59 = vcombine.low %v8323_v41, %v8332_v50  ;;  %v8418_v60 = vrot.slane %v8417_v53, 1 }
 0x4f3   :  { %v8345_v56 = vrot.slane %v8337_v49, %v14774_v35  ;;  %v8424_v57 = vcombine.low %v8392_v51, %v8401_v54 }
 0x4f4   :  { %v8352_v58 = vrot.slane %v8338_v59, %v14774_v35  ;;  %v8419_v61 = vadd.f32 %v8418_v60, %v8417_v53 }
 0x4f5   :  { %v8432_v62 = vrot.slane %v8424_v57, %v14774_v35 }
 0x4f6   :  { %v8353_v63 = vcombine.low %v8345_v56, %v8352_v58  ;;  %v8425_v0 = vcombine.low %v8410_v55, %v8419_v61 }
 0x4f8   :  { %v8360_v3 = vrot.slane %v8353_v63, %v14774_v35  ;;  %v8439_v4 = vrot.slane %v8425_v0, %v14774_v35 }
 0x4fa   :  { %8366 = vst.msk [vmem:[%s14803_s3] ss:$8 sm:$0xf] %vm8364_vm0, %v8360_v3  ;;  %v8440_v2 = vcombine.low %v8432_v62, %v8439_v4 }
 0x4fc   :  { %v8447_v5 = vrot.slane %v8440_v2, %v14774_v35 }
 0x4fe   :  { %9556 = vst.msk [vmem:[%s14803_s3 + $0x1] ss:$8 sm:$0xf] %vm8364_vm0, %v8447_v5 }

</bundles_post_ra>
